<compile_context>
chip_gen: v5e
topology: v5e:2x2
jax: 0.10.0
libtpu: 0.0.40
codegen_flags: <defaults>
</compile_context>

<pallas_src>
import functools

import jax
import jax.numpy as jnp
from jax.experimental import pallas as pl
from jax.experimental.pallas import tpu as pltpu


# ------------------------------ Pallas kernel -------------------------------

def _mee_kernel(xp_ref, wtap_ref, wout_ref, bout_ref, o_ref, *, H, Wp, C):
    # xp_ref  : (Hp*Wp, C)     zero-padded image (4 rows top/bottom, 3 cols
    #                          left/right), NHWC flattened row-major over (y,x)
    # wtap_ref: (27, C, C//2)  per-tap conv weights; last dim = [branch1|branch2],
    #                          /3 already folded in
    # wout_ref: (C//2, 2*C)    block-diagonal [[FC1.T, 0], [0, FC2.T]]
    # bout_ref: (1, 2*C)       [FC1.bias | FC2.bias]
    # o_ref   : (H*Wp, 2*C)    [x1 | x2] on the W-padded grid (caller crops W pad)
    rows = H * Wp
    base = 4 * Wp                      # flat index of padded row y=4, col x=0

    # Sum of the 2 x 3 dilated 3x3 convs (both branches at once), accumulated
    # in registers/VMEM.  A tap with offsets (dy, dx) is a constant row shift
    # of dy*Wp + dx in the flattened padded image; for every *valid* output
    # column the shifted read is exactly the conv's zero-padded neighbor
    # (wrap-around garbage only lands in the W-pad columns, cropped later).
    acc = jnp.zeros((rows, C // 2), jnp.float32)
    t = 0
    for d in (1, 2, 3):                # dilation of FC{1,2}{1,2,3}
        for ky in range(3):
            for kx in range(3):
                shift = (ky - 1) * d * Wp + (kx - 1) * d
                win = xp_ref[pl.ds(base + shift, rows), :]          # (rows, C)
                acc = acc + jnp.dot(win, wtap_ref[t],
                                    preferred_element_type=jnp.float32)
                t += 1

    acc = jnp.maximum(acc, 0.0)        # ReLU on both branches

    # Fused 1x1 convs: block-diagonal matmul -> lane-dense (rows, 2*C) output.
    y = jnp.dot(acc, wout_ref[...], preferred_element_type=jnp.float32)
    o_ref[...] = y + bout_ref[...]


# --------------------------------- wrapper ----------------------------------

def mee_forward(x_nchw, wtap, wout, bout):
    B, C, H, W = x_nchw.shape
    assert H % 8 == 0, "H must be a multiple of 8 for the chosen BlockSpecs"
    Hp, Wp = H + 8, W + 6              # 4/4 rows, 3/3 cols of zero padding

    # Single layout conversion on entry: NCHW -> padded, flattened NHWC tokens.
    x_nhwc = jnp.transpose(x_nchw, (0, 2, 3, 1))                    # (B,H,W,C)
    xp = jnp.pad(x_nhwc, ((0, 0), (4, 4), (3, 3), (0, 0)))          # (B,Hp,Wp,C)
    xp = xp.reshape(B, Hp * Wp, C)

    kern = functools.partial(_mee_kernel, H=H, Wp=Wp, C=C)
    y = pl.pallas_call(
        kern,
        out_shape=jax.ShapeDtypeStruct((B, H * Wp, 2 * C), jnp.float32),
        grid=(B,),
        in_specs=[
            pl.BlockSpec((None, Hp * Wp, C), lambda b: (b, 0, 0)),   # image b
            pl.BlockSpec((27, C, C // 2), lambda b: (0, 0, 0)),      # tap weights
            pl.BlockSpec((C // 2, 2 * C), lambda b: (0, 0)),         # 1x1 weights
            pl.BlockSpec((1, 2 * C), lambda b: (0, 0)),              # biases
        ],
        out_specs=pl.BlockSpec((None, H * Wp, 2 * C), lambda b: (b, 0, 0)),
        compiler_params=pltpu.CompilerParams(
            dimension_semantics=("parallel",)),                      # 2 TCs on v7x
    )(xp, wtap, wout, bout)

    # Single layout conversion on exit: crop W padding, split branches, NCHW.
    y = y.reshape(B, H, Wp, 2 * C)[:, :, 3:3 + W, :]                 # (B,H,W,2C)
    x1 = jnp.transpose(y[..., :C], (0, 3, 1, 2))
    x2 = jnp.transpose(y[..., C:], (0, 3, 1, 2))
    # TODO(synk): nn.Dropout(p=0.01) is identity in eval mode; training-mode stochastic dropout is not implemented.
    return jnp.concatenate([x_nchw, x1, x2], axis=0)                 # cat along batch


# --------------------- weight prep (torch layout -> kernel) ------------------

def prep_params(p, C):
    c4 = C // 4
    taps = []
    for wb1, wb2 in ((p['FC11'], p['FC21']),
                     (p['FC12'], p['FC22']),
                     (p['FC13'], p['FC23'])):          # dilation 1, 2, 3
        for ky in range(3):
            for kx in range(3):
                w1 = wb1[:, :, ky, kx].T / 3.0          # (C, C//4), /3 folded
                w2 = wb2[:, :, ky, kx].T / 3.0
                taps.append(jnp.concatenate([w1, w2], axis=1))       # (C, C//2)
    wtap = jnp.stack(taps, axis=0).astype(jnp.float32)               # (27,C,C//2)

    wout = jnp.zeros((C // 2, 2 * C), jnp.float32)                   # block-diag
    wout = wout.at[:c4, :C].set(p['FC1_w'].reshape(C, c4).T)
    wout = wout.at[c4:, C:].set(p['FC2_w'].reshape(C, c4).T)
    bout = jnp.concatenate([p['FC1_b'], p['FC2_b']]).reshape(1, 2 * C)
    return wtap, wout, bout.astype(jnp.float32)


# ----------------------- plain-JAX reference (for check) ---------------------

def ref_forward(x, p):
    hp = jax.lax.Precision.HIGHEST

    def dil_conv(x, w, d):
        return jax.lax.conv_general_dilated(
            x, w, window_strides=(1, 1), padding=[(d, d), (d, d)],
            rhs_dilation=(d, d), dimension_numbers=('NCHW', 'OIHW', 'NCHW'),
            precision=hp)

    def conv1x1(x, w, b):
        y = jax.lax.conv_general_dilated(
            x, w, window_strides=(1, 1), padding=[(0, 0), (0, 0)],
            dimension_numbers=('NCHW', 'OIHW', 'NCHW'), precision=hp)
        return y + b.reshape(1, -1, 1, 1)

    x1 = (dil_conv(x, p['FC11'], 1) + dil_conv(x, p['FC12'], 2)
          + dil_conv(x, p['FC13'], 3)) / 3.0
    x1 = conv1x1(jnp.maximum(x1, 0.0), p['FC1_w'], p['FC1_b'])
    x2 = (dil_conv(x, p['FC21'], 1) + dil_conv(x, p['FC22'], 2)
          + dil_conv(x, p['FC23'], 3)) / 3.0
    x2 = conv1x1(jnp.maximum(x2, 0.0), p['FC2_w'], p['FC2_b'])
    return jnp.concatenate([x, x1, x2], axis=0)


# ----------------------------------- main ------------------------------------

if __name__ == "__main__":
    # MEE_module(channel=64) on a (2, 64, 16, 16) input.
    B, C, H, W = 2, 64, 16, 16
    key = jax.random.PRNGKey(0)
    ks = jax.random.split(key, 11)

    def nrm(k, shape, fan_in):
        return (jnp.sqrt(2.0 / fan_in) * jax.random.normal(k, shape)).astype(jnp.float32)

    p = {
        'FC11': nrm(ks[0], (C // 4, C, 3, 3), C * 9),
        'FC12': nrm(ks[1], (C // 4, C, 3, 3), C * 9),
        'FC13': nrm(ks[2], (C // 4, C, 3, 3), C * 9),
        'FC21': nrm(ks[3], (C // 4, C, 3, 3), C * 9),
        'FC22': nrm(ks[4], (C // 4, C, 3, 3), C * 9),
        'FC23': nrm(ks[5], (C // 4, C, 3, 3), C * 9),
        'FC1_w': nrm(ks[6], (C, C // 4, 1, 1), C // 4),
        'FC1_b': nrm(ks[7], (C,), C // 4),
        'FC2_w': nrm(ks[8], (C, C // 4, 1, 1), C // 4),
        'FC2_b': nrm(ks[9], (C,), C // 4),
    }
    x = jax.random.normal(ks[10], (B, C, H, W), jnp.float32)

    wtap, wout, bout = prep_params(p, C)

    out = jax.jit(mee_forward)(x, wtap, wout, bout)
    jax.block_until_ready(out)
    assert out.shape == (3 * B, C, H, W) and out.dtype == jnp.float32

    ref = jax.jit(ref_forward)(x, p)
    jax.block_until_ready(ref)
    err = float(jnp.max(jnp.abs(out - ref)))
    assert err < 5e-3, f"mismatch vs reference: max |diff| = {err}"

    print("KERNEL_OK")
</pallas_src>

<mosaic_0001>
module attributes {stable_mosaic.version = 11 : i64} {
  func.func @_mee_kernel(%arg0: i32, %arg1: memref<1x528x64xf32, #tpu.memory_space<vmem>>, %arg2: memref<27x64x32xf32, #tpu.memory_space<vmem>>, %arg3: memref<32x128xf32, #tpu.memory_space<vmem>>, %arg4: memref<1x128xf32, #tpu.memory_space<vmem>>, %arg5: memref<1x352x128xf32, #tpu.memory_space<vmem>>) attributes {dimension_semantics = [#tpu.dimension_semantics<parallel>], iteration_bounds = array<i64: 2>, scalar_prefetch = 0 : i64, scratch_operands = 0 : i64, tpu.core_type = #tpu.core_type<tc>, window_params = [{transform_indices = @transform_0, window_bounds = array<i64: 1, 528, 64>}, {pipeline_mode = #tpu.pipeline_mode<synchronous>, transform_indices = @transform_1, window_bounds = array<i64: 27, 64, 32>}, {pipeline_mode = #tpu.pipeline_mode<synchronous>, transform_indices = @transform_2, window_bounds = array<i64: 32, 128>}, {pipeline_mode = #tpu.pipeline_mode<synchronous>, transform_indices = @transform_3, window_bounds = array<i64: 1, 128>}, {transform_indices = @transform_4, window_bounds = array<i64: 1, 352, 128>}]} {
    %cst = arith.constant 0.000000e+00 : f32
    %0 = vector.broadcast %cst : f32 to vector<352x32xf32>
    %c0 = arith.constant 0 : index
    %c65 = arith.constant 65 : index
    %c0_0 = arith.constant 0 : index
    %1 = vector.load %arg1[%c0, %c65, %c0_0] : memref<1x528x64xf32, #tpu.memory_space<vmem>>, vector<1x352x64xf32>
    %2 = vector.shape_cast %1 : vector<1x352x64xf32> to vector<352x64xf32>
    %c0_1 = arith.constant 0 : index
    %c0_2 = arith.constant 0 : index
    %c0_3 = arith.constant 0 : index
    %3 = vector.load %arg2[%c0_1, %c0_2, %c0_3] : memref<27x64x32xf32, #tpu.memory_space<vmem>>, vector<1x64x32xf32>
    %4 = vector.shape_cast %3 : vector<1x64x32xf32> to vector<64x32xf32>
    %cst_4 = arith.constant dense<0.000000e+00> : vector<352x32xf32>
    %5 = tpu.matmul %2, %4, %cst_4 {dimension_numbers = #tpu.dot_dimension_numbers<[1], [0], [0], [1], [0, 0, 1, 1], [], []>} : vector<352x64xf32>, vector<64x32xf32>, vector<352x32xf32> -> vector<352x32xf32>
    %6 = arith.addf %0, %5 : vector<352x32xf32>
    %c0_5 = arith.constant 0 : index
    %c66 = arith.constant 66 : index
    %c0_6 = arith.constant 0 : index
    %7 = vector.load %arg1[%c0_5, %c66, %c0_6] : memref<1x528x64xf32, #tpu.memory_space<vmem>>, vector<1x352x64xf32>
    %8 = vector.shape_cast %7 : vector<1x352x64xf32> to vector<352x64xf32>
    %c1 = arith.constant 1 : index
    %c0_7 = arith.constant 0 : index
    %c0_8 = arith.constant 0 : index
    %9 = vector.load %arg2[%c1, %c0_7, %c0_8] : memref<27x64x32xf32, #tpu.memory_space<vmem>>, vector<1x64x32xf32>
    %10 = vector.shape_cast %9 : vector<1x64x32xf32> to vector<64x32xf32>
    %cst_9 = arith.constant dense<0.000000e+00> : vector<352x32xf32>
    %11 = tpu.matmul %8, %10, %cst_9 {dimension_numbers = #tpu.dot_dimension_numbers<[1], [0], [0], [1], [0, 0, 1, 1], [], []>} : vector<352x64xf32>, vector<64x32xf32>, vector<352x32xf32> -> vector<352x32xf32>
    %12 = arith.addf %6, %11 : vector<352x32xf32>
    %c0_10 = arith.constant 0 : index
    %c67 = arith.constant 67 : index
    %c0_11 = arith.constant 0 : index
    %13 = vector.load %arg1[%c0_10, %c67, %c0_11] : memref<1x528x64xf32, #tpu.memory_space<vmem>>, vector<1x352x64xf32>
    %14 = vector.shape_cast %13 : vector<1x352x64xf32> to vector<352x64xf32>
    %c2 = arith.constant 2 : index
    %c0_12 = arith.constant 0 : index
    %c0_13 = arith.constant 0 : index
    %15 = vector.load %arg2[%c2, %c0_12, %c0_13] : memref<27x64x32xf32, #tpu.memory_space<vmem>>, vector<1x64x32xf32>
    %16 = vector.shape_cast %15 : vector<1x64x32xf32> to vector<64x32xf32>
    %cst_14 = arith.constant dense<0.000000e+00> : vector<352x32xf32>
    %17 = tpu.matmul %14, %16, %cst_14 {dimension_numbers = #tpu.dot_dimension_numbers<[1], [0], [0], [1], [0, 0, 1, 1], [], []>} : vector<352x64xf32>, vector<64x32xf32>, vector<352x32xf32> -> vector<352x32xf32>
    %18 = arith.addf %12, %17 : vector<352x32xf32>
    %c0_15 = arith.constant 0 : index
    %c87 = arith.constant 87 : index
    %c0_16 = arith.constant 0 : index
    %19 = vector.load %arg1[%c0_15, %c87, %c0_16] : memref<1x528x64xf32, #tpu.memory_space<vmem>>, vector<1x352x64xf32>
    %20 = vector.shape_cast %19 : vector<1x352x64xf32> to vector<352x64xf32>
    %c3 = arith.constant 3 : index
    %c0_17 = arith.constant 0 : index
    %c0_18 = arith.constant 0 : index
    %21 = vector.load %arg2[%c3, %c0_17, %c0_18] : memref<27x64x32xf32, #tpu.memory_space<vmem>>, vector<1x64x32xf32>
    %22 = vector.shape_cast %21 : vector<1x64x32xf32> to vector<64x32xf32>
    %cst_19 = arith.constant dense<0.000000e+00> : vector<352x32xf32>
    %23 = tpu.matmul %20, %22, %cst_19 {dimension_numbers = #tpu.dot_dimension_numbers<[1], [0], [0], [1], [0, 0, 1, 1], [], []>} : vector<352x64xf32>, vector<64x32xf32>, vector<352x32xf32> -> vector<352x32xf32>
    %24 = arith.addf %18, %23 : vector<352x32xf32>
    %c0_20 = arith.constant 0 : index
    %c88 = arith.constant 88 : index
    %c0_21 = arith.constant 0 : index
    %25 = vector.load %arg1[%c0_20, %c88, %c0_21] : memref<1x528x64xf32, #tpu.memory_space<vmem>>, vector<1x352x64xf32>
    %26 = vector.shape_cast %25 : vector<1x352x64xf32> to vector<352x64xf32>
    %c4 = arith.constant 4 : index
    %c0_22 = arith.constant 0 : index
    %c0_23 = arith.constant 0 : index
    %27 = vector.load %arg2[%c4, %c0_22, %c0_23] : memref<27x64x32xf32, #tpu.memory_space<vmem>>, vector<1x64x32xf32>
    %28 = vector.shape_cast %27 : vector<1x64x32xf32> to vector<64x32xf32>
    %cst_24 = arith.constant dense<0.000000e+00> : vector<352x32xf32>
    %29 = tpu.matmul %26, %28, %cst_24 {dimension_numbers = #tpu.dot_dimension_numbers<[1], [0], [0], [1], [0, 0, 1, 1], [], []>} : vector<352x64xf32>, vector<64x32xf32>, vector<352x32xf32> -> vector<352x32xf32>
    %30 = arith.addf %24, %29 : vector<352x32xf32>
    %c0_25 = arith.constant 0 : index
    %c89 = arith.constant 89 : index
    %c0_26 = arith.constant 0 : index
    %31 = vector.load %arg1[%c0_25, %c89, %c0_26] : memref<1x528x64xf32, #tpu.memory_space<vmem>>, vector<1x352x64xf32>
    %32 = vector.shape_cast %31 : vector<1x352x64xf32> to vector<352x64xf32>
    %c5 = arith.constant 5 : index
    %c0_27 = arith.constant 0 : index
    %c0_28 = arith.constant 0 : index
    %33 = vector.load %arg2[%c5, %c0_27, %c0_28] : memref<27x64x32xf32, #tpu.memory_space<vmem>>, vector<1x64x32xf32>
    %34 = vector.shape_cast %33 : vector<1x64x32xf32> to vector<64x32xf32>
    %cst_29 = arith.constant dense<0.000000e+00> : vector<352x32xf32>
    %35 = tpu.matmul %32, %34, %cst_29 {dimension_numbers = #tpu.dot_dimension_numbers<[1], [0], [0], [1], [0, 0, 1, 1], [], []>} : vector<352x64xf32>, vector<64x32xf32>, vector<352x32xf32> -> vector<352x32xf32>
    %36 = arith.addf %30, %35 : vector<352x32xf32>
    %c0_30 = arith.constant 0 : index
    %c109 = arith.constant 109 : index
    %c0_31 = arith.constant 0 : index
    %37 = vector.load %arg1[%c0_30, %c109, %c0_31] : memref<1x528x64xf32, #tpu.memory_space<vmem>>, vector<1x352x64xf32>
    %38 = vector.shape_cast %37 : vector<1x352x64xf32> to vector<352x64xf32>
    %c6 = arith.constant 6 : index
    %c0_32 = arith.constant 0 : index
    %c0_33 = arith.constant 0 : index
    %39 = vector.load %arg2[%c6, %c0_32, %c0_33] : memref<27x64x32xf32, #tpu.memory_space<vmem>>, vector<1x64x32xf32>
    %40 = vector.shape_cast %39 : vector<1x64x32xf32> to vector<64x32xf32>
    %cst_34 = arith.constant dense<0.000000e+00> : vector<352x32xf32>
    %41 = tpu.matmul %38, %40, %cst_34 {dimension_numbers = #tpu.dot_dimension_numbers<[1], [0], [0], [1], [0, 0, 1, 1], [], []>} : vector<352x64xf32>, vector<64x32xf32>, vector<352x32xf32> -> vector<352x32xf32>
    %42 = arith.addf %36, %41 : vector<352x32xf32>
    %c0_35 = arith.constant 0 : index
    %c110 = arith.constant 110 : index
    %c0_36 = arith.constant 0 : index
    %43 = vector.load %arg1[%c0_35, %c110, %c0_36] : memref<1x528x64xf32, #tpu.memory_space<vmem>>, vector<1x352x64xf32>
    %44 = vector.shape_cast %43 : vector<1x352x64xf32> to vector<352x64xf32>
    %c7 = arith.constant 7 : index
    %c0_37 = arith.constant 0 : index
    %c0_38 = arith.constant 0 : index
    %45 = vector.load %arg2[%c7, %c0_37, %c0_38] : memref<27x64x32xf32, #tpu.memory_space<vmem>>, vector<1x64x32xf32>
    %46 = vector.shape_cast %45 : vector<1x64x32xf32> to vector<64x32xf32>
    %cst_39 = arith.constant dense<0.000000e+00> : vector<352x32xf32>
    %47 = tpu.matmul %44, %46, %cst_39 {dimension_numbers = #tpu.dot_dimension_numbers<[1], [0], [0], [1], [0, 0, 1, 1], [], []>} : vector<352x64xf32>, vector<64x32xf32>, vector<352x32xf32> -> vector<352x32xf32>
    %48 = arith.addf %42, %47 : vector<352x32xf32>
    %c0_40 = arith.constant 0 : index
    %c111 = arith.constant 111 : index
    %c0_41 = arith.constant 0 : index
    %49 = vector.load %arg1[%c0_40, %c111, %c0_41] : memref<1x528x64xf32, #tpu.memory_space<vmem>>, vector<1x352x64xf32>
    %50 = vector.shape_cast %49 : vector<1x352x64xf32> to vector<352x64xf32>
    %c8 = arith.constant 8 : index
    %c0_42 = arith.constant 0 : index
    %c0_43 = arith.constant 0 : index
    %51 = vector.load %arg2[%c8, %c0_42, %c0_43] : memref<27x64x32xf32, #tpu.memory_space<vmem>>, vector<1x64x32xf32>
    %52 = vector.shape_cast %51 : vector<1x64x32xf32> to vector<64x32xf32>
    %cst_44 = arith.constant dense<0.000000e+00> : vector<352x32xf32>
    %53 = tpu.matmul %50, %52, %cst_44 {dimension_numbers = #tpu.dot_dimension_numbers<[1], [0], [0], [1], [0, 0, 1, 1], [], []>} : vector<352x64xf32>, vector<64x32xf32>, vector<352x32xf32> -> vector<352x32xf32>
    %54 = arith.addf %48, %53 : vector<352x32xf32>
    %c0_45 = arith.constant 0 : index
    %c42 = arith.constant 42 : index
    %c0_46 = arith.constant 0 : index
    %55 = vector.load %arg1[%c0_45, %c42, %c0_46] : memref<1x528x64xf32, #tpu.memory_space<vmem>>, vector<1x352x64xf32>
    %56 = vector.shape_cast %55 : vector<1x352x64xf32> to vector<352x64xf32>
    %c9 = arith.constant 9 : index
    %c0_47 = arith.constant 0 : index
    %c0_48 = arith.constant 0 : index
    %57 = vector.load %arg2[%c9, %c0_47, %c0_48] : memref<27x64x32xf32, #tpu.memory_space<vmem>>, vector<1x64x32xf32>
    %58 = vector.shape_cast %57 : vector<1x64x32xf32> to vector<64x32xf32>
    %cst_49 = arith.constant dense<0.000000e+00> : vector<352x32xf32>
    %59 = tpu.matmul %56, %58, %cst_49 {dimension_numbers = #tpu.dot_dimension_numbers<[1], [0], [0], [1], [0, 0, 1, 1], [], []>} : vector<352x64xf32>, vector<64x32xf32>, vector<352x32xf32> -> vector<352x32xf32>
    %60 = arith.addf %54, %59 : vector<352x32xf32>
    %c0_50 = arith.constant 0 : index
    %c44 = arith.constant 44 : index
    %c0_51 = arith.constant 0 : index
    %61 = vector.load %arg1[%c0_50, %c44, %c0_51] : memref<1x528x64xf32, #tpu.memory_space<vmem>>, vector<1x352x64xf32>
    %62 = vector.shape_cast %61 : vector<1x352x64xf32> to vector<352x64xf32>
    %c10 = arith.constant 10 : index
    %c0_52 = arith.constant 0 : index
    %c0_53 = arith.constant 0 : index
    %63 = vector.load %arg2[%c10, %c0_52, %c0_53] : memref<27x64x32xf32, #tpu.memory_space<vmem>>, vector<1x64x32xf32>
    %64 = vector.shape_cast %63 : vector<1x64x32xf32> to vector<64x32xf32>
    %cst_54 = arith.constant dense<0.000000e+00> : vector<352x32xf32>
    %65 = tpu.matmul %62, %64, %cst_54 {dimension_numbers = #tpu.dot_dimension_numbers<[1], [0], [0], [1], [0, 0, 1, 1], [], []>} : vector<352x64xf32>, vector<64x32xf32>, vector<352x32xf32> -> vector<352x32xf32>
    %66 = arith.addf %60, %65 : vector<352x32xf32>
    %c0_55 = arith.constant 0 : index
    %c46 = arith.constant 46 : index
    %c0_56 = arith.constant 0 : index
    %67 = vector.load %arg1[%c0_55, %c46, %c0_56] : memref<1x528x64xf32, #tpu.memory_space<vmem>>, vector<1x352x64xf32>
    %68 = vector.shape_cast %67 : vector<1x352x64xf32> to vector<352x64xf32>
    %c11 = arith.constant 11 : index
    %c0_57 = arith.constant 0 : index
    %c0_58 = arith.constant 0 : index
    %69 = vector.load %arg2[%c11, %c0_57, %c0_58] : memref<27x64x32xf32, #tpu.memory_space<vmem>>, vector<1x64x32xf32>
    %70 = vector.shape_cast %69 : vector<1x64x32xf32> to vector<64x32xf32>
    %cst_59 = arith.constant dense<0.000000e+00> : vector<352x32xf32>
    %71 = tpu.matmul %68, %70, %cst_59 {dimension_numbers = #tpu.dot_dimension_numbers<[1], [0], [0], [1], [0, 0, 1, 1], [], []>} : vector<352x64xf32>, vector<64x32xf32>, vector<352x32xf32> -> vector<352x32xf32>
    %72 = arith.addf %66, %71 : vector<352x32xf32>
    %c0_60 = arith.constant 0 : index
    %c86 = arith.constant 86 : index
    %c0_61 = arith.constant 0 : index
    %73 = vector.load %arg1[%c0_60, %c86, %c0_61] : memref<1x528x64xf32, #tpu.memory_space<vmem>>, vector<1x352x64xf32>
    %74 = vector.shape_cast %73 : vector<1x352x64xf32> to vector<352x64xf32>
    %c12 = arith.constant 12 : index
    %c0_62 = arith.constant 0 : index
    %c0_63 = arith.constant 0 : index
    %75 = vector.load %arg2[%c12, %c0_62, %c0_63] : memref<27x64x32xf32, #tpu.memory_space<vmem>>, vector<1x64x32xf32>
    %76 = vector.shape_cast %75 : vector<1x64x32xf32> to vector<64x32xf32>
    %cst_64 = arith.constant dense<0.000000e+00> : vector<352x32xf32>
    %77 = tpu.matmul %74, %76, %cst_64 {dimension_numbers = #tpu.dot_dimension_numbers<[1], [0], [0], [1], [0, 0, 1, 1], [], []>} : vector<352x64xf32>, vector<64x32xf32>, vector<352x32xf32> -> vector<352x32xf32>
    %78 = arith.addf %72, %77 : vector<352x32xf32>
    %c0_65 = arith.constant 0 : index
    %c88_66 = arith.constant 88 : index
    %c0_67 = arith.constant 0 : index
    %79 = vector.load %arg1[%c0_65, %c88_66, %c0_67] : memref<1x528x64xf32, #tpu.memory_space<vmem>>, vector<1x352x64xf32>
    %80 = vector.shape_cast %79 : vector<1x352x64xf32> to vector<352x64xf32>
    %c13 = arith.constant 13 : index
    %c0_68 = arith.constant 0 : index
    %c0_69 = arith.constant 0 : index
    %81 = vector.load %arg2[%c13, %c0_68, %c0_69] : memref<27x64x32xf32, #tpu.memory_space<vmem>>, vector<1x64x32xf32>
    %82 = vector.shape_cast %81 : vector<1x64x32xf32> to vector<64x32xf32>
    %cst_70 = arith.constant dense<0.000000e+00> : vector<352x32xf32>
    %83 = tpu.matmul %80, %82, %cst_70 {dimension_numbers = #tpu.dot_dimension_numbers<[1], [0], [0], [1], [0, 0, 1, 1], [], []>} : vector<352x64xf32>, vector<64x32xf32>, vector<352x32xf32> -> vector<352x32xf32>
    %84 = arith.addf %78, %83 : vector<352x32xf32>
    %c0_71 = arith.constant 0 : index
    %c90 = arith.constant 90 : index
    %c0_72 = arith.constant 0 : index
    %85 = vector.load %arg1[%c0_71, %c90, %c0_72] : memref<1x528x64xf32, #tpu.memory_space<vmem>>, vector<1x352x64xf32>
    %86 = vector.shape_cast %85 : vector<1x352x64xf32> to vector<352x64xf32>
    %c14 = arith.constant 14 : index
    %c0_73 = arith.constant 0 : index
    %c0_74 = arith.constant 0 : index
    %87 = vector.load %arg2[%c14, %c0_73, %c0_74] : memref<27x64x32xf32, #tpu.memory_space<vmem>>, vector<1x64x32xf32>
    %88 = vector.shape_cast %87 : vector<1x64x32xf32> to vector<64x32xf32>
    %cst_75 = arith.constant dense<0.000000e+00> : vector<352x32xf32>
    %89 = tpu.matmul %86, %88, %cst_75 {dimension_numbers = #tpu.dot_dimension_numbers<[1], [0], [0], [1], [0, 0, 1, 1], [], []>} : vector<352x64xf32>, vector<64x32xf32>, vector<352x32xf32> -> vector<352x32xf32>
    %90 = arith.addf %84, %89 : vector<352x32xf32>
    %c0_76 = arith.constant 0 : index
    %c130 = arith.constant 130 : index
    %c0_77 = arith.constant 0 : index
    %91 = vector.load %arg1[%c0_76, %c130, %c0_77] : memref<1x528x64xf32, #tpu.memory_space<vmem>>, vector<1x352x64xf32>
    %92 = vector.shape_cast %91 : vector<1x352x64xf32> to vector<352x64xf32>
    %c15 = arith.constant 15 : index
    %c0_78 = arith.constant 0 : index
    %c0_79 = arith.constant 0 : index
    %93 = vector.load %arg2[%c15, %c0_78, %c0_79] : memref<27x64x32xf32, #tpu.memory_space<vmem>>, vector<1x64x32xf32>
    %94 = vector.shape_cast %93 : vector<1x64x32xf32> to vector<64x32xf32>
    %cst_80 = arith.constant dense<0.000000e+00> : vector<352x32xf32>
    %95 = tpu.matmul %92, %94, %cst_80 {dimension_numbers = #tpu.dot_dimension_numbers<[1], [0], [0], [1], [0, 0, 1, 1], [], []>} : vector<352x64xf32>, vector<64x32xf32>, vector<352x32xf32> -> vector<352x32xf32>
    %96 = arith.addf %90, %95 : vector<352x32xf32>
    %c0_81 = arith.constant 0 : index
    %c132 = arith.constant 132 : index
    %c0_82 = arith.constant 0 : index
    %97 = vector.load %arg1[%c0_81, %c132, %c0_82] : memref<1x528x64xf32, #tpu.memory_space<vmem>>, vector<1x352x64xf32>
    %98 = vector.shape_cast %97 : vector<1x352x64xf32> to vector<352x64xf32>
    %c16 = arith.constant 16 : index
    %c0_83 = arith.constant 0 : index
    %c0_84 = arith.constant 0 : index
    %99 = vector.load %arg2[%c16, %c0_83, %c0_84] : memref<27x64x32xf32, #tpu.memory_space<vmem>>, vector<1x64x32xf32>
    %100 = vector.shape_cast %99 : vector<1x64x32xf32> to vector<64x32xf32>
    %cst_85 = arith.constant dense<0.000000e+00> : vector<352x32xf32>
    %101 = tpu.matmul %98, %100, %cst_85 {dimension_numbers = #tpu.dot_dimension_numbers<[1], [0], [0], [1], [0, 0, 1, 1], [], []>} : vector<352x64xf32>, vector<64x32xf32>, vector<352x32xf32> -> vector<352x32xf32>
    %102 = arith.addf %96, %101 : vector<352x32xf32>
    %c0_86 = arith.constant 0 : index
    %c134 = arith.constant 134 : index
    %c0_87 = arith.constant 0 : index
    %103 = vector.load %arg1[%c0_86, %c134, %c0_87] : memref<1x528x64xf32, #tpu.memory_space<vmem>>, vector<1x352x64xf32>
    %104 = vector.shape_cast %103 : vector<1x352x64xf32> to vector<352x64xf32>
    %c17 = arith.constant 17 : index
    %c0_88 = arith.constant 0 : index
    %c0_89 = arith.constant 0 : index
    %105 = vector.load %arg2[%c17, %c0_88, %c0_89] : memref<27x64x32xf32, #tpu.memory_space<vmem>>, vector<1x64x32xf32>
    %106 = vector.shape_cast %105 : vector<1x64x32xf32> to vector<64x32xf32>
    %cst_90 = arith.constant dense<0.000000e+00> : vector<352x32xf32>
    %107 = tpu.matmul %104, %106, %cst_90 {dimension_numbers = #tpu.dot_dimension_numbers<[1], [0], [0], [1], [0, 0, 1, 1], [], []>} : vector<352x64xf32>, vector<64x32xf32>, vector<352x32xf32> -> vector<352x32xf32>
    %108 = arith.addf %102, %107 : vector<352x32xf32>
    %c0_91 = arith.constant 0 : index
    %c19 = arith.constant 19 : index
    %c0_92 = arith.constant 0 : index
    %109 = vector.load %arg1[%c0_91, %c19, %c0_92] : memref<1x528x64xf32, #tpu.memory_space<vmem>>, vector<1x352x64xf32>
    %110 = vector.shape_cast %109 : vector<1x352x64xf32> to vector<352x64xf32>
    %c18 = arith.constant 18 : index
    %c0_93 = arith.constant 0 : index
    %c0_94 = arith.constant 0 : index
    %111 = vector.load %arg2[%c18, %c0_93, %c0_94] : memref<27x64x32xf32, #tpu.memory_space<vmem>>, vector<1x64x32xf32>
    %112 = vector.shape_cast %111 : vector<1x64x32xf32> to vector<64x32xf32>
    %cst_95 = arith.constant dense<0.000000e+00> : vector<352x32xf32>
    %113 = tpu.matmul %110, %112, %cst_95 {dimension_numbers = #tpu.dot_dimension_numbers<[1], [0], [0], [1], [0, 0, 1, 1], [], []>} : vector<352x64xf32>, vector<64x32xf32>, vector<352x32xf32> -> vector<352x32xf32>
    %114 = arith.addf %108, %113 : vector<352x32xf32>
    %c0_96 = arith.constant 0 : index
    %c22 = arith.constant 22 : index
    %c0_97 = arith.constant 0 : index
    %115 = vector.load %arg1[%c0_96, %c22, %c0_97] : memref<1x528x64xf32, #tpu.memory_space<vmem>>, vector<1x352x64xf32>
    %116 = vector.shape_cast %115 : vector<1x352x64xf32> to vector<352x64xf32>
    %c19_98 = arith.constant 19 : index
    %c0_99 = arith.constant 0 : index
    %c0_100 = arith.constant 0 : index
    %117 = vector.load %arg2[%c19_98, %c0_99, %c0_100] : memref<27x64x32xf32, #tpu.memory_space<vmem>>, vector<1x64x32xf32>
    %118 = vector.shape_cast %117 : vector<1x64x32xf32> to vector<64x32xf32>
    %cst_101 = arith.constant dense<0.000000e+00> : vector<352x32xf32>
    %119 = tpu.matmul %116, %118, %cst_101 {dimension_numbers = #tpu.dot_dimension_numbers<[1], [0], [0], [1], [0, 0, 1, 1], [], []>} : vector<352x64xf32>, vector<64x32xf32>, vector<352x32xf32> -> vector<352x32xf32>
    %120 = arith.addf %114, %119 : vector<352x32xf32>
    %c0_102 = arith.constant 0 : index
    %c25 = arith.constant 25 : index
    %c0_103 = arith.constant 0 : index
    %121 = vector.load %arg1[%c0_102, %c25, %c0_103] : memref<1x528x64xf32, #tpu.memory_space<vmem>>, vector<1x352x64xf32>
    %122 = vector.shape_cast %121 : vector<1x352x64xf32> to vector<352x64xf32>
    %c20 = arith.constant 20 : index
    %c0_104 = arith.constant 0 : index
    %c0_105 = arith.constant 0 : index
    %123 = vector.load %arg2[%c20, %c0_104, %c0_105] : memref<27x64x32xf32, #tpu.memory_space<vmem>>, vector<1x64x32xf32>
    %124 = vector.shape_cast %123 : vector<1x64x32xf32> to vector<64x32xf32>
    %cst_106 = arith.constant dense<0.000000e+00> : vector<352x32xf32>
    %125 = tpu.matmul %122, %124, %cst_106 {dimension_numbers = #tpu.dot_dimension_numbers<[1], [0], [0], [1], [0, 0, 1, 1], [], []>} : vector<352x64xf32>, vector<64x32xf32>, vector<352x32xf32> -> vector<352x32xf32>
    %126 = arith.addf %120, %125 : vector<352x32xf32>
    %c0_107 = arith.constant 0 : index
    %c85 = arith.constant 85 : index
    %c0_108 = arith.constant 0 : index
    %127 = vector.load %arg1[%c0_107, %c85, %c0_108] : memref<1x528x64xf32, #tpu.memory_space<vmem>>, vector<1x352x64xf32>
    %128 = vector.shape_cast %127 : vector<1x352x64xf32> to vector<352x64xf32>
    %c21 = arith.constant 21 : index
    %c0_109 = arith.constant 0 : index
    %c0_110 = arith.constant 0 : index
    %129 = vector.load %arg2[%c21, %c0_109, %c0_110] : memref<27x64x32xf32, #tpu.memory_space<vmem>>, vector<1x64x32xf32>
    %130 = vector.shape_cast %129 : vector<1x64x32xf32> to vector<64x32xf32>
    %cst_111 = arith.constant dense<0.000000e+00> : vector<352x32xf32>
    %131 = tpu.matmul %128, %130, %cst_111 {dimension_numbers = #tpu.dot_dimension_numbers<[1], [0], [0], [1], [0, 0, 1, 1], [], []>} : vector<352x64xf32>, vector<64x32xf32>, vector<352x32xf32> -> vector<352x32xf32>
    %132 = arith.addf %126, %131 : vector<352x32xf32>
    %c0_112 = arith.constant 0 : index
    %c88_113 = arith.constant 88 : index
    %c0_114 = arith.constant 0 : index
    %133 = vector.load %arg1[%c0_112, %c88_113, %c0_114] : memref<1x528x64xf32, #tpu.memory_space<vmem>>, vector<1x352x64xf32>
    %134 = vector.shape_cast %133 : vector<1x352x64xf32> to vector<352x64xf32>
    %c22_115 = arith.constant 22 : index
    %c0_116 = arith.constant 0 : index
    %c0_117 = arith.constant 0 : index
    %135 = vector.load %arg2[%c22_115, %c0_116, %c0_117] : memref<27x64x32xf32, #tpu.memory_space<vmem>>, vector<1x64x32xf32>
    %136 = vector.shape_cast %135 : vector<1x64x32xf32> to vector<64x32xf32>
    %cst_118 = arith.constant dense<0.000000e+00> : vector<352x32xf32>
    %137 = tpu.matmul %134, %136, %cst_118 {dimension_numbers = #tpu.dot_dimension_numbers<[1], [0], [0], [1], [0, 0, 1, 1], [], []>} : vector<352x64xf32>, vector<64x32xf32>, vector<352x32xf32> -> vector<352x32xf32>
    %138 = arith.addf %132, %137 : vector<352x32xf32>
    %c0_119 = arith.constant 0 : index
    %c91 = arith.constant 91 : index
    %c0_120 = arith.constant 0 : index
    %139 = vector.load %arg1[%c0_119, %c91, %c0_120] : memref<1x528x64xf32, #tpu.memory_space<vmem>>, vector<1x352x64xf32>
    %140 = vector.shape_cast %139 : vector<1x352x64xf32> to vector<352x64xf32>
    %c23 = arith.constant 23 : index
    %c0_121 = arith.constant 0 : index
    %c0_122 = arith.constant 0 : index
    %141 = vector.load %arg2[%c23, %c0_121, %c0_122] : memref<27x64x32xf32, #tpu.memory_space<vmem>>, vector<1x64x32xf32>
    %142 = vector.shape_cast %141 : vector<1x64x32xf32> to vector<64x32xf32>
    %cst_123 = arith.constant dense<0.000000e+00> : vector<352x32xf32>
    %143 = tpu.matmul %140, %142, %cst_123 {dimension_numbers = #tpu.dot_dimension_numbers<[1], [0], [0], [1], [0, 0, 1, 1], [], []>} : vector<352x64xf32>, vector<64x32xf32>, vector<352x32xf32> -> vector<352x32xf32>
    %144 = arith.addf %138, %143 : vector<352x32xf32>
    %c0_124 = arith.constant 0 : index
    %c151 = arith.constant 151 : index
    %c0_125 = arith.constant 0 : index
    %145 = vector.load %arg1[%c0_124, %c151, %c0_125] : memref<1x528x64xf32, #tpu.memory_space<vmem>>, vector<1x352x64xf32>
    %146 = vector.shape_cast %145 : vector<1x352x64xf32> to vector<352x64xf32>
    %c24 = arith.constant 24 : index
    %c0_126 = arith.constant 0 : index
    %c0_127 = arith.constant 0 : index
    %147 = vector.load %arg2[%c24, %c0_126, %c0_127] : memref<27x64x32xf32, #tpu.memory_space<vmem>>, vector<1x64x32xf32>
    %148 = vector.shape_cast %147 : vector<1x64x32xf32> to vector<64x32xf32>
    %cst_128 = arith.constant dense<0.000000e+00> : vector<352x32xf32>
    %149 = tpu.matmul %146, %148, %cst_128 {dimension_numbers = #tpu.dot_dimension_numbers<[1], [0], [0], [1], [0, 0, 1, 1], [], []>} : vector<352x64xf32>, vector<64x32xf32>, vector<352x32xf32> -> vector<352x32xf32>
    %150 = arith.addf %144, %149 : vector<352x32xf32>
    %c0_129 = arith.constant 0 : index
    %c154 = arith.constant 154 : index
    %c0_130 = arith.constant 0 : index
    %151 = vector.load %arg1[%c0_129, %c154, %c0_130] : memref<1x528x64xf32, #tpu.memory_space<vmem>>, vector<1x352x64xf32>
    %152 = vector.shape_cast %151 : vector<1x352x64xf32> to vector<352x64xf32>
    %c25_131 = arith.constant 25 : index
    %c0_132 = arith.constant 0 : index
    %c0_133 = arith.constant 0 : index
    %153 = vector.load %arg2[%c25_131, %c0_132, %c0_133] : memref<27x64x32xf32, #tpu.memory_space<vmem>>, vector<1x64x32xf32>
    %154 = vector.shape_cast %153 : vector<1x64x32xf32> to vector<64x32xf32>
    %cst_134 = arith.constant dense<0.000000e+00> : vector<352x32xf32>
    %155 = tpu.matmul %152, %154, %cst_134 {dimension_numbers = #tpu.dot_dimension_numbers<[1], [0], [0], [1], [0, 0, 1, 1], [], []>} : vector<352x64xf32>, vector<64x32xf32>, vector<352x32xf32> -> vector<352x32xf32>
    %156 = arith.addf %150, %155 : vector<352x32xf32>
    %c0_135 = arith.constant 0 : index
    %c157 = arith.constant 157 : index
    %c0_136 = arith.constant 0 : index
    %157 = vector.load %arg1[%c0_135, %c157, %c0_136] : memref<1x528x64xf32, #tpu.memory_space<vmem>>, vector<1x352x64xf32>
    %158 = vector.shape_cast %157 : vector<1x352x64xf32> to vector<352x64xf32>
    %c26 = arith.constant 26 : index
    %c0_137 = arith.constant 0 : index
    %c0_138 = arith.constant 0 : index
    %159 = vector.load %arg2[%c26, %c0_137, %c0_138] : memref<27x64x32xf32, #tpu.memory_space<vmem>>, vector<1x64x32xf32>
    %160 = vector.shape_cast %159 : vector<1x64x32xf32> to vector<64x32xf32>
    %cst_139 = arith.constant dense<0.000000e+00> : vector<352x32xf32>
    %161 = tpu.matmul %158, %160, %cst_139 {dimension_numbers = #tpu.dot_dimension_numbers<[1], [0], [0], [1], [0, 0, 1, 1], [], []>} : vector<352x64xf32>, vector<64x32xf32>, vector<352x32xf32> -> vector<352x32xf32>
    %162 = arith.addf %156, %161 : vector<352x32xf32>
    %cst_140 = arith.constant 0.000000e+00 : f32
    %163 = vector.broadcast %cst_140 : f32 to vector<352x32xf32>
    %164 = arith.maximumf %162, %163 : vector<352x32xf32>
    %c0_141 = arith.constant 0 : index
    %c0_142 = arith.constant 0 : index
    %165 = vector.load %arg3[%c0_141, %c0_142] : memref<32x128xf32, #tpu.memory_space<vmem>>, vector<32x128xf32>
    %cst_143 = arith.constant dense<0.000000e+00> : vector<352x128xf32>
    %166 = tpu.matmul %164, %165, %cst_143 {dimension_numbers = #tpu.dot_dimension_numbers<[1], [0], [0], [1], [0, 0, 1, 1], [], []>} : vector<352x32xf32>, vector<32x128xf32>, vector<352x128xf32> -> vector<352x128xf32>
    %c0_144 = arith.constant 0 : index
    %c0_145 = arith.constant 0 : index
    %167 = vector.load %arg4[%c0_144, %c0_145] : memref<1x128xf32, #tpu.memory_space<vmem>>, vector<1x128xf32>
    %168 = vector.broadcast %167 : vector<1x128xf32> to vector<352x128xf32>
    %169 = arith.addf %166, %168 : vector<352x128xf32>
    %c0_146 = arith.constant 0 : index
    %c0_147 = arith.constant 0 : index
    %c0_148 = arith.constant 0 : index
    %170 = vector.load %arg5[%c0_146, %c0_147, %c0_148] : memref<1x352x128xf32, #tpu.memory_space<vmem>>, vector<1x352x128xf32>
    %171 = vector.shape_cast %170 : vector<1x352x128xf32> to vector<352x128xf32>
    %172 = vector.shape_cast %169 : vector<352x128xf32> to vector<1x352x128xf32>
    tpu.vector_store %arg5[%c0_146, %c0_147, %c0_148], %172 {strides = array<i32>} : memref<1x352x128xf32, #tpu.memory_space<vmem>>, vector<1x352x128xf32>,
    return
  }
  func.func @transform_0(%arg0: i32) -> (i32, i32, i32) {
    %c0_i32 = arith.constant 0 : i32
    %c0_i32_0 = arith.constant 0 : i32
    %c0_i32_1 = arith.constant 0 : i32
    return %arg0, %c0_i32, %c0_i32_0 : i32, i32, i32
  }
  func.func @transform_1(%arg0: i32) -> (i32, i32, i32) {
    %c0_i32 = arith.constant 0 : i32
    %c0_i32_0 = arith.constant 0 : i32
    %c0_i32_1 = arith.constant 0 : i32
    %c0_i32_2 = arith.constant 0 : i32
    return %c0_i32, %c0_i32_0, %c0_i32_1 : i32, i32, i32
  }
  func.func @transform_2(%arg0: i32) -> (i32, i32) {
    %c0_i32 = arith.constant 0 : i32
    %c0_i32_0 = arith.constant 0 : i32
    %c0_i32_1 = arith.constant 0 : i32
    return %c0_i32, %c0_i32_0 : i32, i32
  }
  func.func @transform_3(%arg0: i32) -> (i32, i32) {
    %c0_i32 = arith.constant 0 : i32
    %c0_i32_0 = arith.constant 0 : i32
    %c0_i32_1 = arith.constant 0 : i32
    return %c0_i32, %c0_i32_0 : i32, i32
  }
  func.func @transform_4(%arg0: i32) -> (i32, i32, i32) {
    %c0_i32 = arith.constant 0 : i32
    %c0_i32_0 = arith.constant 0 : i32
    %c0_i32_1 = arith.constant 0 : i32
    return %arg0, %c0_i32, %c0_i32_0 : i32, i32, i32
  }
}

</mosaic_0001>

<bundles_post_ra>
// kernel: mee_forward.1
= control target key start
LH: loop header
LB: loop body
LE: loop exit
PB: predicated region body
PF: predicated region fallthrough
CT: control target
= control target key end

     0   :  { %s11978_s15 = smov 0   ;;  %s16277_s0 = inlined_call_operand.vmem [shape: f32[2,528,64], index: 0, kind: input, shape index: {}]   ;;  %s16278_s1 = inlined_call_operand.vmem [shape: f32[27,64,32], index: 1, kind: input, shape index: {}]   ;;  %s16279_s2 = inlined_call_operand.vmem [shape: f32[32,128], index: 2, kind: input, shape index: {}]   ;;  %s16280_s3 = inlined_call_operand.vmem [shape: f32[1,128], index: 3, kind: input, shape index: {}]   ;;  %s16281_s4 = inlined_call_operand.vmem [shape: f32[2,352,128], index: 4, kind: output, shape index: {}]  }
   0x1 LB: > { %s10397_s16 = sadd.s32 4294967295, %s11951_s15   ;;  %p10401_p0 = scmp.ge.s32.totalorder %s11951_s15, 1  ;;  %s11951_s15 = sphi %s11978_s15, %s14_s15  }
   0x2   : > { %p162_p1 = scmp.lt.s32.totalorder %s11951_s15, 3 }
   0x4   : > { %p163_p2 = pnand %p10401_p0, %p162_p1 }
   0x6   : > { %166 = sbr.rel (%p163_p2) target bundleno = 2756 (0xac4), region = 36 }
   0xb   : > { %v10411_v0 = vld [vmem:[%s16278_s1 + $0x78] sm:$0xff]  ;;  %v10410_v2 = vld [vmem:[%s16278_s1 + $0x70] sm:$0xff]  ;;  %p188_p3 = scmp.lt.s32.totalorder %s10397_s16, 1  ;;  %v10409_v6 = vld [vmem:[%s16278_s1 + $0x68] sm:$0xff]  ;;  %vm303_vm0 = vcmask 523264   ;;  %vm10016_vm1 = vcmask 261120  }
   0xc   : > { %v10507_v1 = vld [vmem:[%s16278_s1 + $0xb8] sm:$0xff]  ;;  %444 = vmatpush.msra.mxu0 %v10411_v0  ;;  %v10506_v4 = vld [vmem:[%s16278_s1 + $0xb0] sm:$0xff]  ;;  %v10505_v8 = vld [vmem:[%s16278_s1 + $0xa8] sm:$0xff] }
   0xd   : > { %1059 = vmatpush.msra.mxu2 %v10507_v1  ;;  %v249_v3 = vld [vmem:[%s16278_s1 + $0x38] sm:$0xff]  ;;  %v248_v7 = vld [vmem:[%s16278_s1 + $0x30] sm:$0xff]  ;;  %s16327_s16 = smov (!%p188_p3, %s10397_s16), 1  ;;  %v247_v10 = vld [vmem:[%s16278_s1 + $0x28] sm:$0xff] }
   0xe   : > { %v10559_v5 = vld [vmem:[%s16278_s1 + $0xf8] sm:$0xff]  ;;  %725 = vmatpush.msra.mxu1 %v249_v3  ;;  %445 = vmatpush.msra.mxu0 %v10410_v2  ;;  %v10558_v9 = vld [vmem:[%s16278_s1 + $0xf0] sm:$0xff]  ;;  %v10408_v11 = vld [vmem:[%s16278_s1 + $0x60] sm:$0xff]  ;;  %s11846_s29 = smul.u32 528, %s16327_s16 }
   0xf   : > { %1437 = vmatpush.msra.mxu3 %v10559_v5  ;;  %1060 = vmatpush.msra.mxu2 %v10506_v4  ;;  %v10504_v12 = vld [vmem:[%s16278_s1 + $0xa0] sm:$0xff]  ;;  %v10557_v13 = vld [vmem:[%s16278_s1 + $0xe8] sm:$0xff]  ;;  %v10407_v16 = vld [vmem:[%s16278_s1 + $0x58] sm:$0xff]  ;;  %s11847_s21 = smul.u32 352, %s16327_s16 }
  0x10   : > { %726 = vmatpush.msra.mxu1 %v248_v7  ;;  %446 = vmatpush.msra.mxu0 %v10409_v6  ;;  %v246_v14 = vld [vmem:[%s16278_s1 + $0x20] sm:$0xff]  ;;  %v10503_v17 = vld [vmem:[%s16278_s1 + $0x98] sm:$0xff]  ;;  %v10406_v20 = vld [vmem:[%s16278_s1 + $0x50] sm:$0xff]  ;;  %s12070_s24 = scalar_lea.vmem %s16277_s0, %s11846_s29 }
  0x11   : > { %1438 = vmatpush.msra.mxu3 %v10558_v9  ;;  %1061 = vmatpush.msra.mxu2 %v10505_v8  ;;  %v10556_v15 = vld [vmem:[%s16278_s1 + $0xe0] sm:$0xff]  ;;  %v245_v18 = vld [vmem:[%s16278_s1 + $0x18] sm:$0xff]  ;;  %v10502_v21 = vld [vmem:[%s16278_s1 + $0x90] sm:$0xff]  ;;  %s16047_s27 = scalar_lea.vmem %s16281_s4, %s11847_s21 }
  0x12   : > { %727 = vmatpush.msra.mxu1 %v247_v10  ;;  %447 = vmatpush.msra.mxu0 %v10408_v11  ;;  %v10555_v19 = vld [vmem:[%s16278_s1 + $0xd8] sm:$0xff]  ;;  %v244_v22 = vld [vmem:[%s16278_s1 + $0x10] sm:$0xff]  ;;  %v10405_v24 = vld [vmem:[%s16278_s1 + $0x48] sm:$0xff] }
  0x13   : > { %1439 = vmatpush.msra.mxu3 %v10557_v13  ;;  %1062 = vmatpush.msra.mxu2 %v10504_v12  ;;  %v10554_v23 = vld [vmem:[%s16278_s1 + $0xd0] sm:$0xff]  ;;  %v10501_v25 = vld [vmem:[%s16278_s1 + $0x88] sm:$0xff]  ;;  %v10404_v28 = vld [vmem:[%s16278_s1 + $0x40] sm:$0xff] }
  0x14   : > { %728 = vmatpush.msra.mxu1 %v246_v14  ;;  %448 = vmatpush.msra.mxu0 %v10407_v16  ;;  %v243_v26 = vld [vmem:[%s16278_s1 + $0x8] sm:$0xff]  ;;  %v10500_v29 = vld [vmem:[%s16278_s1 + $0x80] sm:$0xff]  ;;  %v10715_v32 = vld [vmem:[%s16278_s1 + $0x1b8] sm:$0xff] }
  0x15   : > { %1440 = vmatpush.msra.mxu3 %v10556_v15  ;;  %1063 = vmatpush.msra.mxu2 %v10503_v17  ;;  %v10553_v27 = vld [vmem:[%s16278_s1 + $0xc8] sm:$0xff]  ;;  %v242_v33 = vld [vmem:[%s16278_s1] sm:$0xff]  ;;  %v1244_v36 = vld [vmem:[%s12070_s24 + $0x57] sm:$0xff] }
  0x16   : > { %729 = vmatpush.msra.mxu1 %v245_v18  ;;  %449 = vmatpush.msra.mxu0 %v10406_v20  ;;  %v250_v30 = vld [vmem:[%s12070_s24 + $0x42] sm:$0xff]  ;;  %v10611_v37 = vld [vmem:[%s16278_s1 + $0x138] sm:$0xff]  ;;  %v251_v39 = vld [vmem:[%s12070_s24 + $0x4a] sm:$0xff] }
  0x17   : > { %1441 = vmatpush.msra.mxu3 %v10555_v19  ;;  %1064 = vmatpush.msra.mxu2 %v10502_v21  ;;  %v866_v31 = vld [vmem:[%s12070_s24 + $0x43] sm:$0xff]  ;;  %v10663_v38 = vld [vmem:[%s16278_s1 + $0x178] sm:$0xff]  ;;  %v867_v40 = vld [vmem:[%s12070_s24 + $0x4b] sm:$0xff] }
  0x18   : > { %730 = vmatpush.msra.mxu1 %v244_v22  ;;  %450 = vmatpush.msra.mxu0 %v10405_v24  ;;  %v10552_v34 = vld [vmem:[%s16278_s1 + $0xc0] sm:$0xff]  ;;  %v199_v41 = vld [vmem:[%s12070_s24 + $0x49] sm:$0xff]  ;;  %v252_v45 = vld [vmem:[%s12070_s24 + $0x52] sm:$0xff] }
  0x19   : > { %1442 = vmatpush.msra.mxu3 %v10554_v23  ;;  %1065 = vmatpush.msra.mxu2 %v10501_v25  ;;  %v198_v35 = vld [vmem:[%s12070_s24 + $0x41] sm:$0xff]  ;;  %v10714_v43 = vld [vmem:[%s16278_s1 + $0x1b0] sm:$0xff]  ;;  %v201_v52 = vld [vmem:[%s12070_s24 + $0x59] sm:$0xff] }
  0x1a   : > { %731 = vmatpush.msra.mxu1 %v243_v26  ;;  %451 = vmatpush.msra.mxu0 %v10404_v28  ;;  %v1245_v42 = vld [vmem:[%s12070_s24 + $0x5f] sm:$0xff]  ;;  %v10610_v44 = vld [vmem:[%s16278_s1 + $0x130] sm:$0xff]  ;;  %v1246_v48 = vld [vmem:[%s12070_s24 + $0x67] sm:$0xff] }
  0x1b   : > { %1443 = vmatpush.msra.mxu3 %v10553_v27  ;;  %1066 = vmatpush.msra.mxu2 %v10500_v29  ;;  %v868_v46 = vld [vmem:[%s12070_s24 + $0x53] sm:$0xff]  ;;  %v869_v51 = vld [vmem:[%s12070_s24 + $0x5b] sm:$0xff]  ;;  %v870_v55 = vld [vmem:[%s12070_s24 + $0x63] sm:$0xff] }
  0x1c   : > { %10412 = vmatmul.msk.f32.vlgmr.msra.gmra.mxu0 %vm303_vm0, %v250_v30  ;;  %10508 = vmatmul.msk.f32.vlgmr.msra.gmra.mxu2 %vm303_vm0, %v866_v31  ;;  %v200_v47 = vld [vmem:[%s12070_s24 + $0x51] sm:$0xff]  ;;  %v253_v50 = vld [vmem:[%s12070_s24 + $0x5a] sm:$0xff]  ;;  %v254_v54 = vld [vmem:[%s12070_s24 + $0x62] sm:$0xff] }
  0x1d   : > { %2571 = vmatpush.msrb.mxu2 %v10715_v32  ;;  %732 = vmatpush.msra.mxu1 %v242_v33  ;;  %v10662_v49 = vld [vmem:[%s16278_s1 + $0x170] sm:$0xff]  ;;  %v202_v56 = vld [vmem:[%s12070_s24 + $0x61] sm:$0xff]  ;;  %v205_v4 = vld [vmem:[%s12070_s24 + $0x79] sm:$0xff] }
  0x1e   : > { %1444 = vmatpush.msra.mxu3 %v10552_v34  ;;  %10456 = vmatmul.msk.f32.vlgmr.msra.gmra.mxu1 %vm303_vm0, %v198_v35  ;;  %v1247_v53 = vld [vmem:[%s12070_s24 + $0x6f] sm:$0xff]  ;;  %v1248_v57 = vld [vmem:[%s12070_s24 + $0x77] sm:$0xff]  ;;  %v1249_v61 = vld [vmem:[%s12070_s24 + $0x7f] sm:$0xff] }
  0x1f   : > { %10560 = vmatmul.msk.f32.vlgmr.msra.gmra.mxu3 %vm303_vm0, %v1244_v36  ;;  %1815 = vmatpush.msrb.mxu0 %v10611_v37  ;;  %v255_v58 = vld [vmem:[%s12070_s24 + $0x6a] sm:$0xff]  ;;  %v256_v62 = vld [vmem:[%s12070_s24 + $0x72] sm:$0xff]  ;;  %v257_v2 = vld [vmem:[%s12070_s24 + $0x7a] sm:$0xff] }
  0x20   : > { %2193 = vmatpush.msrb.mxu1 %v10663_v38  ;;  %2572 = vmatpush.msrb.mxu2 %v10714_v43  ;;  %v871_v59 = vld [vmem:[%s12070_s24 + $0x6b] sm:$0xff]  ;;  %v872_v63 = vld [vmem:[%s12070_s24 + $0x73] sm:$0xff]  ;;  %v873_v3 = vld [vmem:[%s12070_s24 + $0x7b] sm:$0xff] }
  0x21   : > { %1816 = vmatpush.msrb.mxu0 %v10610_v44  ;;  %v203_v60 = vld [vmem:[%s12070_s24 + $0x69] sm:$0xff]  ;;  %v204_v0 = vld [vmem:[%s12070_s24 + $0x71] sm:$0xff]  ;;  %v206_v11 = vld [vmem:[%s12070_s24 + $0x81] sm:$0xff] }
  0x22   : > { %2194 = vmatpush.msrb.mxu1 %v10662_v49  ;;  %v1250_v1 = vld [vmem:[%s12070_s24 + $0x87] sm:$0xff]  ;;  %v1251_v5 = vld [vmem:[%s12070_s24 + $0x8f] sm:$0xff]  ;;  %v1252_v12 = vld [vmem:[%s12070_s24 + $0x97] sm:$0xff] }
  0x23   : > { %v10713_v6 = vld [vmem:[%s16278_s1 + $0x1a8] sm:$0xff]  ;;  %v1253_v16 = vld [vmem:[%s12070_s24 + $0x9f] sm:$0xff]  ;;  %v260_v17 = vld [vmem:[%s12070_s24 + $0x92] sm:$0xff] }
  0x24   : > { %10413 = vmatmul.msk.f32.gmra.mxu0 %vm303_vm0, %v251_v39  ;;  %10509 = vmatmul.msk.f32.gmra.mxu2 %vm303_vm0, %v867_v40  ;;  %v10609_v7 = vld [vmem:[%s16278_s1 + $0x128] sm:$0xff]  ;;  %v876_v18 = vld [vmem:[%s12070_s24 + $0x93] sm:$0xff]  ;;  %v877_v22 = vld [vmem:[%s12070_s24 + $0x9b] sm:$0xff] }
  0x25   : > { %2573 = vmatpush.msrb.mxu2 %v10713_v6  ;;  %v10661_v8 = vld [vmem:[%s16278_s1 + $0x168] sm:$0xff]  ;;  %1817 = vmatpush.msrb.mxu0 %v10609_v7  ;;  %v208_v19 = vld [vmem:[%s12070_s24 + $0x91] sm:$0xff]  ;;  %v261_v21 = vld [vmem:[%s12070_s24 + $0x9a] sm:$0xff] }
  0x26   : > { %10457 = vmatmul.msk.f32.gmra.mxu1 %vm303_vm0, %v199_v41  ;;  %v258_v9 = vld [vmem:[%s12070_s24 + $0x82] sm:$0xff]  ;;  %v259_v13 = vld [vmem:[%s12070_s24 + $0x8a] sm:$0xff]  ;;  %v209_v23 = vld [vmem:[%s12070_s24 + $0x99] sm:$0xff] }
  0x27   : > { %10561 = vmatmul.msk.f32.gmra.mxu3 %vm303_vm0, %v1245_v42  ;;  %2195 = vmatpush.msrb.mxu1 %v10661_v8  ;;  %v874_v10 = vld [vmem:[%s12070_s24 + $0x83] sm:$0xff]  ;;  %v875_v14 = vld [vmem:[%s12070_s24 + $0x8b] sm:$0xff]  ;;  %v1256_v28 = vld [vmem:[%s12070_s24 + $0xb7] sm:$0xff] }
  0x28   : > { %v207_v15 = vld [vmem:[%s12070_s24 + $0x89] sm:$0xff]  ;;  %v210_v27 = vld [vmem:[%s12070_s24 + $0xa1] sm:$0xff]  ;;  %v10767_v36 = vld [vmem:[%s16278_s1 + $0x1f8] sm:$0xff] }
  0x29   : > { %v1254_v20 = vld [vmem:[%s12070_s24 + $0xa7] sm:$0xff]  ;;  %v1255_v24 = vld [vmem:[%s12070_s24 + $0xaf] sm:$0xff]  ;;  %v1257_v34 = vld [vmem:[%s12070_s24 + $0xbf] sm:$0xff]  ;;  %2949 = vmatpush.msrb.mxu3 %v10767_v36 }
  0x2a   : > { %v262_v25 = vld [vmem:[%s12070_s24 + $0xa2] sm:$0xff]  ;;  %v263_v30 = vld [vmem:[%s12070_s24 + $0xaa] sm:$0xff]  ;;  %v264_v37 = vld [vmem:[%s12070_s24 + $0xb2] sm:$0xff] }
  0x2b   : > { %v878_v26 = vld [vmem:[%s12070_s24 + $0xa3] sm:$0xff]  ;;  %v879_v31 = vld [vmem:[%s12070_s24 + $0xab] sm:$0xff]  ;;  %v880_v38 = vld [vmem:[%s12070_s24 + $0xb3] sm:$0xff] }
  0x2c   : > { %10414 = vmatmul.msk.f32.gmra.mxu0 %vm303_vm0, %v252_v45  ;;  %10510 = vmatmul.msk.f32.gmra.mxu2 %vm303_vm0, %v868_v46  ;;  %v10712_v29 = vld [vmem:[%s16278_s1 + $0x1a0] sm:$0xff]  ;;  %v211_v32 = vld [vmem:[%s12070_s24 + $0xa9] sm:$0xff]  ;;  %v212_v39 = vld [vmem:[%s12070_s24 + $0xb1] sm:$0xff] }
  0x2d   : > { %2574 = vmatpush.msrb.mxu2 %v10712_v29  ;;  %v10608_v33 = vld [vmem:[%s16278_s1 + $0x120] sm:$0xff]  ;;  %v1259_v44 = vld [vmem:[%s12070_s24 + $0xcf] sm:$0xff] }
  0x2e   : > { %10458 = vmatmul.msk.f32.gmra.mxu1 %vm303_vm0, %v200_v47  ;;  %v10660_v35 = vld [vmem:[%s16278_s1 + $0x160] sm:$0xff]  ;;  %1818 = vmatpush.msrb.mxu0 %v10608_v33  ;;  %v216_v7 = vld [vmem:[%s12070_s24 + $0xd1] sm:$0xff] }
  0x2f   : > { %10562 = vmatmul.msk.f32.gmra.mxu3 %vm303_vm0, %v1246_v48  ;;  %2196 = vmatpush.msrb.mxu1 %v10660_v35  ;;  %v1258_v40 = vld [vmem:[%s12070_s24 + $0xc7] sm:$0xff]  ;;  %v265_v41 = vld [vmem:[%s12070_s24 + $0xba] sm:$0xff] }
  0x30   : > { %v881_v42 = vld [vmem:[%s12070_s24 + $0xbb] sm:$0xff]  ;;  %v882_v47 = vld [vmem:[%s12070_s24 + $0xc3] sm:$0xff] }
  0x31   : > { %v213_v43 = vld [vmem:[%s12070_s24 + $0xb9] sm:$0xff]  ;;  %v266_v46 = vld [vmem:[%s12070_s24 + $0xc2] sm:$0xff] }
  0x32   : > { %v214_v49 = vld [vmem:[%s12070_s24 + $0xc1] sm:$0xff] }
  0x33   : > { %v1262_v8 = vld [vmem:[%s12070_s24 + $0xe7] sm:$0xff] }
  0x34   : > { %10415 = vmatmul.msk.f32.gmra.mxu0 %vm303_vm0, %v253_v50  ;;  %10511 = vmatmul.msk.f32.gmra.mxu2 %vm303_vm0, %v869_v51  ;;  %v1260_v50 = vld [vmem:[%s12070_s24 + $0xd7] sm:$0xff]  ;;  %v886_v29 = vld [vmem:[%s12070_s24 + $0xe3] sm:$0xff] }
  0x35   : > { %v218_v33 = vld [vmem:[%s12070_s24 + $0xe1] sm:$0xff] }
  0x36   : > { %10459 = vmatmul.msk.f32.gmra.mxu1 %vm303_vm0, %v201_v52 }
  0x37   : > { %10563 = vmatmul.msk.f32.gmra.mxu3 %vm303_vm0, %v1247_v53 }
  0x3c   : > { %10416 = vmatmul.msk.f32.gmra.mxu0 %vm303_vm0, %v254_v54  ;;  %10512 = vmatmul.msk.f32.gmra.mxu2 %vm303_vm0, %v870_v55  ;;  %v267_v55 = vld [vmem:[%s12070_s24 + $0xca] sm:$0xff] }
  0x3e   : > { %10460 = vmatmul.msk.f32.gmra.mxu1 %vm303_vm0, %v202_v56  ;;  %v883_v56 = vld [vmem:[%s12070_s24 + $0xcb] sm:$0xff] }
  0x3f   : > { %10564 = vmatmul.msk.f32.gmra.mxu3 %vm303_vm0, %v1248_v57 }
  0x44   : > { %10417 = vmatmul.msk.f32.gmra.mxu0 %vm303_vm0, %v255_v58  ;;  %10513 = vmatmul.msk.f32.gmra.mxu2 %vm303_vm0, %v871_v59 }
  0x46   : > { %10461 = vmatmul.msk.f32.gmra.mxu1 %vm303_vm0, %v203_v60  ;;  %v215_v60 = vld [vmem:[%s12070_s24 + $0xc9] sm:$0xff] }
  0x47   : > { %10565 = vmatmul.msk.f32.gmra.mxu3 %vm303_vm0, %v1249_v61  ;;  %v1261_v61 = vld [vmem:[%s12070_s24 + $0xdf] sm:$0xff] }
  0x4c   : > { %10418 = vmatmul.msk.f32.gmra.mxu0 %vm303_vm0, %v256_v62  ;;  %10514 = vmatmul.msk.f32.gmra.mxu2 %vm303_vm0, %v872_v63 }
  0x4e   : > { %10462 = vmatmul.msk.f32.gmra.mxu1 %vm303_vm0, %v204_v0 }
  0x4f   : > { %10566 = vmatmul.msk.f32.gmra.mxu3 %vm303_vm0, %v1250_v1 }
  0x54   : > { %10419 = vmatmul.msk.f32.gmra.mxu0 %vm303_vm0, %v257_v2  ;;  %10515 = vmatmul.msk.f32.gmra.mxu2 %vm303_vm0, %v873_v3  ;;  %v268_v2 = vld [vmem:[%s12070_s24 + $0xd2] sm:$0xff] }
  0x55   : > { %v884_v3 = vld [vmem:[%s12070_s24 + $0xd3] sm:$0xff] }
  0x56   : > { %10463 = vmatmul.msk.f32.gmra.mxu1 %vm303_vm0, %v205_v4 }
  0x57   : > { %10567 = vmatmul.msk.f32.gmra.mxu3 %vm303_vm0, %v1251_v5 }
  0x5c   : > { %10420 = vmatmul.msk.f32.gmra.mxu0 %vm303_vm0, %v258_v9  ;;  %10516 = vmatmul.msk.f32.gmra.mxu2 %vm303_vm0, %v874_v10  ;;  %v10711_v9 = vld [vmem:[%s16278_s1 + $0x198] sm:$0xff] }
  0x5d   : > { %2575 = vmatpush.msrb.mxu2 %v10711_v9  ;;  %v10710_v9 = vld [vmem:[%s16278_s1 + $0x190] sm:$0xff] }
  0x5e   : > { %10464 = vmatmul.msk.f32.gmra.mxu1 %vm303_vm0, %v206_v11 }
  0x5f   : > { %10568 = vmatmul.msk.f32.gmra.mxu3 %vm303_vm0, %v1252_v12  ;;  %v10607_v12 = vld [vmem:[%s16278_s1 + $0x118] sm:$0xff]  ;;  %2576 = vmatpush.msrb.mxu2 %v10710_v9 }
  0x60   : > { %1819 = vmatpush.msrb.mxu0 %v10607_v12  ;;  %v890_v12 = vld [vmem:[%s12070_s24 + $0x103] sm:$0xff] }
  0x64   : > { %10421 = vmatmul.msk.f32.gmra.mxu0 %vm303_vm0, %v259_v13  ;;  %10517 = vmatmul.msk.f32.gmra.mxu2 %vm303_vm0, %v875_v14  ;;  %v10659_v14 = vld [vmem:[%s16278_s1 + $0x158] sm:$0xff] }
  0x65   : > { %2197 = vmatpush.msrb.mxu1 %v10659_v14 }
  0x66   : > { %10465 = vmatmul.msk.f32.gmra.mxu1 %vm303_vm0, %v207_v15  ;;  %v10766_v15 = vld [vmem:[%s16278_s1 + $0x1f0] sm:$0xff] }
  0x67   : > { %10569 = vmatmul.msk.f32.gmra.mxu3 %vm303_vm0, %v1253_v16 }
  0x68   : > { %2950 = vmatpush.msrb.mxu3 %v10766_v15 }
  0x6c   : > { %10422 = vmatmul.msk.f32.gmra.mxu0 %vm303_vm0, %v260_v17  ;;  %10518 = vmatmul.msk.f32.gmra.mxu2 %vm303_vm0, %v876_v18  ;;  %v269_v17 = vld [vmem:[%s12070_s24 + $0xda] sm:$0xff] }
  0x6d   : > { %v885_v18 = vld [vmem:[%s12070_s24 + $0xdb] sm:$0xff] }
  0x6e   : > { %10466 = vmatmul.msk.f32.gmra.mxu1 %vm303_vm0, %v208_v19 }
  0x6f   : > { %10570 = vmatmul.msk.f32.gmra.mxu3 %vm303_vm0, %v1254_v20 }
  0x74   : > { %10423 = vmatmul.msk.f32.gmra.mxu0 %vm303_vm0, %v261_v21  ;;  %10519 = vmatmul.msk.f32.gmra.mxu2 %vm303_vm0, %v877_v22  ;;  %v217_v22 = vld [vmem:[%s12070_s24 + $0xd9] sm:$0xff] }
  0x76   : > { %10467 = vmatmul.msk.f32.gmra.mxu1 %vm303_vm0, %v209_v23  ;;  %v1263_v23 = vld [vmem:[%s12070_s24 + $0xef] sm:$0xff] }
  0x77   : > { %10571 = vmatmul.msk.f32.gmra.mxu3 %vm303_vm0, %v1255_v24 }
  0x7c   : > { %10424 = vmatmul.msk.f32.gmra.mxu0 %vm303_vm0, %v262_v25  ;;  %10520 = vmatmul.msk.f32.gmra.mxu2 %vm303_vm0, %v878_v26 }
  0x7e   : > { %10468 = vmatmul.msk.f32.gmra.mxu1 %vm303_vm0, %v210_v27 }
  0x7f   : > { %10572 = vmatmul.msk.f32.gmra.mxu3 %vm303_vm0, %v1256_v28  ;;  %v270_v28 = vld [vmem:[%s12070_s24 + $0xe2] sm:$0xff] }
  0x84   : > { %10425 = vmatmul.msk.f32.gmra.mxu0 %vm303_vm0, %v263_v30  ;;  %10521 = vmatmul.msk.f32.gmra.mxu2 %vm303_vm0, %v879_v31 }
  0x86   : > { %10469 = vmatmul.msk.f32.gmra.mxu1 %vm303_vm0, %v211_v32 }
  0x87   : > { %10573 = vmatmul.msk.f32.gmra.mxu3 %vm303_vm0, %v1257_v34  ;;  %v1264_v34 = vld [vmem:[%s12070_s24 + $0xf7] sm:$0xff] }
  0x8c   : > { %10426 = vmatmul.msk.f32.gmra.mxu0 %vm303_vm0, %v264_v37  ;;  %10522 = vmatmul.msk.f32.gmra.mxu2 %vm303_vm0, %v880_v38 }
  0x8e   : > { %10470 = vmatmul.msk.f32.gmra.mxu1 %vm303_vm0, %v212_v39  ;;  %v271_v39 = vld [vmem:[%s12070_s24 + $0xea] sm:$0xff] }
  0x8f   : > { %10574 = vmatmul.msk.f32.gmra.mxu3 %vm303_vm0, %v1258_v40  ;;  %v887_v40 = vld [vmem:[%s12070_s24 + $0xeb] sm:$0xff] }
  0x94   : > { %10427 = vmatmul.msk.f32.gmra.mxu0 %vm303_vm0, %v265_v41  ;;  %10523 = vmatmul.msk.f32.gmra.mxu2 %vm303_vm0, %v881_v42 }
  0x96   : > { %10471 = vmatmul.msk.f32.gmra.mxu1 %vm303_vm0, %v213_v43 }
  0x97   : > { %10575 = vmatmul.msk.f32.gmra.mxu3 %vm303_vm0, %v1259_v44  ;;  %v219_v44 = vld [vmem:[%s12070_s24 + $0xe9] sm:$0xff] }
  0x99   : > { %v453_v45 = vpop.f32.mrf.mxu0 }
  0x9b   : > { %v734_v48 = vpop.f32.mrf.mxu1 }
  0x9c   : > { %10428 = vmatmul.msk.f32.gmra.mxu0 %vm303_vm0, %v266_v46  ;;  %10524 = vmatmul.msk.f32.gmra.mxu2 %vm303_vm0, %v882_v47  ;;  %v735_v51 = vadd.f32 %v734_v48, %v453_v45  ;;  %v1265_v45 = vld [vmem:[%s12070_s24 + $0xff] sm:$0xff] }
  0x9e   : > { %10472 = vmatmul.msk.f32.gmra.mxu1 %vm303_vm0, %v214_v49 }
  0x9f   : > { %10576 = vmatmul.msk.f32.gmra.mxu3 %vm303_vm0, %v1260_v50  ;;  %v1068_v52 = vpop.f32.mrf.mxu2  ;;  %v272_v50 = vld [vmem:[%s12070_s24 + $0xf2] sm:$0xff] }
  0xa0   : > { %v1200_v53 = vadd.f32 %v1068_v52, %v735_v51  ;;  %v888_v51 = vld [vmem:[%s12070_s24 + $0xf3] sm:$0xff] }
  0xa1   : > { %v456_v54 = vpop.f32.mrf.mxu0 }
  0xa2   : > { %v1446_v57 = vpop.f32.mrf.mxu3 }
  0xa3   : > { %v12267_v58 = vadd.f32 %v1446_v57, %v1200_v53  ;;  %v737_v59 = vpop.f32.mrf.mxu1 }
  0xa4   : > { %10429 = vmatmul.msk.f32.gmra.mxu0 %vm303_vm0, %v267_v55  ;;  %10525 = vmatmul.msk.f32.gmra.mxu2 %vm303_vm0, %v883_v56  ;;  %v738_v62 = vadd.f32 %v737_v59, %v456_v54  ;;  %v220_v55 = vld [vmem:[%s12070_s24 + $0xf1] sm:$0xff]  ;;  %v1266_v56 = vld [vmem:[%s12070_s24 + $0x107] sm:$0xff] }
  0xa6   : > { %10473 = vmatmul.msk.f32.gmra.mxu1 %vm303_vm0, %v215_v60 }
  0xa7   : > { %10577 = vmatmul.msk.f32.gmra.mxu3 %vm303_vm0, %v1261_v61  ;;  %v1071_v63 = vpop.f32.mrf.mxu2 }
  0xa8   : > { %v1201_v0 = vadd.f32 %v1071_v63, %v738_v62  ;;  %v273_v62 = vld [vmem:[%s12070_s24 + $0xfa] sm:$0xff] }
  0xa9   : > { %v459_v1 = vpop.f32.mrf.mxu0  ;;  %v889_v63 = vld [vmem:[%s12070_s24 + $0xfb] sm:$0xff] }
  0xaa   : > { %v1449_v4 = vpop.f32.mrf.mxu3 }
  0xab   : > { %v12277_v5 = vadd.f32 %v1449_v4, %v1201_v0  ;;  %v740_v6 = vpop.f32.mrf.mxu1  ;;  %v1267_v4 = vld [vmem:[%s12070_s24 + $0x10f] sm:$0xff] }
  0xac   : > { %10430 = vmatmul.msk.f32.gmra.mxu0 %vm303_vm0, %v268_v2  ;;  %10526 = vmatmul.msk.f32.gmra.mxu2 %vm303_vm0, %v884_v3  ;;  %v741_v10 = vadd.f32 %v740_v6, %v459_v1  ;;  %v221_v3 = vld [vmem:[%s12070_s24 + $0xf9] sm:$0xff] }
  0xae   : > { %10474 = vmatmul.msk.f32.gmra.mxu1 %vm303_vm0, %v216_v7 }
  0xaf   : > { %10578 = vmatmul.msk.f32.gmra.mxu3 %vm303_vm0, %v1262_v8  ;;  %v1074_v11 = vpop.f32.mrf.mxu2 }
  0xb0   : > { %v1202_v13 = vadd.f32 %v1074_v11, %v741_v10  ;;  %v274_v11 = vld [vmem:[%s12070_s24 + $0x102] sm:$0xff] }
  0xb1   : > { %v462_v16 = vpop.f32.mrf.mxu0 }
  0xb2   : > { %v1452_v19 = vpop.f32.mrf.mxu3 }
  0xb3   : > { %v12299_v20 = vadd.f32 %v1452_v19, %v1202_v13  ;;  %v743_v21 = vpop.f32.mrf.mxu1  ;;  %v10658_v19 = vld [vmem:[%s16278_s1 + $0x150] sm:$0xff] }
  0xb4   : > { %10431 = vmatmul.msk.f32.gmra.mxu0 %vm303_vm0, %v269_v17  ;;  %10527 = vmatmul.msk.f32.gmra.mxu2 %vm303_vm0, %v885_v18  ;;  %v744_v24 = vadd.f32 %v743_v21, %v462_v16  ;;  %v222_v16 = vld [vmem:[%s12070_s24 + $0x101] sm:$0xff]  ;;  %v10606_v17 = vld [vmem:[%s16278_s1 + $0x110] sm:$0xff] }
  0xb5   : > { %v1268_v18 = vld [vmem:[%s12070_s24 + $0x117] sm:$0xff]  ;;  %1820 = vmatpush.msrb.mxu0 %v10606_v17  ;;  %2198 = vmatpush.msrb.mxu1 %v10658_v19  ;;  %v10765_v21 = vld [vmem:[%s16278_s1 + $0x1e8] sm:$0xff]  ;;  %v1273_v19 = vld [vmem:[%s12070_s24 + $0x13f] sm:$0xff] }
  0xb6   : > { %10475 = vmatmul.msk.f32.gmra.mxu1 %vm303_vm0, %v217_v22  ;;  %2951 = vmatpush.msrb.mxu3 %v10765_v21  ;;  %v10709_v21 = vld [vmem:[%s16278_s1 + $0x188] sm:$0xff] }
  0xb7   : > { %10579 = vmatmul.msk.f32.gmra.mxu3 %vm303_vm0, %v1263_v23  ;;  %v1077_v25 = vpop.f32.mrf.mxu2  ;;  %2577 = vmatpush.msrb.mxu2 %v10709_v21 }
  0xb8   : > { %v1203_v26 = vadd.f32 %v1077_v25, %v744_v24 }
  0xb9   : > { %v465_v27 = vpop.f32.mrf.mxu0 }
  0xba   : > { %v1455_v30 = vpop.f32.mrf.mxu3 }
  0xbb   : > { %v12309_v31 = vadd.f32 %v1455_v30, %v1203_v26  ;;  %v746_v32 = vpop.f32.mrf.mxu1  ;;  %v275_v26 = vld [vmem:[%s12070_s24 + $0x10a] sm:$0xff] }
  0xbc   : > { %10432 = vmatmul.msk.f32.gmra.mxu0 %vm303_vm0, %v270_v28  ;;  %10528 = vmatmul.msk.f32.gmra.mxu2 %vm303_vm0, %v886_v29  ;;  %v747_v35 = vadd.f32 %v746_v32, %v465_v27  ;;  %v891_v27 = vld [vmem:[%s12070_s24 + $0x10b] sm:$0xff] }
  0xbd   : > { %v223_v32 = vld [vmem:[%s12070_s24 + $0x109] sm:$0xff] }
  0xbe   : > { %10476 = vmatmul.msk.f32.gmra.mxu1 %vm303_vm0, %v218_v33  ;;  %v1269_v33 = vld [vmem:[%s12070_s24 + $0x11f] sm:$0xff] }
  0xbf   : > { %10580 = vmatmul.msk.f32.gmra.mxu3 %vm303_vm0, %v1264_v34  ;;  %v1080_v36 = vpop.f32.mrf.mxu2 }
  0xc0   : > { %v1204_v37 = vadd.f32 %v1080_v36, %v747_v35 }
  0xc1   : > { %v468_v38 = vpop.f32.mrf.mxu0 }
  0xc2   : > { %v1458_v41 = vpop.f32.mrf.mxu3 }
  0xc3   : > { %v12319_v42 = vadd.f32 %v1458_v41, %v1204_v37  ;;  %v749_v43 = vpop.f32.mrf.mxu1 }
  0xc4   : > { %10433 = vmatmul.msk.f32.gmra.mxu0 %vm303_vm0, %v271_v39  ;;  %10529 = vmatmul.msk.f32.gmra.mxu2 %vm303_vm0, %v887_v40  ;;  %v750_v46 = vadd.f32 %v749_v43, %v468_v38  ;;  %v276_v38 = vld [vmem:[%s12070_s24 + $0x112] sm:$0xff] }
  0xc5   : > { %v892_v39 = vld [vmem:[%s12070_s24 + $0x113] sm:$0xff] }
  0xc6   : > { %10477 = vmatmul.msk.f32.gmra.mxu1 %vm303_vm0, %v219_v44  ;;  %v224_v44 = vld [vmem:[%s12070_s24 + $0x111] sm:$0xff] }
  0xc7   : > { %10581 = vmatmul.msk.f32.gmra.mxu3 %vm303_vm0, %v1265_v45  ;;  %v1083_v47 = vpop.f32.mrf.mxu2  ;;  %v1270_v45 = vld [vmem:[%s12070_s24 + $0x127] sm:$0xff] }
  0xc8   : > { %v1205_v48 = vadd.f32 %v1083_v47, %v750_v46 }
  0xc9   : > { %v471_v49 = vpop.f32.mrf.mxu0 }
  0xca   : > { %v1461_v52 = vpop.f32.mrf.mxu3 }
  0xcb   : > { %v12329_v53 = vadd.f32 %v1461_v52, %v1205_v48  ;;  %v752_v54 = vpop.f32.mrf.mxu1 }
  0xcc   : > { %10434 = vmatmul.msk.f32.gmra.mxu0 %vm303_vm0, %v272_v50  ;;  %10530 = vmatmul.msk.f32.gmra.mxu2 %vm303_vm0, %v888_v51  ;;  %v753_v57 = vadd.f32 %v752_v54, %v471_v49  ;;  %v277_v50 = vld [vmem:[%s12070_s24 + $0x11a] sm:$0xff] }
  0xcd   : > { %v893_v51 = vld [vmem:[%s12070_s24 + $0x11b] sm:$0xff] }
  0xce   : > { %10478 = vmatmul.msk.f32.gmra.mxu1 %vm303_vm0, %v220_v55 }
  0xcf   : > { %10582 = vmatmul.msk.f32.gmra.mxu3 %vm303_vm0, %v1266_v56  ;;  %v1086_v59 = vpop.f32.mrf.mxu2  ;;  %v225_v56 = vld [vmem:[%s12070_s24 + $0x119] sm:$0xff] }
  0xd0   : > { %v1206_v60 = vadd.f32 %v1086_v59, %v753_v57  ;;  %v1271_v57 = vld [vmem:[%s12070_s24 + $0x12f] sm:$0xff] }
  0xd1   : > { %v474_v61 = vpop.f32.mrf.mxu0 }
  0xd2   : > { %v1464_v0 = vpop.f32.mrf.mxu3 }
  0xd3   : > { %v12339_v1 = vadd.f32 %v1464_v0, %v1206_v60  ;;  %v755_v2 = vpop.f32.mrf.mxu1  ;;  %v894_v0 = vld [vmem:[%s12070_s24 + $0x123] sm:$0xff] }
  0xd4   : > { %10435 = vmatmul.msk.f32.gmra.mxu0 %vm303_vm0, %v273_v62  ;;  %10531 = vmatmul.msk.f32.gmra.mxu2 %vm303_vm0, %v889_v63  ;;  %v756_v6 = vadd.f32 %v755_v2, %v474_v61  ;;  %v278_v63 = vld [vmem:[%s12070_s24 + $0x122] sm:$0xff] }
  0xd6   : > { %10479 = vmatmul.msk.f32.gmra.mxu1 %vm303_vm0, %v221_v3 }
  0xd7   : > { %10583 = vmatmul.msk.f32.gmra.mxu3 %vm303_vm0, %v1267_v4  ;;  %v1089_v7 = vpop.f32.mrf.mxu2 }
  0xd8   : > { %v1207_v8 = vadd.f32 %v1089_v7, %v756_v6  ;;  %v226_v6 = vld [vmem:[%s12070_s24 + $0x121] sm:$0xff]  ;;  %v1272_v7 = vld [vmem:[%s12070_s24 + $0x137] sm:$0xff] }
  0xd9   : > { %v477_v10 = vpop.f32.mrf.mxu0 }
  0xda   : > { %v1467_v13 = vpop.f32.mrf.mxu3 }
  0xdb   : > { %v12352_v14 = vadd.f32 %v1467_v13, %v1207_v8  ;;  %v758_v15 = vpop.f32.mrf.mxu1  ;;  %v895_v13 = vld [vmem:[%s12070_s24 + $0x12b] sm:$0xff] }
  0xdc   : > { %10436 = vmatmul.msk.f32.gmra.mxu0 %vm303_vm0, %v274_v11  ;;  %10532 = vmatmul.msk.f32.gmra.mxu2 %vm303_vm0, %v890_v12  ;;  %v759_v22 = vadd.f32 %v758_v15, %v477_v10  ;;  %v279_v12 = vld [vmem:[%s12070_s24 + $0x12a] sm:$0xff] }
  0xde   : > { %10480 = vmatmul.msk.f32.gmra.mxu1 %vm303_vm0, %v222_v16 }
  0xdf   : > { %10584 = vmatmul.msk.f32.gmra.mxu3 %vm303_vm0, %v1268_v18  ;;  %v1092_v23 = vpop.f32.mrf.mxu2  ;;  %v227_v18 = vld [vmem:[%s12070_s24 + $0x129] sm:$0xff] }
  0xe0   : > { %v1208_v24 = vadd.f32 %v1092_v23, %v759_v22 }
  0xe1   : > { %v480_v25 = vpop.f32.mrf.mxu0 }
  0xe2   : > { %v1470_v28 = vpop.f32.mrf.mxu3 }
  0xe3   : > { %v12371_v29 = vadd.f32 %v1470_v28, %v1208_v24  ;;  %v761_v30 = vpop.f32.mrf.mxu1  ;;  %v10605_v24 = vld [vmem:[%s16278_s1 + $0x108] sm:$0xff] }
  0xe4   : > { %10437 = vmatmul.msk.f32.gmra.mxu0 %vm303_vm0, %v275_v26  ;;  %10533 = vmatmul.msk.f32.gmra.mxu2 %vm303_vm0, %v891_v27  ;;  %v762_v34 = vadd.f32 %v761_v30, %v480_v25  ;;  %v10657_v26 = vld [vmem:[%s16278_s1 + $0x148] sm:$0xff]  ;;  %v10764_v27 = vld [vmem:[%s16278_s1 + $0x1e0] sm:$0xff]  ;;  %v280_v30 = vld [vmem:[%s12070_s24 + $0x132] sm:$0xff] }
  0xe5   : > { %1821 = vmatpush.msrb.mxu0 %v10605_v24  ;;  %2199 = vmatpush.msrb.mxu1 %v10657_v26 }
  0xe6   : > { %10481 = vmatmul.msk.f32.gmra.mxu1 %vm303_vm0, %v223_v32  ;;  %v896_v32 = vld [vmem:[%s12070_s24 + $0x133] sm:$0xff]  ;;  %2952 = vmatpush.msrb.mxu3 %v10764_v27 }
  0xe7   : > { %10585 = vmatmul.msk.f32.gmra.mxu3 %vm303_vm0, %v1269_v33  ;;  %v1095_v35 = vpop.f32.mrf.mxu2  ;;  %v232_v27 = vld [vmem:[%s12070_s24 + $0x151] sm:$0xff] }
  0xe8   : > { %v1209_v36 = vadd.f32 %v1095_v35, %v762_v34 }
  0xe9   : > { %v483_v37 = vpop.f32.mrf.mxu0 }
  0xea   : > { %v1473_v40 = vpop.f32.mrf.mxu3 }
  0xeb   : > { %v12381_v41 = vadd.f32 %v1473_v40, %v1209_v36  ;;  %v764_v43 = vpop.f32.mrf.mxu1  ;;  %v228_v36 = vld [vmem:[%s12070_s24 + $0x131] sm:$0xff] }
  0xec   : > { %10438 = vmatmul.msk.f32.gmra.mxu0 %vm303_vm0, %v276_v38  ;;  %10534 = vmatmul.msk.f32.gmra.mxu2 %vm303_vm0, %v892_v39  ;;  %v765_v46 = vadd.f32 %v764_v43, %v483_v37  ;;  %v1274_v37 = vld [vmem:[%s12070_s24 + $0x147] sm:$0xff] }
  0xee   : > { %10482 = vmatmul.msk.f32.gmra.mxu1 %vm303_vm0, %v224_v44  ;;  %v281_v44 = vld [vmem:[%s12070_s24 + $0x13a] sm:$0xff] }
  0xef   : > { %10586 = vmatmul.msk.f32.gmra.mxu3 %vm303_vm0, %v1270_v45  ;;  %v1098_v47 = vpop.f32.mrf.mxu2  ;;  %v897_v45 = vld [vmem:[%s12070_s24 + $0x13b] sm:$0xff] }
  0xf0   : > { %v1210_v48 = vadd.f32 %v1098_v47, %v765_v46 }
  0xf1   : > { %v486_v49 = vpop.f32.mrf.mxu0 }
  0xf2   : > { %v1476_v52 = vpop.f32.mrf.mxu3 }
  0xf3   : > { %v12391_v54 = vadd.f32 %v1476_v52, %v1210_v48  ;;  %v767_v55 = vpop.f32.mrf.mxu1 }
  0xf4   : > { %10439 = vmatmul.msk.f32.gmra.mxu0 %vm303_vm0, %v277_v50  ;;  %10535 = vmatmul.msk.f32.gmra.mxu2 %vm303_vm0, %v893_v51  ;;  %v768_v59 = vadd.f32 %v767_v55, %v486_v49  ;;  %v229_v49 = vld [vmem:[%s12070_s24 + $0x139] sm:$0xff]  ;;  %v1275_v50 = vld [vmem:[%s12070_s24 + $0x14f] sm:$0xff] }
  0xf6   : > { %10483 = vmatmul.msk.f32.gmra.mxu1 %vm303_vm0, %v225_v56 }
  0xf7   : > { %10587 = vmatmul.msk.f32.gmra.mxu3 %vm303_vm0, %v1271_v57  ;;  %v1101_v60 = vpop.f32.mrf.mxu2  ;;  %v282_v57 = vld [vmem:[%s12070_s24 + $0x142] sm:$0xff] }
  0xf8   : > { %v1211_v61 = vadd.f32 %v1101_v60, %v768_v59  ;;  %v898_v59 = vld [vmem:[%s12070_s24 + $0x143] sm:$0xff] }
  0xf9   : > { %v489_v62 = vpop.f32.mrf.mxu0 }
  0xfa   : > { %v1479_v2 = vpop.f32.mrf.mxu3 }
  0xfb   : > { %v12401_v3 = vadd.f32 %v1479_v2, %v1211_v61  ;;  %v770_v4 = vpop.f32.mrf.mxu1 }
  0xfc   : > { %10440 = vmatmul.msk.f32.gmra.mxu0 %vm303_vm0, %v278_v63  ;;  %10536 = vmatmul.msk.f32.gmra.mxu2 %vm303_vm0, %v894_v0  ;;  %v771_v8 = vadd.f32 %v770_v4, %v489_v62  ;;  %v230_v63 = vld [vmem:[%s12070_s24 + $0x141] sm:$0xff]  ;;  %v1276_v0 = vld [vmem:[%s12070_s24 + $0x157] sm:$0xff] }
  0xfe   : > { %10484 = vmatmul.msk.f32.gmra.mxu1 %vm303_vm0, %v226_v6 }
  0xff   : > { %10588 = vmatmul.msk.f32.gmra.mxu3 %vm303_vm0, %v1272_v7  ;;  %v1104_v9 = vpop.f32.mrf.mxu2 }
 0x100   : > { %v1212_v10 = vadd.f32 %v1104_v9, %v771_v8  ;;  %v283_v8 = vld [vmem:[%s12070_s24 + $0x14a] sm:$0xff] }
 0x101   : > { %v492_v11 = vpop.f32.mrf.mxu0  ;;  %v899_v9 = vld [vmem:[%s12070_s24 + $0x14b] sm:$0xff] }
 0x102   : > { %v1482_v15 = vpop.f32.mrf.mxu3 }
 0x103   : > { %v12411_v16 = vadd.f32 %v1482_v15, %v1212_v10  ;;  %v773_v17 = vpop.f32.mrf.mxu1  ;;  %v1277_v15 = vld [vmem:[%s12070_s24 + $0x15f] sm:$0xff] }
 0x104   : > { %10441 = vmatmul.msk.f32.gmra.mxu0 %vm303_vm0, %v279_v12  ;;  %10537 = vmatmul.msk.f32.gmra.mxu2 %vm303_vm0, %v895_v13  ;;  %v774_v22 = vadd.f32 %v773_v17, %v492_v11  ;;  %v231_v13 = vld [vmem:[%s12070_s24 + $0x149] sm:$0xff] }
 0x106   : > { %10485 = vmatmul.msk.f32.gmra.mxu1 %vm303_vm0, %v227_v18 }
 0x107   : > { %10589 = vmatmul.msk.f32.gmra.mxu3 %vm303_vm0, %v1273_v19  ;;  %v1107_v23 = vpop.f32.mrf.mxu2 }
 0x108   : > { %v1213_v25 = vadd.f32 %v1107_v23, %v774_v22  ;;  %v284_v22 = vld [vmem:[%s12070_s24 + $0x152] sm:$0xff] }
 0x109   : > { %v495_v28 = vpop.f32.mrf.mxu0  ;;  %v900_v23 = vld [vmem:[%s12070_s24 + $0x153] sm:$0xff] }
 0x10a   : > { %v1485_v33 = vpop.f32.mrf.mxu3 }
 0x10b   : > { %v12433_v34 = vadd.f32 %v1485_v33, %v1213_v25  ;;  %v776_v35 = vpop.f32.mrf.mxu1 }
 0x10c   : > { %10442 = vmatmul.msk.f32.gmra.mxu0 %vm303_vm0, %v280_v30  ;;  %10538 = vmatmul.msk.f32.gmra.mxu2 %vm303_vm0, %v896_v32  ;;  %v777_v38 = vadd.f32 %v776_v35, %v495_v28  ;;  %v1278_v28 = vld [vmem:[%s12070_s24 + $0x167] sm:$0xff] }
 0x10d   : > { %v10708_v35 = vld [vmem:[%s16278_s1 + $0x180] sm:$0xff] }
 0x10e   : > { %10486 = vmatmul.msk.f32.gmra.mxu1 %vm303_vm0, %v228_v36  ;;  %2578 = vmatpush.msrb.mxu2 %v10708_v35 }
 0x10f   : > { %10590 = vmatmul.msk.f32.gmra.mxu3 %vm303_vm0, %v1274_v37  ;;  %v1110_v39 = vpop.f32.mrf.mxu2  ;;  %v285_v37 = vld [vmem:[%s12070_s24 + $0x15a] sm:$0xff] }
 0x110   : > { %v1214_v40 = vadd.f32 %v1110_v39, %v777_v38  ;;  %v901_v38 = vld [vmem:[%s12070_s24 + $0x15b] sm:$0xff] }
 0x111   : > { %v498_v43 = vpop.f32.mrf.mxu0 }
 0x112   : > { %v1488_v46 = vpop.f32.mrf.mxu3 }
 0x113   : > { %v12443_v47 = vadd.f32 %v1488_v46, %v1214_v40  ;;  %v779_v48 = vpop.f32.mrf.mxu1  ;;  %v1279_v46 = vld [vmem:[%s12070_s24 + $0x16f] sm:$0xff] }
 0x114   : > { %10443 = vmatmul.msk.f32.gmra.mxu0 %vm303_vm0, %v281_v44  ;;  %10539 = vmatmul.msk.f32.gmra.mxu2 %vm303_vm0, %v897_v45  ;;  %v780_v51 = vadd.f32 %v779_v48, %v498_v43  ;;  %v233_v44 = vld [vmem:[%s12070_s24 + $0x159] sm:$0xff] }
 0x115   : > { %v10604_v45 = vld [vmem:[%s16278_s1 + $0x100] sm:$0xff] }
 0x116   : > { %10487 = vmatmul.msk.f32.gmra.mxu1 %vm303_vm0, %v229_v49  ;;  %v10656_v48 = vld [vmem:[%s16278_s1 + $0x140] sm:$0xff]  ;;  %1822 = vmatpush.msrb.mxu0 %v10604_v45  ;;  %v10763_v49 = vld [vmem:[%s16278_s1 + $0x1d8] sm:$0xff] }
 0x117   : > { %10591 = vmatmul.msk.f32.gmra.mxu3 %vm303_vm0, %v1275_v50  ;;  %v1113_v52 = vpop.f32.mrf.mxu2  ;;  %2200 = vmatpush.msrb.mxu1 %v10656_v48  ;;  %v1283_v48 = vld [vmem:[%s12070_s24 + $0x18f] sm:$0xff] }
 0x118   : > { %v1215_v55 = vadd.f32 %v1113_v52, %v780_v51  ;;  %2953 = vmatpush.msrb.mxu3 %v10763_v49 }
 0x119   : > { %v501_v56 = vpop.f32.mrf.mxu0 }
 0x11a   : > { %v1491_v60 = vpop.f32.mrf.mxu3 }
 0x11b   : > { %v12453_v61 = vadd.f32 %v1491_v60, %v1215_v55  ;;  %v782_v62 = vpop.f32.mrf.mxu1 }
 0x11c   : > { %10444 = vmatmul.msk.f32.gmra.mxu0 %vm303_vm0, %v282_v57  ;;  %10540 = vmatmul.msk.f32.gmra.mxu2 %vm303_vm0, %v898_v59  ;;  %v783_v2 = vadd.f32 %v782_v62, %v501_v56  ;;  %v286_v56 = vld [vmem:[%s12070_s24 + $0x162] sm:$0xff] }
 0x11d   : > { %v902_v57 = vld [vmem:[%s12070_s24 + $0x163] sm:$0xff] }
 0x11e   : > { %10488 = vmatmul.msk.f32.gmra.mxu1 %vm303_vm0, %v230_v63  ;;  %v234_v63 = vld [vmem:[%s12070_s24 + $0x161] sm:$0xff] }
 0x11f   : > { %10592 = vmatmul.msk.f32.gmra.mxu3 %vm303_vm0, %v1276_v0  ;;  %v1116_v4 = vpop.f32.mrf.mxu2  ;;  %v1280_v0 = vld [vmem:[%s12070_s24 + $0x177] sm:$0xff] }
 0x120   : > { %v1216_v6 = vadd.f32 %v1116_v4, %v783_v2 }
 0x121   : > { %v504_v7 = vpop.f32.mrf.mxu0 }
 0x122   : > { %v1494_v10 = vpop.f32.mrf.mxu3 }
 0x123   : > { %v12463_v11 = vadd.f32 %v1494_v10, %v1216_v6  ;;  %v785_v12 = vpop.f32.mrf.mxu1 }
 0x124   : > { %10445 = vmatmul.msk.f32.gmra.mxu0 %vm303_vm0, %v283_v8  ;;  %10541 = vmatmul.msk.f32.gmra.mxu2 %vm303_vm0, %v899_v9  ;;  %v786_v17 = vadd.f32 %v785_v12, %v504_v7  ;;  %v287_v8 = vld [vmem:[%s12070_s24 + $0x16a] sm:$0xff] }
 0x125   : > { %v903_v9 = vld [vmem:[%s12070_s24 + $0x16b] sm:$0xff] }
 0x126   : > { %10489 = vmatmul.msk.f32.gmra.mxu1 %vm303_vm0, %v231_v13 }
 0x127   : > { %10593 = vmatmul.msk.f32.gmra.mxu3 %vm303_vm0, %v1277_v15  ;;  %v1119_v18 = vpop.f32.mrf.mxu2  ;;  %v235_v15 = vld [vmem:[%s12070_s24 + $0x169] sm:$0xff] }
 0x128   : > { %v1217_v19 = vadd.f32 %v1119_v18, %v786_v17  ;;  %v1281_v17 = vld [vmem:[%s12070_s24 + $0x17f] sm:$0xff] }
 0x129   : > { %v507_v21 = vpop.f32.mrf.mxu0 }
 0x12a   : > { %v1497_v24 = vpop.f32.mrf.mxu3 }
 0x12b   : > { %v12473_v25 = vadd.f32 %v1497_v24, %v1217_v19  ;;  %v788_v26 = vpop.f32.mrf.mxu1  ;;  %v904_v24 = vld [vmem:[%s12070_s24 + $0x173] sm:$0xff] }
 0x12c   : > { %10446 = vmatmul.msk.f32.gmra.mxu0 %vm303_vm0, %v284_v22  ;;  %10542 = vmatmul.msk.f32.gmra.mxu2 %vm303_vm0, %v900_v23  ;;  %v789_v30 = vadd.f32 %v788_v26, %v507_v21  ;;  %v288_v23 = vld [vmem:[%s12070_s24 + $0x172] sm:$0xff] }
 0x12e   : > { %10490 = vmatmul.msk.f32.gmra.mxu1 %vm303_vm0, %v232_v27 }
 0x12f   : > { %10594 = vmatmul.msk.f32.gmra.mxu3 %vm303_vm0, %v1278_v28  ;;  %v1122_v32 = vpop.f32.mrf.mxu2 }
 0x130   : > { %v1218_v33 = vadd.f32 %v1122_v32, %v789_v30  ;;  %v236_v30 = vld [vmem:[%s12070_s24 + $0x171] sm:$0xff]  ;;  %v1282_v32 = vld [vmem:[%s12070_s24 + $0x187] sm:$0xff] }
 0x131   : > { %v510_v36 = vpop.f32.mrf.mxu0 }
 0x132   : > { %v1500_v39 = vpop.f32.mrf.mxu3 }
 0x133   : > { %v12486_v40 = vadd.f32 %v1500_v39, %v1218_v33  ;;  %v791_v43 = vpop.f32.mrf.mxu1  ;;  %v905_v39 = vld [vmem:[%s12070_s24 + $0x17b] sm:$0xff] }
 0x134   : > { %10447 = vmatmul.msk.f32.gmra.mxu0 %vm303_vm0, %v285_v37  ;;  %10543 = vmatmul.msk.f32.gmra.mxu2 %vm303_vm0, %v901_v38  ;;  %v792_v50 = vadd.f32 %v791_v43, %v510_v36  ;;  %v289_v38 = vld [vmem:[%s12070_s24 + $0x17a] sm:$0xff] }
 0x136   : > { %10491 = vmatmul.msk.f32.gmra.mxu1 %vm303_vm0, %v233_v44 }
 0x137   : > { %10595 = vmatmul.msk.f32.gmra.mxu3 %vm303_vm0, %v1279_v46  ;;  %v1125_v51 = vpop.f32.mrf.mxu2  ;;  %v237_v46 = vld [vmem:[%s12070_s24 + $0x179] sm:$0xff] }
 0x138   : > { %v1219_v52 = vadd.f32 %v1125_v51, %v792_v50 }
 0x139   : > { %v513_v55 = vpop.f32.mrf.mxu0 }
 0x13a   : > { %v1503_v59 = vpop.f32.mrf.mxu3 }
 0x13b   : > { %v12505_v60 = vadd.f32 %v1503_v59, %v1219_v52  ;;  %v794_v62 = vpop.f32.mrf.mxu1 }
 0x13c   : > { %10448 = vmatmul.msk.f32.gmra.mxu0 %vm303_vm0, %v286_v56  ;;  %10544 = vmatmul.msk.f32.gmra.mxu2 %vm303_vm0, %v902_v57  ;;  %v795_v2 = vadd.f32 %v794_v62, %v513_v55  ;;  %v290_v55 = vld [vmem:[%s12070_s24 + $0x182] sm:$0xff]  ;;  %v10762_v57 = vld [vmem:[%s16278_s1 + $0x1d0] sm:$0xff] }
 0x13d   : > { %v906_v56 = vld [vmem:[%s12070_s24 + $0x183] sm:$0xff]  ;;  %2954 = vmatpush.msrb.mxu3 %v10762_v57 }
 0x13e   : > { %10492 = vmatmul.msk.f32.gmra.mxu1 %vm303_vm0, %v234_v63 }
 0x13f   : > { %10596 = vmatmul.msk.f32.gmra.mxu3 %vm303_vm0, %v1280_v0  ;;  %v1128_v4 = vpop.f32.mrf.mxu2  ;;  %v238_v0 = vld [vmem:[%s12070_s24 + $0x181] sm:$0xff] }
 0x140   : > { %v1220_v6 = vadd.f32 %v1128_v4, %v795_v2  ;;  %v10761_v2 = vld [vmem:[%s16278_s1 + $0x1c8] sm:$0xff]  ;;  %v1284_v4 = vld [vmem:[%s12070_s24 + $0x197] sm:$0xff] }
 0x141   : > { %v516_v7 = vpop.f32.mrf.mxu0  ;;  %2955 = vmatpush.msrb.mxu3 %v10761_v2 }
 0x142   : > { %v1506_v10 = vpop.f32.mrf.mxu3 }
 0x143   : > { %v12515_v12 = vadd.f32 %v1506_v10, %v1220_v6  ;;  %v797_v13 = vpop.f32.mrf.mxu1  ;;  %v10923_v6 = vld [vmem:[%s16278_s1 + $0x2b8] sm:$0xff] }
 0x144   : > { %10449 = vmatmul.msk.f32.gmra.mxu0 %vm303_vm0, %v287_v8  ;;  %10545 = vmatmul.msk.f32.gmra.mxu2 %vm303_vm0, %v903_v9  ;;  %v798_v18 = vadd.f32 %v797_v13, %v516_v7  ;;  %v10760_v7 = vld [vmem:[%s16278_s1 + $0x1c0] sm:$0xff]  ;;  %v10819_v10 = vld [vmem:[%s16278_s1 + $0x238] sm:$0xff] }
 0x145   : > { %4083 = vmatpush.msra.mxu2 %v10923_v6  ;;  %2956 = vmatpush.msrb.mxu3 %v10760_v7  ;;  %v1622_v7 = vld [vmem:[%s12070_s24 + $0x58] sm:$0xff] }
 0x146   : > { %10493 = vmatmul.msk.f32.gmra.mxu1 %vm303_vm0, %v235_v15  ;;  %3327 = vmatpush.msra.mxu0 %v10819_v10  ;;  %v10871_v15 = vld [vmem:[%s16278_s1 + $0x278] sm:$0xff] }
 0x147   : > { %10597 = vmatmul.msk.f32.gmra.mxu3 %vm303_vm0, %v1281_v17  ;;  %v1131_v19 = vpop.f32.mrf.mxu2  ;;  %3705 = vmatpush.msra.mxu1 %v10871_v15  ;;  %v2000_v15 = vld [vmem:[%s12070_s24 + $0x59] sm:$0xff] }
 0x148   : > { %v1221_v21 = vadd.f32 %v1131_v19, %v798_v18  ;;  %v291_v18 = vld [vmem:[%s12070_s24 + $0x18a] sm:$0xff] }
 0x149   : > { %v519_v22 = vpop.f32.mrf.mxu0  ;;  %v907_v19 = vld [vmem:[%s12070_s24 + $0x18b] sm:$0xff] }
 0x14a   : > { %v1509_v26 = vpop.f32.mrf.mxu3 }
 0x14b   : > { %v12525_v27 = vadd.f32 %v1509_v26, %v1221_v21  ;;  %v800_v28 = vpop.f32.mrf.mxu1  ;;  %v1285_v26 = vld [vmem:[%s12070_s24 + $0x19f] sm:$0xff] }
 0x14c   : > { %10450 = vmatmul.msk.f32.gmra.mxu0 %vm303_vm0, %v288_v23  ;;  %10546 = vmatmul.msk.f32.gmra.mxu2 %vm303_vm0, %v904_v24  ;;  %v801_v33 = vadd.f32 %v800_v28, %v519_v22  ;;  %v239_v24 = vld [vmem:[%s12070_s24 + $0x189] sm:$0xff] }
 0x14e   : > { %10494 = vmatmul.msk.f32.gmra.mxu1 %vm303_vm0, %v236_v30 }
 0x14f   : > { %10598 = vmatmul.msk.f32.gmra.mxu3 %vm303_vm0, %v1282_v32  ;;  %v1134_v35 = vpop.f32.mrf.mxu2 }
 0x150   : > { %v1222_v36 = vadd.f32 %v1134_v35, %v801_v33  ;;  %v292_v35 = vld [vmem:[%s12070_s24 + $0x192] sm:$0xff] }
 0x151   : > { %v522_v37 = vpop.f32.mrf.mxu0 }
 0x152   : > { %v1512_v43 = vpop.f32.mrf.mxu3 }
 0x153   : > { %v12535_v44 = vadd.f32 %v1512_v43, %v1222_v36  ;;  %v803_v45 = vpop.f32.mrf.mxu1  ;;  %v908_v36 = vld [vmem:[%s12070_s24 + $0x193] sm:$0xff] }
 0x154   : > { %10451 = vmatmul.msk.f32.gmra.mxu0 %vm303_vm0, %v289_v38  ;;  %10547 = vmatmul.msk.f32.gmra.mxu2 %vm303_vm0, %v905_v39  ;;  %v804_v49 = vadd.f32 %v803_v45, %v522_v37  ;;  %v240_v43 = vld [vmem:[%s12070_s24 + $0x191] sm:$0xff]  ;;  %v1286_v45 = vld [vmem:[%s12070_s24 + $0x1a7] sm:$0xff] }
 0x156   : > { %10495 = vmatmul.msk.f32.gmra.mxu1 %vm303_vm0, %v237_v46 }
 0x157   : > { %10599 = vmatmul.msk.f32.gmra.mxu3 %vm303_vm0, %v1283_v48  ;;  %v1137_v50 = vpop.f32.mrf.mxu2 }
 0x158   : > { %v1223_v51 = vadd.f32 %v1137_v50, %v804_v49 }
 0x159   : > { %v525_v52 = vpop.f32.mrf.mxu0 }
 0x15a   : > { %v1515_v59 = vpop.f32.mrf.mxu3 }
 0x15b   : > { %v12548_v62 = vadd.f32 %v1515_v59, %v1223_v51  ;;  %v806_v63 = vpop.f32.mrf.mxu1  ;;  %v293_v51 = vld [vmem:[%s12070_s24 + $0x19a] sm:$0xff] }
 0x15c   : > { %10452 = vmatmul.msk.f32.gmra.mxu0 %vm303_vm0, %v290_v55  ;;  %10548 = vmatmul.msk.f32.gmra.mxu2 %vm303_vm0, %v906_v56  ;;  %v807_v8 = vadd.f32 %v806_v63, %v525_v52  ;;  %v909_v52 = vld [vmem:[%s12070_s24 + $0x19b] sm:$0xff]  ;;  %v1287_v63 = vld [vmem:[%s12070_s24 + $0x1af] sm:$0xff] }
 0x15d   : > { %v241_v59 = vld [vmem:[%s12070_s24 + $0x199] sm:$0xff] }
 0x15e   : > { %10496 = vmatmul.msk.f32.gmra.mxu1 %vm303_vm0, %v238_v0 }
 0x15f   : > { %10600 = vmatmul.msk.f32.gmra.mxu3 %vm303_vm0, %v1284_v4  ;;  %v1140_v9 = vpop.f32.mrf.mxu2 }
 0x160   : > { %v1224_v13 = vadd.f32 %v1140_v9, %v807_v8  ;;  %v2378_v8 = vld [vmem:[%s12070_s24 + $0x6d] sm:$0xff] }
 0x161   : > { %v528_v17 = vpop.f32.mrf.mxu0 }
 0x162   : > { %v1518_v21 = vpop.f32.mrf.mxu3 }
 0x163   : > { %v12573_v22 = vadd.f32 %v1518_v21, %v1224_v13  ;;  %v809_v23 = vpop.f32.mrf.mxu1 }
 0x164   : > { %10453 = vmatmul.msk.f32.gmra.mxu0 %vm303_vm0, %v291_v18  ;;  %10549 = vmatmul.msk.f32.gmra.mxu2 %vm303_vm0, %v907_v19  ;;  %v810_v28 = vadd.f32 %v809_v23, %v528_v17  ;;  %v2756_v17 = vld [vmem:[%s12070_s24 + $0x6e] sm:$0xff] }
 0x166   : > { %10497 = vmatmul.msk.f32.gmra.mxu1 %vm303_vm0, %v239_v24  ;;  %v1623_v24 = vld [vmem:[%s12070_s24 + $0x60] sm:$0xff] }
 0x167   : > { %10601 = vmatmul.msk.f32.gmra.mxu3 %vm303_vm0, %v1285_v26  ;;  %v1143_v30 = vpop.f32.mrf.mxu2  ;;  %v2379_v26 = vld [vmem:[%s12070_s24 + $0x75] sm:$0xff] }
 0x168   : > { %v1225_v32 = vadd.f32 %v1143_v30, %v810_v28 }
 0x169   : > { %v531_v33 = vpop.f32.mrf.mxu0 }
 0x16a   : > { %v1521_v37 = vpop.f32.mrf.mxu3 }
 0x16b   : > { %v12583_v38 = vadd.f32 %v1521_v37, %v1225_v32  ;;  %v812_v39 = vpop.f32.mrf.mxu1 }
 0x16c   : > { %10454 = vmatmul.msk.f32.gmra.mxu0 %vm303_vm0, %v292_v35  ;;  %10550 = vmatmul.msk.f32.gmra.mxu2 %vm303_vm0, %v908_v36  ;;  %v813_v46 = vadd.f32 %v812_v39, %v531_v33  ;;  %v2001_v33 = vld [vmem:[%s12070_s24 + $0x61] sm:$0xff]  ;;  %v2757_v35 = vld [vmem:[%s12070_s24 + $0x76] sm:$0xff] }
 0x16e   : > { %10498 = vmatmul.msk.f32.gmra.mxu1 %vm303_vm0, %v240_v43  ;;  %v10922_v43 = vld [vmem:[%s16278_s1 + $0x2b0] sm:$0xff] }
 0x16f   : > { %10602 = vmatmul.msk.f32.gmra.mxu3 %vm303_vm0, %v1286_v45  ;;  %v1146_v48 = vpop.f32.mrf.mxu2  ;;  %4084 = vmatpush.msra.mxu2 %v10922_v43 }
 0x170   : > { %v1226_v49 = vadd.f32 %v1146_v48, %v813_v46  ;;  %v1624_v46 = vld [vmem:[%s12070_s24 + $0x68] sm:$0xff]  ;;  %v2380_v48 = vld [vmem:[%s12070_s24 + $0x7d] sm:$0xff] }
 0x171   : > { %v534_v50 = vpop.f32.mrf.mxu0 }
 0x172   : > { %v1524_v55 = vpop.f32.mrf.mxu3 }
 0x173   : > { %v12593_v56 = vadd.f32 %v1524_v55, %v1226_v49  ;;  %v815_v57 = vpop.f32.mrf.mxu1  ;;  %v10818_v55 = vld [vmem:[%s16278_s1 + $0x230] sm:$0xff] }
 0x174   : > { %10455 = vmatmul.msk.f32.gmra.mxu0 %vm303_vm0, %v293_v51  ;;  %10551 = vmatmul.msk.f32.gmra.mxu2 %vm303_vm0, %v909_v52  ;;  %v816_v0 = vadd.f32 %v815_v57, %v534_v50  ;;  %v2002_v52 = vld [vmem:[%s12070_s24 + $0x69] sm:$0xff]  ;;  %v2758_v57 = vld [vmem:[%s12070_s24 + $0x7e] sm:$0xff] }
 0x175   : > { %3328 = vmatpush.msra.mxu0 %v10818_v55  ;;  %v2005_v55 = vld [vmem:[%s12070_s24 + $0x81] sm:$0xff] }
 0x176   : > { %10499 = vmatmul.msk.f32.gmra.mxu1 %vm303_vm0, %v241_v59  ;;  %v10870_v59 = vld [vmem:[%s16278_s1 + $0x270] sm:$0xff] }
 0x177   : > { %10603 = vmatmul.msk.f32.gmra.mxu3 %vm303_vm0, %v1287_v63  ;;  %v1149_v2 = vpop.f32.mrf.mxu2  ;;  %3706 = vmatpush.msra.mxu1 %v10870_v59 }
 0x178   : > { %v1227_v4 = vadd.f32 %v1149_v2, %v816_v0 }
 0x179   : > { %v537_v6 = vpop.f32.mrf.mxu0 }
 0x17a   : > { %v1527_v9 = vpop.f32.mrf.mxu3 }
 0x17b   : > { %v12603_v10 = vadd.f32 %v1527_v9, %v1227_v4  ;;  %v818_v13 = vpop.f32.mrf.mxu1 }
 0x17c   : > { %10612 = vmatmul.msk.f32.vlgmr.msrb.gmra.mxu0 %vm303_vm0, %v1622_v7  ;;  %10716 = vmatmul.msk.f32.vlgmr.msrb.gmra.mxu2 %vm303_vm0, %v2378_v8  ;;  %v819_v18 = vadd.f32 %v818_v13, %v537_v6  ;;  %v1625_v6 = vld [vmem:[%s12070_s24 + $0x70] sm:$0xff]  ;;  %v2381_v7 = vld [vmem:[%s12070_s24 + $0x85] sm:$0xff] }
 0x17e   : > { %10664 = vmatmul.msk.f32.vlgmr.msrb.gmra.mxu1 %vm303_vm0, %v2000_v15  ;;  %v2003_v15 = vld [vmem:[%s12070_s24 + $0x71] sm:$0xff] }
 0x17f   : > { %10768 = vmatmul.msk.f32.vlgmr.msrb.gmra.mxu3 %vm303_vm0, %v2756_v17  ;;  %v1152_v19 = vpop.f32.mrf.mxu2  ;;  %v2759_v17 = vld [vmem:[%s12070_s24 + $0x86] sm:$0xff] }
 0x180   : > { %v1228_v21 = vadd.f32 %v1152_v19, %v819_v18 }
 0x181   : > { %v540_v23 = vpop.f32.mrf.mxu0 }
 0x182   : > { %v1530_v28 = vpop.f32.mrf.mxu3 }
 0x183   : > { %v12613_v30 = vadd.f32 %v1530_v28, %v1228_v21  ;;  %v821_v32 = vpop.f32.mrf.mxu1 }
 0x184   : > { %10613 = vmatmul.msk.f32.gmra.mxu0 %vm303_vm0, %v1623_v24  ;;  %10717 = vmatmul.msk.f32.gmra.mxu2 %vm303_vm0, %v2379_v26  ;;  %v822_v36 = vadd.f32 %v821_v32, %v540_v23  ;;  %v1626_v24 = vld [vmem:[%s12070_s24 + $0x78] sm:$0xff]  ;;  %v2382_v26 = vld [vmem:[%s12070_s24 + $0x8d] sm:$0xff] }
 0x186   : > { %10665 = vmatmul.msk.f32.gmra.mxu1 %vm303_vm0, %v2001_v33 }
 0x187   : > { %10769 = vmatmul.msk.f32.gmra.mxu3 %vm303_vm0, %v2757_v35  ;;  %v1155_v37 = vpop.f32.mrf.mxu2  ;;  %v2004_v35 = vld [vmem:[%s12070_s24 + $0x79] sm:$0xff] }
 0x188   : > { %v1229_v39 = vadd.f32 %v1155_v37, %v822_v36  ;;  %v2760_v36 = vld [vmem:[%s12070_s24 + $0x8e] sm:$0xff] }
 0x189   : > { %v543_v45 = vpop.f32.mrf.mxu0 }
 0x18a   : > { %v1533_v49 = vpop.f32.mrf.mxu3 }
 0x18b   : > { %v12626_v50 = vadd.f32 %v1533_v49, %v1229_v39  ;;  %v824_v51 = vpop.f32.mrf.mxu1 }
 0x18c   : > { %10614 = vmatmul.msk.f32.gmra.mxu0 %vm303_vm0, %v1624_v46  ;;  %10718 = vmatmul.msk.f32.gmra.mxu2 %vm303_vm0, %v2380_v48  ;;  %v825_v63 = vadd.f32 %v824_v51, %v543_v45  ;;  %v1627_v46 = vld [vmem:[%s12070_s24 + $0x80] sm:$0xff]  ;;  %v2383_v48 = vld [vmem:[%s12070_s24 + $0x95] sm:$0xff] }
 0x18e   : > { %10666 = vmatmul.msk.f32.gmra.mxu1 %vm303_vm0, %v2002_v52 }
 0x18f   : > { %10770 = vmatmul.msk.f32.gmra.mxu3 %vm303_vm0, %v2758_v57  ;;  %v1158_v0 = vpop.f32.mrf.mxu2  ;;  %v2761_v57 = vld [vmem:[%s12070_s24 + $0x96] sm:$0xff] }
 0x190   : > { %v1230_v2 = vadd.f32 %v1158_v0, %v825_v63 }
 0x191   : > { %v546_v4 = vpop.f32.mrf.mxu0 }
 0x192   : > { %v1536_v8 = vpop.f32.mrf.mxu3 }
 0x193   : > { %v12642_v9 = vadd.f32 %v1536_v8, %v1230_v2  ;;  %v827_v13 = vpop.f32.mrf.mxu1 }
 0x194   : > { %10615 = vmatmul.msk.f32.gmra.mxu0 %vm303_vm0, %v1625_v6  ;;  %10719 = vmatmul.msk.f32.gmra.mxu2 %vm303_vm0, %v2381_v7  ;;  %v828_v18 = vadd.f32 %v827_v13, %v546_v4  ;;  %v1628_v4 = vld [vmem:[%s12070_s24 + $0x88] sm:$0xff]  ;;  %v2384_v6 = vld [vmem:[%s12070_s24 + $0x9d] sm:$0xff] }
 0x196   : > { %10667 = vmatmul.msk.f32.gmra.mxu1 %vm303_vm0, %v2003_v15  ;;  %v2006_v15 = vld [vmem:[%s12070_s24 + $0x89] sm:$0xff] }
 0x197   : > { %10771 = vmatmul.msk.f32.gmra.mxu3 %vm303_vm0, %v2759_v17  ;;  %v1161_v19 = vpop.f32.mrf.mxu2  ;;  %v2762_v17 = vld [vmem:[%s12070_s24 + $0x9e] sm:$0xff] }
 0x198   : > { %v1231_v21 = vadd.f32 %v1161_v19, %v828_v18 }
 0x199   : > { %v549_v23 = vpop.f32.mrf.mxu0 }
 0x19a   : > { %v1539_v28 = vpop.f32.mrf.mxu3 }
 0x19b   : > { %v12652_v32 = vadd.f32 %v1539_v28, %v1231_v21  ;;  %v830_v33 = vpop.f32.mrf.mxu1 }
 0x19c   : > { %10616 = vmatmul.msk.f32.gmra.mxu0 %vm303_vm0, %v1626_v24  ;;  %10720 = vmatmul.msk.f32.gmra.mxu2 %vm303_vm0, %v2382_v26  ;;  %v831_v37 = vadd.f32 %v830_v33, %v549_v23  ;;  %v1629_v24 = vld [vmem:[%s12070_s24 + $0x90] sm:$0xff]  ;;  %v2385_v26 = vld [vmem:[%s12070_s24 + $0xa5] sm:$0xff] }
 0x19e   : > { %10668 = vmatmul.msk.f32.gmra.mxu1 %vm303_vm0, %v2004_v35 }
 0x19f   : > { %10772 = vmatmul.msk.f32.gmra.mxu3 %vm303_vm0, %v2760_v36  ;;  %v1164_v39 = vpop.f32.mrf.mxu2  ;;  %v2007_v36 = vld [vmem:[%s12070_s24 + $0x91] sm:$0xff] }
 0x1a0   : > { %v1232_v43 = vadd.f32 %v1164_v39, %v831_v37  ;;  %v2763_v37 = vld [vmem:[%s12070_s24 + $0xa6] sm:$0xff] }
 0x1a1   : > { %v552_v45 = vpop.f32.mrf.mxu0  ;;  %v10921_v39 = vld [vmem:[%s16278_s1 + $0x2a8] sm:$0xff] }
 0x1a2   : > { %v1542_v49 = vpop.f32.mrf.mxu3  ;;  %4085 = vmatpush.msra.mxu2 %v10921_v39  ;;  %v1632_v39 = vld [vmem:[%s12070_s24 + $0xa8] sm:$0xff] }
 0x1a3   : > { %v12662_v51 = vadd.f32 %v1542_v49, %v1232_v43  ;;  %v833_v52 = vpop.f32.mrf.mxu1  ;;  %v10869_v49 = vld [vmem:[%s16278_s1 + $0x268] sm:$0xff] }
 0x1a4   : > { %10617 = vmatmul.msk.f32.gmra.mxu0 %vm303_vm0, %v1627_v46  ;;  %10721 = vmatmul.msk.f32.gmra.mxu2 %vm303_vm0, %v2383_v48  ;;  %v834_v59 = vadd.f32 %v833_v52, %v552_v45  ;;  %v10817_v46 = vld [vmem:[%s16278_s1 + $0x228] sm:$0xff] }
 0x1a5   : > { %3329 = vmatpush.msra.mxu0 %v10817_v46  ;;  %3707 = vmatpush.msra.mxu1 %v10869_v49  ;;  %v2010_v49 = vld [vmem:[%s12070_s24 + $0xa9] sm:$0xff] }
 0x1a6   : > { %10669 = vmatmul.msk.f32.gmra.mxu1 %vm303_vm0, %v2005_v55  ;;  %v1630_v55 = vld [vmem:[%s12070_s24 + $0x98] sm:$0xff] }
 0x1a7   : > { %10773 = vmatmul.msk.f32.gmra.mxu3 %vm303_vm0, %v2761_v57  ;;  %v1167_v63 = vpop.f32.mrf.mxu2  ;;  %v2386_v57 = vld [vmem:[%s12070_s24 + $0xad] sm:$0xff] }
 0x1a8   : > { %v1233_v0 = vadd.f32 %v1167_v63, %v834_v59 }
 0x1a9   : > { %v555_v2 = vpop.f32.mrf.mxu0 }
 0x1aa   : > { %v1545_v7 = vpop.f32.mrf.mxu3 }
 0x1ab   : > { %v12672_v8 = vadd.f32 %v1545_v7, %v1233_v0  ;;  %v836_v13 = vpop.f32.mrf.mxu1 }
 0x1ac   : > { %10618 = vmatmul.msk.f32.gmra.mxu0 %vm303_vm0, %v1628_v4  ;;  %10722 = vmatmul.msk.f32.gmra.mxu2 %vm303_vm0, %v2384_v6  ;;  %v837_v18 = vadd.f32 %v836_v13, %v555_v2  ;;  %v2008_v2 = vld [vmem:[%s12070_s24 + $0x99] sm:$0xff]  ;;  %v2764_v4 = vld [vmem:[%s12070_s24 + $0xae] sm:$0xff] }
 0x1ae   : > { %10670 = vmatmul.msk.f32.gmra.mxu1 %vm303_vm0, %v2006_v15 }
 0x1af   : > { %10774 = vmatmul.msk.f32.gmra.mxu3 %vm303_vm0, %v2762_v17  ;;  %v1170_v19 = vpop.f32.mrf.mxu2  ;;  %v1631_v17 = vld [vmem:[%s12070_s24 + $0xa0] sm:$0xff] }
 0x1b0   : > { %v1234_v21 = vadd.f32 %v1170_v19, %v837_v18  ;;  %v2387_v18 = vld [vmem:[%s12070_s24 + $0xb5] sm:$0xff] }
 0x1b1   : > { %v558_v23 = vpop.f32.mrf.mxu0 }
 0x1b2   : > { %v1548_v28 = vpop.f32.mrf.mxu3 }
 0x1b3   : > { %v12682_v33 = vadd.f32 %v1548_v28, %v1234_v21  ;;  %v839_v35 = vpop.f32.mrf.mxu1 }
 0x1b4   : > { %10619 = vmatmul.msk.f32.gmra.mxu0 %vm303_vm0, %v1629_v24  ;;  %10723 = vmatmul.msk.f32.gmra.mxu2 %vm303_vm0, %v2385_v26  ;;  %v840_v43 = vadd.f32 %v839_v35, %v558_v23  ;;  %v2009_v24 = vld [vmem:[%s12070_s24 + $0xa1] sm:$0xff]  ;;  %v2765_v26 = vld [vmem:[%s12070_s24 + $0xb6] sm:$0xff] }
 0x1b6   : > { %10671 = vmatmul.msk.f32.gmra.mxu1 %vm303_vm0, %v2007_v36 }
 0x1b7   : > { %10775 = vmatmul.msk.f32.gmra.mxu3 %vm303_vm0, %v2763_v37  ;;  %v1173_v45 = vpop.f32.mrf.mxu2 }
 0x1b8   : > { %v1235_v48 = vadd.f32 %v1173_v45, %v840_v43  ;;  %v2388_v43 = vld [vmem:[%s12070_s24 + $0xbd] sm:$0xff] }
 0x1b9   : > { %v561_v52 = vpop.f32.mrf.mxu0 }
 0x1ba   : > { %v1551_v59 = vpop.f32.mrf.mxu3 }
 0x1bb   : > { %v12701_v63 = vadd.f32 %v1551_v59, %v1235_v48  ;;  %v842_v0 = vpop.f32.mrf.mxu1 }
 0x1bc   : > { %10620 = vmatmul.msk.f32.gmra.mxu0 %vm303_vm0, %v1630_v55  ;;  %10724 = vmatmul.msk.f32.gmra.mxu2 %vm303_vm0, %v2386_v57  ;;  %v843_v6 = vadd.f32 %v842_v0, %v561_v52  ;;  %v2766_v52 = vld [vmem:[%s12070_s24 + $0xbe] sm:$0xff] }
 0x1be   : > { %10672 = vmatmul.msk.f32.gmra.mxu1 %vm303_vm0, %v2008_v2  ;;  %v1633_v2 = vld [vmem:[%s12070_s24 + $0xb0] sm:$0xff] }
 0x1bf   : > { %10776 = vmatmul.msk.f32.gmra.mxu3 %vm303_vm0, %v2764_v4  ;;  %v1176_v7 = vpop.f32.mrf.mxu2  ;;  %v2389_v4 = vld [vmem:[%s12070_s24 + $0xc5] sm:$0xff] }
 0x1c0   : > { %v1236_v13 = vadd.f32 %v1176_v7, %v843_v6 }
 0x1c1   : > { %v564_v15 = vpop.f32.mrf.mxu0 }
 0x1c2   : > { %v1554_v19 = vpop.f32.mrf.mxu3 }
 0x1c3   : > { %v12711_v21 = vadd.f32 %v1554_v19, %v1236_v13  ;;  %v845_v23 = vpop.f32.mrf.mxu1 }
 0x1c4   : > { %10621 = vmatmul.msk.f32.gmra.mxu0 %vm303_vm0, %v1631_v17  ;;  %10725 = vmatmul.msk.f32.gmra.mxu2 %vm303_vm0, %v2387_v18  ;;  %v846_v28 = vadd.f32 %v845_v23, %v564_v15  ;;  %v2011_v15 = vld [vmem:[%s12070_s24 + $0xb1] sm:$0xff]  ;;  %v2767_v17 = vld [vmem:[%s12070_s24 + $0xc6] sm:$0xff] }
 0x1c6   : > { %10673 = vmatmul.msk.f32.gmra.mxu1 %vm303_vm0, %v2009_v24 }
 0x1c7   : > { %10777 = vmatmul.msk.f32.gmra.mxu3 %vm303_vm0, %v2765_v26  ;;  %v1179_v35 = vpop.f32.mrf.mxu2  ;;  %v1634_v26 = vld [vmem:[%s12070_s24 + $0xb8] sm:$0xff] }
 0x1c8   : > { %v1237_v36 = vadd.f32 %v1179_v35, %v846_v28  ;;  %v2390_v28 = vld [vmem:[%s12070_s24 + $0xcd] sm:$0xff] }
 0x1c9   : > { %v567_v37 = vpop.f32.mrf.mxu0 }
 0x1ca   : > { %v1557_v45 = vpop.f32.mrf.mxu3 }
 0x1cb   : > { %v12721_v46 = vadd.f32 %v1557_v45, %v1237_v36  ;;  %v848_v48 = vpop.f32.mrf.mxu1 }
 0x1cc   : > { %10622 = vmatmul.msk.f32.gmra.mxu0 %vm303_vm0, %v1632_v39  ;;  %10726 = vmatmul.msk.f32.gmra.mxu2 %vm303_vm0, %v2388_v43  ;;  %v849_v55 = vadd.f32 %v848_v48, %v567_v37  ;;  %v2012_v39 = vld [vmem:[%s12070_s24 + $0xb9] sm:$0xff]  ;;  %v2768_v43 = vld [vmem:[%s12070_s24 + $0xce] sm:$0xff] }
 0x1ce   : > { %10674 = vmatmul.msk.f32.gmra.mxu1 %vm303_vm0, %v2010_v49 }
 0x1cf   : > { %10778 = vmatmul.msk.f32.gmra.mxu3 %vm303_vm0, %v2766_v52  ;;  %v1182_v57 = vpop.f32.mrf.mxu2  ;;  %v10920_v52 = vld [vmem:[%s16278_s1 + $0x2a0] sm:$0xff] }
 0x1d0   : > { %v1238_v59 = vadd.f32 %v1182_v57, %v849_v55  ;;  %v1635_v57 = vld [vmem:[%s12070_s24 + $0xc0] sm:$0xff]  ;;  %4086 = vmatpush.msra.mxu2 %v10920_v52 }
 0x1d1   : > { %v570_v0 = vpop.f32.mrf.mxu0 }
 0x1d2   : > { %v1560_v6 = vpop.f32.mrf.mxu3 }
 0x1d3   : > { %v12731_v7 = vadd.f32 %v1560_v6, %v1238_v59  ;;  %v851_v13 = vpop.f32.mrf.mxu1  ;;  %v2391_v59 = vld [vmem:[%s12070_s24 + $0xd5] sm:$0xff]  ;;  %v2013_v6 = vld [vmem:[%s12070_s24 + $0xc1] sm:$0xff] }
 0x1d4   : > { %10623 = vmatmul.msk.f32.gmra.mxu0 %vm303_vm0, %v1633_v2  ;;  %10727 = vmatmul.msk.f32.gmra.mxu2 %vm303_vm0, %v2389_v4  ;;  %v852_v18 = vadd.f32 %v851_v13, %v570_v0  ;;  %v10816_v13 = vld [vmem:[%s16278_s1 + $0x220] sm:$0xff] }
 0x1d5   : > { %3330 = vmatpush.msra.mxu0 %v10816_v13 }
 0x1d6   : > { %10675 = vmatmul.msk.f32.gmra.mxu1 %vm303_vm0, %v2011_v15  ;;  %v2769_v15 = vld [vmem:[%s12070_s24 + $0xd6] sm:$0xff] }
 0x1d7   : > { %10779 = vmatmul.msk.f32.gmra.mxu3 %vm303_vm0, %v2767_v17  ;;  %v1185_v19 = vpop.f32.mrf.mxu2  ;;  %v10868_v17 = vld [vmem:[%s16278_s1 + $0x260] sm:$0xff] }
 0x1d8   : > { %v1239_v23 = vadd.f32 %v1185_v19, %v852_v18  ;;  %3708 = vmatpush.msra.mxu1 %v10868_v17  ;;  %v10975_v18 = vld [vmem:[%s16278_s1 + $0x2f8] sm:$0xff]  ;;  %v2771_v17 = vld [vmem:[%s12070_s24 + $0xe6] sm:$0xff] }
 0x1d9   : > { %v573_v24 = vpop.f32.mrf.mxu0  ;;  %4461 = vmatpush.msra.mxu3 %v10975_v18 }
 0x1da   : > { %v1563_v35 = vpop.f32.mrf.mxu3 }
 0x1db   : > { %v12741_v36 = vadd.f32 %v1563_v35, %v1239_v23  ;;  %v854_v37 = vpop.f32.mrf.mxu1  ;;  %v2392_v35 = vld [vmem:[%s12070_s24 + $0xdd] sm:$0xff] }
 0x1dc   : > { %10624 = vmatmul.msk.f32.gmra.mxu0 %vm303_vm0, %v1634_v26  ;;  %10728 = vmatmul.msk.f32.gmra.mxu2 %vm303_vm0, %v2390_v28  ;;  %v855_v45 = vadd.f32 %v854_v37, %v573_v24  ;;  %v1636_v28 = vld [vmem:[%s12070_s24 + $0xc8] sm:$0xff] }
 0x1de   : > { %10676 = vmatmul.msk.f32.gmra.mxu1 %vm303_vm0, %v2012_v39 }
 0x1df   : > { %10780 = vmatmul.msk.f32.gmra.mxu3 %vm303_vm0, %v2768_v43  ;;  %v1188_v48 = vpop.f32.mrf.mxu2 }
 0x1e0   : > { %v1240_v49 = vadd.f32 %v1188_v48, %v855_v45  ;;  %v2014_v45 = vld [vmem:[%s12070_s24 + $0xc9] sm:$0xff]  ;;  %v2770_v48 = vld [vmem:[%s12070_s24 + $0xde] sm:$0xff] }
 0x1e1   : > { %v576_v55 = vpop.f32.mrf.mxu0 }
 0x1e2   : > { %v1566_v0 = vpop.f32.mrf.mxu3 }
 0x1e3   : > { %v12754_v2 = vadd.f32 %v1566_v0, %v1240_v49  ;;  %v857_v4 = vpop.f32.mrf.mxu1  ;;  %v2393_v0 = vld [vmem:[%s12070_s24 + $0xe5] sm:$0xff] }
 0x1e4   : > { %10625 = vmatmul.msk.f32.gmra.mxu0 %vm303_vm0, %v1635_v57  ;;  %10729 = vmatmul.msk.f32.gmra.mxu2 %vm303_vm0, %v2391_v59  ;;  %v858_v19 = vadd.f32 %v857_v4, %v576_v55  ;;  %v1637_v59 = vld [vmem:[%s12070_s24 + $0xd0] sm:$0xff] }
 0x1e6   : > { %10677 = vmatmul.msk.f32.gmra.mxu1 %vm303_vm0, %v2013_v6 }
 0x1e7   : > { %10781 = vmatmul.msk.f32.gmra.mxu3 %vm303_vm0, %v2769_v15  ;;  %v1191_v23 = vpop.f32.mrf.mxu2  ;;  %v2015_v15 = vld [vmem:[%s12070_s24 + $0xd1] sm:$0xff] }
 0x1e8   : > { %v1241_v24 = vadd.f32 %v1191_v23, %v858_v19 }
 0x1e9   : > { %v579_v26 = vpop.f32.mrf.mxu0 }
 0x1ea   : > { %v1569_v37 = vpop.f32.mrf.mxu3 }
 0x1eb   : > { %v12773_v39 = vadd.f32 %v1569_v37, %v1241_v24  ;;  %v860_v43 = vpop.f32.mrf.mxu1 }
 0x1ec   : > { %10626 = vmatmul.msk.f32.gmra.mxu0 %vm303_vm0, %v1636_v28  ;;  %10730 = vmatmul.msk.f32.gmra.mxu2 %vm303_vm0, %v2392_v35  ;;  %v861_v49 = vadd.f32 %v860_v43, %v579_v26  ;;  %v1638_v26 = vld [vmem:[%s12070_s24 + $0xd8] sm:$0xff]  ;;  %v2394_v28 = vld [vmem:[%s12070_s24 + $0xed] sm:$0xff] }
 0x1ee   : > { %10678 = vmatmul.msk.f32.gmra.mxu1 %vm303_vm0, %v2014_v45 }
 0x1ef   : > { %10782 = vmatmul.msk.f32.gmra.mxu3 %vm303_vm0, %v2770_v48  ;;  %v1194_v52 = vpop.f32.mrf.mxu2  ;;  %v2016_v48 = vld [vmem:[%s12070_s24 + $0xd9] sm:$0xff] }
 0x1f0   : > { %v1242_v55 = vadd.f32 %v1194_v52, %v861_v49  ;;  %v2772_v49 = vld [vmem:[%s12070_s24 + $0xee] sm:$0xff] }
 0x1f1   : > { %v582_v57 = vpop.f32.mrf.mxu0 }
 0x1f2   : > { %v1572_v4 = vpop.f32.mrf.mxu3 }
 0x1f3   : > { %v12783_v6 = vadd.f32 %v1572_v4, %v1242_v55  ;;  %v863_v13 = vpop.f32.mrf.mxu1 }
 0x1f4   : > { %10627 = vmatmul.msk.f32.gmra.mxu0 %vm303_vm0, %v1637_v59  ;;  %10731 = vmatmul.msk.f32.gmra.mxu2 %vm303_vm0, %v2393_v0  ;;  %v864_v18 = vadd.f32 %v863_v13, %v582_v57  ;;  %v2395_v0 = vld [vmem:[%s12070_s24 + $0xf5] sm:$0xff] }
 0x1f6   : > { %10679 = vmatmul.msk.f32.gmra.mxu1 %vm303_vm0, %v2015_v15 }
 0x1f7   : > { %10783 = vmatmul.msk.f32.gmra.mxu3 %vm303_vm0, %v2771_v17  ;;  %v1197_v19 = vpop.f32.mrf.mxu2 }
 0x1f8   : > { %v1243_v23 = vadd.f32 %v1197_v19, %v864_v18  ;;  %v2017_v18 = vld [vmem:[%s12070_s24 + $0xe1] sm:$0xff]  ;;  %v2773_v19 = vld [vmem:[%s12070_s24 + $0xf6] sm:$0xff] }
 0x1f9   : > { %v1824_v24 = vpop.f32.mrf.mxu0 }
 0x1fa   : > { %v1575_v35 = vpop.f32.mrf.mxu3  ;;  %v1956_v37 = vadd.f32 %v1824_v24, %v12267_v58  ;;  %v1639_v58 = vld [vmem:[%s12070_s24 + $0xe0] sm:$0xff] }
 0x1fb   : > { %v12794_v43 = vadd.f32 %v1575_v35, %v1243_v23  ;;  %v2202_v45 = vpop.f32.mrf.mxu1  ;;  %v2396_v35 = vld [vmem:[%s12070_s24 + $0xfd] sm:$0xff] }
 0x1fc   : > { %10628 = vmatmul.msk.f32.gmra.mxu0 %vm303_vm0, %v1638_v26  ;;  %10732 = vmatmul.msk.f32.gmra.mxu2 %vm303_vm0, %v2394_v28  ;;  %v2334_v52 = vadd.f32 %v2202_v45, %v1956_v37  ;;  %v1640_v28 = vld [vmem:[%s12070_s24 + $0xe8] sm:$0xff] }
 0x1fe   : > { %10680 = vmatmul.msk.f32.gmra.mxu1 %vm303_vm0, %v2016_v48 }
 0x1ff   : > { %10784 = vmatmul.msk.f32.gmra.mxu3 %vm303_vm0, %v2772_v49  ;;  %v2580_v55 = vpop.f32.mrf.mxu2 }
 0x200   : > { %v2712_v57 = vadd.f32 %v2580_v55, %v2334_v52  ;;  %v2018_v52 = vld [vmem:[%s12070_s24 + $0xe9] sm:$0xff]  ;;  %v2774_v55 = vld [vmem:[%s12070_s24 + $0xfe] sm:$0xff] }
 0x201   : > { %v1827_v59 = vpop.f32.mrf.mxu0 }
 0x202   : > { %v1957_v4 = vadd.f32 %v1827_v59, %v12277_v5  ;;  %v2958_v13 = vpop.f32.mrf.mxu3 }
 0x203   : > { %v12805_v15 = vadd.f32 %v2958_v13, %v2712_v57  ;;  %v2205_v17 = vpop.f32.mrf.mxu1  ;;  %v10919_v57 = vld [vmem:[%s16278_s1 + $0x298] sm:$0xff]  ;;  %v10974_v13 = vld [vmem:[%s16278_s1 + $0x2f0] sm:$0xff] }
 0x204   : > { %10629 = vmatmul.msk.f32.gmra.mxu0 %vm303_vm0, %v1639_v58  ;;  %10733 = vmatmul.msk.f32.gmra.mxu2 %vm303_vm0, %v2395_v0  ;;  %v2335_v23 = vadd.f32 %v2205_v17, %v1957_v4  ;;  %v10815_v58 = vld [vmem:[%s16278_s1 + $0x218] sm:$0xff] }
 0x205   : > { %4087 = vmatpush.msra.mxu2 %v10919_v57  ;;  %3331 = vmatpush.msra.mxu0 %v10815_v58  ;;  %v10867_v4 = vld [vmem:[%s16278_s1 + $0x258] sm:$0xff] }
 0x206   : > { %10681 = vmatmul.msk.f32.gmra.mxu1 %vm303_vm0, %v2017_v18  ;;  %v1641_v18 = vld [vmem:[%s12070_s24 + $0xf0] sm:$0xff]  ;;  %4462 = vmatpush.msra.mxu3 %v10974_v13 }
 0x207   : > { %10785 = vmatmul.msk.f32.gmra.mxu3 %vm303_vm0, %v2773_v19  ;;  %v2583_v24 = vpop.f32.mrf.mxu2  ;;  %v2397_v19 = vld [vmem:[%s12070_s24 + $0x105] sm:$0xff]  ;;  %3709 = vmatpush.msra.mxu1 %v10867_v4  ;;  %v2776_v4 = vld [vmem:[%s12070_s24 + $0x10e] sm:$0xff] }
 0x208   : > { %v2713_v26 = vadd.f32 %v2583_v24, %v2335_v23 }
 0x209   : > { %v1830_v5 = vpop.f32.mrf.mxu0 }
 0x20a   : > { %v1958_v37 = vadd.f32 %v1830_v5, %v12299_v20  ;;  %v2961_v45 = vpop.f32.mrf.mxu3 }
 0x20b   : > { %v12816_v48 = vadd.f32 %v2961_v45, %v2713_v26  ;;  %v2208_v49 = vpop.f32.mrf.mxu1 }
 0x20c   : > { %10630 = vmatmul.msk.f32.gmra.mxu0 %vm303_vm0, %v1640_v28  ;;  %10734 = vmatmul.msk.f32.gmra.mxu2 %vm303_vm0, %v2396_v35  ;;  %v2336_v59 = vadd.f32 %v2208_v49, %v1958_v37  ;;  %v2019_v28 = vld [vmem:[%s12070_s24 + $0xf1] sm:$0xff]  ;;  %v2775_v35 = vld [vmem:[%s12070_s24 + $0x106] sm:$0xff] }
 0x20e   : > { %10682 = vmatmul.msk.f32.gmra.mxu1 %vm303_vm0, %v2018_v52  ;;  %v1642_v52 = vld [vmem:[%s12070_s24 + $0xf8] sm:$0xff] }
 0x20f   : > { %10786 = vmatmul.msk.f32.gmra.mxu3 %vm303_vm0, %v2774_v55  ;;  %v2586_v20 = vpop.f32.mrf.mxu2  ;;  %v2398_v55 = vld [vmem:[%s12070_s24 + $0x10d] sm:$0xff] }
 0x210   : > { %v2714_v0 = vadd.f32 %v2586_v20, %v2336_v59 }
 0x211   : > { %v1833_v17 = vpop.f32.mrf.mxu0 }
 0x212   : > { %v1959_v23 = vadd.f32 %v1833_v17, %v12309_v31  ;;  %v2964_v24 = vpop.f32.mrf.mxu3 }
 0x213   : > { %v12839_v26 = vadd.f32 %v2964_v24, %v2714_v0  ;;  %v2211_v5 = vpop.f32.mrf.mxu1  ;;  %v2020_v0 = vld [vmem:[%s12070_s24 + $0xf9] sm:$0xff] }
 0x214   : > { %10631 = vmatmul.msk.f32.gmra.mxu0 %vm303_vm0, %v1641_v18  ;;  %10735 = vmatmul.msk.f32.gmra.mxu2 %vm303_vm0, %v2397_v19  ;;  %v2337_v37 = vadd.f32 %v2211_v5, %v1959_v23  ;;  %v1643_v19 = vld [vmem:[%s12070_s24 + $0x100] sm:$0xff]  ;;  %v2399_v23 = vld [vmem:[%s12070_s24 + $0x115] sm:$0xff] }
 0x216   : > { %10683 = vmatmul.msk.f32.gmra.mxu1 %vm303_vm0, %v2019_v28 }
 0x217   : > { %10787 = vmatmul.msk.f32.gmra.mxu3 %vm303_vm0, %v2775_v35  ;;  %v2589_v45 = vpop.f32.mrf.mxu2 }
 0x218   : > { %v2715_v49 = vadd.f32 %v2589_v45, %v2337_v37  ;;  %v2021_v37 = vld [vmem:[%s12070_s24 + $0x101] sm:$0xff]  ;;  %v2777_v45 = vld [vmem:[%s12070_s24 + $0x116] sm:$0xff] }
 0x219   : > { %v1836_v31 = vpop.f32.mrf.mxu0 }
 0x21a   : > { %v1960_v57 = vadd.f32 %v1836_v31, %v12319_v42  ;;  %v2967_v59 = vpop.f32.mrf.mxu3 }
 0x21b   : > { %v12850_v20 = vadd.f32 %v2967_v59, %v2715_v49  ;;  %v2214_v58 = vpop.f32.mrf.mxu1 }
 0x21c   : > { %10632 = vmatmul.msk.f32.gmra.mxu0 %vm303_vm0, %v1642_v52  ;;  %10736 = vmatmul.msk.f32.gmra.mxu2 %vm303_vm0, %v2398_v55  ;;  %v2338_v13 = vadd.f32 %v2214_v58, %v1960_v57  ;;  %v1644_v55 = vld [vmem:[%s12070_s24 + $0x108] sm:$0xff]  ;;  %v2400_v57 = vld [vmem:[%s12070_s24 + $0x11d] sm:$0xff] }
 0x21e   : > { %10684 = vmatmul.msk.f32.gmra.mxu1 %vm303_vm0, %v2020_v0 }
 0x21f   : > { %10788 = vmatmul.msk.f32.gmra.mxu3 %vm303_vm0, %v2776_v4  ;;  %v2592_v17 = vpop.f32.mrf.mxu2 }
 0x220   : > { %v2716_v18 = vadd.f32 %v2592_v17, %v2338_v13  ;;  %v2022_v13 = vld [vmem:[%s12070_s24 + $0x109] sm:$0xff]  ;;  %v2778_v17 = vld [vmem:[%s12070_s24 + $0x11e] sm:$0xff] }
 0x221   : > { %v1839_v42 = vpop.f32.mrf.mxu0 }
 0x222   : > { %v1961_v24 = vadd.f32 %v1839_v42, %v12329_v53  ;;  %v2970_v5 = vpop.f32.mrf.mxu3 }
 0x223   : > { %v12861_v28 = vadd.f32 %v2970_v5, %v2716_v18  ;;  %v2217_v35 = vpop.f32.mrf.mxu1 }
 0x224   : > { %10633 = vmatmul.msk.f32.gmra.mxu0 %vm303_vm0, %v1643_v19  ;;  %10737 = vmatmul.msk.f32.gmra.mxu2 %vm303_vm0, %v2399_v23  ;;  %v2339_v49 = vadd.f32 %v2217_v35, %v1961_v24  ;;  %v1645_v23 = vld [vmem:[%s12070_s24 + $0x110] sm:$0xff]  ;;  %v2401_v24 = vld [vmem:[%s12070_s24 + $0x125] sm:$0xff] }
 0x226   : > { %10685 = vmatmul.msk.f32.gmra.mxu1 %vm303_vm0, %v2021_v37 }
 0x227   : > { %10789 = vmatmul.msk.f32.gmra.mxu3 %vm303_vm0, %v2777_v45  ;;  %v2595_v31 = vpop.f32.mrf.mxu2 }
 0x228   : > { %v2717_v52 = vadd.f32 %v2595_v31, %v2339_v49  ;;  %v2023_v49 = vld [vmem:[%s12070_s24 + $0x111] sm:$0xff]  ;;  %v2779_v31 = vld [vmem:[%s12070_s24 + $0x126] sm:$0xff] }
 0x229   : > { %v1842_v53 = vpop.f32.mrf.mxu0 }
 0x22a   : > { %v1962_v59 = vadd.f32 %v1842_v53, %v12339_v1  ;;  %v2973_v58 = vpop.f32.mrf.mxu3 }
 0x22b   : > { %v12872_v0 = vadd.f32 %v2973_v58, %v2717_v52  ;;  %v2220_v4 = vpop.f32.mrf.mxu1  ;;  %v2402_v58 = vld [vmem:[%s12070_s24 + $0x12d] sm:$0xff] }
 0x22c   : > { %10634 = vmatmul.msk.f32.gmra.mxu0 %vm303_vm0, %v1644_v55  ;;  %10738 = vmatmul.msk.f32.gmra.mxu2 %vm303_vm0, %v2400_v57  ;;  %v2340_v18 = vadd.f32 %v2220_v4, %v1962_v59  ;;  %v10918_v55 = vld [vmem:[%s16278_s1 + $0x290] sm:$0xff]  ;;  %v1646_v59 = vld [vmem:[%s12070_s24 + $0x118] sm:$0xff] }
 0x22d   : > { %4088 = vmatpush.msra.mxu2 %v10918_v55 }
 0x22e   : > { %10686 = vmatmul.msk.f32.gmra.mxu1 %vm303_vm0, %v2022_v13 }
 0x22f   : > { %10790 = vmatmul.msk.f32.gmra.mxu3 %vm303_vm0, %v2778_v17  ;;  %v2598_v42 = vpop.f32.mrf.mxu2 }
 0x230   : > { %v2718_v19 = vadd.f32 %v2598_v42, %v2340_v18  ;;  %v2024_v42 = vld [vmem:[%s12070_s24 + $0x119] sm:$0xff] }
 0x231   : > { %v1845_v1 = vpop.f32.mrf.mxu0 }
 0x232   : > { %v1963_v5 = vadd.f32 %v1845_v1, %v12352_v14  ;;  %v2976_v35 = vpop.f32.mrf.mxu3  ;;  %v2780_v1 = vld [vmem:[%s12070_s24 + $0x12e] sm:$0xff] }
 0x233   : > { %v12883_v37 = vadd.f32 %v2976_v35, %v2718_v19  ;;  %v2223_v45 = vpop.f32.mrf.mxu1  ;;  %v10814_v19 = vld [vmem:[%s16278_s1 + $0x210] sm:$0xff] }
 0x234   : > { %10635 = vmatmul.msk.f32.gmra.mxu0 %vm303_vm0, %v1645_v23  ;;  %10739 = vmatmul.msk.f32.gmra.mxu2 %vm303_vm0, %v2401_v24  ;;  %v2341_v52 = vadd.f32 %v2223_v45, %v1963_v5  ;;  %v10973_v23 = vld [vmem:[%s16278_s1 + $0x2e8] sm:$0xff] }
 0x235   : > { %3332 = vmatpush.msra.mxu0 %v10814_v19  ;;  %4463 = vmatpush.msra.mxu3 %v10973_v23 }
 0x236   : > { %10687 = vmatmul.msk.f32.gmra.mxu1 %vm303_vm0, %v2023_v49  ;;  %v1647_v49 = vld [vmem:[%s12070_s24 + $0x120] sm:$0xff] }
 0x237   : > { %10791 = vmatmul.msk.f32.gmra.mxu3 %vm303_vm0, %v2779_v31  ;;  %v2601_v53 = vpop.f32.mrf.mxu2  ;;  %v2403_v31 = vld [vmem:[%s12070_s24 + $0x135] sm:$0xff] }
 0x238   : > { %v2719_v14 = vadd.f32 %v2601_v53, %v2341_v52 }
 0x239   : > { %v1848_v57 = vpop.f32.mrf.mxu0 }
 0x23a   : > { %v1964_v4 = vadd.f32 %v1848_v57, %v12371_v29  ;;  %v2979_v13 = vpop.f32.mrf.mxu3  ;;  %v10866_v29 = vld [vmem:[%s16278_s1 + $0x250] sm:$0xff]  ;;  %v2025_v57 = vld [vmem:[%s12070_s24 + $0x121] sm:$0xff] }
 0x23b   : > { %v12897_v17 = vadd.f32 %v2979_v13, %v2719_v14  ;;  %v2226_v18 = vpop.f32.mrf.mxu1  ;;  %3710 = vmatpush.msra.mxu1 %v10866_v29 }
 0x23c   : > { %10636 = vmatmul.msk.f32.gmra.mxu0 %vm303_vm0, %v1646_v59  ;;  %10740 = vmatmul.msk.f32.gmra.mxu2 %vm303_vm0, %v2402_v58  ;;  %v2342_v24 = vadd.f32 %v2226_v18, %v1964_v4  ;;  %v2781_v59 = vld [vmem:[%s12070_s24 + $0x136] sm:$0xff]  ;;  %v1648_v18 = vld [vmem:[%s12070_s24 + $0x128] sm:$0xff] }
 0x23e   : > { %10688 = vmatmul.msk.f32.gmra.mxu1 %vm303_vm0, %v2024_v42  ;;  %v2404_v42 = vld [vmem:[%s12070_s24 + $0x13d] sm:$0xff] }
 0x23f   : > { %10792 = vmatmul.msk.f32.gmra.mxu3 %vm303_vm0, %v2780_v1  ;;  %v2604_v5 = vpop.f32.mrf.mxu2 }
 0x240   : > { %v2720_v35 = vadd.f32 %v2604_v5, %v2342_v24  ;;  %v2026_v24 = vld [vmem:[%s12070_s24 + $0x129] sm:$0xff]  ;;  %v2782_v5 = vld [vmem:[%s12070_s24 + $0x13e] sm:$0xff] }
 0x241   : > { %v1851_v45 = vpop.f32.mrf.mxu0 }
 0x242   : > { %v1965_v52 = vadd.f32 %v1851_v45, %v12381_v41  ;;  %v2982_v53 = vpop.f32.mrf.mxu3 }
 0x243   : > { %v12917_v14 = vadd.f32 %v2982_v53, %v2720_v35  ;;  %v2229_v55 = vpop.f32.mrf.mxu1 }
 0x244   : > { %10637 = vmatmul.msk.f32.gmra.mxu0 %vm303_vm0, %v1647_v49  ;;  %10741 = vmatmul.msk.f32.gmra.mxu2 %vm303_vm0, %v2403_v31  ;;  %v2343_v58 = vadd.f32 %v2229_v55, %v1965_v52  ;;  %v1649_v31 = vld [vmem:[%s12070_s24 + $0x130] sm:$0xff]  ;;  %v2405_v52 = vld [vmem:[%s12070_s24 + $0x145] sm:$0xff] }
 0x246   : > { %10689 = vmatmul.msk.f32.gmra.mxu1 %vm303_vm0, %v2025_v57 }
 0x247   : > { %10793 = vmatmul.msk.f32.gmra.mxu3 %vm303_vm0, %v2781_v59  ;;  %v2607_v4 = vpop.f32.mrf.mxu2 }
 0x248   : > { %v2721_v13 = vadd.f32 %v2607_v4, %v2343_v58  ;;  %v2027_v58 = vld [vmem:[%s12070_s24 + $0x131] sm:$0xff]  ;;  %v2783_v4 = vld [vmem:[%s12070_s24 + $0x146] sm:$0xff] }
 0x249   : > { %v1854_v41 = vpop.f32.mrf.mxu0 }
 0x24a   : > { %v1966_v19 = vadd.f32 %v1854_v41, %v12391_v54  ;;  %v2985_v1 = vpop.f32.mrf.mxu3 }
 0x24b   : > { %v12928_v29 = vadd.f32 %v2985_v1, %v2721_v13  ;;  %v2232_v23 = vpop.f32.mrf.mxu1 }
 0x24c   : > { %10638 = vmatmul.msk.f32.gmra.mxu0 %vm303_vm0, %v1648_v18  ;;  %10742 = vmatmul.msk.f32.gmra.mxu2 %vm303_vm0, %v2404_v42  ;;  %v2344_v35 = vadd.f32 %v2232_v23, %v1966_v19  ;;  %v1650_v42 = vld [vmem:[%s12070_s24 + $0x138] sm:$0xff]  ;;  %v2406_v19 = vld [vmem:[%s12070_s24 + $0x14d] sm:$0xff] }
 0x24e   : > { %10690 = vmatmul.msk.f32.gmra.mxu1 %vm303_vm0, %v2026_v24 }
 0x24f   : > { %10794 = vmatmul.msk.f32.gmra.mxu3 %vm303_vm0, %v2782_v5  ;;  %v2610_v45 = vpop.f32.mrf.mxu2 }
 0x250   : > { %v2722_v49 = vadd.f32 %v2610_v45, %v2344_v35  ;;  %v2028_v35 = vld [vmem:[%s12070_s24 + $0x139] sm:$0xff]  ;;  %v2784_v45 = vld [vmem:[%s12070_s24 + $0x14e] sm:$0xff] }
 0x251   : > { %v1857_v54 = vpop.f32.mrf.mxu0 }
 0x252   : > { %v1967_v53 = vadd.f32 %v1857_v54, %v12401_v3  ;;  %v2988_v55 = vpop.f32.mrf.mxu3 }
 0x253   : > { %v12939_v57 = vadd.f32 %v2988_v55, %v2722_v49  ;;  %v2235_v59 = vpop.f32.mrf.mxu1 }
 0x254   : > { %10639 = vmatmul.msk.f32.gmra.mxu0 %vm303_vm0, %v1649_v31  ;;  %10743 = vmatmul.msk.f32.gmra.mxu2 %vm303_vm0, %v2405_v52  ;;  %v2345_v13 = vadd.f32 %v2235_v59, %v1967_v53  ;;  %v1651_v52 = vld [vmem:[%s12070_s24 + $0x140] sm:$0xff]  ;;  %v2407_v53 = vld [vmem:[%s12070_s24 + $0x155] sm:$0xff] }
 0x256   : > { %10691 = vmatmul.msk.f32.gmra.mxu1 %vm303_vm0, %v2027_v58 }
 0x257   : > { %10795 = vmatmul.msk.f32.gmra.mxu3 %vm303_vm0, %v2783_v4  ;;  %v2613_v41 = vpop.f32.mrf.mxu2 }
 0x258   : > { %v2723_v18 = vadd.f32 %v2613_v41, %v2345_v13  ;;  %v2029_v13 = vld [vmem:[%s12070_s24 + $0x141] sm:$0xff]  ;;  %v2785_v41 = vld [vmem:[%s12070_s24 + $0x156] sm:$0xff] }
 0x259   : > { %v1860_v3 = vpop.f32.mrf.mxu0 }
 0x25a   : > { %v1968_v1 = vadd.f32 %v1860_v3, %v12411_v16  ;;  %v2991_v23 = vpop.f32.mrf.mxu3 }
 0x25b   : > { %v12950_v24 = vadd.f32 %v2991_v23, %v2723_v18  ;;  %v2238_v5 = vpop.f32.mrf.mxu1  ;;  %v10917_v18 = vld [vmem:[%s16278_s1 + $0x288] sm:$0xff]  ;;  %v10972_v23 = vld [vmem:[%s16278_s1 + $0x2e0] sm:$0xff] }
 0x25c   : > { %10640 = vmatmul.msk.f32.gmra.mxu0 %vm303_vm0, %v1650_v42  ;;  %10744 = vmatmul.msk.f32.gmra.mxu2 %vm303_vm0, %v2406_v19  ;;  %v2346_v49 = vadd.f32 %v2238_v5, %v1968_v1  ;;  %v10813_v42 = vld [vmem:[%s16278_s1 + $0x208] sm:$0xff] }
 0x25d   : > { %4089 = vmatpush.msra.mxu2 %v10917_v18  ;;  %3333 = vmatpush.msra.mxu0 %v10813_v42  ;;  %v10865_v1 = vld [vmem:[%s16278_s1 + $0x248] sm:$0xff] }
 0x25e   : > { %10692 = vmatmul.msk.f32.gmra.mxu1 %vm303_vm0, %v2028_v35  ;;  %v1652_v35 = vld [vmem:[%s12070_s24 + $0x148] sm:$0xff]  ;;  %4464 = vmatpush.msra.mxu3 %v10972_v23 }
 0x25f   : > { %10796 = vmatmul.msk.f32.gmra.mxu3 %vm303_vm0, %v2784_v45  ;;  %v2616_v54 = vpop.f32.mrf.mxu2  ;;  %v2408_v45 = vld [vmem:[%s12070_s24 + $0x15d] sm:$0xff]  ;;  %3711 = vmatpush.msra.mxu1 %v10865_v1  ;;  %v2787_v1 = vld [vmem:[%s12070_s24 + $0x166] sm:$0xff] }
 0x260   : > { %v2724_v31 = vadd.f32 %v2616_v54, %v2346_v49 }
 0x261   : > { %v1863_v16 = vpop.f32.mrf.mxu0 }
 0x262   : > { %v1969_v55 = vadd.f32 %v1863_v16, %v12433_v34  ;;  %v2994_v59 = vpop.f32.mrf.mxu3 }
 0x263   : > { %v12961_v58 = vadd.f32 %v2994_v59, %v2724_v31  ;;  %v2241_v4 = vpop.f32.mrf.mxu1 }
 0x264   : > { %10641 = vmatmul.msk.f32.gmra.mxu0 %vm303_vm0, %v1651_v52  ;;  %10745 = vmatmul.msk.f32.gmra.mxu2 %vm303_vm0, %v2407_v53  ;;  %v2347_v3 = vadd.f32 %v2241_v4, %v1969_v55  ;;  %v2030_v52 = vld [vmem:[%s12070_s24 + $0x149] sm:$0xff]  ;;  %v2786_v53 = vld [vmem:[%s12070_s24 + $0x15e] sm:$0xff] }
 0x266   : > { %10693 = vmatmul.msk.f32.gmra.mxu1 %vm303_vm0, %v2029_v13  ;;  %v1653_v13 = vld [vmem:[%s12070_s24 + $0x150] sm:$0xff] }
 0x267   : > { %10797 = vmatmul.msk.f32.gmra.mxu3 %vm303_vm0, %v2785_v41  ;;  %v2619_v34 = vpop.f32.mrf.mxu2  ;;  %v2409_v41 = vld [vmem:[%s12070_s24 + $0x165] sm:$0xff] }
 0x268   : > { %v2725_v19 = vadd.f32 %v2619_v34, %v2347_v3 }
 0x269   : > { %v1866_v5 = vpop.f32.mrf.mxu0 }
 0x26a   : > { %v1970_v49 = vadd.f32 %v1866_v5, %v12443_v47  ;;  %v2997_v54 = vpop.f32.mrf.mxu3 }
 0x26b   : > { %v12984_v31 = vadd.f32 %v2997_v54, %v2725_v19  ;;  %v2244_v16 = vpop.f32.mrf.mxu1  ;;  %v2031_v19 = vld [vmem:[%s12070_s24 + $0x151] sm:$0xff] }
 0x26c   : > { %10642 = vmatmul.msk.f32.gmra.mxu0 %vm303_vm0, %v1652_v35  ;;  %10746 = vmatmul.msk.f32.gmra.mxu2 %vm303_vm0, %v2408_v45  ;;  %v2348_v55 = vadd.f32 %v2244_v16, %v1970_v49  ;;  %v1654_v45 = vld [vmem:[%s12070_s24 + $0x158] sm:$0xff]  ;;  %v2410_v49 = vld [vmem:[%s12070_s24 + $0x16d] sm:$0xff] }
 0x26e   : > { %10694 = vmatmul.msk.f32.gmra.mxu1 %vm303_vm0, %v2030_v52 }
 0x26f   : > { %10798 = vmatmul.msk.f32.gmra.mxu3 %vm303_vm0, %v2786_v53  ;;  %v2622_v59 = vpop.f32.mrf.mxu2 }
 0x270   : > { %v2726_v4 = vadd.f32 %v2622_v59, %v2348_v55  ;;  %v2032_v55 = vld [vmem:[%s12070_s24 + $0x159] sm:$0xff]  ;;  %v2788_v59 = vld [vmem:[%s12070_s24 + $0x16e] sm:$0xff] }
 0x271   : > { %v1869_v47 = vpop.f32.mrf.mxu0 }
 0x272   : > { %v1971_v18 = vadd.f32 %v1869_v47, %v12453_v61  ;;  %v3000_v3 = vpop.f32.mrf.mxu3 }
 0x273   : > { %v12995_v34 = vadd.f32 %v3000_v3, %v2726_v4  ;;  %v2247_v42 = vpop.f32.mrf.mxu1 }
 0x274   : > { %10643 = vmatmul.msk.f32.gmra.mxu0 %vm303_vm0, %v1653_v13  ;;  %10747 = vmatmul.msk.f32.gmra.mxu2 %vm303_vm0, %v2409_v41  ;;  %v2349_v23 = vadd.f32 %v2247_v42, %v1971_v18  ;;  %v1655_v41 = vld [vmem:[%s12070_s24 + $0x160] sm:$0xff]  ;;  %v2411_v18 = vld [vmem:[%s12070_s24 + $0x175] sm:$0xff] }
 0x276   : > { %10695 = vmatmul.msk.f32.gmra.mxu1 %vm303_vm0, %v2031_v19 }
 0x277   : > { %10799 = vmatmul.msk.f32.gmra.mxu3 %vm303_vm0, %v2787_v1  ;;  %v2625_v5 = vpop.f32.mrf.mxu2 }
 0x278   : > { %v2727_v35 = vadd.f32 %v2625_v5, %v2349_v23  ;;  %v2033_v23 = vld [vmem:[%s12070_s24 + $0x161] sm:$0xff]  ;;  %v2789_v5 = vld [vmem:[%s12070_s24 + $0x176] sm:$0xff] }
 0x279   : > { %v1872_v61 = vpop.f32.mrf.mxu0 }
 0x27a   : > { %v1972_v54 = vadd.f32 %v1872_v61, %v12463_v11  ;;  %v3003_v16 = vpop.f32.mrf.mxu3 }
 0x27b   : > { %v13006_v52 = vadd.f32 %v3003_v16, %v2727_v35  ;;  %v2250_v53 = vpop.f32.mrf.mxu1 }
 0x27c   : > { %10644 = vmatmul.msk.f32.gmra.mxu0 %vm303_vm0, %v1654_v45  ;;  %10748 = vmatmul.msk.f32.gmra.mxu2 %vm303_vm0, %v2410_v49  ;;  %v2350_v4 = vadd.f32 %v2250_v53, %v1972_v54  ;;  %v1656_v49 = vld [vmem:[%s12070_s24 + $0x168] sm:$0xff]  ;;  %v2412_v54 = vld [vmem:[%s12070_s24 + $0x17d] sm:$0xff] }
 0x27e   : > { %10696 = vmatmul.msk.f32.gmra.mxu1 %vm303_vm0, %v2032_v55 }
 0x27f   : > { %10800 = vmatmul.msk.f32.gmra.mxu3 %vm303_vm0, %v2788_v59  ;;  %v2628_v47 = vpop.f32.mrf.mxu2 }
 0x280   : > { %v2728_v13 = vadd.f32 %v2628_v47, %v2350_v4  ;;  %v2034_v4 = vld [vmem:[%s12070_s24 + $0x169] sm:$0xff]  ;;  %v2790_v47 = vld [vmem:[%s12070_s24 + $0x17e] sm:$0xff] }
 0x281   : > { %v1875_v11 = vpop.f32.mrf.mxu0 }
 0x282   : > { %v1973_v3 = vadd.f32 %v1875_v11, %v12473_v25  ;;  %v3006_v42 = vpop.f32.mrf.mxu3 }
 0x283   : > { %v13017_v19 = vadd.f32 %v3006_v42, %v2728_v13  ;;  %v2253_v1 = vpop.f32.mrf.mxu1  ;;  %v2413_v42 = vld [vmem:[%s12070_s24 + $0x185] sm:$0xff] }
 0x284   : > { %10645 = vmatmul.msk.f32.gmra.mxu0 %vm303_vm0, %v1655_v41  ;;  %10749 = vmatmul.msk.f32.gmra.mxu2 %vm303_vm0, %v2411_v18  ;;  %v2351_v35 = vadd.f32 %v2253_v1, %v1973_v3  ;;  %v10916_v41 = vld [vmem:[%s16278_s1 + $0x280] sm:$0xff]  ;;  %v1657_v3 = vld [vmem:[%s12070_s24 + $0x170] sm:$0xff] }
 0x285   : > { %4090 = vmatpush.msra.mxu2 %v10916_v41 }
 0x286   : > { %10697 = vmatmul.msk.f32.gmra.mxu1 %vm303_vm0, %v2033_v23 }
 0x287   : > { %10801 = vmatmul.msk.f32.gmra.mxu3 %vm303_vm0, %v2789_v5  ;;  %v2631_v61 = vpop.f32.mrf.mxu2 }
 0x288   : > { %v2729_v45 = vadd.f32 %v2631_v61, %v2351_v35  ;;  %v2035_v61 = vld [vmem:[%s12070_s24 + $0x171] sm:$0xff] }
 0x289   : > { %v1878_v25 = vpop.f32.mrf.mxu0 }
 0x28a   : > { %v1974_v16 = vadd.f32 %v1878_v25, %v12486_v40  ;;  %v3009_v53 = vpop.f32.mrf.mxu3  ;;  %v2791_v25 = vld [vmem:[%s12070_s24 + $0x186] sm:$0xff] }
 0x28b   : > { %v13028_v55 = vadd.f32 %v3009_v53, %v2729_v45  ;;  %v2256_v59 = vpop.f32.mrf.mxu1  ;;  %v10812_v45 = vld [vmem:[%s16278_s1 + $0x200] sm:$0xff] }
 0x28c   : > { %10646 = vmatmul.msk.f32.gmra.mxu0 %vm303_vm0, %v1656_v49  ;;  %10750 = vmatmul.msk.f32.gmra.mxu2 %vm303_vm0, %v2412_v54  ;;  %v2352_v13 = vadd.f32 %v2256_v59, %v1974_v16  ;;  %v10971_v49 = vld [vmem:[%s16278_s1 + $0x2d8] sm:$0xff] }
 0x28d   : > { %3334 = vmatpush.msra.mxu0 %v10812_v45  ;;  %4465 = vmatpush.msra.mxu3 %v10971_v49 }
 0x28e   : > { %10698 = vmatmul.msk.f32.gmra.mxu1 %vm303_vm0, %v2034_v4  ;;  %v1658_v4 = vld [vmem:[%s12070_s24 + $0x178] sm:$0xff] }
 0x28f   : > { %10802 = vmatmul.msk.f32.gmra.mxu3 %vm303_vm0, %v2790_v47  ;;  %v2634_v11 = vpop.f32.mrf.mxu2  ;;  %v2414_v47 = vld [vmem:[%s12070_s24 + $0x18d] sm:$0xff] }
 0x290   : > { %v2730_v40 = vadd.f32 %v2634_v11, %v2352_v13 }
 0x291   : > { %v1881_v18 = vpop.f32.mrf.mxu0 }
 0x292   : > { %v1975_v1 = vadd.f32 %v1881_v18, %v12505_v60  ;;  %v3012_v23 = vpop.f32.mrf.mxu3  ;;  %v10864_v60 = vld [vmem:[%s16278_s1 + $0x240] sm:$0xff] }
 0x293   : > { %v13042_v5 = vadd.f32 %v3012_v23, %v2730_v40  ;;  %v2259_v35 = vpop.f32.mrf.mxu1  ;;  %3712 = vmatpush.msra.mxu1 %v10864_v60  ;;  %v2036_v18 = vld [vmem:[%s12070_s24 + $0x179] sm:$0xff] }
 0x294   : > { %10647 = vmatmul.msk.f32.gmra.mxu0 %vm303_vm0, %v1657_v3  ;;  %10751 = vmatmul.msk.f32.gmra.mxu2 %vm303_vm0, %v2413_v42  ;;  %v2353_v54 = vadd.f32 %v2259_v35, %v1975_v1  ;;  %v2792_v3 = vld [vmem:[%s12070_s24 + $0x18e] sm:$0xff]  ;;  %v1659_v35 = vld [vmem:[%s12070_s24 + $0x180] sm:$0xff] }
 0x296   : > { %10699 = vmatmul.msk.f32.gmra.mxu1 %vm303_vm0, %v2035_v61  ;;  %v2415_v61 = vld [vmem:[%s12070_s24 + $0x195] sm:$0xff] }
 0x297   : > { %10803 = vmatmul.msk.f32.gmra.mxu3 %vm303_vm0, %v2791_v25  ;;  %v2637_v16 = vpop.f32.mrf.mxu2 }
 0x298   : > { %v2731_v53 = vadd.f32 %v2637_v16, %v2353_v54  ;;  %v2037_v54 = vld [vmem:[%s12070_s24 + $0x181] sm:$0xff]  ;;  %v2793_v16 = vld [vmem:[%s12070_s24 + $0x196] sm:$0xff] }
 0x299   : > { %v1884_v59 = vpop.f32.mrf.mxu0 }
 0x29a   : > { %v1976_v13 = vadd.f32 %v1884_v59, %v12515_v12  ;;  %v3015_v11 = vpop.f32.mrf.mxu3 }
 0x29b   : > { %v13062_v40 = vadd.f32 %v3015_v11, %v2731_v53  ;;  %v2262_v41 = vpop.f32.mrf.mxu1 }
 0x29c   : > { %10648 = vmatmul.msk.f32.gmra.mxu0 %vm303_vm0, %v1658_v4  ;;  %10752 = vmatmul.msk.f32.gmra.mxu2 %vm303_vm0, %v2414_v47  ;;  %v2354_v42 = vadd.f32 %v2262_v41, %v1976_v13  ;;  %v1660_v47 = vld [vmem:[%s12070_s24 + $0x188] sm:$0xff]  ;;  %v2416_v13 = vld [vmem:[%s12070_s24 + $0x19d] sm:$0xff] }
 0x29e   : > { %10700 = vmatmul.msk.f32.gmra.mxu1 %vm303_vm0, %v2036_v18 }
 0x29f   : > { %10804 = vmatmul.msk.f32.gmra.mxu3 %vm303_vm0, %v2792_v3  ;;  %v2640_v1 = vpop.f32.mrf.mxu2 }
 0x2a0   : > { %v2732_v23 = vadd.f32 %v2640_v1, %v2354_v42  ;;  %v2038_v42 = vld [vmem:[%s12070_s24 + $0x189] sm:$0xff]  ;;  %v2794_v1 = vld [vmem:[%s12070_s24 + $0x19e] sm:$0xff] }
 0x2a1   : > { %v1887_v12 = vpop.f32.mrf.mxu0 }
 0x2a2   : > { %v1977_v45 = vadd.f32 %v1887_v12, %v12525_v27  ;;  %v3018_v25 = vpop.f32.mrf.mxu3 }
 0x2a3   : > { %v13073_v60 = vadd.f32 %v3018_v25, %v2732_v23  ;;  %v2265_v49 = vpop.f32.mrf.mxu1 }
 0x2a4   : > { %10649 = vmatmul.msk.f32.gmra.mxu0 %vm303_vm0, %v1659_v35  ;;  %10753 = vmatmul.msk.f32.gmra.mxu2 %vm303_vm0, %v2415_v61  ;;  %v2355_v53 = vadd.f32 %v2265_v49, %v1977_v45  ;;  %v1661_v61 = vld [vmem:[%s12070_s24 + $0x190] sm:$0xff]  ;;  %v2417_v45 = vld [vmem:[%s12070_s24 + $0x1a5] sm:$0xff] }
 0x2a6   : > { %10701 = vmatmul.msk.f32.gmra.mxu1 %vm303_vm0, %v2037_v54 }
 0x2a7   : > { %10805 = vmatmul.msk.f32.gmra.mxu3 %vm303_vm0, %v2793_v16  ;;  %v2643_v59 = vpop.f32.mrf.mxu2 }
 0x2a8   : > { %v2733_v4 = vadd.f32 %v2643_v59, %v2355_v53  ;;  %v2039_v53 = vld [vmem:[%s12070_s24 + $0x191] sm:$0xff]  ;;  %v2795_v59 = vld [vmem:[%s12070_s24 + $0x1a6] sm:$0xff] }
 0x2a9   : > { %v1890_v27 = vpop.f32.mrf.mxu0 }
 0x2aa   : > { %v1978_v11 = vadd.f32 %v1890_v27, %v12535_v44  ;;  %v3021_v41 = vpop.f32.mrf.mxu3 }
 0x2ab   : > { %v13084_v18 = vadd.f32 %v3021_v41, %v2733_v4  ;;  %v2268_v3 = vpop.f32.mrf.mxu1  ;;  %v10970_v41 = vld [vmem:[%s16278_s1 + $0x2d0] sm:$0xff] }
 0x2ac   : > { %10650 = vmatmul.msk.f32.gmra.mxu0 %vm303_vm0, %v1660_v47  ;;  %10754 = vmatmul.msk.f32.gmra.mxu2 %vm303_vm0, %v2416_v13  ;;  %v2356_v23 = vadd.f32 %v2268_v3, %v1978_v11  ;;  %v1662_v13 = vld [vmem:[%s12070_s24 + $0x198] sm:$0xff]  ;;  %v2418_v11 = vld [vmem:[%s12070_s24 + $0x1ad] sm:$0xff] }
 0x2ad   : > { %4466 = vmatpush.msra.mxu3 %v10970_v41  ;;  %v2041_v41 = vld [vmem:[%s12070_s24 + $0x1a1] sm:$0xff] }
 0x2ae   : > { %10702 = vmatmul.msk.f32.gmra.mxu1 %vm303_vm0, %v2038_v42 }
 0x2af   : > { %10806 = vmatmul.msk.f32.gmra.mxu3 %vm303_vm0, %v2794_v1  ;;  %v2646_v12 = vpop.f32.mrf.mxu2 }
 0x2b0   : > { %v2734_v35 = vadd.f32 %v2646_v12, %v2356_v23  ;;  %v2040_v12 = vld [vmem:[%s12070_s24 + $0x199] sm:$0xff] }
 0x2b1   : > { %v1893_v44 = vpop.f32.mrf.mxu0 }
 0x2b2   : > { %v1979_v25 = vadd.f32 %v1893_v44, %v12548_v62  ;;  %v3024_v49 = vpop.f32.mrf.mxu3  ;;  %v2796_v44 = vld [vmem:[%s12070_s24 + $0x1ae] sm:$0xff] }
 0x2b3   : > { %v13095_v54 = vadd.f32 %v3024_v49, %v2734_v35  ;;  %v2271_v16 = vpop.f32.mrf.mxu1  ;;  %v10969_v35 = vld [vmem:[%s16278_s1 + $0x2c8] sm:$0xff]  ;;  %v11027_v49 = vld [vmem:[%s16278_s1 + $0x338] sm:$0xff] }
 0x2b4   : > { %10651 = vmatmul.msk.f32.gmra.mxu0 %vm303_vm0, %v1661_v61  ;;  %10755 = vmatmul.msk.f32.gmra.mxu2 %vm303_vm0, %v2417_v45  ;;  %v2357_v4 = vadd.f32 %v2271_v16, %v1979_v25  ;;  %v10968_v61 = vld [vmem:[%s16278_s1 + $0x2c0] sm:$0xff] }
 0x2b5   : > { %4467 = vmatpush.msra.mxu3 %v10969_v35  ;;  %4839 = vmatpush.msrb.mxu0 %v11027_v49  ;;  %v1664_v35 = vld [vmem:[%s12070_s24 + $0x1a8] sm:$0xff] }
 0x2b6   : > { %10703 = vmatmul.msk.f32.gmra.mxu1 %vm303_vm0, %v2039_v53  ;;  %v11079_v53 = vld [vmem:[%s16278_s1 + $0x378] sm:$0xff]  ;;  %v2042_v49 = vld [vmem:[%s12070_s24 + $0x1a9] sm:$0xff] }
 0x2b7   : > { %10807 = vmatmul.msk.f32.gmra.mxu3 %vm303_vm0, %v2795_v59  ;;  %v2649_v27 = vpop.f32.mrf.mxu2  ;;  %5041 = vmatpush.msrb.mxu1 %v11079_v53 }
 0x2b8   : > { %v2735_v47 = vadd.f32 %v2649_v27, %v2357_v4  ;;  %4468 = vmatpush.msra.mxu3 %v10968_v61  ;;  %v1663_v4 = vld [vmem:[%s12070_s24 + $0x1a0] sm:$0xff]  ;;  %v2419_v27 = vld [vmem:[%s12070_s24 + $0x1b5] sm:$0xff] }
 0x2b9   : > { %v1896_v62 = vpop.f32.mrf.mxu0 }
 0x2ba   : > { %v1980_v3 = vadd.f32 %v1896_v62, %v12573_v22  ;;  %v3027_v42 = vpop.f32.mrf.mxu3  ;;  %v11131_v22 = vld [vmem:[%s16278_s1 + $0x3b8] sm:$0xff] }
 0x2bb   : > { %v13109_v1 = vadd.f32 %v3027_v42, %v2735_v47  ;;  %v2274_v23 = vpop.f32.mrf.mxu1  ;;  %5419 = vmatpush.msrb.mxu2 %v11131_v22 }
 0x2bc   : > { %10652 = vmatmul.msk.f32.gmra.mxu0 %vm303_vm0, %v1662_v13  ;;  %10756 = vmatmul.msk.f32.gmra.mxu2 %vm303_vm0, %v2418_v11  ;;  %v2358_v45 = vadd.f32 %v2274_v23, %v1980_v3  ;;  %v2797_v3 = vld [vmem:[%s12070_s24 + $0x1b6] sm:$0xff] }
 0x2be   : > { %10704 = vmatmul.msk.f32.gmra.mxu1 %vm303_vm0, %v2040_v12 }
 0x2bf   : > { %10808 = vmatmul.msk.f32.gmra.mxu3 %vm303_vm0, %v2796_v44  ;;  %v2652_v25 = vpop.f32.mrf.mxu2  ;;  %v2420_v44 = vld [vmem:[%s12070_s24 + $0x1bd] sm:$0xff] }
 0x2c0   : > { %v2736_v16 = vadd.f32 %v2652_v25, %v2358_v45 }
 0x2c1   : > { %v1899_v59 = vpop.f32.mrf.mxu0 }
 0x2c2   : > { %v1981_v47 = vadd.f32 %v1899_v59, %v12583_v38  ;;  %v3030_v62 = vpop.f32.mrf.mxu3 }
 0x2c3   : > { %v13135_v13 = vadd.f32 %v3030_v62, %v2736_v16  ;;  %v2277_v11 = vpop.f32.mrf.mxu1  ;;  %v2798_v16 = vld [vmem:[%s12070_s24 + $0x1be] sm:$0xff] }
 0x2c4   : > { %10653 = vmatmul.msk.f32.gmra.mxu0 %vm303_vm0, %v1663_v4  ;;  %10757 = vmatmul.msk.f32.gmra.mxu2 %vm303_vm0, %v2419_v27  ;;  %v2359_v42 = vadd.f32 %v2277_v11, %v1981_v47  ;;  %v1665_v27 = vld [vmem:[%s12070_s24 + $0x1b0] sm:$0xff]  ;;  %v2421_v47 = vld [vmem:[%s12070_s24 + $0x1c5] sm:$0xff] }
 0x2c6   : > { %10705 = vmatmul.msk.f32.gmra.mxu1 %vm303_vm0, %v2041_v41 }
 0x2c7   : > { %10809 = vmatmul.msk.f32.gmra.mxu3 %vm303_vm0, %v2797_v3  ;;  %v2655_v23 = vpop.f32.mrf.mxu2 }
 0x2c8   : > { %v2737_v12 = vadd.f32 %v2655_v23, %v2359_v42  ;;  %v2043_v42 = vld [vmem:[%s12070_s24 + $0x1b1] sm:$0xff]  ;;  %v2799_v23 = vld [vmem:[%s12070_s24 + $0x1c6] sm:$0xff] }
 0x2c9   : > { %v1902_v38 = vpop.f32.mrf.mxu0 }
 0x2ca   : > { %v1982_v22 = vadd.f32 %v1902_v38, %v12593_v56  ;;  %v3033_v61 = vpop.f32.mrf.mxu3 }
 0x2cb   : > { %v13146_v45 = vadd.f32 %v3033_v61, %v2737_v12  ;;  %v2280_v25 = vpop.f32.mrf.mxu1 }
 0x2cc   : > { %10654 = vmatmul.msk.f32.gmra.mxu0 %vm303_vm0, %v1664_v35  ;;  %10758 = vmatmul.msk.f32.gmra.mxu2 %vm303_vm0, %v2420_v44  ;;  %v2360_v53 = vadd.f32 %v2280_v25, %v1982_v22  ;;  %v3134_v44 = vld [vmem:[%s12070_s24 + $0x6f] sm:$0xff] }
 0x2cd   : > { %v3890_v22 = vld [vmem:[%s12070_s24 + $0x2c] sm:$0xff] }
 0x2ce   : > { %10706 = vmatmul.msk.f32.gmra.mxu1 %vm303_vm0, %v2042_v49 }
 0x2cf   : > { %10810 = vmatmul.msk.f32.gmra.mxu3 %vm303_vm0, %v2798_v16  ;;  %v2658_v59 = vpop.f32.mrf.mxu2 }
 0x2d0   : > { %v2738_v4 = vadd.f32 %v2658_v59, %v2360_v53  ;;  %v3512_v53 = vld [vmem:[%s12070_s24 + $0x2a] sm:$0xff] }
 0x2d1   : > { %v1905_v56 = vpop.f32.mrf.mxu0  ;;  %v4268_v59 = vld [vmem:[%s12070_s24 + $0x2e] sm:$0xff] }
 0x2d2   : > { %v1983_v62 = vadd.f32 %v1905_v56, %v12603_v10  ;;  %v3036_v11 = vpop.f32.mrf.mxu3 }
 0x2d3   : > { %v13157_v41 = vadd.f32 %v3036_v11, %v2738_v4  ;;  %v2283_v3 = vpop.f32.mrf.mxu1 }
 0x2d4   : > { %10655 = vmatmul.msk.f32.gmra.mxu0 %vm303_vm0, %v1665_v27  ;;  %10759 = vmatmul.msk.f32.gmra.mxu2 %vm303_vm0, %v2421_v47  ;;  %v2361_v12 = vadd.f32 %v2283_v3, %v1983_v62  ;;  %v3135_v47 = vld [vmem:[%s12070_s24 + $0x77] sm:$0xff] }
 0x2d5   : > { %v3891_v62 = vld [vmem:[%s12070_s24 + $0x34] sm:$0xff] }
 0x2d6   : > { %10707 = vmatmul.msk.f32.gmra.mxu1 %vm303_vm0, %v2043_v42 }
 0x2d7   : > { %10811 = vmatmul.msk.f32.gmra.mxu3 %vm303_vm0, %v2799_v23  ;;  %v2661_v38 = vpop.f32.mrf.mxu2 }
 0x2d8   : > { %v2739_v35 = vadd.f32 %v2661_v38, %v2361_v12  ;;  %v3513_v12 = vld [vmem:[%s12070_s24 + $0x32] sm:$0xff] }
 0x2d9   : > { %v1908_v10 = vpop.f32.mrf.mxu0  ;;  %v4269_v38 = vld [vmem:[%s12070_s24 + $0x36] sm:$0xff] }
 0x2da   : > { %v1984_v61 = vadd.f32 %v1908_v10, %v12613_v30  ;;  %v3039_v25 = vpop.f32.mrf.mxu3 }
 0x2db   : > { %v13168_v49 = vadd.f32 %v3039_v25, %v2739_v35  ;;  %v2286_v16 = vpop.f32.mrf.mxu1  ;;  %v3892_v25 = vld [vmem:[%s12070_s24 + $0x3c] sm:$0xff] }
 0x2dc   : > { %10820 = vmatmul.msk.f32.vlgmr.msra.gmra.mxu0 %vm303_vm0, %v3134_v44  ;;  %10924 = vmatmul.msk.f32.vlgmr.msra.gmra.mxu2 %vm303_vm0, %v3890_v22  ;;  %v2362_v4 = vadd.f32 %v2286_v16, %v1984_v61  ;;  %v11130_v44 = vld [vmem:[%s16278_s1 + $0x3b0] sm:$0xff]  ;;  %v3136_v61 = vld [vmem:[%s12070_s24 + $0x7f] sm:$0xff] }
 0x2dd   : > { %5420 = vmatpush.msrb.mxu2 %v11130_v44  ;;  %v3515_v44 = vld [vmem:[%s12070_s24 + $0x42] sm:$0xff] }
 0x2de   : > { %10872 = vmatmul.msk.f32.vlgmr.msra.gmra.mxu1 %vm303_vm0, %v3512_v53 }
 0x2df   : > { %10976 = vmatmul.msk.f32.vlgmr.msra.gmra.mxu3 %vm303_vm0, %v4268_v59  ;;  %v2664_v56 = vpop.f32.mrf.mxu2 }
 0x2e0   : > { %v2740_v27 = vadd.f32 %v2664_v56, %v2362_v4  ;;  %v3514_v56 = vld [vmem:[%s12070_s24 + $0x3a] sm:$0xff] }
 0x2e1   : > { %v1911_v30 = vpop.f32.mrf.mxu0 }
 0x2e2   : > { %v1985_v11 = vadd.f32 %v1911_v30, %v12626_v50  ;;  %v3042_v3 = vpop.f32.mrf.mxu3  ;;  %v4270_v30 = vld [vmem:[%s12070_s24 + $0x3e] sm:$0xff] }
 0x2e3   : > { %v13179_v42 = vadd.f32 %v3042_v3, %v2740_v27  ;;  %v2289_v23 = vpop.f32.mrf.mxu1  ;;  %v11026_v27 = vld [vmem:[%s16278_s1 + $0x330] sm:$0xff] }
 0x2e4   : > { %10821 = vmatmul.msk.f32.gmra.mxu0 %vm303_vm0, %v3135_v47  ;;  %10925 = vmatmul.msk.f32.gmra.mxu2 %vm303_vm0, %v3891_v62  ;;  %v2363_v35 = vadd.f32 %v2289_v23, %v1985_v11  ;;  %v3137_v23 = vld [vmem:[%s12070_s24 + $0x87] sm:$0xff] }
 0x2e5   : > { %4840 = vmatpush.msrb.mxu0 %v11026_v27 }
 0x2e6   : > { %10873 = vmatmul.msk.f32.gmra.mxu1 %vm303_vm0, %v3513_v12  ;;  %v3893_v12 = vld [vmem:[%s12070_s24 + $0x44] sm:$0xff] }
 0x2e7   : > { %10977 = vmatmul.msk.f32.gmra.mxu3 %vm303_vm0, %v4269_v38  ;;  %v2667_v10 = vpop.f32.mrf.mxu2 }
 0x2e8   : > { %v2741_v50 = vadd.f32 %v2667_v10, %v2363_v35 }
 0x2e9   : > { %v1914_v22 = vpop.f32.mrf.mxu0 }
 0x2ea   : > { %v1986_v16 = vadd.f32 %v1914_v22, %v12642_v9  ;;  %v3045_v53 = vpop.f32.mrf.mxu3  ;;  %v11078_v9 = vld [vmem:[%s16278_s1 + $0x370] sm:$0xff]  ;;  %v4271_v22 = vld [vmem:[%s12070_s24 + $0x46] sm:$0xff] }
 0x2eb   : > { %v13193_v59 = vadd.f32 %v3045_v53, %v2741_v50  ;;  %v2292_v4 = vpop.f32.mrf.mxu1  ;;  %5042 = vmatpush.msrb.mxu1 %v11078_v9  ;;  %v3138_v53 = vld [vmem:[%s12070_s24 + $0x8f] sm:$0xff] }
 0x2ec   : > { %10822 = vmatmul.msk.f32.gmra.mxu0 %vm303_vm0, %v3136_v61  ;;  %10926 = vmatmul.msk.f32.gmra.mxu2 %vm303_vm0, %v3892_v25  ;;  %v2364_v47 = vadd.f32 %v2292_v4, %v1986_v16  ;;  %v3894_v4 = vld [vmem:[%s12070_s24 + $0x4c] sm:$0xff] }
 0x2ee   : > { %10874 = vmatmul.msk.f32.gmra.mxu1 %vm303_vm0, %v3514_v56 }
 0x2ef   : > { %10978 = vmatmul.msk.f32.gmra.mxu3 %vm303_vm0, %v4270_v30  ;;  %v2670_v62 = vpop.f32.mrf.mxu2 }
 0x2f0   : > { %v2742_v11 = vadd.f32 %v2670_v62, %v2364_v47  ;;  %v3516_v47 = vld [vmem:[%s12070_s24 + $0x4a] sm:$0xff] }
 0x2f1   : > { %v1917_v3 = vpop.f32.mrf.mxu0  ;;  %v4272_v62 = vld [vmem:[%s12070_s24 + $0x4e] sm:$0xff] }
 0x2f2   : > { %v1987_v38 = vadd.f32 %v1917_v3, %v12652_v32  ;;  %v3048_v35 = vpop.f32.mrf.mxu3 }
 0x2f3   : > { %v13210_v10 = vadd.f32 %v3048_v35, %v2742_v11  ;;  %v2295_v50 = vpop.f32.mrf.mxu1 }
 0x2f4   : > { %10823 = vmatmul.msk.f32.gmra.mxu0 %vm303_vm0, %v3137_v23  ;;  %10927 = vmatmul.msk.f32.gmra.mxu2 %vm303_vm0, %v3893_v12  ;;  %v2365_v61 = vadd.f32 %v2295_v50, %v1987_v38  ;;  %v3139_v12 = vld [vmem:[%s12070_s24 + $0x97] sm:$0xff] }
 0x2f5   : > { %v3895_v38 = vld [vmem:[%s12070_s24 + $0x54] sm:$0xff] }
 0x2f6   : > { %10875 = vmatmul.msk.f32.gmra.mxu1 %vm303_vm0, %v3515_v44 }
 0x2f7   : > { %10979 = vmatmul.msk.f32.gmra.mxu3 %vm303_vm0, %v4271_v22  ;;  %v2673_v25 = vpop.f32.mrf.mxu2 }
 0x2f8   : > { %v2743_v16 = vadd.f32 %v2673_v25, %v2365_v61  ;;  %v3517_v61 = vld [vmem:[%s12070_s24 + $0x52] sm:$0xff] }
 0x2f9   : > { %v1920_v32 = vpop.f32.mrf.mxu0  ;;  %v4273_v25 = vld [vmem:[%s12070_s24 + $0x56] sm:$0xff] }
 0x2fa   : > { %v1988_v56 = vadd.f32 %v1920_v32, %v12662_v51  ;;  %v3051_v27 = vpop.f32.mrf.mxu3 }
 0x2fb   : > { %v13221_v30 = vadd.f32 %v3051_v27, %v2743_v16  ;;  %v2298_v9 = vpop.f32.mrf.mxu1 }
 0x2fc   : > { %10824 = vmatmul.msk.f32.gmra.mxu0 %vm303_vm0, %v3138_v53  ;;  %10928 = vmatmul.msk.f32.gmra.mxu2 %vm303_vm0, %v3894_v4  ;;  %v2366_v11 = vadd.f32 %v2298_v9, %v1988_v56  ;;  %v3140_v4 = vld [vmem:[%s12070_s24 + $0x9f] sm:$0xff] }
 0x2fd   : > { %v3896_v56 = vld [vmem:[%s12070_s24 + $0x5c] sm:$0xff] }
 0x2fe   : > { %10876 = vmatmul.msk.f32.gmra.mxu1 %vm303_vm0, %v3516_v47 }
 0x2ff   : > { %10980 = vmatmul.msk.f32.gmra.mxu3 %vm303_vm0, %v4272_v62  ;;  %v2676_v3 = vpop.f32.mrf.mxu2 }
 0x300   : > { %v2744_v23 = vadd.f32 %v2676_v3, %v2366_v11  ;;  %v3518_v11 = vld [vmem:[%s12070_s24 + $0x5a] sm:$0xff] }
 0x301   : > { %v1923_v51 = vpop.f32.mrf.mxu0  ;;  %v4274_v3 = vld [vmem:[%s12070_s24 + $0x5e] sm:$0xff] }
 0x302   : > { %v1989_v35 = vadd.f32 %v1923_v51, %v12672_v8  ;;  %v3054_v50 = vpop.f32.mrf.mxu3 }
 0x303   : > { %v13232_v44 = vadd.f32 %v3054_v50, %v2744_v23  ;;  %v2301_v22 = vpop.f32.mrf.mxu1 }
 0x304   : > { %10825 = vmatmul.msk.f32.gmra.mxu0 %vm303_vm0, %v3139_v12  ;;  %10929 = vmatmul.msk.f32.gmra.mxu2 %vm303_vm0, %v3895_v38  ;;  %v2367_v16 = vadd.f32 %v2301_v22, %v1989_v35  ;;  %v3141_v38 = vld [vmem:[%s12070_s24 + $0xa7] sm:$0xff] }
 0x305   : > { %v3897_v35 = vld [vmem:[%s12070_s24 + $0x64] sm:$0xff] }
 0x306   : > { %10877 = vmatmul.msk.f32.gmra.mxu1 %vm303_vm0, %v3517_v61 }
 0x307   : > { %10981 = vmatmul.msk.f32.gmra.mxu3 %vm303_vm0, %v4273_v25  ;;  %v2679_v32 = vpop.f32.mrf.mxu2 }
 0x308   : > { %v2745_v53 = vadd.f32 %v2679_v32, %v2367_v16  ;;  %v3519_v16 = vld [vmem:[%s12070_s24 + $0x62] sm:$0xff] }
 0x309   : > { %v1926_v8 = vpop.f32.mrf.mxu0  ;;  %v4275_v32 = vld [vmem:[%s12070_s24 + $0x66] sm:$0xff] }
 0x30a   : > { %v1990_v27 = vadd.f32 %v1926_v8, %v12682_v33  ;;  %v3057_v9 = vpop.f32.mrf.mxu3 }
 0x30b   : > { %v13243_v47 = vadd.f32 %v3057_v9, %v2745_v53  ;;  %v2304_v62 = vpop.f32.mrf.mxu1  ;;  %v11129_v53 = vld [vmem:[%s16278_s1 + $0x3a8] sm:$0xff] }
 0x30c   : > { %10826 = vmatmul.msk.f32.gmra.mxu0 %vm303_vm0, %v3140_v4  ;;  %10930 = vmatmul.msk.f32.gmra.mxu2 %vm303_vm0, %v3896_v56  ;;  %v2368_v23 = vadd.f32 %v2304_v62, %v1990_v27  ;;  %v11025_v4 = vld [vmem:[%s16278_s1 + $0x328] sm:$0xff] }
 0x30d   : > { %5421 = vmatpush.msrb.mxu2 %v11129_v53  ;;  %4841 = vmatpush.msrb.mxu0 %v11025_v4  ;;  %v11077_v27 = vld [vmem:[%s16278_s1 + $0x368] sm:$0xff]  ;;  %v3521_v4 = vld [vmem:[%s12070_s24 + $0x72] sm:$0xff] }
 0x30e   : > { %10878 = vmatmul.msk.f32.gmra.mxu1 %vm303_vm0, %v3518_v11  ;;  %v3142_v62 = vld [vmem:[%s12070_s24 + $0xaf] sm:$0xff] }
 0x30f   : > { %10982 = vmatmul.msk.f32.gmra.mxu3 %vm303_vm0, %v4274_v3  ;;  %v2682_v51 = vpop.f32.mrf.mxu2  ;;  %v3898_v11 = vld [vmem:[%s12070_s24 + $0x6c] sm:$0xff]  ;;  %5043 = vmatpush.msrb.mxu1 %v11077_v27 }
 0x310   : > { %v2746_v12 = vadd.f32 %v2682_v51, %v2368_v23 }
 0x311   : > { %v1929_v33 = vpop.f32.mrf.mxu0 }
 0x312   : > { %v1991_v50 = vadd.f32 %v1929_v33, %v12701_v63  ;;  %v3060_v22 = vpop.f32.mrf.mxu3  ;;  %v3520_v33 = vld [vmem:[%s12070_s24 + $0x6a] sm:$0xff] }
 0x313   : > { %v13254_v61 = vadd.f32 %v3060_v22, %v2746_v12  ;;  %v2307_v25 = vpop.f32.mrf.mxu1 }
 0x314   : > { %10827 = vmatmul.msk.f32.gmra.mxu0 %vm303_vm0, %v3141_v38  ;;  %10931 = vmatmul.msk.f32.gmra.mxu2 %vm303_vm0, %v3897_v35  ;;  %v2369_v8 = vadd.f32 %v2307_v25, %v1991_v50  ;;  %v4276_v38 = vld [vmem:[%s12070_s24 + $0x6e] sm:$0xff]  ;;  %v3143_v25 = vld [vmem:[%s12070_s24 + $0xb7] sm:$0xff] }
 0x316   : > { %10879 = vmatmul.msk.f32.gmra.mxu1 %vm303_vm0, %v3519_v16  ;;  %v3899_v16 = vld [vmem:[%s12070_s24 + $0x74] sm:$0xff] }
 0x317   : > { %10983 = vmatmul.msk.f32.gmra.mxu3 %vm303_vm0, %v4275_v32  ;;  %v2685_v63 = vpop.f32.mrf.mxu2 }
 0x318   : > { %v2747_v56 = vadd.f32 %v2685_v63, %v2369_v8 }
 0x319   : > { %v1932_v9 = vpop.f32.mrf.mxu0 }
 0x31a   : > { %v1992_v3 = vadd.f32 %v1932_v9, %v12711_v21  ;;  %v3063_v23 = vpop.f32.mrf.mxu3 }
 0x31b   : > { %v13274_v51 = vadd.f32 %v3063_v23, %v2747_v56  ;;  %v2310_v12 = vpop.f32.mrf.mxu1  ;;  %v4277_v56 = vld [vmem:[%s12070_s24 + $0x76] sm:$0xff] }
 0x31c   : > { %10828 = vmatmul.msk.f32.gmra.mxu0 %vm303_vm0, %v3142_v62  ;;  %10932 = vmatmul.msk.f32.gmra.mxu2 %vm303_vm0, %v3898_v11  ;;  %v2370_v35 = vadd.f32 %v2310_v12, %v1992_v3  ;;  %v3144_v11 = vld [vmem:[%s12070_s24 + $0xbf] sm:$0xff] }
 0x31d   : > { %v3900_v3 = vld [vmem:[%s12070_s24 + $0x7c] sm:$0xff] }
 0x31e   : > { %10880 = vmatmul.msk.f32.gmra.mxu1 %vm303_vm0, %v3520_v33 }
 0x31f   : > { %10984 = vmatmul.msk.f32.gmra.mxu3 %vm303_vm0, %v4276_v38  ;;  %v2688_v50 = vpop.f32.mrf.mxu2 }
 0x320   : > { %v2748_v22 = vadd.f32 %v2688_v50, %v2370_v35  ;;  %v3522_v35 = vld [vmem:[%s12070_s24 + $0x7a] sm:$0xff] }
 0x321   : > { %v1935_v21 = vpop.f32.mrf.mxu0  ;;  %v4278_v50 = vld [vmem:[%s12070_s24 + $0x7e] sm:$0xff] }
 0x322   : > { %v1993_v32 = vadd.f32 %v1935_v21, %v12721_v46  ;;  %v3066_v53 = vpop.f32.mrf.mxu3 }
 0x323   : > { %v13285_v8 = vadd.f32 %v3066_v53, %v2748_v22  ;;  %v2313_v63 = vpop.f32.mrf.mxu1 }
 0x324   : > { %10829 = vmatmul.msk.f32.gmra.mxu0 %vm303_vm0, %v3143_v25  ;;  %10933 = vmatmul.msk.f32.gmra.mxu2 %vm303_vm0, %v3899_v16  ;;  %v2371_v27 = vadd.f32 %v2313_v63, %v1993_v32  ;;  %v3145_v16 = vld [vmem:[%s12070_s24 + $0xc7] sm:$0xff] }
 0x325   : > { %v3901_v32 = vld [vmem:[%s12070_s24 + $0x84] sm:$0xff] }
 0x326   : > { %10881 = vmatmul.msk.f32.gmra.mxu1 %vm303_vm0, %v3521_v4 }
 0x327   : > { %10985 = vmatmul.msk.f32.gmra.mxu3 %vm303_vm0, %v4277_v56  ;;  %v2691_v9 = vpop.f32.mrf.mxu2 }
 0x328   : > { %v2749_v62 = vadd.f32 %v2691_v9, %v2371_v27  ;;  %v3523_v27 = vld [vmem:[%s12070_s24 + $0x82] sm:$0xff] }
 0x329   : > { %v1938_v46 = vpop.f32.mrf.mxu0  ;;  %v4279_v9 = vld [vmem:[%s12070_s24 + $0x86] sm:$0xff] }
 0x32a   : > { %v1994_v23 = vadd.f32 %v1938_v46, %v12731_v7  ;;  %v3069_v12 = vpop.f32.mrf.mxu3 }
 0x32b   : > { %v13296_v33 = vadd.f32 %v3069_v12, %v2749_v62  ;;  %v2316_v38 = vpop.f32.mrf.mxu1 }
 0x32c   : > { %10830 = vmatmul.msk.f32.gmra.mxu0 %vm303_vm0, %v3144_v11  ;;  %10934 = vmatmul.msk.f32.gmra.mxu2 %vm303_vm0, %v3900_v3  ;;  %v2372_v22 = vadd.f32 %v2316_v38, %v1994_v23  ;;  %v3146_v3 = vld [vmem:[%s12070_s24 + $0xcf] sm:$0xff] }
 0x32d   : > { %v3902_v23 = vld [vmem:[%s12070_s24 + $0x8c] sm:$0xff] }
 0x32e   : > { %10882 = vmatmul.msk.f32.gmra.mxu1 %vm303_vm0, %v3522_v35 }
 0x32f   : > { %10986 = vmatmul.msk.f32.gmra.mxu3 %vm303_vm0, %v4278_v50  ;;  %v2694_v21 = vpop.f32.mrf.mxu2 }
 0x330   : > { %v2750_v25 = vadd.f32 %v2694_v21, %v2372_v22  ;;  %v3524_v22 = vld [vmem:[%s12070_s24 + $0x8a] sm:$0xff] }
 0x331   : > { %v1941_v7 = vpop.f32.mrf.mxu0  ;;  %v4280_v21 = vld [vmem:[%s12070_s24 + $0x8e] sm:$0xff] }
 0x332   : > { %v1995_v53 = vadd.f32 %v1941_v7, %v12741_v36  ;;  %v3072_v63 = vpop.f32.mrf.mxu3 }
 0x333   : > { %v13307_v4 = vadd.f32 %v3072_v63, %v2750_v25  ;;  %v2319_v56 = vpop.f32.mrf.mxu1  ;;  %v3903_v63 = vld [vmem:[%s12070_s24 + $0x94] sm:$0xff] }
 0x334   : > { %10831 = vmatmul.msk.f32.gmra.mxu0 %vm303_vm0, %v3145_v16  ;;  %10935 = vmatmul.msk.f32.gmra.mxu2 %vm303_vm0, %v3901_v32  ;;  %v2373_v62 = vadd.f32 %v2319_v56, %v1995_v53  ;;  %v11128_v16 = vld [vmem:[%s16278_s1 + $0x3a0] sm:$0xff]  ;;  %v3147_v53 = vld [vmem:[%s12070_s24 + $0xd7] sm:$0xff] }
 0x335   : > { %5422 = vmatpush.msrb.mxu2 %v11128_v16 }
 0x336   : > { %10883 = vmatmul.msk.f32.gmra.mxu1 %vm303_vm0, %v3523_v27 }
 0x337   : > { %10987 = vmatmul.msk.f32.gmra.mxu3 %vm303_vm0, %v4279_v9  ;;  %v2697_v46 = vpop.f32.mrf.mxu2 }
 0x338   : > { %v2751_v11 = vadd.f32 %v2697_v46, %v2373_v62  ;;  %v3525_v46 = vld [vmem:[%s12070_s24 + $0x92] sm:$0xff] }
 0x339   : > { %v1944_v36 = vpop.f32.mrf.mxu0 }
 0x33a   : > { %v1996_v12 = vadd.f32 %v1944_v36, %v12754_v2  ;;  %v3075_v38 = vpop.f32.mrf.mxu3  ;;  %v4281_v36 = vld [vmem:[%s12070_s24 + $0x96] sm:$0xff] }
 0x33b   : > { %v13318_v35 = vadd.f32 %v3075_v38, %v2751_v11  ;;  %v2322_v50 = vpop.f32.mrf.mxu1  ;;  %v11024_v11 = vld [vmem:[%s16278_s1 + $0x320] sm:$0xff] }
 0x33c   : > { %10832 = vmatmul.msk.f32.gmra.mxu0 %vm303_vm0, %v3146_v3  ;;  %10936 = vmatmul.msk.f32.gmra.mxu2 %vm303_vm0, %v3902_v23  ;;  %v2374_v25 = vadd.f32 %v2322_v50, %v1996_v12  ;;  %v11183_v3 = vld [vmem:[%s16278_s1 + $0x3f8] sm:$0xff] }
 0x33d   : > { %4842 = vmatpush.msrb.mxu0 %v11024_v11  ;;  %5797 = vmatpush.msrb.mxu3 %v11183_v3 }
 0x33e   : > { %10884 = vmatmul.msk.f32.gmra.mxu1 %vm303_vm0, %v3524_v22  ;;  %v3148_v22 = vld [vmem:[%s12070_s24 + $0xdf] sm:$0xff] }
 0x33f   : > { %10988 = vmatmul.msk.f32.gmra.mxu3 %vm303_vm0, %v4280_v21  ;;  %v2700_v7 = vpop.f32.mrf.mxu2  ;;  %v3904_v21 = vld [vmem:[%s12070_s24 + $0x9c] sm:$0xff] }
 0x340   : > { %v2752_v2 = vadd.f32 %v2700_v7, %v2374_v25 }
 0x341   : > { %v1947_v32 = vpop.f32.mrf.mxu0 }
 0x342   : > { %v1997_v56 = vadd.f32 %v1947_v32, %v12773_v39  ;;  %v3078_v27 = vpop.f32.mrf.mxu3  ;;  %v11076_v39 = vld [vmem:[%s16278_s1 + $0x360] sm:$0xff] }
 0x343   : > { %v13332_v9 = vadd.f32 %v3078_v27, %v2752_v2  ;;  %v2325_v62 = vpop.f32.mrf.mxu1  ;;  %5044 = vmatpush.msrb.mxu1 %v11076_v39  ;;  %v3526_v32 = vld [vmem:[%s12070_s24 + $0x9a] sm:$0xff] }
 0x344   : > { %10833 = vmatmul.msk.f32.gmra.mxu0 %vm303_vm0, %v3147_v53  ;;  %10937 = vmatmul.msk.f32.gmra.mxu2 %vm303_vm0, %v3903_v63  ;;  %v2375_v23 = vadd.f32 %v2325_v62, %v1997_v56  ;;  %v4282_v53 = vld [vmem:[%s12070_s24 + $0x9e] sm:$0xff]  ;;  %v3149_v62 = vld [vmem:[%s12070_s24 + $0xe7] sm:$0xff] }
 0x346   : > { %10885 = vmatmul.msk.f32.gmra.mxu1 %vm303_vm0, %v3525_v46  ;;  %v3905_v46 = vld [vmem:[%s12070_s24 + $0xa4] sm:$0xff] }
 0x347   : > { %10989 = vmatmul.msk.f32.gmra.mxu3 %vm303_vm0, %v4281_v36  ;;  %v2703_v12 = vpop.f32.mrf.mxu2 }
 0x348   : > { %v2753_v38 = vadd.f32 %v2703_v12, %v2375_v23  ;;  %v3527_v23 = vld [vmem:[%s12070_s24 + $0xa2] sm:$0xff] }
 0x349   : > { %v1950_v50 = vpop.f32.mrf.mxu0  ;;  %v4283_v12 = vld [vmem:[%s12070_s24 + $0xa6] sm:$0xff] }
 0x34a   : > { %v1998_v25 = vadd.f32 %v1950_v50, %v12783_v6  ;;  %v3081_v7 = vpop.f32.mrf.mxu3 }
 0x34b   : > { %v13352_v2 = vadd.f32 %v3081_v7, %v2753_v38  ;;  %v2328_v16 = vpop.f32.mrf.mxu1 }
 0x34c   : > { %10834 = vmatmul.msk.f32.gmra.mxu0 %vm303_vm0, %v3148_v22  ;;  %10938 = vmatmul.msk.f32.gmra.mxu2 %vm303_vm0, %v3904_v21  ;;  %v2376_v63 = vadd.f32 %v2328_v16, %v1998_v25  ;;  %v3150_v21 = vld [vmem:[%s12070_s24 + $0xef] sm:$0xff] }
 0x34d   : > { %v3906_v25 = vld [vmem:[%s12070_s24 + $0xac] sm:$0xff] }
 0x34e   : > { %10886 = vmatmul.msk.f32.gmra.mxu1 %vm303_vm0, %v3526_v32 }
 0x34f   : > { %10990 = vmatmul.msk.f32.gmra.mxu3 %vm303_vm0, %v4282_v53  ;;  %v2706_v56 = vpop.f32.mrf.mxu2 }
 0x350   : > { %v2754_v27 = vadd.f32 %v2706_v56, %v2376_v63  ;;  %v3528_v63 = vld [vmem:[%s12070_s24 + $0xaa] sm:$0xff] }
 0x351   : > { %v1953_v6 = vpop.f32.mrf.mxu0  ;;  %v4284_v56 = vld [vmem:[%s12070_s24 + $0xae] sm:$0xff] }
 0x352   : > { %v1999_v11 = vadd.f32 %v1953_v6, %v12794_v43  ;;  %v3084_v36 = vpop.f32.mrf.mxu3 }
 0x353   : > { %v13363_v39 = vadd.f32 %v3084_v36, %v2754_v27  ;;  %v2331_v3 = vpop.f32.mrf.mxu1 }
 0x354   : > { %10835 = vmatmul.msk.f32.gmra.mxu0 %vm303_vm0, %v3149_v62  ;;  %10939 = vmatmul.msk.f32.gmra.mxu2 %vm303_vm0, %v3905_v46  ;;  %v2377_v38 = vadd.f32 %v2331_v3, %v1999_v11  ;;  %v3907_v11 = vld [vmem:[%s12070_s24 + $0xb4] sm:$0xff] }
 0x356   : > { %10887 = vmatmul.msk.f32.gmra.mxu1 %vm303_vm0, %v3527_v23 }
 0x357   : > { %10991 = vmatmul.msk.f32.gmra.mxu3 %vm303_vm0, %v4283_v12  ;;  %v2709_v50 = vpop.f32.mrf.mxu2 }
 0x358   : > { %v2755_v22 = vadd.f32 %v2709_v50, %v2377_v38  ;;  %v3529_v38 = vld [vmem:[%s12070_s24 + $0xb2] sm:$0xff] }
 0x359   : > { %v3336_v43 = vpop.f32.mrf.mxu0  ;;  %v4285_v50 = vld [vmem:[%s12070_s24 + $0xb6] sm:$0xff] }
 0x35a   : > { %v3087_v7 = vpop.f32.mrf.mxu3  ;;  %v3468_v16 = vadd.f32 %v3336_v43, %v12805_v15  ;;  %v3151_v15 = vld [vmem:[%s12070_s24 + $0xf7] sm:$0xff] }
 0x35b   : > { %v13374_v32 = vadd.f32 %v3087_v7, %v2755_v22  ;;  %v3714_v53 = vpop.f32.mrf.mxu1  ;;  %v3908_v7 = vld [vmem:[%s12070_s24 + $0xbc] sm:$0xff] }
 0x35c   : > { %10836 = vmatmul.msk.f32.gmra.mxu0 %vm303_vm0, %v3150_v21  ;;  %10940 = vmatmul.msk.f32.gmra.mxu2 %vm303_vm0, %v3906_v25  ;;  %v3846_v27 = vadd.f32 %v3714_v53, %v3468_v16  ;;  %v3152_v25 = vld [vmem:[%s12070_s24 + $0xff] sm:$0xff] }
 0x35e   : > { %10888 = vmatmul.msk.f32.gmra.mxu1 %vm303_vm0, %v3528_v63 }
 0x35f   : > { %10992 = vmatmul.msk.f32.gmra.mxu3 %vm303_vm0, %v4284_v56  ;;  %v4092_v6 = vpop.f32.mrf.mxu2 }
 0x360   : > { %v4224_v62 = vadd.f32 %v4092_v6, %v3846_v27  ;;  %v3530_v27 = vld [vmem:[%s12070_s24 + $0xba] sm:$0xff] }
 0x361   : > { %v3339_v46 = vpop.f32.mrf.mxu0  ;;  %v4286_v6 = vld [vmem:[%s12070_s24 + $0xbe] sm:$0xff] }
 0x362   : > { %v3469_v36 = vadd.f32 %v3339_v46, %v12816_v48  ;;  %v4470_v3 = vpop.f32.mrf.mxu3 }
 0x363   : > { %v13385_v23 = vadd.f32 %v4470_v3, %v4224_v62  ;;  %v3717_v12 = vpop.f32.mrf.mxu1  ;;  %v11127_v62 = vld [vmem:[%s16278_s1 + $0x398] sm:$0xff]  ;;  %v11182_v3 = vld [vmem:[%s16278_s1 + $0x3f0] sm:$0xff] }
 0x364   : > { %10837 = vmatmul.msk.f32.gmra.mxu0 %vm303_vm0, %v3151_v15  ;;  %10941 = vmatmul.msk.f32.gmra.mxu2 %vm303_vm0, %v3907_v11  ;;  %v3847_v22 = vadd.f32 %v3717_v12, %v3469_v36  ;;  %v11023_v15 = vld [vmem:[%s16278_s1 + $0x318] sm:$0xff] }
 0x365   : > { %5423 = vmatpush.msrb.mxu2 %v11127_v62  ;;  %4843 = vmatpush.msrb.mxu0 %v11023_v15  ;;  %v11075_v36 = vld [vmem:[%s16278_s1 + $0x358] sm:$0xff] }
 0x366   : > { %10889 = vmatmul.msk.f32.gmra.mxu1 %vm303_vm0, %v3529_v38  ;;  %v3153_v38 = vld [vmem:[%s12070_s24 + $0x107] sm:$0xff]  ;;  %5798 = vmatpush.msrb.mxu3 %v11182_v3 }
 0x367   : > { %10993 = vmatmul.msk.f32.gmra.mxu3 %vm303_vm0, %v4285_v50  ;;  %v4095_v43 = vpop.f32.mrf.mxu2  ;;  %v3909_v50 = vld [vmem:[%s12070_s24 + $0xc4] sm:$0xff]  ;;  %5045 = vmatpush.msrb.mxu1 %v11075_v36  ;;  %v4288_v36 = vld [vmem:[%s12070_s24 + $0xce] sm:$0xff] }
 0x368   : > { %v4225_v21 = vadd.f32 %v4095_v43, %v3847_v22 }
 0x369   : > { %v3342_v48 = vpop.f32.mrf.mxu0 }
 0x36a   : > { %v3470_v16 = vadd.f32 %v3342_v48, %v12839_v26  ;;  %v4473_v53 = vpop.f32.mrf.mxu3 }
 0x36b   : > { %v13396_v63 = vadd.f32 %v4473_v53, %v4225_v21  ;;  %v3720_v56 = vpop.f32.mrf.mxu1 }
 0x36c   : > { %10838 = vmatmul.msk.f32.gmra.mxu0 %vm303_vm0, %v3152_v25  ;;  %10942 = vmatmul.msk.f32.gmra.mxu2 %vm303_vm0, %v3908_v7  ;;  %v3848_v46 = vadd.f32 %v3720_v56, %v3470_v16  ;;  %v3531_v25 = vld [vmem:[%s12070_s24 + $0xc2] sm:$0xff] }
 0x36d   : > { %v4287_v7 = vld [vmem:[%s12070_s24 + $0xc6] sm:$0xff] }
 0x36e   : > { %10890 = vmatmul.msk.f32.gmra.mxu1 %vm303_vm0, %v3530_v27  ;;  %v3154_v27 = vld [vmem:[%s12070_s24 + $0x10f] sm:$0xff] }
 0x36f   : > { %10994 = vmatmul.msk.f32.gmra.mxu3 %vm303_vm0, %v4286_v6  ;;  %v4098_v26 = vpop.f32.mrf.mxu2  ;;  %v3910_v6 = vld [vmem:[%s12070_s24 + $0xcc] sm:$0xff] }
 0x370   : > { %v4226_v11 = vadd.f32 %v4098_v26, %v3848_v46 }
 0x371   : > { %v3345_v12 = vpop.f32.mrf.mxu0 }
 0x372   : > { %v3471_v22 = vadd.f32 %v3345_v12, %v12850_v20  ;;  %v4476_v43 = vpop.f32.mrf.mxu3 }
 0x373   : > { %v13419_v21 = vadd.f32 %v4476_v43, %v4226_v11  ;;  %v3723_v48 = vpop.f32.mrf.mxu1  ;;  %v3532_v11 = vld [vmem:[%s12070_s24 + $0xca] sm:$0xff] }
 0x374   : > { %10839 = vmatmul.msk.f32.gmra.mxu0 %vm303_vm0, %v3153_v38  ;;  %10943 = vmatmul.msk.f32.gmra.mxu2 %vm303_vm0, %v3909_v50  ;;  %v3849_v16 = vadd.f32 %v3723_v48, %v3471_v22  ;;  %v3155_v50 = vld [vmem:[%s12070_s24 + $0x117] sm:$0xff] }
 0x375   : > { %v3911_v22 = vld [vmem:[%s12070_s24 + $0xd4] sm:$0xff] }
 0x376   : > { %10891 = vmatmul.msk.f32.gmra.mxu1 %vm303_vm0, %v3531_v25 }
 0x377   : > { %10995 = vmatmul.msk.f32.gmra.mxu3 %vm303_vm0, %v4287_v7  ;;  %v4101_v53 = vpop.f32.mrf.mxu2 }
 0x378   : > { %v4227_v56 = vadd.f32 %v4101_v53, %v3849_v16  ;;  %v3533_v16 = vld [vmem:[%s12070_s24 + $0xd2] sm:$0xff] }
 0x379   : > { %v3348_v20 = vpop.f32.mrf.mxu0  ;;  %v4289_v53 = vld [vmem:[%s12070_s24 + $0xd6] sm:$0xff] }
 0x37a   : > { %v3472_v62 = vadd.f32 %v3348_v20, %v12861_v28  ;;  %v4479_v46 = vpop.f32.mrf.mxu3 }
 0x37b   : > { %v13430_v26 = vadd.f32 %v4479_v46, %v4227_v56  ;;  %v3726_v15 = vpop.f32.mrf.mxu1 }
 0x37c   : > { %10840 = vmatmul.msk.f32.gmra.mxu0 %vm303_vm0, %v3154_v27  ;;  %10944 = vmatmul.msk.f32.gmra.mxu2 %vm303_vm0, %v3910_v6  ;;  %v3850_v3 = vadd.f32 %v3726_v15, %v3472_v62  ;;  %v3156_v6 = vld [vmem:[%s12070_s24 + $0x11f] sm:$0xff] }
 0x37d   : > { %v3912_v62 = vld [vmem:[%s12070_s24 + $0xdc] sm:$0xff] }
 0x37e   : > { %10892 = vmatmul.msk.f32.gmra.mxu1 %vm303_vm0, %v3532_v11 }
 0x37f   : > { %10996 = vmatmul.msk.f32.gmra.mxu3 %vm303_vm0, %v4288_v36  ;;  %v4104_v12 = vpop.f32.mrf.mxu2 }
 0x380   : > { %v4228_v38 = vadd.f32 %v4104_v12, %v3850_v3  ;;  %v3534_v3 = vld [vmem:[%s12070_s24 + $0xda] sm:$0xff] }
 0x381   : > { %v3351_v28 = vpop.f32.mrf.mxu0  ;;  %v4290_v12 = vld [vmem:[%s12070_s24 + $0xde] sm:$0xff] }
 0x382   : > { %v3473_v43 = vadd.f32 %v3351_v28, %v12872_v0  ;;  %v4482_v48 = vpop.f32.mrf.mxu3 }
 0x383   : > { %v13441_v25 = vadd.f32 %v4482_v48, %v4228_v38  ;;  %v3729_v7 = vpop.f32.mrf.mxu1 }
 0x384   : > { %10841 = vmatmul.msk.f32.gmra.mxu0 %vm303_vm0, %v3155_v50  ;;  %10945 = vmatmul.msk.f32.gmra.mxu2 %vm303_vm0, %v3911_v22  ;;  %v3851_v56 = vadd.f32 %v3729_v7, %v3473_v43  ;;  %v3157_v22 = vld [vmem:[%s12070_s24 + $0x127] sm:$0xff] }
 0x385   : > { %v3913_v43 = vld [vmem:[%s12070_s24 + $0xe4] sm:$0xff] }
 0x386   : > { %10893 = vmatmul.msk.f32.gmra.mxu1 %vm303_vm0, %v3533_v16 }
 0x387   : > { %10997 = vmatmul.msk.f32.gmra.mxu3 %vm303_vm0, %v4289_v53  ;;  %v4107_v20 = vpop.f32.mrf.mxu2 }
 0x388   : > { %v4229_v27 = vadd.f32 %v4107_v20, %v3851_v56  ;;  %v3535_v56 = vld [vmem:[%s12070_s24 + $0xe2] sm:$0xff] }
 0x389   : > { %v3354_v0 = vpop.f32.mrf.mxu0  ;;  %v4291_v20 = vld [vmem:[%s12070_s24 + $0xe6] sm:$0xff] }
 0x38a   : > { %v3474_v46 = vadd.f32 %v3354_v0, %v12883_v37  ;;  %v4485_v15 = vpop.f32.mrf.mxu3 }
 0x38b   : > { %v13452_v11 = vadd.f32 %v4485_v15, %v4229_v27  ;;  %v3732_v36 = vpop.f32.mrf.mxu1  ;;  %v3914_v15 = vld [vmem:[%s12070_s24 + $0xec] sm:$0xff] }
 0x38c   : > { %10842 = vmatmul.msk.f32.gmra.mxu0 %vm303_vm0, %v3156_v6  ;;  %10946 = vmatmul.msk.f32.gmra.mxu2 %vm303_vm0, %v3912_v62  ;;  %v3852_v38 = vadd.f32 %v3732_v36, %v3474_v46  ;;  %v11126_v6 = vld [vmem:[%s16278_s1 + $0x390] sm:$0xff] }
 0x38d   : > { %v3158_v46 = vld [vmem:[%s12070_s24 + $0x12f] sm:$0xff]  ;;  %5424 = vmatpush.msrb.mxu2 %v11126_v6 }
 0x38e   : > { %10894 = vmatmul.msk.f32.gmra.mxu1 %vm303_vm0, %v3534_v3 }
 0x38f   : > { %10998 = vmatmul.msk.f32.gmra.mxu3 %vm303_vm0, %v4290_v12  ;;  %v4110_v28 = vpop.f32.mrf.mxu2 }
 0x390   : > { %v4230_v50 = vadd.f32 %v4110_v28, %v3852_v38  ;;  %v3536_v28 = vld [vmem:[%s12070_s24 + $0xea] sm:$0xff] }
 0x391   : > { %v3357_v37 = vpop.f32.mrf.mxu0 }
 0x392   : > { %v3475_v48 = vadd.f32 %v3357_v37, %v12897_v17  ;;  %v4488_v7 = vpop.f32.mrf.mxu3  ;;  %v4292_v37 = vld [vmem:[%s12070_s24 + $0xee] sm:$0xff] }
 0x393   : > { %v13463_v16 = vadd.f32 %v4488_v7, %v4230_v50  ;;  %v3735_v53 = vpop.f32.mrf.mxu1  ;;  %v11022_v50 = vld [vmem:[%s16278_s1 + $0x310] sm:$0xff] }
 0x394   : > { %10843 = vmatmul.msk.f32.gmra.mxu0 %vm303_vm0, %v3157_v22  ;;  %10947 = vmatmul.msk.f32.gmra.mxu2 %vm303_vm0, %v3913_v43  ;;  %v3853_v27 = vadd.f32 %v3735_v53, %v3475_v48  ;;  %v11181_v22 = vld [vmem:[%s16278_s1 + $0x3e8] sm:$0xff] }
 0x395   : > { %4844 = vmatpush.msrb.mxu0 %v11022_v50  ;;  %5799 = vmatpush.msrb.mxu3 %v11181_v22 }
 0x396   : > { %10895 = vmatmul.msk.f32.gmra.mxu1 %vm303_vm0, %v3535_v56  ;;  %v3159_v56 = vld [vmem:[%s12070_s24 + $0x137] sm:$0xff] }
 0x397   : > { %10999 = vmatmul.msk.f32.gmra.mxu3 %vm303_vm0, %v4291_v20  ;;  %v4113_v0 = vpop.f32.mrf.mxu2  ;;  %v3915_v20 = vld [vmem:[%s12070_s24 + $0xf4] sm:$0xff] }
 0x398   : > { %v4231_v17 = vadd.f32 %v4113_v0, %v3853_v27 }
 0x399   : > { %v3360_v62 = vpop.f32.mrf.mxu0 }
 0x39a   : > { %v3476_v36 = vadd.f32 %v3360_v62, %v12917_v14  ;;  %v4491_v3 = vpop.f32.mrf.mxu3  ;;  %v11074_v14 = vld [vmem:[%s16278_s1 + $0x350] sm:$0xff] }
 0x39b   : > { %v13477_v12 = vadd.f32 %v4491_v3, %v4231_v17  ;;  %v3738_v38 = vpop.f32.mrf.mxu1  ;;  %5046 = vmatpush.msrb.mxu1 %v11074_v14  ;;  %v3537_v62 = vld [vmem:[%s12070_s24 + $0xf2] sm:$0xff] }
 0x39c   : > { %10844 = vmatmul.msk.f32.gmra.mxu0 %vm303_vm0, %v3158_v46  ;;  %10948 = vmatmul.msk.f32.gmra.mxu2 %vm303_vm0, %v3914_v15  ;;  %v3854_v43 = vadd.f32 %v3738_v38, %v3476_v36  ;;  %v4293_v46 = vld [vmem:[%s12070_s24 + $0xf6] sm:$0xff]  ;;  %v3160_v38 = vld [vmem:[%s12070_s24 + $0x13f] sm:$0xff] }
 0x39e   : > { %10896 = vmatmul.msk.f32.gmra.mxu1 %vm303_vm0, %v3536_v28  ;;  %v3916_v28 = vld [vmem:[%s12070_s24 + $0xfc] sm:$0xff] }
 0x39f   : > { %11000 = vmatmul.msk.f32.gmra.mxu3 %vm303_vm0, %v4292_v37  ;;  %v4116_v48 = vpop.f32.mrf.mxu2 }
 0x3a0   : > { %v4232_v7 = vadd.f32 %v4116_v48, %v3854_v43  ;;  %v3538_v43 = vld [vmem:[%s12070_s24 + $0xfa] sm:$0xff] }
 0x3a1   : > { %v3363_v53 = vpop.f32.mrf.mxu0  ;;  %v4294_v48 = vld [vmem:[%s12070_s24 + $0xfe] sm:$0xff] }
 0x3a2   : > { %v3477_v27 = vadd.f32 %v3363_v53, %v12928_v29  ;;  %v4494_v0 = vpop.f32.mrf.mxu3 }
 0x3a3   : > { %v13497_v17 = vadd.f32 %v4494_v0, %v4232_v7  ;;  %v3741_v6 = vpop.f32.mrf.mxu1 }
 0x3a4   : > { %10845 = vmatmul.msk.f32.gmra.mxu0 %vm303_vm0, %v3159_v56  ;;  %10949 = vmatmul.msk.f32.gmra.mxu2 %vm303_vm0, %v3915_v20  ;;  %v3855_v15 = vadd.f32 %v3741_v6, %v3477_v27  ;;  %v3161_v20 = vld [vmem:[%s12070_s24 + $0x147] sm:$0xff] }
 0x3a5   : > { %v3917_v27 = vld [vmem:[%s12070_s24 + $0x104] sm:$0xff] }
 0x3a6   : > { %10897 = vmatmul.msk.f32.gmra.mxu1 %vm303_vm0, %v3537_v62 }
 0x3a7   : > { %11001 = vmatmul.msk.f32.gmra.mxu3 %vm303_vm0, %v4293_v46  ;;  %v4119_v36 = vpop.f32.mrf.mxu2 }
 0x3a8   : > { %v4233_v3 = vadd.f32 %v4119_v36, %v3855_v15  ;;  %v3539_v15 = vld [vmem:[%s12070_s24 + $0x102] sm:$0xff] }
 0x3a9   : > { %v3366_v29 = vpop.f32.mrf.mxu0  ;;  %v4295_v36 = vld [vmem:[%s12070_s24 + $0x106] sm:$0xff] }
 0x3aa   : > { %v3478_v50 = vadd.f32 %v3366_v29, %v12939_v57  ;;  %v4497_v37 = vpop.f32.mrf.mxu3 }
 0x3ab   : > { %v13508_v14 = vadd.f32 %v4497_v37, %v4233_v3  ;;  %v3744_v22 = vpop.f32.mrf.mxu1 }
 0x3ac   : > { %10846 = vmatmul.msk.f32.gmra.mxu0 %vm303_vm0, %v3160_v38  ;;  %10950 = vmatmul.msk.f32.gmra.mxu2 %vm303_vm0, %v3916_v28  ;;  %v3856_v7 = vadd.f32 %v3744_v22, %v3478_v50  ;;  %v3162_v28 = vld [vmem:[%s12070_s24 + $0x14f] sm:$0xff] }
 0x3ad   : > { %v3918_v50 = vld [vmem:[%s12070_s24 + $0x10c] sm:$0xff] }
 0x3ae   : > { %10898 = vmatmul.msk.f32.gmra.mxu1 %vm303_vm0, %v3538_v43 }
 0x3af   : > { %11002 = vmatmul.msk.f32.gmra.mxu3 %vm303_vm0, %v4294_v48  ;;  %v4122_v53 = vpop.f32.mrf.mxu2 }
 0x3b0   : > { %v4234_v56 = vadd.f32 %v4122_v53, %v3856_v7  ;;  %v3540_v7 = vld [vmem:[%s12070_s24 + $0x10a] sm:$0xff] }
 0x3b1   : > { %v3369_v57 = vpop.f32.mrf.mxu0  ;;  %v4296_v53 = vld [vmem:[%s12070_s24 + $0x10e] sm:$0xff] }
 0x3b2   : > { %v3479_v0 = vadd.f32 %v3369_v57, %v12950_v24  ;;  %v4500_v6 = vpop.f32.mrf.mxu3 }
 0x3b3   : > { %v13519_v62 = vadd.f32 %v4500_v6, %v4234_v56  ;;  %v3747_v46 = vpop.f32.mrf.mxu1 }
 0x3b4   : > { %10847 = vmatmul.msk.f32.gmra.mxu0 %vm303_vm0, %v3161_v20  ;;  %10951 = vmatmul.msk.f32.gmra.mxu2 %vm303_vm0, %v3917_v27  ;;  %v3857_v3 = vadd.f32 %v3747_v46, %v3479_v0  ;;  %v3163_v27 = vld [vmem:[%s12070_s24 + $0x157] sm:$0xff] }
 0x3b5   : > { %v3919_v0 = vld [vmem:[%s12070_s24 + $0x114] sm:$0xff] }
 0x3b6   : > { %10899 = vmatmul.msk.f32.gmra.mxu1 %vm303_vm0, %v3539_v15 }
 0x3b7   : > { %11003 = vmatmul.msk.f32.gmra.mxu3 %vm303_vm0, %v4295_v36  ;;  %v4125_v29 = vpop.f32.mrf.mxu2 }
 0x3b8   : > { %v4235_v38 = vadd.f32 %v4125_v29, %v3857_v3  ;;  %v3541_v3 = vld [vmem:[%s12070_s24 + $0x112] sm:$0xff] }
 0x3b9   : > { %v3372_v24 = vpop.f32.mrf.mxu0  ;;  %v4297_v29 = vld [vmem:[%s12070_s24 + $0x116] sm:$0xff] }
 0x3ba   : > { %v3480_v37 = vadd.f32 %v3372_v24, %v12961_v58  ;;  %v4503_v22 = vpop.f32.mrf.mxu3 }
 0x3bb   : > { %v13530_v43 = vadd.f32 %v4503_v22, %v4235_v38  ;;  %v3750_v48 = vpop.f32.mrf.mxu1  ;;  %v11125_v38 = vld [vmem:[%s16278_s1 + $0x388] sm:$0xff]  ;;  %v11180_v22 = vld [vmem:[%s16278_s1 + $0x3e0] sm:$0xff] }
 0x3bc   : > { %10848 = vmatmul.msk.f32.gmra.mxu0 %vm303_vm0, %v3162_v28  ;;  %10952 = vmatmul.msk.f32.gmra.mxu2 %vm303_vm0, %v3918_v50  ;;  %v3858_v56 = vadd.f32 %v3750_v48, %v3480_v37  ;;  %v11021_v28 = vld [vmem:[%s16278_s1 + $0x308] sm:$0xff] }
 0x3bd   : > { %5425 = vmatpush.msrb.mxu2 %v11125_v38  ;;  %4845 = vmatpush.msrb.mxu0 %v11021_v28  ;;  %v11073_v37 = vld [vmem:[%s16278_s1 + $0x348] sm:$0xff] }
 0x3be   : > { %10900 = vmatmul.msk.f32.gmra.mxu1 %vm303_vm0, %v3540_v7  ;;  %v3164_v7 = vld [vmem:[%s12070_s24 + $0x15f] sm:$0xff]  ;;  %5800 = vmatpush.msrb.mxu3 %v11180_v22 }
 0x3bf   : > { %11004 = vmatmul.msk.f32.gmra.mxu3 %vm303_vm0, %v4296_v53  ;;  %v4128_v57 = vpop.f32.mrf.mxu2  ;;  %v3920_v53 = vld [vmem:[%s12070_s24 + $0x11c] sm:$0xff]  ;;  %5047 = vmatpush.msrb.mxu1 %v11073_v37  ;;  %v4299_v37 = vld [vmem:[%s12070_s24 + $0x126] sm:$0xff] }
 0x3c0   : > { %v4236_v20 = vadd.f32 %v4128_v57, %v3858_v56 }
 0x3c1   : > { %v3375_v58 = vpop.f32.mrf.mxu0 }
 0x3c2   : > { %v3481_v6 = vadd.f32 %v3375_v58, %v12984_v31  ;;  %v4506_v46 = vpop.f32.mrf.mxu3 }
 0x3c3   : > { %v13541_v15 = vadd.f32 %v4506_v46, %v4236_v20  ;;  %v3753_v36 = vpop.f32.mrf.mxu1 }
 0x3c4   : > { %10849 = vmatmul.msk.f32.gmra.mxu0 %vm303_vm0, %v3163_v27  ;;  %10953 = vmatmul.msk.f32.gmra.mxu2 %vm303_vm0, %v3919_v0  ;;  %v3859_v24 = vadd.f32 %v3753_v36, %v3481_v6  ;;  %v3542_v27 = vld [vmem:[%s12070_s24 + $0x11a] sm:$0xff] }
 0x3c5   : > { %v4298_v0 = vld [vmem:[%s12070_s24 + $0x11e] sm:$0xff] }
 0x3c6   : > { %10901 = vmatmul.msk.f32.gmra.mxu1 %vm303_vm0, %v3541_v3  ;;  %v3165_v3 = vld [vmem:[%s12070_s24 + $0x167] sm:$0xff] }
 0x3c7   : > { %11005 = vmatmul.msk.f32.gmra.mxu3 %vm303_vm0, %v4297_v29  ;;  %v4131_v31 = vpop.f32.mrf.mxu2  ;;  %v3921_v29 = vld [vmem:[%s12070_s24 + $0x124] sm:$0xff] }
 0x3c8   : > { %v4237_v50 = vadd.f32 %v4131_v31, %v3859_v24 }
 0x3c9   : > { %v3378_v48 = vpop.f32.mrf.mxu0 }
 0x3ca   : > { %v3482_v56 = vadd.f32 %v3378_v48, %v12995_v34  ;;  %v4509_v57 = vpop.f32.mrf.mxu3 }
 0x3cb   : > { %v13564_v20 = vadd.f32 %v4509_v57, %v4237_v50  ;;  %v3756_v58 = vpop.f32.mrf.mxu1  ;;  %v3543_v50 = vld [vmem:[%s12070_s24 + $0x122] sm:$0xff] }
 0x3cc   : > { %10850 = vmatmul.msk.f32.gmra.mxu0 %vm303_vm0, %v3164_v7  ;;  %10954 = vmatmul.msk.f32.gmra.mxu2 %vm303_vm0, %v3920_v53  ;;  %v3860_v6 = vadd.f32 %v3756_v58, %v3482_v56  ;;  %v3166_v53 = vld [vmem:[%s12070_s24 + $0x16f] sm:$0xff] }
 0x3cd   : > { %v3922_v56 = vld [vmem:[%s12070_s24 + $0x12c] sm:$0xff] }
 0x3ce   : > { %10902 = vmatmul.msk.f32.gmra.mxu1 %vm303_vm0, %v3542_v27 }
 0x3cf   : > { %11006 = vmatmul.msk.f32.gmra.mxu3 %vm303_vm0, %v4298_v0  ;;  %v4134_v46 = vpop.f32.mrf.mxu2 }
 0x3d0   : > { %v4238_v36 = vadd.f32 %v4134_v46, %v3860_v6  ;;  %v3544_v6 = vld [vmem:[%s12070_s24 + $0x12a] sm:$0xff] }
 0x3d1   : > { %v3381_v34 = vpop.f32.mrf.mxu0  ;;  %v4300_v46 = vld [vmem:[%s12070_s24 + $0x12e] sm:$0xff] }
 0x3d2   : > { %v3483_v38 = vadd.f32 %v3381_v34, %v13006_v52  ;;  %v4512_v24 = vpop.f32.mrf.mxu3 }
 0x3d3   : > { %v13575_v31 = vadd.f32 %v4512_v24, %v4238_v36  ;;  %v3759_v28 = vpop.f32.mrf.mxu1 }
 0x3d4   : > { %10851 = vmatmul.msk.f32.gmra.mxu0 %vm303_vm0, %v3165_v3  ;;  %10955 = vmatmul.msk.f32.gmra.mxu2 %vm303_vm0, %v3921_v29  ;;  %v3861_v22 = vadd.f32 %v3759_v28, %v3483_v38  ;;  %v3167_v29 = vld [vmem:[%s12070_s24 + $0x177] sm:$0xff] }
 0x3d5   : > { %v3923_v38 = vld [vmem:[%s12070_s24 + $0x134] sm:$0xff] }
 0x3d6   : > { %10903 = vmatmul.msk.f32.gmra.mxu1 %vm303_vm0, %v3543_v50 }
 0x3d7   : > { %11007 = vmatmul.msk.f32.gmra.mxu3 %vm303_vm0, %v4299_v37  ;;  %v4137_v48 = vpop.f32.mrf.mxu2 }
 0x3d8   : > { %v4239_v7 = vadd.f32 %v4137_v48, %v3861_v22  ;;  %v3545_v22 = vld [vmem:[%s12070_s24 + $0x132] sm:$0xff] }
 0x3d9   : > { %v3384_v52 = vpop.f32.mrf.mxu0  ;;  %v4301_v48 = vld [vmem:[%s12070_s24 + $0x136] sm:$0xff] }
 0x3da   : > { %v3484_v57 = vadd.f32 %v3384_v52, %v13017_v19  ;;  %v4515_v58 = vpop.f32.mrf.mxu3 }
 0x3db   : > { %v13586_v27 = vadd.f32 %v4515_v58, %v4239_v7  ;;  %v3762_v0 = vpop.f32.mrf.mxu1 }
 0x3dc   : > { %10852 = vmatmul.msk.f32.gmra.mxu0 %vm303_vm0, %v3166_v53  ;;  %10956 = vmatmul.msk.f32.gmra.mxu2 %vm303_vm0, %v3922_v56  ;;  %v3862_v36 = vadd.f32 %v3762_v0, %v3484_v57  ;;  %v3168_v56 = vld [vmem:[%s12070_s24 + $0x17f] sm:$0xff] }
 0x3dd   : > { %v3924_v57 = vld [vmem:[%s12070_s24 + $0x13c] sm:$0xff] }
 0x3de   : > { %10904 = vmatmul.msk.f32.gmra.mxu1 %vm303_vm0, %v3544_v6 }
 0x3df   : > { %11008 = vmatmul.msk.f32.gmra.mxu3 %vm303_vm0, %v4300_v46  ;;  %v4140_v34 = vpop.f32.mrf.mxu2 }
 0x3e0   : > { %v4240_v3 = vadd.f32 %v4140_v34, %v3862_v36  ;;  %v3546_v36 = vld [vmem:[%s12070_s24 + $0x13a] sm:$0xff] }
 0x3e1   : > { %v3387_v19 = vpop.f32.mrf.mxu0  ;;  %v4302_v34 = vld [vmem:[%s12070_s24 + $0x13e] sm:$0xff] }
 0x3e2   : > { %v3485_v24 = vadd.f32 %v3387_v19, %v13028_v55  ;;  %v4518_v28 = vpop.f32.mrf.mxu3 }
 0x3e3   : > { %v13597_v50 = vadd.f32 %v4518_v28, %v4240_v3  ;;  %v3765_v37 = vpop.f32.mrf.mxu1  ;;  %v3925_v28 = vld [vmem:[%s12070_s24 + $0x144] sm:$0xff] }
 0x3e4   : > { %10853 = vmatmul.msk.f32.gmra.mxu0 %vm303_vm0, %v3167_v29  ;;  %10957 = vmatmul.msk.f32.gmra.mxu2 %vm303_vm0, %v3923_v38  ;;  %v3863_v7 = vadd.f32 %v3765_v37, %v3485_v24  ;;  %v11124_v29 = vld [vmem:[%s16278_s1 + $0x380] sm:$0xff] }
 0x3e5   : > { %v3169_v24 = vld [vmem:[%s12070_s24 + $0x187] sm:$0xff]  ;;  %5426 = vmatpush.msrb.mxu2 %v11124_v29 }
 0x3e6   : > { %10905 = vmatmul.msk.f32.gmra.mxu1 %vm303_vm0, %v3545_v22 }
 0x3e7   : > { %11009 = vmatmul.msk.f32.gmra.mxu3 %vm303_vm0, %v4301_v48  ;;  %v4143_v52 = vpop.f32.mrf.mxu2 }
 0x3e8   : > { %v4241_v53 = vadd.f32 %v4143_v52, %v3863_v7  ;;  %v3547_v52 = vld [vmem:[%s12070_s24 + $0x142] sm:$0xff] }
 0x3e9   : > { %v3390_v55 = vpop.f32.mrf.mxu0 }
 0x3ea   : > { %v3486_v58 = vadd.f32 %v3390_v55, %v13042_v5  ;;  %v4521_v0 = vpop.f32.mrf.mxu3  ;;  %v4303_v55 = vld [vmem:[%s12070_s24 + $0x146] sm:$0xff] }
 0x3eb   : > { %v13608_v6 = vadd.f32 %v4521_v0, %v4241_v53  ;;  %v3768_v46 = vpop.f32.mrf.mxu1  ;;  %v11020_v53 = vld [vmem:[%s16278_s1 + $0x300] sm:$0xff] }
 0x3ec   : > { %10854 = vmatmul.msk.f32.gmra.mxu0 %vm303_vm0, %v3168_v56  ;;  %10958 = vmatmul.msk.f32.gmra.mxu2 %vm303_vm0, %v3924_v57  ;;  %v3864_v3 = vadd.f32 %v3768_v46, %v3486_v58  ;;  %v11179_v56 = vld [vmem:[%s16278_s1 + $0x3d8] sm:$0xff] }
 0x3ed   : > { %4846 = vmatpush.msrb.mxu0 %v11020_v53  ;;  %5801 = vmatpush.msrb.mxu3 %v11179_v56 }
 0x3ee   : > { %10906 = vmatmul.msk.f32.gmra.mxu1 %vm303_vm0, %v3546_v36  ;;  %v3170_v36 = vld [vmem:[%s12070_s24 + $0x18f] sm:$0xff] }
 0x3ef   : > { %11010 = vmatmul.msk.f32.gmra.mxu3 %vm303_vm0, %v4302_v34  ;;  %v4146_v19 = vpop.f32.mrf.mxu2  ;;  %v3926_v34 = vld [vmem:[%s12070_s24 + $0x14c] sm:$0xff] }
 0x3f0   : > { %v4242_v5 = vadd.f32 %v4146_v19, %v3864_v3 }
 0x3f1   : > { %v3393_v38 = vpop.f32.mrf.mxu0 }
 0x3f2   : > { %v3487_v37 = vadd.f32 %v3393_v38, %v13062_v40  ;;  %v4524_v22 = vpop.f32.mrf.mxu3  ;;  %v11072_v40 = vld [vmem:[%s16278_s1 + $0x340] sm:$0xff]  ;;  %v3548_v38 = vld [vmem:[%s12070_s24 + $0x14a] sm:$0xff] }
 0x3f3   : > { %v13622_v48 = vadd.f32 %v4524_v22, %v4242_v5  ;;  %v3771_v7 = vpop.f32.mrf.mxu1  ;;  %5048 = vmatpush.msrb.mxu1 %v11072_v40 }
 0x3f4   : > { %10855 = vmatmul.msk.f32.gmra.mxu0 %vm303_vm0, %v3169_v24  ;;  %10959 = vmatmul.msk.f32.gmra.mxu2 %vm303_vm0, %v3925_v28  ;;  %v3865_v57 = vadd.f32 %v3771_v7, %v3487_v37  ;;  %v4304_v24 = vld [vmem:[%s12070_s24 + $0x14e] sm:$0xff]  ;;  %v3171_v7 = vld [vmem:[%s12070_s24 + $0x197] sm:$0xff] }
 0x3f6   : > { %10907 = vmatmul.msk.f32.gmra.mxu1 %vm303_vm0, %v3547_v52  ;;  %v3927_v52 = vld [vmem:[%s12070_s24 + $0x154] sm:$0xff] }
 0x3f7   : > { %11011 = vmatmul.msk.f32.gmra.mxu3 %vm303_vm0, %v4303_v55  ;;  %v4149_v58 = vpop.f32.mrf.mxu2 }
 0x3f8   : > { %v4243_v0 = vadd.f32 %v4149_v58, %v3865_v57  ;;  %v3549_v57 = vld [vmem:[%s12070_s24 + $0x152] sm:$0xff] }
 0x3f9   : > { %v3396_v46 = vpop.f32.mrf.mxu0  ;;  %v4305_v58 = vld [vmem:[%s12070_s24 + $0x156] sm:$0xff] }
 0x3fa   : > { %v3488_v3 = vadd.f32 %v3396_v46, %v13073_v60  ;;  %v4527_v19 = vpop.f32.mrf.mxu3 }
 0x3fb   : > { %v13642_v5 = vadd.f32 %v4527_v19, %v4243_v0  ;;  %v3774_v29 = vpop.f32.mrf.mxu1 }
 0x3fc   : > { %10856 = vmatmul.msk.f32.gmra.mxu0 %vm303_vm0, %v3170_v36  ;;  %10960 = vmatmul.msk.f32.gmra.mxu2 %vm303_vm0, %v3926_v34  ;;  %v3866_v28 = vadd.f32 %v3774_v29, %v3488_v3  ;;  %v3172_v34 = vld [vmem:[%s12070_s24 + $0x19f] sm:$0xff] }
 0x3fd   : > { %v3928_v3 = vld [vmem:[%s12070_s24 + $0x15c] sm:$0xff] }
 0x3fe   : > { %10908 = vmatmul.msk.f32.gmra.mxu1 %vm303_vm0, %v3548_v38 }
 0x3ff   : > { %11012 = vmatmul.msk.f32.gmra.mxu3 %vm303_vm0, %v4304_v24  ;;  %v4152_v37 = vpop.f32.mrf.mxu2 }
 0x400   : > { %v4244_v22 = vadd.f32 %v4152_v37, %v3866_v28  ;;  %v3550_v28 = vld [vmem:[%s12070_s24 + $0x15a] sm:$0xff] }
 0x401   : > { %v3399_v60 = vpop.f32.mrf.mxu0  ;;  %v4306_v37 = vld [vmem:[%s12070_s24 + $0x15e] sm:$0xff] }
 0x402   : > { %v3489_v53 = vadd.f32 %v3399_v60, %v13084_v18  ;;  %v4530_v55 = vpop.f32.mrf.mxu3 }
 0x403   : > { %v13653_v40 = vadd.f32 %v4530_v55, %v4244_v22  ;;  %v3777_v56 = vpop.f32.mrf.mxu1 }
 0x404   : > { %10857 = vmatmul.msk.f32.gmra.mxu0 %vm303_vm0, %v3171_v7  ;;  %10961 = vmatmul.msk.f32.gmra.mxu2 %vm303_vm0, %v3927_v52  ;;  %v3867_v0 = vadd.f32 %v3777_v56, %v3489_v53  ;;  %v3173_v52 = vld [vmem:[%s12070_s24 + $0x1a7] sm:$0xff] }
 0x405   : > { %v3929_v53 = vld [vmem:[%s12070_s24 + $0x164] sm:$0xff] }
 0x406   : > { %10909 = vmatmul.msk.f32.gmra.mxu1 %vm303_vm0, %v3549_v57 }
 0x407   : > { %11013 = vmatmul.msk.f32.gmra.mxu3 %vm303_vm0, %v4305_v58  ;;  %v4155_v46 = vpop.f32.mrf.mxu2 }
 0x408   : > { %v4245_v36 = vadd.f32 %v4155_v46, %v3867_v0  ;;  %v3551_v0 = vld [vmem:[%s12070_s24 + $0x162] sm:$0xff] }
 0x409   : > { %v3402_v18 = vpop.f32.mrf.mxu0  ;;  %v4307_v46 = vld [vmem:[%s12070_s24 + $0x166] sm:$0xff] }
 0x40a   : > { %v3490_v19 = vadd.f32 %v3402_v18, %v13095_v54  ;;  %v4533_v29 = vpop.f32.mrf.mxu3 }
 0x40b   : > { %v13664_v38 = vadd.f32 %v4533_v29, %v4245_v36  ;;  %v3780_v24 = vpop.f32.mrf.mxu1  ;;  %v11178_v29 = vld [vmem:[%s16278_s1 + $0x3d0] sm:$0xff] }
 0x40c   : > { %10858 = vmatmul.msk.f32.gmra.mxu0 %vm303_vm0, %v3172_v34  ;;  %10962 = vmatmul.msk.f32.gmra.mxu2 %vm303_vm0, %v3928_v3  ;;  %v3868_v22 = vadd.f32 %v3780_v24, %v3490_v19  ;;  %v3174_v3 = vld [vmem:[%s12070_s24 + $0x1af] sm:$0xff] }
 0x40d   : > { %v3930_v19 = vld [vmem:[%s12070_s24 + $0x16c] sm:$0xff]  ;;  %5802 = vmatpush.msrb.mxu3 %v11178_v29 }
 0x40e   : > { %10910 = vmatmul.msk.f32.gmra.mxu1 %vm303_vm0, %v3550_v28  ;;  %v3553_v29 = vld [vmem:[%s12070_s24 + $0x172] sm:$0xff] }
 0x40f   : > { %11014 = vmatmul.msk.f32.gmra.mxu3 %vm303_vm0, %v4306_v37  ;;  %v4158_v60 = vpop.f32.mrf.mxu2 }
 0x410   : > { %v4246_v7 = vadd.f32 %v4158_v60, %v3868_v22  ;;  %v3552_v60 = vld [vmem:[%s12070_s24 + $0x16a] sm:$0xff] }
 0x411   : > { %v3405_v54 = vpop.f32.mrf.mxu0 }
 0x412   : > { %v3491_v55 = vadd.f32 %v3405_v54, %v13109_v1  ;;  %v4536_v56 = vpop.f32.mrf.mxu3  ;;  %v4308_v54 = vld [vmem:[%s12070_s24 + $0x16e] sm:$0xff] }
 0x413   : > { %v13675_v57 = vadd.f32 %v4536_v56, %v4246_v7  ;;  %v3783_v58 = vpop.f32.mrf.mxu1  ;;  %v11177_v7 = vld [vmem:[%s16278_s1 + $0x3c8] sm:$0xff]  ;;  %v11235_v56 = vld [vmem:[%s16278_s1 + $0x438] sm:$0xff] }
 0x414   : > { %10859 = vmatmul.msk.f32.gmra.mxu0 %vm303_vm0, %v3173_v52  ;;  %10963 = vmatmul.msk.f32.gmra.mxu2 %vm303_vm0, %v3929_v53  ;;  %v3869_v36 = vadd.f32 %v3783_v58, %v3491_v55  ;;  %v11176_v52 = vld [vmem:[%s16278_s1 + $0x3c0] sm:$0xff] }
 0x415   : > { %5803 = vmatpush.msrb.mxu3 %v11177_v7  ;;  %6175 = vmatpush.msra.mxu0 %v11235_v56  ;;  %v3176_v7 = vld [vmem:[%s12070_s24 + $0x1bf] sm:$0xff] }
 0x416   : > { %10911 = vmatmul.msk.f32.gmra.mxu1 %vm303_vm0, %v3551_v0  ;;  %v11287_v0 = vld [vmem:[%s16278_s1 + $0x478] sm:$0xff] }
 0x417   : > { %11015 = vmatmul.msk.f32.gmra.mxu3 %vm303_vm0, %v4307_v46  ;;  %v4161_v18 = vpop.f32.mrf.mxu2  ;;  %6553 = vmatpush.msra.mxu1 %v11287_v0  ;;  %v3554_v56 = vld [vmem:[%s12070_s24 + $0x17a] sm:$0xff] }
 0x418   : > { %v4247_v34 = vadd.f32 %v4161_v18, %v3869_v36  ;;  %5804 = vmatpush.msrb.mxu3 %v11176_v52  ;;  %v3175_v36 = vld [vmem:[%s12070_s24 + $0x1b7] sm:$0xff] }
 0x419   : > { %v3408_v1 = vpop.f32.mrf.mxu0  ;;  %v3931_v18 = vld [vmem:[%s12070_s24 + $0x174] sm:$0xff] }
 0x41a   : > { %v3492_v24 = vadd.f32 %v3408_v1, %v13135_v13  ;;  %v4539_v28 = vpop.f32.mrf.mxu3  ;;  %v11339_v13 = vld [vmem:[%s16278_s1 + $0x4b8] sm:$0xff] }
 0x41b   : > { %v13689_v37 = vadd.f32 %v4539_v28, %v4247_v34  ;;  %v3786_v22 = vpop.f32.mrf.mxu1  ;;  %6931 = vmatpush.msra.mxu2 %v11339_v13 }
 0x41c   : > { %10860 = vmatmul.msk.f32.gmra.mxu0 %vm303_vm0, %v3174_v3  ;;  %10964 = vmatmul.msk.f32.gmra.mxu2 %vm303_vm0, %v3930_v19  ;;  %v3870_v53 = vadd.f32 %v3786_v22, %v3492_v24  ;;  %v4309_v24 = vld [vmem:[%s12070_s24 + $0x176] sm:$0xff] }
 0x41e   : > { %10912 = vmatmul.msk.f32.gmra.mxu1 %vm303_vm0, %v3552_v60 }
 0x41f   : > { %11016 = vmatmul.msk.f32.gmra.mxu3 %vm303_vm0, %v4308_v54  ;;  %v4164_v55 = vpop.f32.mrf.mxu2  ;;  %v3932_v54 = vld [vmem:[%s12070_s24 + $0x17c] sm:$0xff] }
 0x420   : > { %v4248_v58 = vadd.f32 %v4164_v55, %v3870_v53 }
 0x421   : > { %v3411_v46 = vpop.f32.mrf.mxu0 }
 0x422   : > { %v3493_v34 = vadd.f32 %v3411_v46, %v13146_v45  ;;  %v4542_v1 = vpop.f32.mrf.mxu3 }
 0x423   : > { %v13715_v3 = vadd.f32 %v4542_v1, %v4248_v58  ;;  %v3789_v19 = vpop.f32.mrf.mxu1  ;;  %v4310_v58 = vld [vmem:[%s12070_s24 + $0x17e] sm:$0xff] }
 0x424   : > { %10861 = vmatmul.msk.f32.gmra.mxu0 %vm303_vm0, %v3175_v36  ;;  %10965 = vmatmul.msk.f32.gmra.mxu2 %vm303_vm0, %v3931_v18  ;;  %v3871_v28 = vadd.f32 %v3789_v19, %v3493_v34  ;;  %v3177_v18 = vld [vmem:[%s12070_s24 + $0x1c7] sm:$0xff] }
 0x425   : > { %v3933_v34 = vld [vmem:[%s12070_s24 + $0x184] sm:$0xff] }
 0x426   : > { %10913 = vmatmul.msk.f32.gmra.mxu1 %vm303_vm0, %v3553_v29 }
 0x427   : > { %11017 = vmatmul.msk.f32.gmra.mxu3 %vm303_vm0, %v4309_v24  ;;  %v4167_v22 = vpop.f32.mrf.mxu2 }
 0x428   : > { %v4249_v60 = vadd.f32 %v4167_v22, %v3871_v28  ;;  %v3555_v28 = vld [vmem:[%s12070_s24 + $0x182] sm:$0xff] }
 0x429   : > { %v3414_v45 = vpop.f32.mrf.mxu0  ;;  %v4311_v22 = vld [vmem:[%s12070_s24 + $0x186] sm:$0xff] }
 0x42a   : > { %v3494_v13 = vadd.f32 %v3414_v45, %v13157_v41  ;;  %v4545_v52 = vpop.f32.mrf.mxu3 }
 0x42b   : > { %v13726_v53 = vadd.f32 %v4545_v52, %v4249_v60  ;;  %v3792_v55 = vpop.f32.mrf.mxu1 }
 0x42c   : > { %10862 = vmatmul.msk.f32.gmra.mxu0 %vm303_vm0, %v3176_v7  ;;  %10966 = vmatmul.msk.f32.gmra.mxu2 %vm303_vm0, %v3932_v54  ;;  %v3872_v0 = vadd.f32 %v3792_v55, %v3494_v13  ;;  %v4646_v54 = vld [vmem:[%s12070_s24 + $0x56] sm:$0xff] }
 0x42d   : > { %v5226_v13 = vld [vmem:[%s12070_s24 + $0x5a] sm:$0xff] }
 0x42e   : > { %10914 = vmatmul.msk.f32.gmra.mxu1 %vm303_vm0, %v3554_v56 }
 0x42f   : > { %11018 = vmatmul.msk.f32.gmra.mxu3 %vm303_vm0, %v4310_v58  ;;  %v4170_v46 = vpop.f32.mrf.mxu2 }
 0x430   : > { %v4250_v36 = vadd.f32 %v4170_v46, %v3872_v0  ;;  %v13753_v0 = vld [vmem:[%s12070_s24 + $0x82] sm:$0xff] }
 0x431   : > { %v3417_v41 = vpop.f32.mrf.mxu0 }
 0x432   : > { %v3495_v1 = vadd.f32 %v3417_v41, %v13168_v49  ;;  %v4548_v19 = vpop.f32.mrf.mxu3 }
 0x433   : > { %v13737_v29 = vadd.f32 %v4548_v19, %v4250_v36  ;;  %v3795_v24 = vpop.f32.mrf.mxu1  ;;  %v11857_v36 = vld [vmem:[%s12070_s24 + $0x58] sm:$0xff] }
 0x434   : > { %10863 = vmatmul.msk.f32.gmra.mxu0 %vm303_vm0, %v3177_v18  ;;  %10967 = vmatmul.msk.f32.gmra.mxu2 %vm303_vm0, %v3933_v34  ;;  %v3873_v60 = vadd.f32 %v3795_v24, %v3495_v1  ;;  %v4647_v34 = vld [vmem:[%s12070_s24 + $0x5e] sm:$0xff] }
 0x435   : > { %v5227_v1 = vld [vmem:[%s12070_s24 + $0x62] sm:$0xff] }
 0x436   : > { %10915 = vmatmul.msk.f32.gmra.mxu1 %vm303_vm0, %v3555_v28 }
 0x437   : > { %11019 = vmatmul.msk.f32.gmra.mxu3 %vm303_vm0, %v4311_v22  ;;  %v4173_v45 = vpop.f32.mrf.mxu2 }
 0x438   : > { %v4251_v7 = vadd.f32 %v4173_v45, %v3873_v60  ;;  %v13767_v60 = vld [vmem:[%s12070_s24 + $0x8a] sm:$0xff] }
 0x439   : > { %v3420_v49 = vpop.f32.mrf.mxu0 }
 0x43a   : > { %v3496_v52 = vadd.f32 %v3420_v49, %v13179_v42  ;;  %v4551_v55 = vpop.f32.mrf.mxu3 }
 0x43b   : > { %v13748_v56 = vadd.f32 %v4551_v55, %v4251_v7  ;;  %v3798_v58 = vpop.f32.mrf.mxu1  ;;  %v11858_v7 = vld [vmem:[%s12070_s24 + $0x60] sm:$0xff]  ;;  %v5228_v55 = vld [vmem:[%s12070_s24 + $0x6a] sm:$0xff] }
 0x43c   : > { %11028 = vmatmul.msk.f32.vlgmr.msrb.gmra.mxu0 %vm303_vm0, %v4646_v54  ;;  %11132 = vmatmul.msk.f32.vlgmr.msrb.gmra.mxu2 %vm303_vm0, %v5226_v13  ;;  %v3874_v46 = vadd.f32 %v3798_v58, %v3496_v52  ;;  %v11338_v54 = vld [vmem:[%s16278_s1 + $0x4b0] sm:$0xff]  ;;  %v4648_v52 = vld [vmem:[%s12070_s24 + $0x66] sm:$0xff] }
 0x43d   : > { %6932 = vmatpush.msra.mxu2 %v11338_v54 }
 0x43e   : > { %11080 = vmatmul.msk.f32.vlgmr.msrb.gmra.mxu1 %vm303_vm0, %v11857_v36 }
 0x43f   : > { %11184 = vmatmul.msk.f32.vlgmr.msrb.gmra.mxu3 %vm303_vm0, %v13753_v0  ;;  %v4176_v42 = vpop.f32.mrf.mxu2 }
 0x440   : > { %v4252_v41 = vadd.f32 %v4176_v42, %v3874_v46 }
 0x441   : > { %v3423_v18 = vpop.f32.mrf.mxu0 }
 0x442   : > { %v3497_v19 = vadd.f32 %v3423_v18, %v13193_v59  ;;  %v4554_v24 = vpop.f32.mrf.mxu3  ;;  %v13787_v18 = vld [vmem:[%s12070_s24 + $0x92] sm:$0xff] }
 0x443   : > { %v13762_v28 = vadd.f32 %v4554_v24, %v4252_v41  ;;  %v3801_v22 = vpop.f32.mrf.mxu1  ;;  %v11234_v41 = vld [vmem:[%s16278_s1 + $0x430] sm:$0xff] }
 0x444   : > { %11029 = vmatmul.msk.f32.gmra.mxu0 %vm303_vm0, %v4647_v34  ;;  %11133 = vmatmul.msk.f32.gmra.mxu2 %vm303_vm0, %v5227_v1  ;;  %v3875_v45 = vadd.f32 %v3801_v22, %v3497_v19  ;;  %v11859_v1 = vld [vmem:[%s12070_s24 + $0x68] sm:$0xff] }
 0x445   : > { %6176 = vmatpush.msra.mxu0 %v11234_v41  ;;  %v4650_v41 = vld [vmem:[%s12070_s24 + $0x76] sm:$0xff] }
 0x446   : > { %11081 = vmatmul.msk.f32.gmra.mxu1 %vm303_vm0, %v11858_v7  ;;  %v5229_v7 = vld [vmem:[%s12070_s24 + $0x72] sm:$0xff] }
 0x447   : > { %11185 = vmatmul.msk.f32.gmra.mxu3 %vm303_vm0, %v13767_v60  ;;  %v4179_v59 = vpop.f32.mrf.mxu2 }
 0x448   : > { %v4253_v49 = vadd.f32 %v4179_v59, %v3875_v45  ;;  %v4649_v45 = vld [vmem:[%s12070_s24 + $0x6e] sm:$0xff] }
 0x449   : > { %v3426_v13 = vpop.f32.mrf.mxu0 }
 0x44a   : > { %v3498_v58 = vadd.f32 %v3426_v13, %v13210_v10  ;;  %v4557_v46 = vpop.f32.mrf.mxu3  ;;  %v11286_v10 = vld [vmem:[%s16278_s1 + $0x470] sm:$0xff] }
 0x44b   : > { %v13779_v36 = vadd.f32 %v4557_v46, %v4253_v49  ;;  %v3804_v42 = vpop.f32.mrf.mxu1  ;;  %6554 = vmatpush.msra.mxu1 %v11286_v10  ;;  %v5230_v10 = vld [vmem:[%s12070_s24 + $0x7a] sm:$0xff] }
 0x44c   : > { %11030 = vmatmul.msk.f32.gmra.mxu0 %vm303_vm0, %v4648_v52  ;;  %11134 = vmatmul.msk.f32.gmra.mxu2 %vm303_vm0, %v5228_v55  ;;  %v3876_v34 = vadd.f32 %v3804_v42, %v3498_v58  ;;  %v13804_v52 = vld [vmem:[%s12070_s24 + $0x9a] sm:$0xff]  ;;  %v11860_v58 = vld [vmem:[%s12070_s24 + $0x70] sm:$0xff] }
 0x44e   : > { %11082 = vmatmul.msk.f32.gmra.mxu1 %vm303_vm0, %v11859_v1 }
 0x44f   : > { %11186 = vmatmul.msk.f32.gmra.mxu3 %vm303_vm0, %v13787_v18  ;;  %v4182_v19 = vpop.f32.mrf.mxu2 }
 0x450   : > { %v4254_v24 = vadd.f32 %v4182_v19, %v3876_v34 }
 0x451   : > { %v3429_v22 = vpop.f32.mrf.mxu0 }
 0x452   : > { %v3499_v59 = vadd.f32 %v3429_v22, %v13221_v30  ;;  %v4560_v49 = vpop.f32.mrf.mxu3  ;;  %v13818_v22 = vld [vmem:[%s12070_s24 + $0xa2] sm:$0xff] }
 0x453   : > { %v13799_v54 = vadd.f32 %v4560_v49, %v4254_v24  ;;  %v3807_v13 = vpop.f32.mrf.mxu1 }
 0x454   : > { %11031 = vmatmul.msk.f32.gmra.mxu0 %vm303_vm0, %v4649_v45  ;;  %11135 = vmatmul.msk.f32.gmra.mxu2 %vm303_vm0, %v5229_v7  ;;  %v3877_v55 = vadd.f32 %v3807_v13, %v3499_v59  ;;  %v11861_v7 = vld [vmem:[%s12070_s24 + $0x78] sm:$0xff] }
 0x455   : > { %v4651_v13 = vld [vmem:[%s12070_s24 + $0x7e] sm:$0xff] }
 0x456   : > { %11083 = vmatmul.msk.f32.gmra.mxu1 %vm303_vm0, %v11860_v58 }
 0x457   : > { %11187 = vmatmul.msk.f32.gmra.mxu3 %vm303_vm0, %v13804_v52  ;;  %v4185_v30 = vpop.f32.mrf.mxu2 }
 0x458   : > { %v4255_v46 = vadd.f32 %v4185_v30, %v3877_v55 }
 0x459   : > { %v3432_v42 = vpop.f32.mrf.mxu0 }
 0x45a   : > { %v3500_v34 = vadd.f32 %v3432_v42, %v13232_v44  ;;  %v4563_v1 = vpop.f32.mrf.mxu3  ;;  %v13832_v42 = vld [vmem:[%s12070_s24 + $0xaa] sm:$0xff] }
 0x45b   : > { %v13813_v19 = vadd.f32 %v4563_v1, %v4255_v46  ;;  %v3810_v24 = vpop.f32.mrf.mxu1 }
 0x45c   : > { %11032 = vmatmul.msk.f32.gmra.mxu0 %vm303_vm0, %v4650_v41  ;;  %11136 = vmatmul.msk.f32.gmra.mxu2 %vm303_vm0, %v5230_v10  ;;  %v3878_v45 = vadd.f32 %v3810_v24, %v3500_v34  ;;  %v11862_v10 = vld [vmem:[%s12070_s24 + $0x80] sm:$0xff] }
 0x45d   : > { %v4652_v24 = vld [vmem:[%s12070_s24 + $0x86] sm:$0xff] }
 0x45e   : > { %11084 = vmatmul.msk.f32.gmra.mxu1 %vm303_vm0, %v11861_v7 }
 0x45f   : > { %11188 = vmatmul.msk.f32.gmra.mxu3 %vm303_vm0, %v13818_v22  ;;  %v4188_v44 = vpop.f32.mrf.mxu2 }
 0x460   : > { %v4256_v59 = vadd.f32 %v4188_v44, %v3878_v45 }
 0x461   : > { %v3435_v49 = vpop.f32.mrf.mxu0 }
 0x462   : > { %v3501_v55 = vadd.f32 %v3435_v49, %v13243_v47  ;;  %v4566_v58 = vpop.f32.mrf.mxu3 }
 0x463   : > { %v13826_v30 = vadd.f32 %v4566_v58, %v4256_v59  ;;  %v3813_v46 = vpop.f32.mrf.mxu1  ;;  %v13846_v59 = vld [vmem:[%s12070_s24 + $0xb2] sm:$0xff] }
 0x464   : > { %11033 = vmatmul.msk.f32.gmra.mxu0 %vm303_vm0, %v4651_v13  ;;  %11137 = vmatmul.msk.f32.gmra.mxu2 %vm303_vm0, %v13753_v0  ;;  %v3879_v41 = vadd.f32 %v3813_v46, %v3501_v55  ;;  %v11863_v13 = vld [vmem:[%s12070_s24 + $0x88] sm:$0xff] }
 0x465   : > { %v4653_v46 = vld [vmem:[%s12070_s24 + $0x8e] sm:$0xff] }
 0x466   : > { %11085 = vmatmul.msk.f32.gmra.mxu1 %vm303_vm0, %v11862_v10 }
 0x467   : > { %11189 = vmatmul.msk.f32.gmra.mxu3 %vm303_vm0, %v13832_v42  ;;  %v4191_v47 = vpop.f32.mrf.mxu2 }
 0x468   : > { %v4257_v34 = vadd.f32 %v4191_v47, %v3879_v41 }
 0x469   : > { %v3438_v1 = vpop.f32.mrf.mxu0 }
 0x46a   : > { %v3502_v45 = vadd.f32 %v3438_v1, %v13254_v61  ;;  %v4569_v7 = vpop.f32.mrf.mxu3  ;;  %v11337_v1 = vld [vmem:[%s16278_s1 + $0x4a8] sm:$0xff] }
 0x46b   : > { %v13840_v0 = vadd.f32 %v4569_v7, %v4257_v34  ;;  %v3816_v44 = vpop.f32.mrf.mxu1  ;;  %v13860_v34 = vld [vmem:[%s12070_s24 + $0xba] sm:$0xff]  ;;  %6933 = vmatpush.msra.mxu2 %v11337_v1 }
 0x46c   : > { %11034 = vmatmul.msk.f32.gmra.mxu0 %vm303_vm0, %v4652_v24  ;;  %11138 = vmatmul.msk.f32.gmra.mxu2 %vm303_vm0, %v13767_v60  ;;  %v3880_v49 = vadd.f32 %v3816_v44, %v3502_v45  ;;  %v11864_v45 = vld [vmem:[%s12070_s24 + $0x90] sm:$0xff]  ;;  %v11285_v44 = vld [vmem:[%s16278_s1 + $0x468] sm:$0xff] }
 0x46d   : > { %6555 = vmatpush.msra.mxu1 %v11285_v44  ;;  %v13897_v44 = vld [vmem:[%s12070_s24 + $0xca] sm:$0xff] }
 0x46e   : > { %11086 = vmatmul.msk.f32.gmra.mxu1 %vm303_vm0, %v11863_v13  ;;  %v4654_v13 = vld [vmem:[%s12070_s24 + $0x96] sm:$0xff] }
 0x46f   : > { %11190 = vmatmul.msk.f32.gmra.mxu3 %vm303_vm0, %v13846_v59  ;;  %v4194_v61 = vpop.f32.mrf.mxu2 }
 0x470   : > { %v4258_v55 = vadd.f32 %v4194_v61, %v3880_v49 }
 0x471   : > { %v3441_v58 = vpop.f32.mrf.mxu0 }
 0x472   : > { %v3503_v41 = vadd.f32 %v3441_v58, %v13274_v51  ;;  %v4572_v10 = vpop.f32.mrf.mxu3 }
 0x473   : > { %v13854_v47 = vadd.f32 %v4572_v10, %v4258_v55  ;;  %v3819_v60 = vpop.f32.mrf.mxu1 }
 0x474   : > { %11035 = vmatmul.msk.f32.gmra.mxu0 %vm303_vm0, %v4653_v46  ;;  %11139 = vmatmul.msk.f32.gmra.mxu2 %vm303_vm0, %v13787_v18  ;;  %v3881_v24 = vadd.f32 %v3819_v60, %v3503_v41  ;;  %v11233_v18 = vld [vmem:[%s16278_s1 + $0x428] sm:$0xff]  ;;  %v11865_v60 = vld [vmem:[%s12070_s24 + $0x98] sm:$0xff] }
 0x475   : > { %6177 = vmatpush.msra.mxu0 %v11233_v18  ;;  %v13883_v41 = vld [vmem:[%s12070_s24 + $0xc2] sm:$0xff] }
 0x476   : > { %11087 = vmatmul.msk.f32.gmra.mxu1 %vm303_vm0, %v11864_v45  ;;  %v4655_v45 = vld [vmem:[%s12070_s24 + $0x9e] sm:$0xff] }
 0x477   : > { %11191 = vmatmul.msk.f32.gmra.mxu3 %vm303_vm0, %v13860_v34  ;;  %v4197_v51 = vpop.f32.mrf.mxu2 }
 0x478   : > { %v4259_v7 = vadd.f32 %v4197_v51, %v3881_v24 }
 0x479   : > { %v3444_v49 = vpop.f32.mrf.mxu0 }
 0x47a   : > { %v3504_v61 = vadd.f32 %v3444_v49, %v13285_v8  ;;  %v4575_v55 = vpop.f32.mrf.mxu3 }
 0x47b   : > { %v13877_v58 = vadd.f32 %v4575_v55, %v4259_v7  ;;  %v3822_v46 = vpop.f32.mrf.mxu1 }
 0x47c   : > { %11036 = vmatmul.msk.f32.gmra.mxu0 %vm303_vm0, %v4654_v13  ;;  %11140 = vmatmul.msk.f32.gmra.mxu2 %vm303_vm0, %v13804_v52  ;;  %v3882_v10 = vadd.f32 %v3822_v46, %v3504_v61  ;;  %v11866_v13 = vld [vmem:[%s12070_s24 + $0xa0] sm:$0xff] }
 0x47d   : > { %v4656_v46 = vld [vmem:[%s12070_s24 + $0xa6] sm:$0xff] }
 0x47e   : > { %11088 = vmatmul.msk.f32.gmra.mxu1 %vm303_vm0, %v11865_v60 }
 0x47f   : > { %11192 = vmatmul.msk.f32.gmra.mxu3 %vm303_vm0, %v13883_v41  ;;  %v4200_v8 = vpop.f32.mrf.mxu2 }
 0x480   : > { %v4260_v1 = vadd.f32 %v4200_v8, %v3882_v10 }
 0x481   : > { %v3447_v24 = vpop.f32.mrf.mxu0 }
 0x482   : > { %v3505_v51 = vadd.f32 %v3447_v24, %v13296_v33  ;;  %v4578_v18 = vpop.f32.mrf.mxu3 }
 0x483   : > { %v13891_v52 = vadd.f32 %v4578_v18, %v4260_v1  ;;  %v3825_v7 = vpop.f32.mrf.mxu1  ;;  %v13911_v1 = vld [vmem:[%s12070_s24 + $0xd2] sm:$0xff] }
 0x484   : > { %11037 = vmatmul.msk.f32.gmra.mxu0 %vm303_vm0, %v4655_v45  ;;  %11141 = vmatmul.msk.f32.gmra.mxu2 %vm303_vm0, %v13818_v22  ;;  %v3883_v49 = vadd.f32 %v3825_v7, %v3505_v51  ;;  %v11867_v45 = vld [vmem:[%s12070_s24 + $0xa8] sm:$0xff] }
 0x485   : > { %v4657_v7 = vld [vmem:[%s12070_s24 + $0xae] sm:$0xff] }
 0x486   : > { %11089 = vmatmul.msk.f32.gmra.mxu1 %vm303_vm0, %v11866_v13 }
 0x487   : > { %11193 = vmatmul.msk.f32.gmra.mxu3 %vm303_vm0, %v13897_v44  ;;  %v4203_v33 = vpop.f32.mrf.mxu2 }
 0x488   : > { %v4261_v61 = vadd.f32 %v4203_v33, %v3883_v49 }
 0x489   : > { %v3450_v55 = vpop.f32.mrf.mxu0 }
 0x48a   : > { %v3506_v10 = vadd.f32 %v3450_v55, %v13307_v4  ;;  %v4581_v60 = vpop.f32.mrf.mxu3 }
 0x48b   : > { %v13905_v22 = vadd.f32 %v4581_v60, %v4261_v61  ;;  %v3828_v8 = vpop.f32.mrf.mxu1  ;;  %v13925_v61 = vld [vmem:[%s12070_s24 + $0xda] sm:$0xff] }
 0x48c   : > { %11038 = vmatmul.msk.f32.gmra.mxu0 %vm303_vm0, %v4656_v46  ;;  %11142 = vmatmul.msk.f32.gmra.mxu2 %vm303_vm0, %v13832_v42  ;;  %v3884_v24 = vadd.f32 %v3828_v8, %v3506_v10  ;;  %v11868_v46 = vld [vmem:[%s12070_s24 + $0xb0] sm:$0xff] }
 0x48d   : > { %v4658_v8 = vld [vmem:[%s12070_s24 + $0xb6] sm:$0xff] }
 0x48e   : > { %11090 = vmatmul.msk.f32.gmra.mxu1 %vm303_vm0, %v11867_v45 }
 0x48f   : > { %11194 = vmatmul.msk.f32.gmra.mxu3 %vm303_vm0, %v13911_v1  ;;  %v4206_v4 = vpop.f32.mrf.mxu2 }
 0x490   : > { %v4262_v51 = vadd.f32 %v4206_v4, %v3884_v24 }
 0x491   : > { %v3453_v18 = vpop.f32.mrf.mxu0 }
 0x492   : > { %v3507_v49 = vadd.f32 %v3453_v18, %v13318_v35  ;;  %v4584_v13 = vpop.f32.mrf.mxu3 }
 0x493   : > { %v13919_v42 = vadd.f32 %v4584_v13, %v4262_v51  ;;  %v3831_v33 = vpop.f32.mrf.mxu1  ;;  %v13939_v51 = vld [vmem:[%s12070_s24 + $0xe2] sm:$0xff] }
 0x494   : > { %11039 = vmatmul.msk.f32.gmra.mxu0 %vm303_vm0, %v4657_v7  ;;  %11143 = vmatmul.msk.f32.gmra.mxu2 %vm303_vm0, %v13846_v59  ;;  %v3885_v55 = vadd.f32 %v3831_v33, %v3507_v49  ;;  %v11869_v7 = vld [vmem:[%s12070_s24 + $0xb8] sm:$0xff]  ;;  %v11336_v13 = vld [vmem:[%s16278_s1 + $0x4a0] sm:$0xff] }
 0x495   : > { %6934 = vmatpush.msra.mxu2 %v11336_v13 }
 0x496   : > { %11091 = vmatmul.msk.f32.gmra.mxu1 %vm303_vm0, %v11868_v46 }
 0x497   : > { %11195 = vmatmul.msk.f32.gmra.mxu3 %vm303_vm0, %v13925_v61  ;;  %v4209_v35 = vpop.f32.mrf.mxu2 }
 0x498   : > { %v4263_v10 = vadd.f32 %v4209_v35, %v3885_v55  ;;  %v4659_v55 = vld [vmem:[%s12070_s24 + $0xbe] sm:$0xff] }
 0x499   : > { %v3456_v60 = vpop.f32.mrf.mxu0 }
 0x49a   : > { %v3508_v24 = vadd.f32 %v3456_v60, %v13332_v9  ;;  %v4587_v45 = vpop.f32.mrf.mxu3  ;;  %v11232_v60 = vld [vmem:[%s16278_s1 + $0x420] sm:$0xff] }
 0x49b   : > { %v13933_v59 = vadd.f32 %v4587_v45, %v4263_v10  ;;  %v3834_v4 = vpop.f32.mrf.mxu1  ;;  %6178 = vmatpush.msra.mxu0 %v11232_v60 }
 0x49c   : > { %11040 = vmatmul.msk.f32.gmra.mxu0 %vm303_vm0, %v4658_v8  ;;  %11144 = vmatmul.msk.f32.gmra.mxu2 %vm303_vm0, %v13860_v34  ;;  %v3886_v18 = vadd.f32 %v3834_v4, %v3508_v24  ;;  %v13959_v8 = vld [vmem:[%s12070_s24 + $0xea] sm:$0xff]  ;;  %v11391_v24 = vld [vmem:[%s16278_s1 + $0x4f8] sm:$0xff]  ;;  %v11870_v4 = vld [vmem:[%s12070_s24 + $0xc0] sm:$0xff] }
 0x49d   : > { %7309 = vmatpush.msra.mxu3 %v11391_v24  ;;  %v4661_v24 = vld [vmem:[%s12070_s24 + $0xce] sm:$0xff] }
 0x49e   : > { %11092 = vmatmul.msk.f32.gmra.mxu1 %vm303_vm0, %v11869_v7 }
 0x49f   : > { %11196 = vmatmul.msk.f32.gmra.mxu3 %vm303_vm0, %v13939_v51  ;;  %v4212_v9 = vpop.f32.mrf.mxu2 }
 0x4a0   : > { %v4264_v49 = vadd.f32 %v4212_v9, %v3886_v18  ;;  %v4660_v9 = vld [vmem:[%s12070_s24 + $0xc6] sm:$0xff] }
 0x4a1   : > { %v3459_v33 = vpop.f32.mrf.mxu0 }
 0x4a2   : > { %v3509_v34 = vadd.f32 %v3459_v33, %v13352_v2  ;;  %v4590_v46 = vpop.f32.mrf.mxu3  ;;  %v11284_v2 = vld [vmem:[%s16278_s1 + $0x460] sm:$0xff] }
 0x4a3   : > { %v13950_v35 = vadd.f32 %v4590_v46, %v4264_v49  ;;  %v3837_v10 = vpop.f32.mrf.mxu1  ;;  %6556 = vmatpush.msra.mxu1 %v11284_v2 }
 0x4a4   : > { %11041 = vmatmul.msk.f32.gmra.mxu0 %vm303_vm0, %v4659_v55  ;;  %11145 = vmatmul.msk.f32.gmra.mxu2 %vm303_vm0, %v13883_v41  ;;  %v3887_v45 = vadd.f32 %v3837_v10, %v3509_v34  ;;  %v13979_v34 = vld [vmem:[%s12070_s24 + $0xf2] sm:$0xff]  ;;  %v11871_v10 = vld [vmem:[%s12070_s24 + $0xc8] sm:$0xff] }
 0x4a6   : > { %11093 = vmatmul.msk.f32.gmra.mxu1 %vm303_vm0, %v11870_v4 }
 0x4a7   : > { %11197 = vmatmul.msk.f32.gmra.mxu3 %vm303_vm0, %v13959_v8  ;;  %v4215_v41 = vpop.f32.mrf.mxu2 }
 0x4a8   : > { %v4265_v18 = vadd.f32 %v4215_v41, %v3887_v45 }
 0x4a9   : > { %v3462_v7 = vpop.f32.mrf.mxu0 }
 0x4aa   : > { %v3510_v49 = vadd.f32 %v3462_v7, %v13363_v39  ;;  %v4593_v13 = vpop.f32.mrf.mxu3 }
 0x4ab   : > { %v13973_v33 = vadd.f32 %v4593_v13, %v4265_v18  ;;  %v3840_v55 = vpop.f32.mrf.mxu1  ;;  %v13993_v18 = vld [vmem:[%s12070_s24 + $0xfa] sm:$0xff] }
 0x4ac   : > { %11042 = vmatmul.msk.f32.gmra.mxu0 %vm303_vm0, %v4660_v9  ;;  %11146 = vmatmul.msk.f32.gmra.mxu2 %vm303_vm0, %v13897_v44  ;;  %v3888_v46 = vadd.f32 %v3840_v55, %v3510_v49  ;;  %v11872_v9 = vld [vmem:[%s12070_s24 + $0xd0] sm:$0xff] }
 0x4ad   : > { %v4662_v55 = vld [vmem:[%s12070_s24 + $0xd6] sm:$0xff] }
 0x4ae   : > { %11094 = vmatmul.msk.f32.gmra.mxu1 %vm303_vm0, %v11871_v10 }
 0x4af   : > { %11198 = vmatmul.msk.f32.gmra.mxu3 %vm303_vm0, %v13979_v34  ;;  %v4218_v39 = vpop.f32.mrf.mxu2 }
 0x4b0   : > { %v4266_v60 = vadd.f32 %v4218_v39, %v3888_v46 }
 0x4b1   : > { %v3465_v2 = vpop.f32.mrf.mxu0 }
 0x4b2   : > { %v3511_v45 = vadd.f32 %v3465_v2, %v13374_v32  ;;  %v4596_v4 = vpop.f32.mrf.mxu3 }
 0x4b3   : > { %v13987_v44 = vadd.f32 %v4596_v4, %v4266_v60  ;;  %v3843_v41 = vpop.f32.mrf.mxu1  ;;  %v14007_v60 = vld [vmem:[%s12070_s24 + $0x102] sm:$0xff] }
 0x4b4   : > { %11043 = vmatmul.msk.f32.gmra.mxu0 %vm303_vm0, %v4661_v24  ;;  %11147 = vmatmul.msk.f32.gmra.mxu2 %vm303_vm0, %v13911_v1  ;;  %v3889_v7 = vadd.f32 %v3843_v41, %v3511_v45  ;;  %v11873_v24 = vld [vmem:[%s12070_s24 + $0xd8] sm:$0xff] }
 0x4b5   : > { %v4663_v41 = vld [vmem:[%s12070_s24 + $0xde] sm:$0xff] }
 0x4b6   : > { %11095 = vmatmul.msk.f32.gmra.mxu1 %vm303_vm0, %v11872_v9 }
 0x4b7   : > { %11199 = vmatmul.msk.f32.gmra.mxu3 %vm303_vm0, %v13993_v18  ;;  %v4221_v32 = vpop.f32.mrf.mxu2 }
 0x4b8   : > { %v4267_v49 = vadd.f32 %v4221_v32, %v3889_v7 }
 0x4b9   : > { %v4848_v13 = vpop.f32.mrf.mxu0 }
 0x4ba   : > { %v4599_v46 = vpop.f32.mrf.mxu3  ;;  %v4980_v10 = vadd.f32 %v4848_v13, %v13385_v23 }
 0x4bb   : > { %v14001_v1 = vadd.f32 %v4599_v46, %v4267_v49  ;;  %v5050_v39 = vpop.f32.mrf.mxu1  ;;  %v14021_v49 = vld [vmem:[%s12070_s24 + $0x10a] sm:$0xff] }
 0x4bc   : > { %11044 = vmatmul.msk.f32.gmra.mxu0 %vm303_vm0, %v4662_v55  ;;  %11148 = vmatmul.msk.f32.gmra.mxu2 %vm303_vm0, %v13925_v61  ;;  %v5182_v2 = vadd.f32 %v5050_v39, %v4980_v10  ;;  %v11874_v55 = vld [vmem:[%s12070_s24 + $0xe0] sm:$0xff] }
 0x4bd   : > { %v4664_v39 = vld [vmem:[%s12070_s24 + $0xe6] sm:$0xff] }
 0x4be   : > { %11096 = vmatmul.msk.f32.gmra.mxu1 %vm303_vm0, %v11873_v24 }
 0x4bf   : > { %11200 = vmatmul.msk.f32.gmra.mxu3 %vm303_vm0, %v14007_v60  ;;  %v5428_v23 = vpop.f32.mrf.mxu2 }
 0x4c0   : > { %v5560_v45 = vadd.f32 %v5428_v23, %v5182_v2 }
 0x4c1   : > { %v4851_v4 = vpop.f32.mrf.mxu0 }
 0x4c2   : > { %v4981_v7 = vadd.f32 %v4851_v4, %v13396_v63  ;;  %v5806_v9 = vpop.f32.mrf.mxu3  ;;  %v11335_v4 = vld [vmem:[%s16278_s1 + $0x498] sm:$0xff] }
 0x4c3   : > { %v14015_v61 = vadd.f32 %v5806_v9, %v5560_v45  ;;  %v5053_v32 = vpop.f32.mrf.mxu1  ;;  %v14035_v45 = vld [vmem:[%s12070_s24 + $0x112] sm:$0xff]  ;;  %6935 = vmatpush.msra.mxu2 %v11335_v4 }
 0x4c4   : > { %11045 = vmatmul.msk.f32.gmra.mxu0 %vm303_vm0, %v4663_v41  ;;  %11149 = vmatmul.msk.f32.gmra.mxu2 %vm303_vm0, %v13939_v51  ;;  %v5183_v13 = vadd.f32 %v5053_v32, %v4981_v7  ;;  %v11875_v7 = vld [vmem:[%s12070_s24 + $0xe8] sm:$0xff]  ;;  %v11283_v32 = vld [vmem:[%s16278_s1 + $0x458] sm:$0xff]  ;;  %v11876_v4 = vld [vmem:[%s12070_s24 + $0xf0] sm:$0xff] }
 0x4c5   : > { %6557 = vmatpush.msra.mxu1 %v11283_v32 }
 0x4c6   : > { %11097 = vmatmul.msk.f32.gmra.mxu1 %vm303_vm0, %v11874_v55 }
 0x4c7   : > { %11201 = vmatmul.msk.f32.gmra.mxu3 %vm303_vm0, %v14021_v49  ;;  %v5431_v63 = vpop.f32.mrf.mxu2 }
 0x4c8   : > { %v5561_v46 = vadd.f32 %v5431_v63, %v5183_v13  ;;  %v11390_v13 = vld [vmem:[%s16278_s1 + $0x4f0] sm:$0xff] }
 0x4c9   : > { %v4854_v10 = vpop.f32.mrf.mxu0  ;;  %v4665_v63 = vld [vmem:[%s12070_s24 + $0xee] sm:$0xff]  ;;  %7310 = vmatpush.msra.mxu3 %v11390_v13  ;;  %v14075_v13 = vld [vmem:[%s12070_s24 + $0x122] sm:$0xff] }
 0x4ca   : > { %v4982_v2 = vadd.f32 %v4854_v10, %v13419_v21  ;;  %v5809_v24 = vpop.f32.mrf.mxu3 }
 0x4cb   : > { %v14029_v23 = vadd.f32 %v5809_v24, %v5561_v46  ;;  %v5056_v51 = vpop.f32.mrf.mxu1  ;;  %v14061_v24 = vld [vmem:[%s12070_s24 + $0x11a] sm:$0xff] }
 0x4cc   : > { %11046 = vmatmul.msk.f32.gmra.mxu0 %vm303_vm0, %v4664_v39  ;;  %11150 = vmatmul.msk.f32.gmra.mxu2 %vm303_vm0, %v13959_v8  ;;  %v5184_v41 = vadd.f32 %v5056_v51, %v4982_v2  ;;  %v11231_v8 = vld [vmem:[%s16278_s1 + $0x418] sm:$0xff] }
 0x4cd   : > { %6179 = vmatpush.msra.mxu0 %v11231_v8 }
 0x4ce   : > { %11098 = vmatmul.msk.f32.gmra.mxu1 %vm303_vm0, %v11875_v7 }
 0x4cf   : > { %11202 = vmatmul.msk.f32.gmra.mxu3 %vm303_vm0, %v14035_v45  ;;  %v5434_v21 = vpop.f32.mrf.mxu2 }
 0x4d0   : > { %v5562_v9 = vadd.f32 %v5434_v21, %v5184_v41  ;;  %v4666_v21 = vld [vmem:[%s12070_s24 + $0xf6] sm:$0xff] }
 0x4d1   : > { %v4857_v55 = vpop.f32.mrf.mxu0 }
 0x4d2   : > { %v4983_v46 = vadd.f32 %v4857_v55, %v13430_v26  ;;  %v5812_v10 = vpop.f32.mrf.mxu3 }
 0x4d3   : > { %v14055_v39 = vadd.f32 %v5812_v10, %v5562_v9  ;;  %v5059_v2 = vpop.f32.mrf.mxu1 }
 0x4d4   : > { %11047 = vmatmul.msk.f32.gmra.mxu0 %vm303_vm0, %v4665_v63  ;;  %11151 = vmatmul.msk.f32.gmra.mxu2 %vm303_vm0, %v13979_v34  ;;  %v5185_v51 = vadd.f32 %v5059_v2, %v4983_v46  ;;  %v11877_v63 = vld [vmem:[%s12070_s24 + $0xf8] sm:$0xff] }
 0x4d5   : > { %v4667_v2 = vld [vmem:[%s12070_s24 + $0xfe] sm:$0xff] }
 0x4d6   : > { %11099 = vmatmul.msk.f32.gmra.mxu1 %vm303_vm0, %v11876_v4 }
 0x4d7   : > { %11203 = vmatmul.msk.f32.gmra.mxu3 %vm303_vm0, %v14061_v24  ;;  %v5437_v26 = vpop.f32.mrf.mxu2 }
 0x4d8   : > { %v5563_v41 = vadd.f32 %v5437_v26, %v5185_v51 }
 0x4d9   : > { %v4860_v7 = vpop.f32.mrf.mxu0 }
 0x4da   : > { %v4984_v8 = vadd.f32 %v4860_v7, %v13441_v25  ;;  %v5815_v9 = vpop.f32.mrf.mxu3 }
 0x4db   : > { %v14069_v34 = vadd.f32 %v5815_v9, %v5563_v41  ;;  %v5062_v32 = vpop.f32.mrf.mxu1  ;;  %v14089_v41 = vld [vmem:[%s12070_s24 + $0x12a] sm:$0xff] }
 0x4dc   : > { %11048 = vmatmul.msk.f32.gmra.mxu0 %vm303_vm0, %v4666_v21  ;;  %11152 = vmatmul.msk.f32.gmra.mxu2 %vm303_vm0, %v13993_v18  ;;  %v5186_v55 = vadd.f32 %v5062_v32, %v4984_v8  ;;  %v11878_v21 = vld [vmem:[%s12070_s24 + $0x100] sm:$0xff] }
 0x4dd   : > { %v4668_v32 = vld [vmem:[%s12070_s24 + $0x106] sm:$0xff] }
 0x4de   : > { %11100 = vmatmul.msk.f32.gmra.mxu1 %vm303_vm0, %v11877_v63 }
 0x4df   : > { %11204 = vmatmul.msk.f32.gmra.mxu3 %vm303_vm0, %v14075_v13  ;;  %v5440_v25 = vpop.f32.mrf.mxu2 }
 0x4e0   : > { %v5564_v46 = vadd.f32 %v5440_v25, %v5186_v55 }
 0x4e1   : > { %v4863_v10 = vpop.f32.mrf.mxu0 }
 0x4e2   : > { %v4985_v51 = vadd.f32 %v4863_v10, %v13452_v11  ;;  %v5818_v4 = vpop.f32.mrf.mxu3 }
 0x4e3   : > { %v14083_v18 = vadd.f32 %v5818_v4, %v5564_v46  ;;  %v5065_v26 = vpop.f32.mrf.mxu1  ;;  %v14103_v46 = vld [vmem:[%s12070_s24 + $0x132] sm:$0xff] }
 0x4e4   : > { %11049 = vmatmul.msk.f32.gmra.mxu0 %vm303_vm0, %v4667_v2  ;;  %11153 = vmatmul.msk.f32.gmra.mxu2 %vm303_vm0, %v14007_v60  ;;  %v5187_v7 = vadd.f32 %v5065_v26, %v4985_v51  ;;  %v11879_v2 = vld [vmem:[%s12070_s24 + $0x108] sm:$0xff] }
 0x4e5   : > { %v4669_v26 = vld [vmem:[%s12070_s24 + $0x10e] sm:$0xff] }
 0x4e6   : > { %11101 = vmatmul.msk.f32.gmra.mxu1 %vm303_vm0, %v11878_v21 }
 0x4e7   : > { %11205 = vmatmul.msk.f32.gmra.mxu3 %vm303_vm0, %v14089_v41  ;;  %v5443_v11 = vpop.f32.mrf.mxu2 }
 0x4e8   : > { %v5565_v8 = vadd.f32 %v5443_v11, %v5187_v7 }
 0x4e9   : > { %v4866_v9 = vpop.f32.mrf.mxu0 }
 0x4ea   : > { %v4986_v55 = vadd.f32 %v4866_v9, %v13463_v16  ;;  %v5821_v63 = vpop.f32.mrf.mxu3 }
 0x4eb   : > { %v14097_v60 = vadd.f32 %v5821_v63, %v5565_v8  ;;  %v5068_v25 = vpop.f32.mrf.mxu1  ;;  %v14117_v8 = vld [vmem:[%s12070_s24 + $0x13a] sm:$0xff]  ;;  %v11334_v63 = vld [vmem:[%s16278_s1 + $0x490] sm:$0xff] }
 0x4ec   : > { %11050 = vmatmul.msk.f32.gmra.mxu0 %vm303_vm0, %v4668_v32  ;;  %11154 = vmatmul.msk.f32.gmra.mxu2 %vm303_vm0, %v14021_v49  ;;  %v5188_v10 = vadd.f32 %v5068_v25, %v4986_v55  ;;  %v11880_v32 = vld [vmem:[%s12070_s24 + $0x110] sm:$0xff] }
 0x4ed   : > { %6936 = vmatpush.msra.mxu2 %v11334_v63 }
 0x4ee   : > { %11102 = vmatmul.msk.f32.gmra.mxu1 %vm303_vm0, %v11879_v2 }
 0x4ef   : > { %11206 = vmatmul.msk.f32.gmra.mxu3 %vm303_vm0, %v14103_v46  ;;  %v5446_v16 = vpop.f32.mrf.mxu2 }
 0x4f0   : > { %v5566_v51 = vadd.f32 %v5446_v16, %v5188_v10  ;;  %v4670_v10 = vld [vmem:[%s12070_s24 + $0x116] sm:$0xff] }
 0x4f1   : > { %v4869_v4 = vpop.f32.mrf.mxu0 }
 0x4f2   : > { %v4987_v7 = vadd.f32 %v4869_v4, %v13477_v12  ;;  %v5824_v21 = vpop.f32.mrf.mxu3  ;;  %v11230_v4 = vld [vmem:[%s16278_s1 + $0x410] sm:$0xff] }
 0x4f3   : > { %v14111_v49 = vadd.f32 %v5824_v21, %v5566_v51  ;;  %v5071_v11 = vpop.f32.mrf.mxu1  ;;  %6180 = vmatpush.msra.mxu0 %v11230_v4 }
 0x4f4   : > { %11051 = vmatmul.msk.f32.gmra.mxu0 %vm303_vm0, %v4669_v26  ;;  %11155 = vmatmul.msk.f32.gmra.mxu2 %vm303_vm0, %v14035_v45  ;;  %v5189_v9 = vadd.f32 %v5071_v11, %v4987_v7  ;;  %v14137_v26 = vld [vmem:[%s12070_s24 + $0x142] sm:$0xff]  ;;  %v11881_v11 = vld [vmem:[%s12070_s24 + $0x118] sm:$0xff] }
 0x4f5   : > { %v11389_v7 = vld [vmem:[%s16278_s1 + $0x4e8] sm:$0xff] }
 0x4f6   : > { %11103 = vmatmul.msk.f32.gmra.mxu1 %vm303_vm0, %v11880_v32  ;;  %7311 = vmatpush.msra.mxu3 %v11389_v7  ;;  %v4672_v7 = vld [vmem:[%s12070_s24 + $0x126] sm:$0xff] }
 0x4f7   : > { %11207 = vmatmul.msk.f32.gmra.mxu3 %vm303_vm0, %v14117_v8  ;;  %v5449_v12 = vpop.f32.mrf.mxu2 }
 0x4f8   : > { %v5567_v55 = vadd.f32 %v5449_v12, %v5189_v9  ;;  %v4671_v12 = vld [vmem:[%s12070_s24 + $0x11e] sm:$0xff] }
 0x4f9   : > { %v4872_v25 = vpop.f32.mrf.mxu0 }
 0x4fa   : > { %v4988_v45 = vadd.f32 %v4872_v25, %v13497_v17  ;;  %v5827_v2 = vpop.f32.mrf.mxu3  ;;  %v11282_v17 = vld [vmem:[%s16278_s1 + $0x450] sm:$0xff] }
 0x4fb   : > { %v14128_v16 = vadd.f32 %v5827_v2, %v5567_v55  ;;  %v5074_v51 = vpop.f32.mrf.mxu1  ;;  %6558 = vmatpush.msra.mxu1 %v11282_v17 }
 0x4fc   : > { %11052 = vmatmul.msk.f32.gmra.mxu0 %vm303_vm0, %v4670_v10  ;;  %11156 = vmatmul.msk.f32.gmra.mxu2 %vm303_vm0, %v14061_v24  ;;  %v5190_v21 = vadd.f32 %v5074_v51, %v4988_v45  ;;  %v14157_v45 = vld [vmem:[%s12070_s24 + $0x14a] sm:$0xff]  ;;  %v11882_v51 = vld [vmem:[%s12070_s24 + $0x120] sm:$0xff] }
 0x4fe   : > { %11104 = vmatmul.msk.f32.gmra.mxu1 %vm303_vm0, %v11881_v11 }
 0x4ff   : > { %11208 = vmatmul.msk.f32.gmra.mxu3 %vm303_vm0, %v14137_v26  ;;  %v5452_v24 = vpop.f32.mrf.mxu2 }
 0x500   : > { %v5568_v9 = vadd.f32 %v5452_v24, %v5190_v21 }
 0x501   : > { %v4875_v32 = vpop.f32.mrf.mxu0 }
 0x502   : > { %v4989_v55 = vadd.f32 %v4875_v32, %v13508_v14  ;;  %v5830_v63 = vpop.f32.mrf.mxu3 }
 0x503   : > { %v14151_v25 = vadd.f32 %v5830_v63, %v5568_v9  ;;  %v5077_v10 = vpop.f32.mrf.mxu1  ;;  %v14171_v9 = vld [vmem:[%s12070_s24 + $0x152] sm:$0xff] }
 0x504   : > { %11053 = vmatmul.msk.f32.gmra.mxu0 %vm303_vm0, %v4671_v12  ;;  %11157 = vmatmul.msk.f32.gmra.mxu2 %vm303_vm0, %v14075_v13  ;;  %v5191_v2 = vadd.f32 %v5077_v10, %v4989_v55  ;;  %v11883_v12 = vld [vmem:[%s12070_s24 + $0x128] sm:$0xff] }
 0x505   : > { %v4673_v10 = vld [vmem:[%s12070_s24 + $0x12e] sm:$0xff] }
 0x506   : > { %11105 = vmatmul.msk.f32.gmra.mxu1 %vm303_vm0, %v11882_v51 }
 0x507   : > { %11209 = vmatmul.msk.f32.gmra.mxu3 %vm303_vm0, %v14157_v45  ;;  %v5455_v14 = vpop.f32.mrf.mxu2 }
 0x508   : > { %v5569_v4 = vadd.f32 %v5455_v14, %v5191_v2 }
 0x509   : > { %v4878_v17 = vpop.f32.mrf.mxu0 }
 0x50a   : > { %v4990_v21 = vadd.f32 %v4878_v17, %v13519_v62  ;;  %v5833_v11 = vpop.f32.mrf.mxu3 }
 0x50b   : > { %v14165_v13 = vadd.f32 %v5833_v11, %v5569_v4  ;;  %v5080_v24 = vpop.f32.mrf.mxu1  ;;  %v14185_v4 = vld [vmem:[%s12070_s24 + $0x15a] sm:$0xff] }
 0x50c   : > { %11054 = vmatmul.msk.f32.gmra.mxu0 %vm303_vm0, %v4672_v7  ;;  %11158 = vmatmul.msk.f32.gmra.mxu2 %vm303_vm0, %v14089_v41  ;;  %v5192_v32 = vadd.f32 %v5080_v24, %v4990_v21  ;;  %v11884_v7 = vld [vmem:[%s12070_s24 + $0x130] sm:$0xff] }
 0x50d   : > { %v4674_v24 = vld [vmem:[%s12070_s24 + $0x136] sm:$0xff] }
 0x50e   : > { %11106 = vmatmul.msk.f32.gmra.mxu1 %vm303_vm0, %v11883_v12 }
 0x50f   : > { %11210 = vmatmul.msk.f32.gmra.mxu3 %vm303_vm0, %v14171_v9  ;;  %v5458_v62 = vpop.f32.mrf.mxu2 }
 0x510   : > { %v5570_v55 = vadd.f32 %v5458_v62, %v5192_v32 }
 0x511   : > { %v4881_v63 = vpop.f32.mrf.mxu0 }
 0x512   : > { %v4991_v2 = vadd.f32 %v4881_v63, %v13530_v43  ;;  %v5836_v51 = vpop.f32.mrf.mxu3 }
 0x513   : > { %v14179_v41 = vadd.f32 %v5836_v51, %v5570_v55  ;;  %v5083_v14 = vpop.f32.mrf.mxu1  ;;  %v14199_v55 = vld [vmem:[%s12070_s24 + $0x162] sm:$0xff] }
 0x514   : > { %11055 = vmatmul.msk.f32.gmra.mxu0 %vm303_vm0, %v4673_v10  ;;  %11159 = vmatmul.msk.f32.gmra.mxu2 %vm303_vm0, %v14103_v46  ;;  %v5193_v17 = vadd.f32 %v5083_v14, %v4991_v2  ;;  %v11885_v10 = vld [vmem:[%s12070_s24 + $0x138] sm:$0xff] }
 0x515   : > { %v4675_v14 = vld [vmem:[%s12070_s24 + $0x13e] sm:$0xff] }
 0x516   : > { %11107 = vmatmul.msk.f32.gmra.mxu1 %vm303_vm0, %v11884_v7 }
 0x517   : > { %11211 = vmatmul.msk.f32.gmra.mxu3 %vm303_vm0, %v14185_v4  ;;  %v5461_v43 = vpop.f32.mrf.mxu2 }
 0x518   : > { %v5571_v21 = vadd.f32 %v5461_v43, %v5193_v17 }
 0x519   : > { %v4884_v11 = vpop.f32.mrf.mxu0 }
 0x51a   : > { %v4992_v32 = vadd.f32 %v4884_v11, %v13541_v15  ;;  %v5839_v12 = vpop.f32.mrf.mxu3  ;;  %v11333_v11 = vld [vmem:[%s16278_s1 + $0x488] sm:$0xff] }
 0x51b   : > { %v14193_v46 = vadd.f32 %v5839_v12, %v5571_v21  ;;  %v5086_v62 = vpop.f32.mrf.mxu1  ;;  %v14213_v21 = vld [vmem:[%s12070_s24 + $0x16a] sm:$0xff]  ;;  %6937 = vmatpush.msra.mxu2 %v11333_v11 }
 0x51c   : > { %11056 = vmatmul.msk.f32.gmra.mxu0 %vm303_vm0, %v4674_v24  ;;  %11160 = vmatmul.msk.f32.gmra.mxu2 %vm303_vm0, %v14117_v8  ;;  %v5194_v63 = vadd.f32 %v5086_v62, %v4992_v32  ;;  %v11886_v32 = vld [vmem:[%s12070_s24 + $0x140] sm:$0xff]  ;;  %v11281_v62 = vld [vmem:[%s16278_s1 + $0x448] sm:$0xff] }
 0x51d   : > { %6559 = vmatpush.msra.mxu1 %v11281_v62  ;;  %v11887_v11 = vld [vmem:[%s12070_s24 + $0x148] sm:$0xff] }
 0x51e   : > { %11108 = vmatmul.msk.f32.gmra.mxu1 %vm303_vm0, %v11885_v10 }
 0x51f   : > { %11212 = vmatmul.msk.f32.gmra.mxu3 %vm303_vm0, %v14199_v55  ;;  %v5464_v15 = vpop.f32.mrf.mxu2 }
 0x520   : > { %v5572_v2 = vadd.f32 %v5464_v15, %v5194_v63  ;;  %v11388_v63 = vld [vmem:[%s16278_s1 + $0x4e0] sm:$0xff] }
 0x521   : > { %v4887_v51 = vpop.f32.mrf.mxu0  ;;  %v4676_v15 = vld [vmem:[%s12070_s24 + $0x146] sm:$0xff]  ;;  %7312 = vmatpush.msra.mxu3 %v11388_v63  ;;  %v14253_v63 = vld [vmem:[%s12070_s24 + $0x17a] sm:$0xff] }
 0x522   : > { %v4993_v17 = vadd.f32 %v4887_v51, %v13564_v20  ;;  %v5842_v7 = vpop.f32.mrf.mxu3 }
 0x523   : > { %v14207_v43 = vadd.f32 %v5842_v7, %v5572_v2  ;;  %v5089_v8 = vpop.f32.mrf.mxu1  ;;  %v14239_v7 = vld [vmem:[%s12070_s24 + $0x172] sm:$0xff] }
 0x524   : > { %11057 = vmatmul.msk.f32.gmra.mxu0 %vm303_vm0, %v4675_v14  ;;  %11161 = vmatmul.msk.f32.gmra.mxu2 %vm303_vm0, %v14137_v26  ;;  %v5195_v24 = vadd.f32 %v5089_v8, %v4993_v17  ;;  %v11229_v26 = vld [vmem:[%s16278_s1 + $0x408] sm:$0xff] }
 0x525   : > { %6181 = vmatpush.msra.mxu0 %v11229_v26 }
 0x526   : > { %11109 = vmatmul.msk.f32.gmra.mxu1 %vm303_vm0, %v11886_v32 }
 0x527   : > { %11213 = vmatmul.msk.f32.gmra.mxu3 %vm303_vm0, %v14213_v21  ;;  %v5467_v20 = vpop.f32.mrf.mxu2 }
 0x528   : > { %v5573_v12 = vadd.f32 %v5467_v20, %v5195_v24  ;;  %v4677_v20 = vld [vmem:[%s12070_s24 + $0x14e] sm:$0xff] }
 0x529   : > { %v4890_v10 = vpop.f32.mrf.mxu0 }
 0x52a   : > { %v4994_v2 = vadd.f32 %v4890_v10, %v13575_v31  ;;  %v5845_v51 = vpop.f32.mrf.mxu3 }
 0x52b   : > { %v14233_v14 = vadd.f32 %v5845_v51, %v5573_v12  ;;  %v5092_v17 = vpop.f32.mrf.mxu1 }
 0x52c   : > { %11058 = vmatmul.msk.f32.gmra.mxu0 %vm303_vm0, %v4676_v15  ;;  %11162 = vmatmul.msk.f32.gmra.mxu2 %vm303_vm0, %v14157_v45  ;;  %v5196_v8 = vadd.f32 %v5092_v17, %v4994_v2  ;;  %v11888_v15 = vld [vmem:[%s12070_s24 + $0x150] sm:$0xff] }
 0x52d   : > { %v4678_v17 = vld [vmem:[%s12070_s24 + $0x156] sm:$0xff] }
 0x52e   : > { %11110 = vmatmul.msk.f32.gmra.mxu1 %vm303_vm0, %v11887_v11 }
 0x52f   : > { %11214 = vmatmul.msk.f32.gmra.mxu3 %vm303_vm0, %v14239_v7  ;;  %v5470_v31 = vpop.f32.mrf.mxu2 }
 0x530   : > { %v5574_v24 = vadd.f32 %v5470_v31, %v5196_v8 }
 0x531   : > { %v4893_v32 = vpop.f32.mrf.mxu0 }
 0x532   : > { %v4995_v26 = vadd.f32 %v4893_v32, %v13586_v27  ;;  %v5848_v12 = vpop.f32.mrf.mxu3 }
 0x533   : > { %v14247_v45 = vadd.f32 %v5848_v12, %v5574_v24  ;;  %v5095_v62 = vpop.f32.mrf.mxu1  ;;  %v14267_v24 = vld [vmem:[%s12070_s24 + $0x182] sm:$0xff] }
 0x534   : > { %11059 = vmatmul.msk.f32.gmra.mxu0 %vm303_vm0, %v4677_v20  ;;  %11163 = vmatmul.msk.f32.gmra.mxu2 %vm303_vm0, %v14171_v9  ;;  %v5197_v10 = vadd.f32 %v5095_v62, %v4995_v26  ;;  %v11889_v20 = vld [vmem:[%s12070_s24 + $0x158] sm:$0xff] }
 0x535   : > { %v4679_v62 = vld [vmem:[%s12070_s24 + $0x15e] sm:$0xff] }
 0x536   : > { %11111 = vmatmul.msk.f32.gmra.mxu1 %vm303_vm0, %v11888_v15 }
 0x537   : > { %11215 = vmatmul.msk.f32.gmra.mxu3 %vm303_vm0, %v14253_v63  ;;  %v5473_v27 = vpop.f32.mrf.mxu2 }
 0x538   : > { %v5575_v2 = vadd.f32 %v5473_v27, %v5197_v10 }
 0x539   : > { %v4896_v51 = vpop.f32.mrf.mxu0 }
 0x53a   : > { %v4996_v8 = vadd.f32 %v4896_v51, %v13597_v50  ;;  %v5851_v11 = vpop.f32.mrf.mxu3 }
 0x53b   : > { %v14261_v9 = vadd.f32 %v5851_v11, %v5575_v2  ;;  %v5098_v31 = vpop.f32.mrf.mxu1  ;;  %v14281_v2 = vld [vmem:[%s12070_s24 + $0x18a] sm:$0xff] }
 0x53c   : > { %11060 = vmatmul.msk.f32.gmra.mxu0 %vm303_vm0, %v4678_v17  ;;  %11164 = vmatmul.msk.f32.gmra.mxu2 %vm303_vm0, %v14185_v4  ;;  %v5198_v32 = vadd.f32 %v5098_v31, %v4996_v8  ;;  %v11890_v17 = vld [vmem:[%s12070_s24 + $0x160] sm:$0xff] }
 0x53d   : > { %v4680_v31 = vld [vmem:[%s12070_s24 + $0x166] sm:$0xff] }
 0x53e   : > { %11112 = vmatmul.msk.f32.gmra.mxu1 %vm303_vm0, %v11889_v20 }
 0x53f   : > { %11216 = vmatmul.msk.f32.gmra.mxu3 %vm303_vm0, %v14267_v24  ;;  %v5476_v50 = vpop.f32.mrf.mxu2 }
 0x540   : > { %v5576_v26 = vadd.f32 %v5476_v50, %v5198_v32 }
 0x541   : > { %v4899_v12 = vpop.f32.mrf.mxu0 }
 0x542   : > { %v4997_v10 = vadd.f32 %v4899_v12, %v13608_v6  ;;  %v5854_v15 = vpop.f32.mrf.mxu3 }
 0x543   : > { %v14275_v4 = vadd.f32 %v5854_v15, %v5576_v26  ;;  %v5101_v27 = vpop.f32.mrf.mxu1  ;;  %v14295_v26 = vld [vmem:[%s12070_s24 + $0x192] sm:$0xff]  ;;  %v11332_v15 = vld [vmem:[%s16278_s1 + $0x480] sm:$0xff] }
 0x544   : > { %11061 = vmatmul.msk.f32.gmra.mxu0 %vm303_vm0, %v4679_v62  ;;  %11165 = vmatmul.msk.f32.gmra.mxu2 %vm303_vm0, %v14199_v55  ;;  %v5199_v51 = vadd.f32 %v5101_v27, %v4997_v10  ;;  %v11891_v62 = vld [vmem:[%s12070_s24 + $0x168] sm:$0xff] }
 0x545   : > { %6938 = vmatpush.msra.mxu2 %v11332_v15 }
 0x546   : > { %11113 = vmatmul.msk.f32.gmra.mxu1 %vm303_vm0, %v11890_v17 }
 0x547   : > { %11217 = vmatmul.msk.f32.gmra.mxu3 %vm303_vm0, %v14281_v2  ;;  %v5479_v6 = vpop.f32.mrf.mxu2 }
 0x548   : > { %v5577_v8 = vadd.f32 %v5479_v6, %v5199_v51  ;;  %v4681_v51 = vld [vmem:[%s12070_s24 + $0x16e] sm:$0xff] }
 0x549   : > { %v4902_v11 = vpop.f32.mrf.mxu0 }
 0x54a   : > { %v4998_v32 = vadd.f32 %v4902_v11, %v13622_v48  ;;  %v5857_v20 = vpop.f32.mrf.mxu3  ;;  %v11228_v11 = vld [vmem:[%s16278_s1 + $0x400] sm:$0xff] }
 0x54b   : > { %v14289_v55 = vadd.f32 %v5857_v20, %v5577_v8  ;;  %v5104_v50 = vpop.f32.mrf.mxu1  ;;  %6182 = vmatpush.msra.mxu0 %v11228_v11 }
 0x54c   : > { %11062 = vmatmul.msk.f32.gmra.mxu0 %vm303_vm0, %v4680_v31  ;;  %11166 = vmatmul.msk.f32.gmra.mxu2 %vm303_vm0, %v14213_v21  ;;  %v5200_v12 = vadd.f32 %v5104_v50, %v4998_v32  ;;  %v14315_v31 = vld [vmem:[%s12070_s24 + $0x19a] sm:$0xff]  ;;  %v11892_v50 = vld [vmem:[%s12070_s24 + $0x170] sm:$0xff] }
 0x54d   : > { %v11387_v32 = vld [vmem:[%s16278_s1 + $0x4d8] sm:$0xff] }
 0x54e   : > { %11114 = vmatmul.msk.f32.gmra.mxu1 %vm303_vm0, %v11891_v62  ;;  %7313 = vmatpush.msra.mxu3 %v11387_v32  ;;  %v4683_v32 = vld [vmem:[%s12070_s24 + $0x17e] sm:$0xff] }
 0x54f   : > { %11218 = vmatmul.msk.f32.gmra.mxu3 %vm303_vm0, %v14295_v26  ;;  %v5482_v48 = vpop.f32.mrf.mxu2 }
 0x550   : > { %v5578_v10 = vadd.f32 %v5482_v48, %v5200_v12  ;;  %v4682_v48 = vld [vmem:[%s12070_s24 + $0x176] sm:$0xff] }
 0x551   : > { %v4905_v27 = vpop.f32.mrf.mxu0 }
 0x552   : > { %v4999_v21 = vadd.f32 %v4905_v27, %v13642_v5  ;;  %v5860_v17 = vpop.f32.mrf.mxu3  ;;  %v11280_v5 = vld [vmem:[%s16278_s1 + $0x440] sm:$0xff] }
 0x553   : > { %v14306_v6 = vadd.f32 %v5860_v17, %v5578_v10  ;;  %v5107_v8 = vpop.f32.mrf.mxu1  ;;  %6560 = vmatpush.msra.mxu1 %v11280_v5 }
 0x554   : > { %11063 = vmatmul.msk.f32.gmra.mxu0 %vm303_vm0, %v4681_v51  ;;  %11167 = vmatmul.msk.f32.gmra.mxu2 %vm303_vm0, %v14239_v7  ;;  %v5201_v20 = vadd.f32 %v5107_v8, %v4999_v21  ;;  %v14335_v21 = vld [vmem:[%s12070_s24 + $0x1a2] sm:$0xff]  ;;  %v11893_v8 = vld [vmem:[%s12070_s24 + $0x178] sm:$0xff] }
 0x556   : > { %11115 = vmatmul.msk.f32.gmra.mxu1 %vm303_vm0, %v11892_v50 }
 0x557   : > { %11219 = vmatmul.msk.f32.gmra.mxu3 %vm303_vm0, %v14315_v31  ;;  %v5485_v7 = vpop.f32.mrf.mxu2 }
 0x558   : > { %v5579_v12 = vadd.f32 %v5485_v7, %v5201_v20 }
 0x559   : > { %v4908_v62 = vpop.f32.mrf.mxu0 }
 0x55a   : > { %v5000_v10 = vadd.f32 %v4908_v62, %v13653_v40  ;;  %v5863_v15 = vpop.f32.mrf.mxu3 }
 0x55b   : > { %v14329_v27 = vadd.f32 %v5863_v15, %v5579_v12  ;;  %v5110_v51 = vpop.f32.mrf.mxu1  ;;  %v14349_v12 = vld [vmem:[%s12070_s24 + $0x1aa] sm:$0xff] }
 0x55c   : > { %11064 = vmatmul.msk.f32.gmra.mxu0 %vm303_vm0, %v4682_v48  ;;  %11168 = vmatmul.msk.f32.gmra.mxu2 %vm303_vm0, %v14253_v63  ;;  %v5202_v17 = vadd.f32 %v5110_v51, %v5000_v10  ;;  %v11894_v48 = vld [vmem:[%s12070_s24 + $0x180] sm:$0xff] }
 0x55d   : > { %v4684_v51 = vld [vmem:[%s12070_s24 + $0x186] sm:$0xff] }
 0x55e   : > { %11116 = vmatmul.msk.f32.gmra.mxu1 %vm303_vm0, %v11893_v8 }
 0x55f   : > { %11220 = vmatmul.msk.f32.gmra.mxu3 %vm303_vm0, %v14335_v21  ;;  %v5488_v40 = vpop.f32.mrf.mxu2 }
 0x560   : > { %v5580_v11 = vadd.f32 %v5488_v40, %v5202_v17 }
 0x561   : > { %v4911_v5 = vpop.f32.mrf.mxu0 }
 0x562   : > { %v5001_v20 = vadd.f32 %v4911_v5, %v13664_v38  ;;  %v5866_v50 = vpop.f32.mrf.mxu3 }
 0x563   : > { %v14343_v63 = vadd.f32 %v5866_v50, %v5580_v11  ;;  %v5113_v7 = vpop.f32.mrf.mxu1  ;;  %v14363_v11 = vld [vmem:[%s12070_s24 + $0x1b2] sm:$0xff] }
 0x564   : > { %11065 = vmatmul.msk.f32.gmra.mxu0 %vm303_vm0, %v4683_v32  ;;  %11169 = vmatmul.msk.f32.gmra.mxu2 %vm303_vm0, %v14267_v24  ;;  %v5203_v62 = vadd.f32 %v5113_v7, %v5001_v20  ;;  %v11895_v32 = vld [vmem:[%s12070_s24 + $0x188] sm:$0xff] }
 0x565   : > { %v4685_v7 = vld [vmem:[%s12070_s24 + $0x18e] sm:$0xff] }
 0x566   : > { %11117 = vmatmul.msk.f32.gmra.mxu1 %vm303_vm0, %v11894_v48 }
 0x567   : > { %11221 = vmatmul.msk.f32.gmra.mxu3 %vm303_vm0, %v14349_v12  ;;  %v5491_v38 = vpop.f32.mrf.mxu2 }
 0x568   : > { %v5581_v10 = vadd.f32 %v5491_v38, %v5203_v62 }
 0x569   : > { %v4914_v15 = vpop.f32.mrf.mxu0 }
 0x56a   : > { %v5002_v17 = vadd.f32 %v4914_v15, %v13675_v57  ;;  %v5869_v8 = vpop.f32.mrf.mxu3 }
 0x56b   : > { %v14357_v24 = vadd.f32 %v5869_v8, %v5581_v10  ;;  %v5116_v40 = vpop.f32.mrf.mxu1  ;;  %v5643_v10 = vld [vmem:[%s12070_s24 + $0x1ba] sm:$0xff] }
 0x56c   : > { %11066 = vmatmul.msk.f32.gmra.mxu0 %vm303_vm0, %v4684_v51  ;;  %11170 = vmatmul.msk.f32.gmra.mxu2 %vm303_vm0, %v14281_v2  ;;  %v5204_v5 = vadd.f32 %v5116_v40, %v5002_v17  ;;  %v11896_v51 = vld [vmem:[%s12070_s24 + $0x190] sm:$0xff] }
 0x56d   : > { %v4686_v40 = vld [vmem:[%s12070_s24 + $0x196] sm:$0xff] }
 0x56e   : > { %11118 = vmatmul.msk.f32.gmra.mxu1 %vm303_vm0, %v11895_v32 }
 0x56f   : > { %11222 = vmatmul.msk.f32.gmra.mxu3 %vm303_vm0, %v14363_v11  ;;  %v5494_v57 = vpop.f32.mrf.mxu2 }
 0x570   : > { %v5582_v20 = vadd.f32 %v5494_v57, %v5204_v5  ;;  %v11386_v5 = vld [vmem:[%s16278_s1 + $0x4d0] sm:$0xff] }
 0x571   : > { %v4917_v50 = vpop.f32.mrf.mxu0  ;;  %7314 = vmatpush.msra.mxu3 %v11386_v5 }
 0x572   : > { %v5003_v62 = vadd.f32 %v4917_v50, %v13689_v37  ;;  %v5872_v48 = vpop.f32.mrf.mxu3  ;;  %v11385_v50 = vld [vmem:[%s16278_s1 + $0x4c8] sm:$0xff] }
 0x573   : > { %v14371_v2 = vadd.f32 %v5872_v48, %v5582_v20  ;;  %v5119_v38 = vpop.f32.mrf.mxu1  ;;  %7315 = vmatpush.msra.mxu3 %v11385_v50  ;;  %v11898_v50 = vld [vmem:[%s12070_s24 + $0x1a0] sm:$0xff] }
 0x574   : > { %11067 = vmatmul.msk.f32.gmra.mxu0 %vm303_vm0, %v4685_v7  ;;  %11171 = vmatmul.msk.f32.gmra.mxu2 %vm303_vm0, %v14295_v26  ;;  %v5205_v15 = vadd.f32 %v5119_v38, %v5003_v62  ;;  %v5644_v7 = vld [vmem:[%s12070_s24 + $0x1c2] sm:$0xff]  ;;  %v11897_v38 = vld [vmem:[%s12070_s24 + $0x198] sm:$0xff] }
 0x575   : > { %v11384_v62 = vld [vmem:[%s16278_s1 + $0x4c0] sm:$0xff] }
 0x576   : > { %11119 = vmatmul.msk.f32.gmra.mxu1 %vm303_vm0, %v11896_v51  ;;  %7316 = vmatpush.msra.mxu3 %v11384_v62  ;;  %v11495_v51 = vld [vmem:[%s16278_s1 + $0x578] sm:$0xff]  ;;  %v4688_v62 = vld [vmem:[%s12070_s24 + $0x1a6] sm:$0xff] }
 0x577   : > { %11223 = vmatmul.msk.f32.gmra.mxu3 %vm303_vm0, %v5643_v10  ;;  %v5497_v17 = vpop.f32.mrf.mxu2  ;;  %v11443_v10 = vld [vmem:[%s16278_s1 + $0x538] sm:$0xff]  ;;  %8065 = vmatpush.msrb.mxu1 %v11495_v51  ;;  %v11899_v51 = vld [vmem:[%s12070_s24 + $0x1a8] sm:$0xff] }
 0x578   : > { %v5583_v8 = vadd.f32 %v5497_v17, %v5205_v15  ;;  %7687 = vmatpush.msrb.mxu0 %v11443_v10  ;;  %v5646_v10 = vld [vmem:[%s12070_s24 + $0x1d2] sm:$0xff] }
 0x579   : > { %v4920_v37 = vpop.f32.mrf.mxu0 }
 0x57a   : > { %v5004_v32 = vadd.f32 %v4920_v37, %v13715_v3  ;;  %v5875_v26 = vpop.f32.mrf.mxu3  ;;  %v11547_v3 = vld [vmem:[%s16278_s1 + $0x5b8] sm:$0xff] }
 0x57b   : > { %v14385_v57 = vadd.f32 %v5875_v26, %v5583_v8  ;;  %v5122_v20 = vpop.f32.mrf.mxu1  ;;  %8267 = vmatpush.msrb.mxu2 %v11547_v3  ;;  %v4687_v8 = vld [vmem:[%s12070_s24 + $0x19e] sm:$0xff]  ;;  %v5645_v26 = vld [vmem:[%s12070_s24 + $0x1ca] sm:$0xff] }
 0x57c   : > { %11068 = vmatmul.msk.f32.gmra.mxu0 %vm303_vm0, %v4686_v40  ;;  %11172 = vmatmul.msk.f32.gmra.mxu2 %vm303_vm0, %v14315_v31  ;;  %v5206_v48 = vadd.f32 %v5122_v20, %v5004_v32 }
 0x57e   : > { %11120 = vmatmul.msk.f32.gmra.mxu1 %vm303_vm0, %v11897_v38 }
 0x57f   : > { %11224 = vmatmul.msk.f32.gmra.mxu3 %vm303_vm0, %v5644_v7  ;;  %v5500_v31 = vpop.f32.mrf.mxu2 }
 0x580   : > { %v5584_v15 = vadd.f32 %v5500_v31, %v5206_v48 }
 0x581   : > { %v4923_v17 = vpop.f32.mrf.mxu0 }
 0x582   : > { %v5005_v37 = vadd.f32 %v4923_v17, %v13726_v53  ;;  %v5878_v40 = vpop.f32.mrf.mxu3 }
 0x583   : > { %v14411_v5 = vadd.f32 %v5878_v40, %v5584_v15  ;;  %v5125_v32 = vpop.f32.mrf.mxu1 }
 0x584   : > { %11069 = vmatmul.msk.f32.gmra.mxu0 %vm303_vm0, %v4687_v8  ;;  %11173 = vmatmul.msk.f32.gmra.mxu2 %vm303_vm0, %v14335_v21  ;;  %v5207_v20 = vadd.f32 %v5125_v32, %v5005_v37  ;;  %v4689_v37 = vld [vmem:[%s12070_s24 + $0x1ae] sm:$0xff] }
 0x586   : > { %11121 = vmatmul.msk.f32.gmra.mxu1 %vm303_vm0, %v11898_v50 }
 0x587   : > { %11225 = vmatmul.msk.f32.gmra.mxu3 %vm303_vm0, %v5645_v26  ;;  %v5503_v7 = vpop.f32.mrf.mxu2 }
 0x588   : > { %v5585_v53 = vadd.f32 %v5503_v7, %v5207_v20  ;;  %v5647_v20 = vld [vmem:[%s12070_s24 + $0x1da] sm:$0xff]  ;;  %v11900_v7 = vld [vmem:[%s12070_s24 + $0x1b0] sm:$0xff] }
 0x589   : > { %v4926_v3 = vpop.f32.mrf.mxu0 }
 0x58a   : > { %v5006_v48 = vadd.f32 %v4926_v3, %v13737_v29  ;;  %v5881_v38 = vpop.f32.mrf.mxu3 }
 0x58b   : > { %v14422_v31 = vadd.f32 %v5881_v38, %v5585_v53  ;;  %v5128_v21 = vpop.f32.mrf.mxu1 }
 0x58c   : > { %11070 = vmatmul.msk.f32.gmra.mxu0 %vm303_vm0, %v4688_v62  ;;  %11174 = vmatmul.msk.f32.gmra.mxu2 %vm303_vm0, %v14349_v12  ;;  %v5208_v15 = vadd.f32 %v5128_v21, %v5006_v48  ;;  %v5982_v62 = vld [vmem:[%s12070_s24 + $0x84] sm:$0xff]  ;;  %v6738_v48 = vld [vmem:[%s12070_s24 + $0x13] sm:$0xff] }
 0x58e   : > { %11122 = vmatmul.msk.f32.gmra.mxu1 %vm303_vm0, %v11899_v51  ;;  %v7116_v51 = vld [vmem:[%s12070_s24 + $0x16] sm:$0xff] }
 0x58f   : > { %11226 = vmatmul.msk.f32.gmra.mxu3 %vm303_vm0, %v5646_v10  ;;  %v5506_v17 = vpop.f32.mrf.mxu2 }
 0x590   : > { %v5586_v29 = vadd.f32 %v5506_v17, %v5208_v15  ;;  %v14448_v15 = vld [vmem:[%s12070_s24 + $0x86] sm:$0xff] }
 0x591   : > { %v4929_v8 = vpop.f32.mrf.mxu0 }
 0x592   : > { %v5007_v40 = vadd.f32 %v4929_v8, %v13748_v56  ;;  %v5884_v32 = vpop.f32.mrf.mxu3 }
 0x593   : > { %v14433_v26 = vadd.f32 %v5884_v32, %v5586_v29  ;;  %v5131_v12 = vpop.f32.mrf.mxu1 }
 0x594   : > { %11071 = vmatmul.msk.f32.gmra.mxu0 %vm303_vm0, %v4689_v37  ;;  %11175 = vmatmul.msk.f32.gmra.mxu2 %vm303_vm0, %v14363_v11  ;;  %v5209_v50 = vadd.f32 %v5131_v12, %v5007_v40  ;;  %v5983_v37 = vld [vmem:[%s12070_s24 + $0x8c] sm:$0xff]  ;;  %v6739_v40 = vld [vmem:[%s12070_s24 + $0x1b] sm:$0xff] }
 0x596   : > { %11123 = vmatmul.msk.f32.gmra.mxu1 %vm303_vm0, %v11900_v7  ;;  %v14462_v7 = vld [vmem:[%s12070_s24 + $0x8e] sm:$0xff] }
 0x597   : > { %11227 = vmatmul.msk.f32.gmra.mxu3 %vm303_vm0, %v5647_v20  ;;  %v5509_v53 = vpop.f32.mrf.mxu2 }
 0x598   : > { %v5587_v56 = vadd.f32 %v5509_v53, %v5209_v50  ;;  %v7117_v53 = vld [vmem:[%s12070_s24 + $0x1e] sm:$0xff] }
 0x599   : > { %v4932_v3 = vpop.f32.mrf.mxu0 }
 0x59a   : > { %v5008_v38 = vadd.f32 %v4932_v3, %v13762_v28  ;;  %v5887_v21 = vpop.f32.mrf.mxu3 }
 0x59b   : > { %v14445_v10 = vadd.f32 %v5887_v21, %v5587_v56  ;;  %v5134_v11 = vpop.f32.mrf.mxu1  ;;  %v6740_v21 = vld [vmem:[%s12070_s24 + $0x23] sm:$0xff] }
 0x59c   : > { %11236 = vmatmul.msk.f32.vlgmr.msra.gmra.mxu0 %vm303_vm0, %v5982_v62  ;;  %11340 = vmatmul.msk.f32.vlgmr.msra.gmra.mxu2 %vm303_vm0, %v6738_v48  ;;  %v5210_v17 = vadd.f32 %v5134_v11, %v5008_v38  ;;  %v11546_v62 = vld [vmem:[%s16278_s1 + $0x5b0] sm:$0xff] }
 0x59d   : > { %v5984_v38 = vld [vmem:[%s12070_s24 + $0x94] sm:$0xff]  ;;  %8268 = vmatpush.msrb.mxu2 %v11546_v62 }
 0x59e   : > { %11288 = vmatmul.msk.f32.vlgmr.msra.gmra.mxu1 %vm303_vm0, %v14448_v15 }
 0x59f   : > { %11392 = vmatmul.msk.f32.vlgmr.msra.gmra.mxu3 %vm303_vm0, %v7116_v51  ;;  %v5512_v28 = vpop.f32.mrf.mxu2 }
 0x5a0   : > { %v5588_v29 = vadd.f32 %v5512_v28, %v5210_v17 }
 0x5a1   : > { %v4935_v8 = vpop.f32.mrf.mxu0 }
 0x5a2   : > { %v5009_v32 = vadd.f32 %v4935_v8, %v13779_v36  ;;  %v5890_v12 = vpop.f32.mrf.mxu3  ;;  %v11442_v8 = vld [vmem:[%s16278_s1 + $0x530] sm:$0xff] }
 0x5a3   : > { %v14459_v20 = vadd.f32 %v5890_v12, %v5588_v29  ;;  %v5137_v50 = vpop.f32.mrf.mxu1  ;;  %v14479_v29 = vld [vmem:[%s12070_s24 + $0x96] sm:$0xff]  ;;  %7688 = vmatpush.msrb.mxu0 %v11442_v8  ;;  %v5986_v8 = vld [vmem:[%s12070_s24 + $0xa4] sm:$0xff] }
 0x5a4   : > { %11237 = vmatmul.msk.f32.gmra.mxu0 %vm303_vm0, %v5983_v37  ;;  %11341 = vmatmul.msk.f32.gmra.mxu2 %vm303_vm0, %v6739_v40  ;;  %v5211_v56 = vadd.f32 %v5137_v50, %v5009_v32  ;;  %v7118_v37 = vld [vmem:[%s12070_s24 + $0x26] sm:$0xff] }
 0x5a6   : > { %11289 = vmatmul.msk.f32.gmra.mxu1 %vm303_vm0, %v14462_v7 }
 0x5a7   : > { %11393 = vmatmul.msk.f32.gmra.mxu3 %vm303_vm0, %v7117_v53  ;;  %v5515_v36 = vpop.f32.mrf.mxu2  ;;  %v5985_v53 = vld [vmem:[%s12070_s24 + $0x9c] sm:$0xff] }
 0x5a8   : > { %v5589_v3 = vadd.f32 %v5515_v36, %v5211_v56  ;;  %v6741_v56 = vld [vmem:[%s12070_s24 + $0x2b] sm:$0xff] }
 0x5a9   : > { %v4938_v48 = vpop.f32.mrf.mxu0 }
 0x5aa   : > { %v5010_v11 = vadd.f32 %v4938_v48, %v13799_v54  ;;  %v5893_v51 = vpop.f32.mrf.mxu3  ;;  %v11494_v54 = vld [vmem:[%s16278_s1 + $0x570] sm:$0xff] }
 0x5ab   : > { %v14476_v17 = vadd.f32 %v5893_v51, %v5589_v3  ;;  %v5140_v28 = vpop.f32.mrf.mxu1  ;;  %8066 = vmatpush.msrb.mxu1 %v11494_v54 }
 0x5ac   : > { %11238 = vmatmul.msk.f32.gmra.mxu0 %vm303_vm0, %v5984_v38  ;;  %11342 = vmatmul.msk.f32.gmra.mxu2 %vm303_vm0, %v6740_v21  ;;  %v5212_v40 = vadd.f32 %v5140_v28, %v5010_v11  ;;  %v14499_v38 = vld [vmem:[%s12070_s24 + $0x9e] sm:$0xff]  ;;  %v7119_v21 = vld [vmem:[%s12070_s24 + $0x2e] sm:$0xff] }
 0x5ae   : > { %11290 = vmatmul.msk.f32.gmra.mxu1 %vm303_vm0, %v14479_v29 }
 0x5af   : > { %11394 = vmatmul.msk.f32.gmra.mxu3 %vm303_vm0, %v7118_v37  ;;  %v5518_v32 = vpop.f32.mrf.mxu2  ;;  %v6742_v37 = vld [vmem:[%s12070_s24 + $0x33] sm:$0xff] }
 0x5b0   : > { %v5590_v12 = vadd.f32 %v5518_v32, %v5212_v40 }
 0x5b1   : > { %v4941_v50 = vpop.f32.mrf.mxu0 }
 0x5b2   : > { %v5011_v36 = vadd.f32 %v4941_v50, %v13813_v19  ;;  %v5896_v3 = vpop.f32.mrf.mxu3  ;;  %v14513_v50 = vld [vmem:[%s12070_s24 + $0xa6] sm:$0xff] }
 0x5b3   : > { %v14496_v62 = vadd.f32 %v5896_v3, %v5590_v12  ;;  %v5143_v48 = vpop.f32.mrf.mxu1 }
 0x5b4   : > { %11239 = vmatmul.msk.f32.gmra.mxu0 %vm303_vm0, %v5985_v53  ;;  %11343 = vmatmul.msk.f32.gmra.mxu2 %vm303_vm0, %v6741_v56  ;;  %v5213_v11 = vadd.f32 %v5143_v48, %v5011_v36  ;;  %v7120_v53 = vld [vmem:[%s12070_s24 + $0x36] sm:$0xff]  ;;  %v5987_v48 = vld [vmem:[%s12070_s24 + $0xac] sm:$0xff] }
 0x5b6   : > { %11291 = vmatmul.msk.f32.gmra.mxu1 %vm303_vm0, %v14499_v38 }
 0x5b7   : > { %11395 = vmatmul.msk.f32.gmra.mxu3 %vm303_vm0, %v7119_v21  ;;  %v5521_v19 = vpop.f32.mrf.mxu2  ;;  %v6743_v21 = vld [vmem:[%s12070_s24 + $0x3b] sm:$0xff] }
 0x5b8   : > { %v5591_v51 = vadd.f32 %v5521_v19, %v5213_v11 }
 0x5b9   : > { %v4944_v28 = vpop.f32.mrf.mxu0 }
 0x5ba   : > { %v5012_v54 = vadd.f32 %v4944_v28, %v13826_v30  ;;  %v5899_v40 = vpop.f32.mrf.mxu3 }
 0x5bb   : > { %v14510_v32 = vadd.f32 %v5899_v40, %v5591_v51  ;;  %v5146_v12 = vpop.f32.mrf.mxu1 }
 0x5bc   : > { %11240 = vmatmul.msk.f32.gmra.mxu0 %vm303_vm0, %v5986_v8  ;;  %11344 = vmatmul.msk.f32.gmra.mxu2 %vm303_vm0, %v6742_v37  ;;  %v5214_v56 = vadd.f32 %v5146_v12, %v5012_v54  ;;  %v14527_v8 = vld [vmem:[%s12070_s24 + $0xae] sm:$0xff]  ;;  %v7121_v37 = vld [vmem:[%s12070_s24 + $0x3e] sm:$0xff] }
 0x5be   : > { %11292 = vmatmul.msk.f32.gmra.mxu1 %vm303_vm0, %v14513_v50 }
 0x5bf   : > { %11396 = vmatmul.msk.f32.gmra.mxu3 %vm303_vm0, %v7120_v53  ;;  %v5524_v30 = vpop.f32.mrf.mxu2  ;;  %v5988_v53 = vld [vmem:[%s12070_s24 + $0xb4] sm:$0xff] }
 0x5c0   : > { %v5592_v36 = vadd.f32 %v5524_v30, %v5214_v56  ;;  %v6744_v56 = vld [vmem:[%s12070_s24 + $0x43] sm:$0xff] }
 0x5c1   : > { %v4947_v3 = vpop.f32.mrf.mxu0 }
 0x5c2   : > { %v5013_v11 = vadd.f32 %v4947_v3, %v13840_v0  ;;  %v5902_v19 = vpop.f32.mrf.mxu3 }
 0x5c3   : > { %v14524_v51 = vadd.f32 %v5902_v19, %v5592_v36  ;;  %v5149_v28 = vpop.f32.mrf.mxu1 }
 0x5c4   : > { %11241 = vmatmul.msk.f32.gmra.mxu0 %vm303_vm0, %v5987_v48  ;;  %11345 = vmatmul.msk.f32.gmra.mxu2 %vm303_vm0, %v6743_v21  ;;  %v5215_v54 = vadd.f32 %v5149_v28, %v5013_v11  ;;  %v14541_v21 = vld [vmem:[%s12070_s24 + $0xb6] sm:$0xff]  ;;  %v7122_v11 = vld [vmem:[%s12070_s24 + $0x46] sm:$0xff] }
 0x5c6   : > { %11293 = vmatmul.msk.f32.gmra.mxu1 %vm303_vm0, %v14527_v8 }
 0x5c7   : > { %11397 = vmatmul.msk.f32.gmra.mxu3 %vm303_vm0, %v7121_v37  ;;  %v5527_v0 = vpop.f32.mrf.mxu2 }
 0x5c8   : > { %v5593_v40 = vadd.f32 %v5527_v0, %v5215_v54  ;;  %v5989_v54 = vld [vmem:[%s12070_s24 + $0xbc] sm:$0xff]  ;;  %v6745_v0 = vld [vmem:[%s12070_s24 + $0x4b] sm:$0xff] }
 0x5c9   : > { %v4950_v12 = vpop.f32.mrf.mxu0 }
 0x5ca   : > { %v5014_v30 = vadd.f32 %v4950_v12, %v13854_v47  ;;  %v5905_v36 = vpop.f32.mrf.mxu3 }
 0x5cb   : > { %v14538_v3 = vadd.f32 %v5905_v36, %v5593_v40  ;;  %v5152_v48 = vpop.f32.mrf.mxu1 }
 0x5cc   : > { %11242 = vmatmul.msk.f32.gmra.mxu0 %vm303_vm0, %v5988_v53  ;;  %11346 = vmatmul.msk.f32.gmra.mxu2 %vm303_vm0, %v6744_v56  ;;  %v5216_v19 = vadd.f32 %v5152_v48, %v5014_v30  ;;  %v14555_v56 = vld [vmem:[%s12070_s24 + $0xbe] sm:$0xff]  ;;  %v7123_v30 = vld [vmem:[%s12070_s24 + $0x4e] sm:$0xff] }
 0x5cd   : > { %v11545_v48 = vld [vmem:[%s16278_s1 + $0x5a8] sm:$0xff] }
 0x5ce   : > { %11294 = vmatmul.msk.f32.gmra.mxu1 %vm303_vm0, %v14541_v21  ;;  %8269 = vmatpush.msrb.mxu2 %v11545_v48  ;;  %v14578_v48 = vld [vmem:[%s12070_s24 + $0xc6] sm:$0xff] }
 0x5cf   : > { %11398 = vmatmul.msk.f32.gmra.mxu3 %vm303_vm0, %v7122_v11  ;;  %v5530_v47 = vpop.f32.mrf.mxu2 }
 0x5d0   : > { %v5594_v28 = vadd.f32 %v5530_v47, %v5216_v19  ;;  %v11441_v19 = vld [vmem:[%s16278_s1 + $0x528] sm:$0xff] }
 0x5d1   : > { %v4953_v37 = vpop.f32.mrf.mxu0  ;;  %7689 = vmatpush.msrb.mxu0 %v11441_v19 }
 0x5d2   : > { %v5015_v40 = vadd.f32 %v4953_v37, %v13877_v58  ;;  %v5908_v12 = vpop.f32.mrf.mxu3 }
 0x5d3   : > { %v14552_v36 = vadd.f32 %v5908_v12, %v5594_v28  ;;  %v5155_v53 = vpop.f32.mrf.mxu1  ;;  %v11493_v28 = vld [vmem:[%s16278_s1 + $0x568] sm:$0xff] }
 0x5d4   : > { %11243 = vmatmul.msk.f32.gmra.mxu0 %vm303_vm0, %v5989_v54  ;;  %11347 = vmatmul.msk.f32.gmra.mxu2 %vm303_vm0, %v6745_v0  ;;  %v5217_v11 = vadd.f32 %v5155_v53, %v5015_v40  ;;  %v5990_v54 = vld [vmem:[%s12070_s24 + $0xc4] sm:$0xff]  ;;  %v6746_v0 = vld [vmem:[%s12070_s24 + $0x53] sm:$0xff] }
 0x5d5   : > { %16282 = vst [vmem:[#allocation2_spill] sm:$0xff] %v14552_v36  ;;  %8067 = vmatpush.msrb.mxu1 %v11493_v28  ;;  %v5991_v28 = vld [vmem:[%s12070_s24 + $0xcc] sm:$0xff] }
 0x5d6   : > { %11295 = vmatmul.msk.f32.gmra.mxu1 %vm303_vm0, %v14555_v56  ;;  %v14592_v36 = vld [vmem:[%s12070_s24 + $0xce] sm:$0xff] }
 0x5d7   : > { %11399 = vmatmul.msk.f32.gmra.mxu3 %vm303_vm0, %v7123_v30  ;;  %v5533_v58 = vpop.f32.mrf.mxu2 }
 0x5d8   : > { %v5595_v47 = vadd.f32 %v5533_v58, %v5217_v11  ;;  %v7124_v11 = vld [vmem:[%s12070_s24 + $0x56] sm:$0xff] }
 0x5d9   : > { %v4956_v37 = vpop.f32.mrf.mxu0 }
 0x5da   : > { %v5016_v40 = vadd.f32 %v4956_v37, %v13891_v52  ;;  %v5911_v12 = vpop.f32.mrf.mxu3  ;;  %v6747_v37 = vld [vmem:[%s12070_s24 + $0x5b] sm:$0xff] }
 0x5db   : > { %v14575_v53 = vadd.f32 %v5911_v12, %v5595_v47  ;;  %v5158_v30 = vpop.f32.mrf.mxu1 }
 0x5dc   : > { %11244 = vmatmul.msk.f32.gmra.mxu0 %vm303_vm0, %v5990_v54  ;;  %11348 = vmatmul.msk.f32.gmra.mxu2 %vm303_vm0, %v6746_v0  ;;  %v5218_v58 = vadd.f32 %v5158_v30, %v5016_v40  ;;  %v7125_v40 = vld [vmem:[%s12070_s24 + $0x5e] sm:$0xff] }
 0x5dd   : > { %16283 = vst [vmem:[#allocation3_spill] sm:$0xff] %v14575_v53 }
 0x5de   : > { %11296 = vmatmul.msk.f32.gmra.mxu1 %vm303_vm0, %v14578_v48 }
 0x5df   : > { %11400 = vmatmul.msk.f32.gmra.mxu3 %vm303_vm0, %v7124_v11  ;;  %v5536_v52 = vpop.f32.mrf.mxu2 }
 0x5e0   : > { %v5596_v19 = vadd.f32 %v5536_v52, %v5218_v58  ;;  %v5992_v52 = vld [vmem:[%s12070_s24 + $0xd4] sm:$0xff] }
 0x5e1   : > { %v4959_v47 = vpop.f32.mrf.mxu0 }
 0x5e2   : > { %v5017_v12 = vadd.f32 %v4959_v47, %v13905_v22  ;;  %v5914_v54 = vpop.f32.mrf.mxu3 }
 0x5e3   : > { %v14589_v53 = vadd.f32 %v5914_v54, %v5596_v19  ;;  %v5161_v0 = vpop.f32.mrf.mxu1  ;;  %v6748_v19 = vld [vmem:[%s12070_s24 + $0x63] sm:$0xff] }
 0x5e4   : > { %11245 = vmatmul.msk.f32.gmra.mxu0 %vm303_vm0, %v5991_v28  ;;  %11349 = vmatmul.msk.f32.gmra.mxu2 %vm303_vm0, %v6747_v37  ;;  %v5219_v30 = vadd.f32 %v5161_v0, %v5017_v12  ;;  %v7126_v12 = vld [vmem:[%s12070_s24 + $0x66] sm:$0xff] }
 0x5e5   : > { %16284 = vst [vmem:[#allocation4_spill] sm:$0xff] %v14589_v53  ;;  %v14606_v53 = vld [vmem:[%s12070_s24 + $0xd6] sm:$0xff] }
 0x5e6   : > { %11297 = vmatmul.msk.f32.gmra.mxu1 %vm303_vm0, %v14592_v36 }
 0x5e7   : > { %11401 = vmatmul.msk.f32.gmra.mxu3 %vm303_vm0, %v7125_v40  ;;  %v5539_v22 = vpop.f32.mrf.mxu2 }
 0x5e8   : > { %v5597_v11 = vadd.f32 %v5539_v22, %v5219_v30  ;;  %v5993_v22 = vld [vmem:[%s12070_s24 + $0xdc] sm:$0xff] }
 0x5e9   : > { %v4962_v58 = vpop.f32.mrf.mxu0 }
 0x5ea   : > { %v5018_v47 = vadd.f32 %v4962_v58, %v13919_v42  ;;  %v5917_v28 = vpop.f32.mrf.mxu3 }
 0x5eb   : > { %v14603_v54 = vadd.f32 %v5917_v28, %v5597_v11  ;;  %v5164_v37 = vpop.f32.mrf.mxu1  ;;  %v6749_v11 = vld [vmem:[%s12070_s24 + $0x6b] sm:$0xff] }
 0x5ec   : > { %11246 = vmatmul.msk.f32.gmra.mxu0 %vm303_vm0, %v5992_v52  ;;  %11350 = vmatmul.msk.f32.gmra.mxu2 %vm303_vm0, %v6748_v19  ;;  %v5220_v0 = vadd.f32 %v5164_v37, %v5018_v47  ;;  %v7127_v47 = vld [vmem:[%s12070_s24 + $0x6e] sm:$0xff] }
 0x5ed   : > { %16285 = vst [vmem:[#allocation5_spill] sm:$0xff] %v14603_v54  ;;  %v14620_v54 = vld [vmem:[%s12070_s24 + $0xde] sm:$0xff] }
 0x5ee   : > { %11298 = vmatmul.msk.f32.gmra.mxu1 %vm303_vm0, %v14606_v53 }
 0x5ef   : > { %11402 = vmatmul.msk.f32.gmra.mxu3 %vm303_vm0, %v7126_v12  ;;  %v5542_v42 = vpop.f32.mrf.mxu2 }
 0x5f0   : > { %v5598_v40 = vadd.f32 %v5542_v42, %v5220_v0  ;;  %v5994_v42 = vld [vmem:[%s12070_s24 + $0xe4] sm:$0xff] }
 0x5f1   : > { %v4965_v30 = vpop.f32.mrf.mxu0 }
 0x5f2   : > { %v5019_v58 = vadd.f32 %v4965_v30, %v13933_v59  ;;  %v5920_v52 = vpop.f32.mrf.mxu3 }
 0x5f3   : > { %v14617_v28 = vadd.f32 %v5920_v52, %v5598_v40  ;;  %v5167_v19 = vpop.f32.mrf.mxu1  ;;  %v6750_v40 = vld [vmem:[%s12070_s24 + $0x73] sm:$0xff] }
 0x5f4   : > { %11247 = vmatmul.msk.f32.gmra.mxu0 %vm303_vm0, %v5993_v22  ;;  %11351 = vmatmul.msk.f32.gmra.mxu2 %vm303_vm0, %v6749_v11  ;;  %v5221_v37 = vadd.f32 %v5167_v19, %v5019_v58  ;;  %v7128_v58 = vld [vmem:[%s12070_s24 + $0x76] sm:$0xff] }
 0x5f5   : > { %16286 = vst [vmem:[#allocation6_spill] sm:$0xff] %v14617_v28  ;;  %v14634_v28 = vld [vmem:[%s12070_s24 + $0xe6] sm:$0xff] }
 0x5f6   : > { %11299 = vmatmul.msk.f32.gmra.mxu1 %vm303_vm0, %v14620_v54 }
 0x5f7   : > { %11403 = vmatmul.msk.f32.gmra.mxu3 %vm303_vm0, %v7127_v47  ;;  %v5545_v59 = vpop.f32.mrf.mxu2 }
 0x5f8   : > { %v5599_v12 = vadd.f32 %v5545_v59, %v5221_v37  ;;  %v11544_v37 = vld [vmem:[%s16278_s1 + $0x5a0] sm:$0xff] }
 0x5f9   : > { %v4968_v0 = vpop.f32.mrf.mxu0  ;;  %8270 = vmatpush.msrb.mxu2 %v11544_v37 }
 0x5fa   : > { %v5020_v30 = vadd.f32 %v4968_v0, %v13950_v35  ;;  %v5923_v22 = vpop.f32.mrf.mxu3  ;;  %v6751_v0 = vld [vmem:[%s12070_s24 + $0x7b] sm:$0xff] }
 0x5fb   : > { %v14631_v52 = vadd.f32 %v5923_v22, %v5599_v12  ;;  %v5170_v11 = vpop.f32.mrf.mxu1  ;;  %v5995_v12 = vld [vmem:[%s12070_s24 + $0xec] sm:$0xff] }
 0x5fc   : > { %11248 = vmatmul.msk.f32.gmra.mxu0 %vm303_vm0, %v5994_v42  ;;  %11352 = vmatmul.msk.f32.gmra.mxu2 %vm303_vm0, %v6750_v40  ;;  %v5222_v19 = vadd.f32 %v5170_v11, %v5020_v30  ;;  %v14651_v11 = vld [vmem:[%s12070_s24 + $0xee] sm:$0xff] }
 0x5fd   : > { %16287 = vst [vmem:[#allocation7_spill] sm:$0xff] %v14631_v52 }
 0x5fe   : > { %11300 = vmatmul.msk.f32.gmra.mxu1 %vm303_vm0, %v14634_v28 }
 0x5ff   : > { %11404 = vmatmul.msk.f32.gmra.mxu3 %vm303_vm0, %v7128_v58  ;;  %v5548_v35 = vpop.f32.mrf.mxu2  ;;  %v11440_v58 = vld [vmem:[%s16278_s1 + $0x520] sm:$0xff] }
 0x600   : > { %v5600_v47 = vadd.f32 %v5548_v35, %v5222_v19  ;;  %v7129_v19 = vld [vmem:[%s12070_s24 + $0x7e] sm:$0xff]  ;;  %7690 = vmatpush.msrb.mxu0 %v11440_v58 }
 0x601   : > { %v4971_v59 = vpop.f32.mrf.mxu0  ;;  %v11599_v35 = vld [vmem:[%s16278_s1 + $0x5f8] sm:$0xff] }
 0x602   : > { %v5021_v42 = vadd.f32 %v4971_v59, %v13973_v33  ;;  %v5926_v40 = vpop.f32.mrf.mxu3  ;;  %v11492_v33 = vld [vmem:[%s16278_s1 + $0x560] sm:$0xff]  ;;  %8645 = vmatpush.msrb.mxu3 %v11599_v35 }
 0x603   : > { %v14648_v30 = vadd.f32 %v5926_v40, %v5600_v47  ;;  %v5173_v22 = vpop.f32.mrf.mxu1  ;;  %8068 = vmatpush.msrb.mxu1 %v11492_v33  ;;  %v6752_v40 = vld [vmem:[%s12070_s24 + $0x83] sm:$0xff] }
 0x604   : > { %11249 = vmatmul.msk.f32.gmra.mxu0 %vm303_vm0, %v5995_v12  ;;  %11353 = vmatmul.msk.f32.gmra.mxu2 %vm303_vm0, %v6751_v0  ;;  %v5223_v47 = vadd.f32 %v5173_v22, %v5021_v42  ;;  %v5996_v0 = vld [vmem:[%s12070_s24 + $0xf4] sm:$0xff] }
 0x605   : > { %16288 = vst [vmem:[#allocation8_spill] sm:$0xff] %v14648_v30  ;;  %v14674_v42 = vld [vmem:[%s12070_s24 + $0xf6] sm:$0xff] }
 0x606   : > { %11301 = vmatmul.msk.f32.gmra.mxu1 %vm303_vm0, %v14651_v11 }
 0x607   : > { %11405 = vmatmul.msk.f32.gmra.mxu3 %vm303_vm0, %v7129_v19  ;;  %v5551_v37 = vpop.f32.mrf.mxu2 }
 0x608   : > { %v5601_v59 = vadd.f32 %v5551_v37, %v5223_v47  ;;  %v5997_v47 = vld [vmem:[%s12070_s24 + $0xfc] sm:$0xff]  ;;  %v6753_v37 = vld [vmem:[%s12070_s24 + $0x8b] sm:$0xff] }
 0x609   : > { %v4974_v12 = vpop.f32.mrf.mxu0 }
 0x60a   : > { %v5022_v58 = vadd.f32 %v4974_v12, %v13987_v44  ;;  %v5929_v33 = vpop.f32.mrf.mxu3 }
 0x60b   : > { %v14671_v30 = vadd.f32 %v5929_v33, %v5601_v59  ;;  %v5176_v52 = vpop.f32.mrf.mxu1 }
 0x60c   : > { %11250 = vmatmul.msk.f32.gmra.mxu0 %vm303_vm0, %v5996_v0  ;;  %11354 = vmatmul.msk.f32.gmra.mxu2 %vm303_vm0, %v6752_v40  ;;  %v5224_v22 = vadd.f32 %v5176_v52, %v5022_v58  ;;  %v14688_v52 = vld [vmem:[%s12070_s24 + $0xfe] sm:$0xff] }
 0x60e   : > { %11302 = vmatmul.msk.f32.gmra.mxu1 %vm303_vm0, %v14674_v42 }
 0x60f   : > { %11406 = vmatmul.msk.f32.gmra.mxu3 %vm303_vm0, %v14448_v15  ;;  %v5554_v19 = vpop.f32.mrf.mxu2 }
 0x610   : > { %v5602_v44 = vadd.f32 %v5554_v19, %v5224_v22  ;;  %v5998_v22 = vld [vmem:[%s12070_s24 + $0x104] sm:$0xff]  ;;  %v6754_v19 = vld [vmem:[%s12070_s24 + $0x93] sm:$0xff] }
 0x611   : > { %v4977_v35 = vpop.f32.mrf.mxu0 }
 0x612   : > { %v5023_v59 = vadd.f32 %v4977_v35, %v14001_v1  ;;  %v5932_v12 = vpop.f32.mrf.mxu3 }
 0x613   : > { %v14685_v0 = vadd.f32 %v5932_v12, %v5602_v44  ;;  %v5179_v40 = vpop.f32.mrf.mxu1 }
 0x614   : > { %11251 = vmatmul.msk.f32.gmra.mxu0 %vm303_vm0, %v5997_v47  ;;  %11355 = vmatmul.msk.f32.gmra.mxu2 %vm303_vm0, %v6753_v37  ;;  %v5225_v15 = vadd.f32 %v5179_v40, %v5023_v59  ;;  %v14702_v59 = vld [vmem:[%s12070_s24 + $0x106] sm:$0xff] }
 0x616   : > { %11303 = vmatmul.msk.f32.gmra.mxu1 %vm303_vm0, %v14688_v52 }
 0x617   : > { %11407 = vmatmul.msk.f32.gmra.mxu3 %vm303_vm0, %v14462_v7  ;;  %v5557_v58 = vpop.f32.mrf.mxu2 }
 0x618   : > { %v5603_v1 = vadd.f32 %v5557_v58, %v5225_v15  ;;  %v5999_v15 = vld [vmem:[%s12070_s24 + $0x10c] sm:$0xff]  ;;  %v6755_v58 = vld [vmem:[%s12070_s24 + $0x9b] sm:$0xff] }
 0x619   : > { %v6184_v33 = vpop.f32.mrf.mxu0 }
 0x61a   : > { %v5935_v44 = vpop.f32.mrf.mxu3  ;;  %v6316_v35 = vadd.f32 %v6184_v33, %v14015_v61 }
 0x61b   : > { %v14699_v47 = vadd.f32 %v5935_v44, %v5603_v1  ;;  %v6562_v37 = vpop.f32.mrf.mxu1  ;;  %v14716_v44 = vld [vmem:[%s12070_s24 + $0x10e] sm:$0xff] }
 0x61c   : > { %11252 = vmatmul.msk.f32.gmra.mxu0 %vm303_vm0, %v5998_v22  ;;  %11356 = vmatmul.msk.f32.gmra.mxu2 %vm303_vm0, %v6754_v19  ;;  %v6694_v7 = vadd.f32 %v6562_v37, %v6316_v35 }
 0x61e   : > { %11304 = vmatmul.msk.f32.gmra.mxu1 %vm303_vm0, %v14702_v59 }
 0x61f   : > { %11408 = vmatmul.msk.f32.gmra.mxu3 %vm303_vm0, %v14479_v29  ;;  %v6940_v12 = vpop.f32.mrf.mxu2 }
 0x620   : > { %v7072_v40 = vadd.f32 %v6940_v12, %v6694_v7  ;;  %v6000_v7 = vld [vmem:[%s12070_s24 + $0x114] sm:$0xff]  ;;  %v6756_v12 = vld [vmem:[%s12070_s24 + $0xa3] sm:$0xff] }
 0x621   : > { %v6187_v61 = vpop.f32.mrf.mxu0 }
 0x622   : > { %v6317_v1 = vadd.f32 %v6187_v61, %v14029_v23  ;;  %v7318_v33 = vpop.f32.mrf.mxu3 }
 0x623   : > { %v14713_v22 = vadd.f32 %v7318_v33, %v7072_v40  ;;  %v6565_v19 = vpop.f32.mrf.mxu1 }
 0x624   : > { %11253 = vmatmul.msk.f32.gmra.mxu0 %vm303_vm0, %v5999_v15  ;;  %11357 = vmatmul.msk.f32.gmra.mxu2 %vm303_vm0, %v6755_v58  ;;  %v6695_v29 = vadd.f32 %v6565_v19, %v6317_v1  ;;  %v14730_v58 = vld [vmem:[%s12070_s24 + $0x116] sm:$0xff] }
 0x625   : > { %v11439_v19 = vld [vmem:[%s16278_s1 + $0x518] sm:$0xff] }
 0x626   : > { %11305 = vmatmul.msk.f32.gmra.mxu1 %vm303_vm0, %v14716_v44  ;;  %7691 = vmatpush.msrb.mxu0 %v11439_v19 }
 0x627   : > { %11409 = vmatmul.msk.f32.gmra.mxu3 %vm303_vm0, %v14499_v38  ;;  %v6943_v35 = vpop.f32.mrf.mxu2  ;;  %v11543_v38 = vld [vmem:[%s16278_s1 + $0x598] sm:$0xff] }
 0x628   : > { %v7073_v23 = vadd.f32 %v6943_v35, %v6695_v29  ;;  %8271 = vmatpush.msrb.mxu2 %v11543_v38  ;;  %v11491_v35 = vld [vmem:[%s16278_s1 + $0x558] sm:$0xff] }
 0x629   : > { %v6190_v37 = vpop.f32.mrf.mxu0  ;;  %8069 = vmatpush.msrb.mxu1 %v11491_v35  ;;  %v14756_v38 = vld [vmem:[%s12070_s24 + $0x11e] sm:$0xff]  ;;  %v6758_v35 = vld [vmem:[%s12070_s24 + $0xb3] sm:$0xff] }
 0x62a   : > { %v6318_v40 = vadd.f32 %v6190_v37, %v14055_v39  ;;  %v7321_v61 = vpop.f32.mrf.mxu3 }
 0x62b   : > { %v14727_v33 = vadd.f32 %v7321_v61, %v7073_v23  ;;  %v6568_v15 = vpop.f32.mrf.mxu1  ;;  %v11598_v23 = vld [vmem:[%s16278_s1 + $0x5f0] sm:$0xff] }
 0x62c   : > { %11254 = vmatmul.msk.f32.gmra.mxu0 %vm303_vm0, %v6000_v7  ;;  %11358 = vmatmul.msk.f32.gmra.mxu2 %vm303_vm0, %v6756_v12  ;;  %v6696_v1 = vadd.f32 %v6568_v15, %v6318_v40  ;;  %v6001_v7 = vld [vmem:[%s12070_s24 + $0x11c] sm:$0xff]  ;;  %v6757_v12 = vld [vmem:[%s12070_s24 + $0xab] sm:$0xff] }
 0x62d   : > { %8646 = vmatpush.msrb.mxu3 %v11598_v23 }
 0x62e   : > { %11306 = vmatmul.msk.f32.gmra.mxu1 %vm303_vm0, %v14730_v58 }
 0x62f   : > { %11410 = vmatmul.msk.f32.gmra.mxu3 %vm303_vm0, %v14513_v50  ;;  %v6946_v39 = vpop.f32.mrf.mxu2 }
 0x630   : > { %v7074_v29 = vadd.f32 %v6946_v39, %v6696_v1 }
 0x631   : > { %v6193_v37 = vpop.f32.mrf.mxu0 }
 0x632   : > { %v6319_v50 = vadd.f32 %v6193_v37, %v14069_v34  ;;  %v7324_v40 = vpop.f32.mrf.mxu3 }
 0x633   : > { %v14753_v61 = vadd.f32 %v7324_v40, %v7074_v29  ;;  %v6571_v15 = vpop.f32.mrf.mxu1  ;;  %v6002_v29 = vld [vmem:[%s12070_s24 + $0x124] sm:$0xff] }
 0x634   : > { %11255 = vmatmul.msk.f32.gmra.mxu0 %vm303_vm0, %v6001_v7  ;;  %11359 = vmatmul.msk.f32.gmra.mxu2 %vm303_vm0, %v6757_v12  ;;  %v6697_v1 = vadd.f32 %v6571_v15, %v6319_v50  ;;  %v14770_v50 = vld [vmem:[%s12070_s24 + $0x126] sm:$0xff] }
 0x636   : > { %11307 = vmatmul.msk.f32.gmra.mxu1 %vm303_vm0, %v14756_v38 }
 0x637   : > { %11411 = vmatmul.msk.f32.gmra.mxu3 %vm303_vm0, %v14527_v8  ;;  %v6949_v39 = vpop.f32.mrf.mxu2 }
 0x638   : > { %v7075_v34 = vadd.f32 %v6949_v39, %v6697_v1  ;;  %v6003_v1 = vld [vmem:[%s12070_s24 + $0x12c] sm:$0xff]  ;;  %v6759_v39 = vld [vmem:[%s12070_s24 + $0xbb] sm:$0xff] }
 0x639   : > { %v6196_v19 = vpop.f32.mrf.mxu0 }
 0x63a   : > { %v6320_v23 = vadd.f32 %v6196_v19, %v14083_v18  ;;  %v7327_v37 = vpop.f32.mrf.mxu3 }
 0x63b   : > { %v14767_v7 = vadd.f32 %v7327_v37, %v7075_v34  ;;  %v6574_v12 = vpop.f32.mrf.mxu1 }
 0x63c   : > { %11256 = vmatmul.msk.f32.gmra.mxu0 %vm303_vm0, %v6002_v29  ;;  %11360 = vmatmul.msk.f32.gmra.mxu2 %vm303_vm0, %v6758_v35  ;;  %v6698_v8 = vadd.f32 %v6574_v12, %v6320_v23  ;;  %v14784_v23 = vld [vmem:[%s12070_s24 + $0x12e] sm:$0xff] }
 0x63e   : > { %11308 = vmatmul.msk.f32.gmra.mxu1 %vm303_vm0, %v14770_v50 }
 0x63f   : > { %11412 = vmatmul.msk.f32.gmra.mxu3 %vm303_vm0, %v14541_v21  ;;  %v6952_v40 = vpop.f32.mrf.mxu2 }
 0x640   : > { %v7076_v18 = vadd.f32 %v6952_v40, %v6698_v8  ;;  %v6004_v8 = vld [vmem:[%s12070_s24 + $0x134] sm:$0xff]  ;;  %v6760_v40 = vld [vmem:[%s12070_s24 + $0xc3] sm:$0xff] }
 0x641   : > { %v6199_v15 = vpop.f32.mrf.mxu0 }
 0x642   : > { %v6321_v34 = vadd.f32 %v6199_v15, %v14097_v60  ;;  %v7330_v19 = vpop.f32.mrf.mxu3 }
 0x643   : > { %v14781_v29 = vadd.f32 %v7330_v19, %v7076_v18  ;;  %v6577_v35 = vpop.f32.mrf.mxu1 }
 0x644   : > { %11257 = vmatmul.msk.f32.gmra.mxu0 %vm303_vm0, %v6003_v1  ;;  %11361 = vmatmul.msk.f32.gmra.mxu2 %vm303_vm0, %v6759_v39  ;;  %v6699_v21 = vadd.f32 %v6577_v35, %v6321_v34  ;;  %v14798_v34 = vld [vmem:[%s12070_s24 + $0x136] sm:$0xff] }
 0x646   : > { %11309 = vmatmul.msk.f32.gmra.mxu1 %vm303_vm0, %v14784_v23 }
 0x647   : > { %11413 = vmatmul.msk.f32.gmra.mxu3 %vm303_vm0, %v14555_v56  ;;  %v6955_v37 = vpop.f32.mrf.mxu2 }
 0x648   : > { %v7077_v60 = vadd.f32 %v6955_v37, %v6699_v21  ;;  %v6005_v21 = vld [vmem:[%s12070_s24 + $0x13c] sm:$0xff]  ;;  %v6761_v37 = vld [vmem:[%s12070_s24 + $0xcb] sm:$0xff] }
 0x649   : > { %v6202_v12 = vpop.f32.mrf.mxu0 }
 0x64a   : > { %v6322_v18 = vadd.f32 %v6202_v12, %v14111_v49  ;;  %v7333_v15 = vpop.f32.mrf.mxu3 }
 0x64b   : > { %v14795_v1 = vadd.f32 %v7333_v15, %v7077_v60  ;;  %v6580_v39 = vpop.f32.mrf.mxu1 }
 0x64c   : > { %11258 = vmatmul.msk.f32.gmra.mxu0 %vm303_vm0, %v6004_v8  ;;  %11362 = vmatmul.msk.f32.gmra.mxu2 %vm303_vm0, %v6760_v40  ;;  %v6700_v56 = vadd.f32 %v6580_v39, %v6322_v18  ;;  %v14812_v18 = vld [vmem:[%s12070_s24 + $0x13e] sm:$0xff]  ;;  %v11542_v39 = vld [vmem:[%s16278_s1 + $0x590] sm:$0xff] }
 0x64d   : > { %8272 = vmatpush.msrb.mxu2 %v11542_v39 }
 0x64e   : > { %11310 = vmatmul.msk.f32.gmra.mxu1 %vm303_vm0, %v14798_v34 }
 0x64f   : > { %11414 = vmatmul.msk.f32.gmra.mxu3 %vm303_vm0, %v14578_v48  ;;  %v6958_v19 = vpop.f32.mrf.mxu2 }
 0x650   : > { %v7078_v49 = vadd.f32 %v6958_v19, %v6700_v56  ;;  %v6006_v19 = vld [vmem:[%s12070_s24 + $0x144] sm:$0xff] }
 0x651   : > { %v6205_v35 = vpop.f32.mrf.mxu0 }
 0x652   : > { %v6323_v60 = vadd.f32 %v6205_v35, %v14128_v16  ;;  %v7336_v12 = vpop.f32.mrf.mxu3 }
 0x653   : > { %v14809_v8 = vadd.f32 %v7336_v12, %v7078_v49  ;;  %v6583_v40 = vpop.f32.mrf.mxu1  ;;  %v6762_v49 = vld [vmem:[%s12070_s24 + $0xd3] sm:$0xff]  ;;  %v14829_v12 = vld [vmem:[%s12070_s24 + $0x146] sm:$0xff] }
 0x654   : > { %11259 = vmatmul.msk.f32.gmra.mxu0 %vm303_vm0, %v6005_v21  ;;  %11363 = vmatmul.msk.f32.gmra.mxu2 %vm303_vm0, %v6761_v37  ;;  %v6701_v48 = vadd.f32 %v6583_v40, %v6323_v60  ;;  %v11597_v40 = vld [vmem:[%s16278_s1 + $0x5e8] sm:$0xff] }
 0x655   : > { %8647 = vmatpush.msrb.mxu3 %v11597_v40 }
 0x656   : > { %11311 = vmatmul.msk.f32.gmra.mxu1 %vm303_vm0, %v14812_v18 }
 0x657   : > { %11415 = vmatmul.msk.f32.gmra.mxu3 %vm303_vm0, %v14592_v36  ;;  %v6961_v15 = vpop.f32.mrf.mxu2  ;;  %v11438_v36 = vld [vmem:[%s16278_s1 + $0x510] sm:$0xff] }
 0x658   : > { %v7079_v16 = vadd.f32 %v6961_v15, %v6701_v48  ;;  %7692 = vmatpush.msrb.mxu0 %v11438_v36 }
 0x659   : > { %v6208_v56 = vpop.f32.mrf.mxu0 }
 0x65a   : > { %v6324_v35 = vadd.f32 %v6208_v56, %v14151_v25  ;;  %v7339_v21 = vpop.f32.mrf.mxu3  ;;  %v11490_v25 = vld [vmem:[%s16278_s1 + $0x550] sm:$0xff] }
 0x65b   : > { %v14826_v37 = vadd.f32 %v7339_v21, %v7079_v16  ;;  %v6586_v60 = vpop.f32.mrf.mxu1  ;;  %8070 = vmatpush.msrb.mxu1 %v11490_v25  ;;  %v6007_v56 = vld [vmem:[%s12070_s24 + $0x14c] sm:$0xff] }
 0x65c   : > { %11260 = vmatmul.msk.f32.gmra.mxu0 %vm303_vm0, %v6006_v19  ;;  %11364 = vmatmul.msk.f32.gmra.mxu2 %vm303_vm0, %v6762_v49  ;;  %v6702_v48 = vadd.f32 %v6586_v60, %v6324_v35  ;;  %v6763_v19 = vld [vmem:[%s12070_s24 + $0xdb] sm:$0xff]  ;;  %v14852_v60 = vld [vmem:[%s12070_s24 + $0x14e] sm:$0xff] }
 0x65e   : > { %11312 = vmatmul.msk.f32.gmra.mxu1 %vm303_vm0, %v14829_v12 }
 0x65f   : > { %11416 = vmatmul.msk.f32.gmra.mxu3 %vm303_vm0, %v14606_v53  ;;  %v6964_v15 = vpop.f32.mrf.mxu2 }
 0x660   : > { %v7080_v16 = vadd.f32 %v6964_v15, %v6702_v48  ;;  %v6008_v48 = vld [vmem:[%s12070_s24 + $0x154] sm:$0xff]  ;;  %v6764_v15 = vld [vmem:[%s12070_s24 + $0xe3] sm:$0xff] }
 0x661   : > { %v6211_v39 = vpop.f32.mrf.mxu0 }
 0x662   : > { %v6325_v49 = vadd.f32 %v6211_v39, %v14165_v13  ;;  %v7342_v21 = vpop.f32.mrf.mxu3 }
 0x663   : > { %v14849_v36 = vadd.f32 %v7342_v21, %v7080_v16  ;;  %v6589_v35 = vpop.f32.mrf.mxu1 }
 0x664   : > { %11261 = vmatmul.msk.f32.gmra.mxu0 %vm303_vm0, %v6007_v56  ;;  %11365 = vmatmul.msk.f32.gmra.mxu2 %vm303_vm0, %v6763_v19  ;;  %v6703_v53 = vadd.f32 %v6589_v35, %v6325_v49  ;;  %v14866_v49 = vld [vmem:[%s12070_s24 + $0x156] sm:$0xff] }
 0x666   : > { %11313 = vmatmul.msk.f32.gmra.mxu1 %vm303_vm0, %v14852_v60 }
 0x667   : > { %11417 = vmatmul.msk.f32.gmra.mxu3 %vm303_vm0, %v14620_v54  ;;  %v6967_v25 = vpop.f32.mrf.mxu2 }
 0x668   : > { %v7081_v13 = vadd.f32 %v6967_v25, %v6703_v53  ;;  %v6009_v53 = vld [vmem:[%s12070_s24 + $0x15c] sm:$0xff]  ;;  %v6765_v25 = vld [vmem:[%s12070_s24 + $0xeb] sm:$0xff] }
 0x669   : > { %v6214_v40 = vpop.f32.mrf.mxu0 }
 0x66a   : > { %v6326_v16 = vadd.f32 %v6214_v40, %v14179_v41  ;;  %v7345_v39 = vpop.f32.mrf.mxu3 }
 0x66b   : > { %v14863_v56 = vadd.f32 %v7345_v39, %v7081_v13  ;;  %v6592_v19 = vpop.f32.mrf.mxu1 }
 0x66c   : > { %11262 = vmatmul.msk.f32.gmra.mxu0 %vm303_vm0, %v6008_v48  ;;  %11366 = vmatmul.msk.f32.gmra.mxu2 %vm303_vm0, %v6764_v15  ;;  %v6704_v54 = vadd.f32 %v6592_v19, %v6326_v16  ;;  %v14880_v16 = vld [vmem:[%s12070_s24 + $0x15e] sm:$0xff] }
 0x66e   : > { %11314 = vmatmul.msk.f32.gmra.mxu1 %vm303_vm0, %v14866_v49 }
 0x66f   : > { %11418 = vmatmul.msk.f32.gmra.mxu3 %vm303_vm0, %v14634_v28  ;;  %v6970_v21 = vpop.f32.mrf.mxu2 }
 0x670   : > { %v7082_v41 = vadd.f32 %v6970_v21, %v6704_v54  ;;  %v6010_v54 = vld [vmem:[%s12070_s24 + $0x164] sm:$0xff]  ;;  %v6766_v21 = vld [vmem:[%s12070_s24 + $0xf3] sm:$0xff] }
 0x671   : > { %v6217_v35 = vpop.f32.mrf.mxu0 }
 0x672   : > { %v6327_v13 = vadd.f32 %v6217_v35, %v14193_v46  ;;  %v7348_v40 = vpop.f32.mrf.mxu3 }
 0x673   : > { %v14877_v48 = vadd.f32 %v7348_v40, %v7082_v41  ;;  %v6595_v15 = vpop.f32.mrf.mxu1 }
 0x674   : > { %11263 = vmatmul.msk.f32.gmra.mxu0 %vm303_vm0, %v6009_v53  ;;  %11367 = vmatmul.msk.f32.gmra.mxu2 %vm303_vm0, %v6765_v25  ;;  %v6705_v28 = vadd.f32 %v6595_v15, %v6327_v13  ;;  %v14894_v13 = vld [vmem:[%s12070_s24 + $0x166] sm:$0xff] }
 0x676   : > { %11315 = vmatmul.msk.f32.gmra.mxu1 %vm303_vm0, %v14880_v16 }
 0x677   : > { %11419 = vmatmul.msk.f32.gmra.mxu3 %vm303_vm0, %v14651_v11  ;;  %v6973_v39 = vpop.f32.mrf.mxu2 }
 0x678   : > { %v7083_v46 = vadd.f32 %v6973_v39, %v6705_v28  ;;  %v6011_v28 = vld [vmem:[%s12070_s24 + $0x16c] sm:$0xff]  ;;  %v6767_v39 = vld [vmem:[%s12070_s24 + $0xfb] sm:$0xff] }
 0x679   : > { %v6220_v19 = vpop.f32.mrf.mxu0 }
 0x67a   : > { %v6328_v41 = vadd.f32 %v6220_v19, %v14207_v43  ;;  %v7351_v35 = vpop.f32.mrf.mxu3 }
 0x67b   : > { %v14891_v53 = vadd.f32 %v7351_v35, %v7083_v46  ;;  %v6598_v25 = vpop.f32.mrf.mxu1 }
 0x67c   : > { %11264 = vmatmul.msk.f32.gmra.mxu0 %vm303_vm0, %v6010_v54  ;;  %11368 = vmatmul.msk.f32.gmra.mxu2 %vm303_vm0, %v6766_v21  ;;  %v6706_v11 = vadd.f32 %v6598_v25, %v6328_v41  ;;  %v14908_v21 = vld [vmem:[%s12070_s24 + $0x16e] sm:$0xff] }
 0x67d   : > { %v11437_v25 = vld [vmem:[%s16278_s1 + $0x508] sm:$0xff] }
 0x67e   : > { %11316 = vmatmul.msk.f32.gmra.mxu1 %vm303_vm0, %v14894_v13  ;;  %7693 = vmatpush.msrb.mxu0 %v11437_v25 }
 0x67f   : > { %11420 = vmatmul.msk.f32.gmra.mxu3 %vm303_vm0, %v14674_v42  ;;  %v6976_v40 = vpop.f32.mrf.mxu2  ;;  %v11541_v42 = vld [vmem:[%s16278_s1 + $0x588] sm:$0xff] }
 0x680   : > { %v7084_v43 = vadd.f32 %v6976_v40, %v6706_v11  ;;  %8273 = vmatpush.msrb.mxu2 %v11541_v42  ;;  %v11489_v40 = vld [vmem:[%s16278_s1 + $0x548] sm:$0xff]  ;;  %v6390_v42 = vld [vmem:[%s12070_s24 + $0x176] sm:$0xff] }
 0x681   : > { %v6223_v15 = vpop.f32.mrf.mxu0  ;;  %8071 = vmatpush.msrb.mxu1 %v11489_v40 }
 0x682   : > { %v6329_v46 = vadd.f32 %v6223_v15, %v14233_v14  ;;  %v7354_v19 = vpop.f32.mrf.mxu3 }
 0x683   : > { %v14905_v35 = vadd.f32 %v7354_v19, %v7084_v43  ;;  %v6601_v54 = vpop.f32.mrf.mxu1  ;;  %v11596_v43 = vld [vmem:[%s16278_s1 + $0x5e0] sm:$0xff] }
 0x684   : > { %11265 = vmatmul.msk.f32.gmra.mxu0 %vm303_vm0, %v6011_v28  ;;  %11369 = vmatmul.msk.f32.gmra.mxu2 %vm303_vm0, %v6767_v39  ;;  %v6707_v41 = vadd.f32 %v6601_v54, %v6329_v46  ;;  %v6012_v28 = vld [vmem:[%s12070_s24 + $0x174] sm:$0xff]  ;;  %v6768_v39 = vld [vmem:[%s12070_s24 + $0x103] sm:$0xff] }
 0x685   : > { %8648 = vmatpush.msrb.mxu3 %v11596_v43 }
 0x686   : > { %11317 = vmatmul.msk.f32.gmra.mxu1 %vm303_vm0, %v14908_v21 }
 0x687   : > { %11421 = vmatmul.msk.f32.gmra.mxu3 %vm303_vm0, %v14688_v52  ;;  %v6979_v14 = vpop.f32.mrf.mxu2 }
 0x688   : > { %v7085_v11 = vadd.f32 %v6979_v14, %v6707_v41 }
 0x689   : > { %v6226_v15 = vpop.f32.mrf.mxu0 }
 0x68a   : > { %v6330_v52 = vadd.f32 %v6226_v15, %v14247_v45  ;;  %v7357_v46 = vpop.f32.mrf.mxu3  ;;  %v6013_v45 = vld [vmem:[%s12070_s24 + $0x17c] sm:$0xff] }
 0x68b   : > { %v14931_v19 = vadd.f32 %v7357_v46, %v7085_v11  ;;  %v6604_v54 = vpop.f32.mrf.mxu1  ;;  %v6769_v11 = vld [vmem:[%s12070_s24 + $0x10b] sm:$0xff] }
 0x68c   : > { %11266 = vmatmul.msk.f32.gmra.mxu0 %vm303_vm0, %v6012_v28  ;;  %11370 = vmatmul.msk.f32.gmra.mxu2 %vm303_vm0, %v6768_v39  ;;  %v6708_v41 = vadd.f32 %v6604_v54, %v6330_v52  ;;  %v6391_v39 = vld [vmem:[%s12070_s24 + $0x17e] sm:$0xff] }
 0x68e   : > { %11318 = vmatmul.msk.f32.gmra.mxu1 %vm303_vm0, %v6390_v42 }
 0x68f   : > { %11422 = vmatmul.msk.f32.gmra.mxu3 %vm303_vm0, %v14702_v59  ;;  %v6982_v14 = vpop.f32.mrf.mxu2 }
 0x690   : > { %v7086_v25 = vadd.f32 %v6982_v14, %v6708_v41  ;;  %v6770_v41 = vld [vmem:[%s12070_s24 + $0x113] sm:$0xff] }
 0x691   : > { %v6229_v40 = vpop.f32.mrf.mxu0 }
 0x692   : > { %v6331_v43 = vadd.f32 %v6229_v40, %v14261_v9  ;;  %v7360_v15 = vpop.f32.mrf.mxu3  ;;  %v6014_v9 = vld [vmem:[%s12070_s24 + $0x184] sm:$0xff] }
 0x693   : > { %v14942_v46 = vadd.f32 %v7360_v15, %v7086_v25  ;;  %v6607_v28 = vpop.f32.mrf.mxu1 }
 0x694   : > { %11267 = vmatmul.msk.f32.gmra.mxu0 %vm303_vm0, %v6013_v45  ;;  %11371 = vmatmul.msk.f32.gmra.mxu2 %vm303_vm0, %v6769_v11  ;;  %v6709_v59 = vadd.f32 %v6607_v28, %v6331_v43  ;;  %v6392_v11 = vld [vmem:[%s12070_s24 + $0x186] sm:$0xff] }
 0x696   : > { %11319 = vmatmul.msk.f32.gmra.mxu1 %vm303_vm0, %v6391_v39  ;;  %v6771_v39 = vld [vmem:[%s12070_s24 + $0x11b] sm:$0xff] }
 0x697   : > { %11423 = vmatmul.msk.f32.gmra.mxu3 %vm303_vm0, %v14716_v44  ;;  %v6985_v52 = vpop.f32.mrf.mxu2 }
 0x698   : > { %v7087_v54 = vadd.f32 %v6985_v52, %v6709_v59 }
 0x699   : > { %v6232_v42 = vpop.f32.mrf.mxu0 }
 0x69a   : > { %v6332_v14 = vadd.f32 %v6232_v42, %v14275_v4  ;;  %v7363_v25 = vpop.f32.mrf.mxu3  ;;  %v6015_v4 = vld [vmem:[%s12070_s24 + $0x18c] sm:$0xff] }
 0x69b   : > { %v14953_v40 = vadd.f32 %v7363_v25, %v7087_v54  ;;  %v6610_v45 = vpop.f32.mrf.mxu1 }
 0x69c   : > { %11268 = vmatmul.msk.f32.gmra.mxu0 %vm303_vm0, %v6014_v9  ;;  %11372 = vmatmul.msk.f32.gmra.mxu2 %vm303_vm0, %v6770_v41  ;;  %v6710_v44 = vadd.f32 %v6610_v45, %v6332_v14  ;;  %v6393_v9 = vld [vmem:[%s12070_s24 + $0x18e] sm:$0xff]  ;;  %v6772_v45 = vld [vmem:[%s12070_s24 + $0x123] sm:$0xff] }
 0x69e   : > { %11320 = vmatmul.msk.f32.gmra.mxu1 %vm303_vm0, %v6392_v11 }
 0x69f   : > { %11424 = vmatmul.msk.f32.gmra.mxu3 %vm303_vm0, %v14730_v58  ;;  %v6988_v43 = vpop.f32.mrf.mxu2 }
 0x6a0   : > { %v7088_v15 = vadd.f32 %v6988_v43, %v6710_v44 }
 0x6a1   : > { %v6235_v28 = vpop.f32.mrf.mxu0 }
 0x6a2   : > { %v6333_v59 = vadd.f32 %v6235_v28, %v14289_v55  ;;  %v7366_v52 = vpop.f32.mrf.mxu3  ;;  %v6016_v55 = vld [vmem:[%s12070_s24 + $0x194] sm:$0xff] }
 0x6a3   : > { %v14964_v54 = vadd.f32 %v7366_v52, %v7088_v15  ;;  %v6613_v42 = vpop.f32.mrf.mxu1  ;;  %v6394_v28 = vld [vmem:[%s12070_s24 + $0x196] sm:$0xff] }
 0x6a4   : > { %11269 = vmatmul.msk.f32.gmra.mxu0 %vm303_vm0, %v6015_v4  ;;  %11373 = vmatmul.msk.f32.gmra.mxu2 %vm303_vm0, %v6771_v39  ;;  %v6711_v58 = vadd.f32 %v6613_v42, %v6333_v59  ;;  %v6017_v52 = vld [vmem:[%s12070_s24 + $0x19c] sm:$0xff]  ;;  %v6773_v42 = vld [vmem:[%s12070_s24 + $0x12b] sm:$0xff] }
 0x6a6   : > { %11321 = vmatmul.msk.f32.gmra.mxu1 %vm303_vm0, %v6393_v9 }
 0x6a7   : > { %11425 = vmatmul.msk.f32.gmra.mxu3 %vm303_vm0, %v14756_v38  ;;  %v6991_v41 = vpop.f32.mrf.mxu2 }
 0x6a8   : > { %v7089_v14 = vadd.f32 %v6991_v41, %v6711_v58 }
 0x6a9   : > { %v6238_v25 = vpop.f32.mrf.mxu0 }
 0x6aa   : > { %v6334_v11 = vadd.f32 %v6238_v25, %v14306_v6  ;;  %v7369_v44 = vpop.f32.mrf.mxu3  ;;  %v11540_v6 = vld [vmem:[%s16278_s1 + $0x580] sm:$0xff] }
 0x6ab   : > { %v14975_v43 = vadd.f32 %v7369_v44, %v7089_v14  ;;  %v6616_v15 = vpop.f32.mrf.mxu1  ;;  %8274 = vmatpush.msrb.mxu2 %v11540_v6  ;;  %v6395_v25 = vld [vmem:[%s12070_s24 + $0x19e] sm:$0xff] }
 0x6ac   : > { %11270 = vmatmul.msk.f32.gmra.mxu0 %vm303_vm0, %v6016_v55  ;;  %11374 = vmatmul.msk.f32.gmra.mxu2 %vm303_vm0, %v6772_v45  ;;  %v6712_v38 = vadd.f32 %v6616_v15, %v6334_v11  ;;  %v11488_v55 = vld [vmem:[%s16278_s1 + $0x540] sm:$0xff] }
 0x6ad   : > { %8072 = vmatpush.msrb.mxu1 %v11488_v55 }
 0x6ae   : > { %11322 = vmatmul.msk.f32.gmra.mxu1 %vm303_vm0, %v6394_v28  ;;  %v6018_v28 = vld [vmem:[%s12070_s24 + $0x1a4] sm:$0xff] }
 0x6af   : > { %11426 = vmatmul.msk.f32.gmra.mxu3 %vm303_vm0, %v14770_v50  ;;  %v6994_v4 = vpop.f32.mrf.mxu2  ;;  %v11436_v50 = vld [vmem:[%s16278_s1 + $0x500] sm:$0xff] }
 0x6b0   : > { %v7090_v39 = vadd.f32 %v6994_v4, %v6712_v38  ;;  %7694 = vmatpush.msrb.mxu0 %v11436_v50  ;;  %v6774_v38 = vld [vmem:[%s12070_s24 + $0x133] sm:$0xff] }
 0x6b1   : > { %v6241_v59 = vpop.f32.mrf.mxu0 }
 0x6b2   : > { %v6335_v9 = vadd.f32 %v6241_v59, %v14329_v27  ;;  %v7372_v58 = vpop.f32.mrf.mxu3  ;;  %v11595_v27 = vld [vmem:[%s16278_s1 + $0x5d8] sm:$0xff] }
 0x6b3   : > { %v14989_v41 = vadd.f32 %v7372_v58, %v7090_v39  ;;  %v6619_v14 = vpop.f32.mrf.mxu1  ;;  %8649 = vmatpush.msrb.mxu3 %v11595_v27 }
 0x6b4   : > { %11271 = vmatmul.msk.f32.gmra.mxu0 %vm303_vm0, %v6017_v52  ;;  %11375 = vmatmul.msk.f32.gmra.mxu2 %vm303_vm0, %v6773_v42  ;;  %v6713_v45 = vadd.f32 %v6619_v14, %v6335_v9  ;;  %v6396_v52 = vld [vmem:[%s12070_s24 + $0x1a6] sm:$0xff]  ;;  %v6775_v14 = vld [vmem:[%s12070_s24 + $0x13b] sm:$0xff] }
 0x6b6   : > { %11323 = vmatmul.msk.f32.gmra.mxu1 %vm303_vm0, %v6395_v25 }
 0x6b7   : > { %11427 = vmatmul.msk.f32.gmra.mxu3 %vm303_vm0, %v14784_v23  ;;  %v6997_v11 = vpop.f32.mrf.mxu2 }
 0x6b8   : > { %v7091_v44 = vadd.f32 %v6997_v11, %v6713_v45  ;;  %v6397_v45 = vld [vmem:[%s12070_s24 + $0x1ae] sm:$0xff] }
 0x6b9   : > { %v6244_v15 = vpop.f32.mrf.mxu0 }
 0x6ba   : > { %v6336_v4 = vadd.f32 %v6244_v15, %v14343_v63  ;;  %v7375_v39 = vpop.f32.mrf.mxu3  ;;  %v6019_v63 = vld [vmem:[%s12070_s24 + $0x1ac] sm:$0xff] }
 0x6bb   : > { %v15009_v6 = vadd.f32 %v7375_v39, %v7091_v44  ;;  %v6622_v59 = vpop.f32.mrf.mxu1 }
 0x6bc   : > { %11272 = vmatmul.msk.f32.gmra.mxu0 %vm303_vm0, %v6018_v28  ;;  %11376 = vmatmul.msk.f32.gmra.mxu2 %vm303_vm0, %v6774_v38  ;;  %v6714_v23 = vadd.f32 %v6622_v59, %v6336_v4  ;;  %v6776_v28 = vld [vmem:[%s12070_s24 + $0x143] sm:$0xff] }
 0x6be   : > { %11324 = vmatmul.msk.f32.gmra.mxu1 %vm303_vm0, %v6396_v52  ;;  %v6398_v52 = vld [vmem:[%s12070_s24 + $0x1b6] sm:$0xff] }
 0x6bf   : > { %11428 = vmatmul.msk.f32.gmra.mxu3 %vm303_vm0, %v14798_v34  ;;  %v7000_v42 = vpop.f32.mrf.mxu2 }
 0x6c0   : > { %v7092_v9 = vadd.f32 %v7000_v42, %v6714_v23 }
 0x6c1   : > { %v6247_v58 = vpop.f32.mrf.mxu0 }
 0x6c2   : > { %v6337_v25 = vadd.f32 %v6247_v58, %v14357_v24  ;;  %v7378_v50 = vpop.f32.mrf.mxu3  ;;  %v6020_v24 = vld [vmem:[%s12070_s24 + $0x1b4] sm:$0xff]  ;;  %v6777_v58 = vld [vmem:[%s12070_s24 + $0x14b] sm:$0xff] }
 0x6c3   : > { %v15020_v55 = vadd.f32 %v7378_v50, %v7092_v9  ;;  %v6625_v27 = vpop.f32.mrf.mxu1 }
 0x6c4   : > { %11273 = vmatmul.msk.f32.gmra.mxu0 %vm303_vm0, %v6019_v63  ;;  %11377 = vmatmul.msk.f32.gmra.mxu2 %vm303_vm0, %v6775_v14  ;;  %v6715_v34 = vadd.f32 %v6625_v27, %v6337_v25  ;;  %v6399_v27 = vld [vmem:[%s12070_s24 + $0x1be] sm:$0xff] }
 0x6c6   : > { %11325 = vmatmul.msk.f32.gmra.mxu1 %vm303_vm0, %v6397_v45 }
 0x6c7   : > { %11429 = vmatmul.msk.f32.gmra.mxu3 %vm303_vm0, %v14812_v18  ;;  %v7003_v11 = vpop.f32.mrf.mxu2 }
 0x6c8   : > { %v7093_v44 = vadd.f32 %v7003_v11, %v6715_v34 }
 0x6c9   : > { %v6250_v15 = vpop.f32.mrf.mxu0 }
 0x6ca   : > { %v6338_v38 = vadd.f32 %v6250_v15, %v14371_v2  ;;  %v7381_v4 = vpop.f32.mrf.mxu3  ;;  %v6021_v2 = vld [vmem:[%s12070_s24 + $0x1bc] sm:$0xff]  ;;  %v11594_v15 = vld [vmem:[%s16278_s1 + $0x5d0] sm:$0xff] }
 0x6cb   : > { %v15031_v39 = vadd.f32 %v7381_v4, %v7093_v44  ;;  %v6628_v59 = vpop.f32.mrf.mxu1  ;;  %v6778_v44 = vld [vmem:[%s12070_s24 + $0x153] sm:$0xff]  ;;  %8650 = vmatpush.msrb.mxu3 %v11594_v15  ;;  %v6780_v15 = vld [vmem:[%s12070_s24 + $0x163] sm:$0xff] }
 0x6cc   : > { %11274 = vmatmul.msk.f32.gmra.mxu0 %vm303_vm0, %v6020_v24  ;;  %11378 = vmatmul.msk.f32.gmra.mxu2 %vm303_vm0, %v6776_v28  ;;  %v6716_v18 = vadd.f32 %v6628_v59, %v6338_v38  ;;  %v6400_v59 = vld [vmem:[%s12070_s24 + $0x1c6] sm:$0xff] }
 0x6ce   : > { %11326 = vmatmul.msk.f32.gmra.mxu1 %vm303_vm0, %v6398_v52  ;;  %v11592_v52 = vld [vmem:[%s16278_s1 + $0x5c0] sm:$0xff] }
 0x6cf   : > { %11430 = vmatmul.msk.f32.gmra.mxu3 %vm303_vm0, %v14829_v12  ;;  %v7006_v23 = vpop.f32.mrf.mxu2 }
 0x6d0   : > { %v7094_v42 = vadd.f32 %v7006_v23, %v6716_v18 }
 0x6d1   : > { %v6253_v9 = vpop.f32.mrf.mxu0 }
 0x6d2   : > { %v6339_v63 = vadd.f32 %v6253_v9, %v14385_v57  ;;  %v7384_v14 = vpop.f32.mrf.mxu3  ;;  %v6022_v57 = vld [vmem:[%s12070_s24 + $0x1c4] sm:$0xff] }
 0x6d3   : > { %v15042_v25 = vadd.f32 %v7384_v14, %v7094_v42  ;;  %v6631_v50 = vpop.f32.mrf.mxu1  ;;  %v11651_v42 = vld [vmem:[%s16278_s1 + $0x638] sm:$0xff] }
 0x6d4   : > { %11275 = vmatmul.msk.f32.gmra.mxu0 %vm303_vm0, %v6021_v2  ;;  %11379 = vmatmul.msk.f32.gmra.mxu2 %vm303_vm0, %v6777_v58  ;;  %v6717_v12 = vadd.f32 %v6631_v50, %v6339_v63  ;;  %v11703_v2 = vld [vmem:[%s16278_s1 + $0x678] sm:$0xff]  ;;  %v6023_v63 = vld [vmem:[%s12070_s24 + $0x1cc] sm:$0xff] }
 0x6d5   : > { %9023 = vmatpush.msra.mxu0 %v11651_v42  ;;  %v6779_v14 = vld [vmem:[%s12070_s24 + $0x15b] sm:$0xff]  ;;  %9401 = vmatpush.msra.mxu1 %v11703_v2 }
 0x6d6   : > { %11327 = vmatmul.msk.f32.gmra.mxu1 %vm303_vm0, %v6399_v27 }
 0x6d7   : > { %11431 = vmatmul.msk.f32.gmra.mxu3 %vm303_vm0, %v14852_v60  ;;  %v7009_v45 = vpop.f32.mrf.mxu2  ;;  %v11593_v60 = vld [vmem:[%s16278_s1 + $0x5c8] sm:$0xff] }
 0x6d8   : > { %v7095_v34 = vadd.f32 %v7009_v45, %v6717_v12  ;;  %8651 = vmatpush.msrb.mxu3 %v11593_v60  ;;  %v6401_v45 = vld [vmem:[%s12070_s24 + $0x1ce] sm:$0xff]  ;;  %v6402_v60 = vld [vmem:[%s12070_s24 + $0x1d6] sm:$0xff] }
 0x6d9   : > { %v6256_v11 = vpop.f32.mrf.mxu0 }
 0x6da   : > { %v6340_v24 = vadd.f32 %v6256_v11, %v14411_v5  ;;  %v7387_v28 = vpop.f32.mrf.mxu3  ;;  %v11755_v5 = vld [vmem:[%s16278_s1 + $0x6b8] sm:$0xff]  ;;  %8652 = vmatpush.msrb.mxu3 %v11592_v52 }
 0x6db   : > { %v15056_v38 = vadd.f32 %v7387_v28, %v7095_v34  ;;  %v6634_v4 = vpop.f32.mrf.mxu1  ;;  %9779 = vmatpush.msra.mxu2 %v11755_v5 }
 0x6dc   : > { %11276 = vmatmul.msk.f32.gmra.mxu0 %vm303_vm0, %v6022_v57  ;;  %11380 = vmatmul.msk.f32.gmra.mxu2 %vm303_vm0, %v6778_v44  ;;  %v6718_v18 = vadd.f32 %v6634_v4, %v6340_v24 }
 0x6de   : > { %11328 = vmatmul.msk.f32.gmra.mxu1 %vm303_vm0, %v6400_v59 }
 0x6df   : > { %11432 = vmatmul.msk.f32.gmra.mxu3 %vm303_vm0, %v14866_v49  ;;  %v7012_v23 = vpop.f32.mrf.mxu2 }
 0x6e0   : > { %v7096_v9 = vadd.f32 %v7012_v23, %v6718_v18  ;;  %v6781_v23 = vld [vmem:[%s12070_s24 + $0x16b] sm:$0xff] }
 0x6e1   : > { %v6259_v58 = vpop.f32.mrf.mxu0 }
 0x6e2   : > { %v6341_v49 = vadd.f32 %v6259_v58, %v14422_v31  ;;  %v7390_v50 = vpop.f32.mrf.mxu3  ;;  %v6024_v31 = vld [vmem:[%s12070_s24 + $0x1d4] sm:$0xff] }
 0x6e3   : > { %v15082_v27 = vadd.f32 %v7390_v50, %v7096_v9  ;;  %v6637_v12 = vpop.f32.mrf.mxu1  ;;  %v7494_v50 = vld [vmem:[%s12070_s24 + $0x19] sm:$0xff] }
 0x6e4   : > { %11277 = vmatmul.msk.f32.gmra.mxu0 %vm303_vm0, %v6023_v63  ;;  %11381 = vmatmul.msk.f32.gmra.mxu2 %vm303_vm0, %v6779_v14  ;;  %v6719_v34 = vadd.f32 %v6637_v12, %v6341_v49  ;;  %v6403_v63 = vld [vmem:[%s12070_s24 + $0x1de] sm:$0xff] }
 0x6e6   : > { %11329 = vmatmul.msk.f32.gmra.mxu1 %vm303_vm0, %v6401_v45 }
 0x6e7   : > { %11433 = vmatmul.msk.f32.gmra.mxu3 %vm303_vm0, %v14880_v16  ;;  %v7015_v11 = vpop.f32.mrf.mxu2 }
 0x6e8   : > { %v7097_v57 = vadd.f32 %v7015_v11, %v6719_v34 }
 0x6e9   : > { %v6262_v44 = vpop.f32.mrf.mxu0 }
 0x6ea   : > { %v6342_v24 = vadd.f32 %v6262_v44, %v14433_v26  ;;  %v7393_v28 = vpop.f32.mrf.mxu3  ;;  %v6025_v26 = vld [vmem:[%s12070_s24 + $0x1dc] sm:$0xff] }
 0x6eb   : > { %v15093_v4 = vadd.f32 %v7393_v28, %v7097_v57  ;;  %v6640_v59 = vpop.f32.mrf.mxu1  ;;  %v7872_v57 = vld [vmem:[%s12070_s24 + $0x55] sm:$0xff]  ;;  %v7495_v28 = vld [vmem:[%s12070_s24 + $0x21] sm:$0xff] }
 0x6ec   : > { %11278 = vmatmul.msk.f32.gmra.mxu0 %vm303_vm0, %v6024_v31  ;;  %11382 = vmatmul.msk.f32.gmra.mxu2 %vm303_vm0, %v6780_v15  ;;  %v6720_v16 = vadd.f32 %v6640_v59, %v6342_v24  ;;  %v11901_v44 = vld [vmem:[%s12070_s24 + $0x58] sm:$0xff] }
 0x6ee   : > { %11330 = vmatmul.msk.f32.gmra.mxu1 %vm303_vm0, %v6402_v60 }
 0x6ef   : > { %11434 = vmatmul.msk.f32.gmra.mxu3 %vm303_vm0, %v14894_v13  ;;  %v7018_v5 = vpop.f32.mrf.mxu2 }
 0x6f0   : > { %v7098_v52 = vadd.f32 %v7018_v5, %v6720_v16 }
 0x6f1   : > { %v6265_v18 = vpop.f32.mrf.mxu0 }
 0x6f2   : > { %v6343_v42 = vadd.f32 %v6265_v18, %v14445_v10  ;;  %v7396_v9 = vpop.f32.mrf.mxu3  ;;  %v11902_v18 = vld [vmem:[%s12070_s24 + $0x60] sm:$0xff] }
 0x6f3   : > { %v15104_v2 = vadd.f32 %v7396_v9, %v7098_v52  ;;  %v6643_v58 = vpop.f32.mrf.mxu1  ;;  %v7873_v52 = vld [vmem:[%s12070_s24 + $0x5d] sm:$0xff]  ;;  %v11754_v9 = vld [vmem:[%s16278_s1 + $0x6b0] sm:$0xff] }
 0x6f4   : > { %11279 = vmatmul.msk.f32.gmra.mxu0 %vm303_vm0, %v6025_v26  ;;  %11383 = vmatmul.msk.f32.gmra.mxu2 %vm303_vm0, %v6781_v23  ;;  %v6721_v13 = vadd.f32 %v6643_v58, %v6343_v42  ;;  %v8453_v26 = vld [vmem:[%s12070_s24 + $0x63] sm:$0xff] }
 0x6f5   : > { %9780 = vmatpush.msra.mxu2 %v11754_v9 }
 0x6f6   : > { %11331 = vmatmul.msk.f32.gmra.mxu1 %vm303_vm0, %v6403_v63  ;;  %v7496_v63 = vld [vmem:[%s12070_s24 + $0x29] sm:$0xff] }
 0x6f7   : > { %11435 = vmatmul.msk.f32.gmra.mxu3 %vm303_vm0, %v14908_v21  ;;  %v7021_v14 = vpop.f32.mrf.mxu2  ;;  %v8452_v21 = vld [vmem:[%s12070_s24 + $0x5b] sm:$0xff] }
 0x6f8   : > { %v7099_v10 = vadd.f32 %v7021_v14, %v6721_v13 }
 0x6f9   : > { %v6268_v49 = vpop.f32.mrf.mxu0 }
 0x6fa   : > { %v6344_v12 = vadd.f32 %v6268_v49, %v14459_v20  ;;  %v7399_v45 = vpop.f32.mrf.mxu3 }
 0x6fb   : > { %v15114_v34 = vadd.f32 %v7399_v45, %v7099_v10  ;;  %v6646_v11 = vpop.f32.mrf.mxu1  ;;  %v11903_v45 = vld [vmem:[%s12070_s24 + $0x68] sm:$0xff] }
 0x6fc   : > { %11444 = vmatmul.msk.f32.vlgmr.msrb.gmra.mxu0 %vm303_vm0, %v7494_v50  ;;  %11548 = vmatmul.msk.f32.vlgmr.msrb.gmra.mxu2 %vm303_vm0, %v11901_v44  ;;  %v6722_v31 = vadd.f32 %v6646_v11, %v6344_v12  ;;  %v7874_v50 = vld [vmem:[%s12070_s24 + $0x65] sm:$0xff]  ;;  %v11650_v12 = vld [vmem:[%s16278_s1 + $0x630] sm:$0xff] }
 0x6fd   : > { %v8454_v11 = vld [vmem:[%s12070_s24 + $0x6b] sm:$0xff]  ;;  %9024 = vmatpush.msra.mxu0 %v11650_v12 }
 0x6fe   : > { %11496 = vmatmul.msk.f32.vlgmr.msrb.gmra.mxu1 %vm303_vm0, %v7872_v57 }
 0x6ff   : > { %11600 = vmatmul.msk.f32.vlgmr.msrb.gmra.mxu3 %vm303_vm0, %v8452_v21  ;;  %v7024_v20 = vpop.f32.mrf.mxu2 }
 0x700   : > { %v7100_v15 = vadd.f32 %v7024_v20, %v6722_v31  ;;  %v7497_v20 = vld [vmem:[%s12070_s24 + $0x31] sm:$0xff] }
 0x701   : > { %v6271_v24 = vpop.f32.mrf.mxu0 }
 0x702   : > { %v6345_v59 = vadd.f32 %v6271_v24, %v14476_v17  ;;  %v7402_v60 = vpop.f32.mrf.mxu3 }
 0x703   : > { %v15125_v16 = vadd.f32 %v7402_v60, %v7100_v15  ;;  %v6649_v5 = vpop.f32.mrf.mxu1  ;;  %v7875_v60 = vld [vmem:[%s12070_s24 + $0x6d] sm:$0xff] }
 0x704   : > { %11445 = vmatmul.msk.f32.gmra.mxu0 %vm303_vm0, %v7495_v28  ;;  %11549 = vmatmul.msk.f32.gmra.mxu2 %vm303_vm0, %v11902_v18  ;;  %v6723_v23 = vadd.f32 %v6649_v5, %v6345_v59  ;;  %v11904_v5 = vld [vmem:[%s12070_s24 + $0x70] sm:$0xff] }
 0x706   : > { %11497 = vmatmul.msk.f32.gmra.mxu1 %vm303_vm0, %v7873_v52  ;;  %v8455_v52 = vld [vmem:[%s12070_s24 + $0x73] sm:$0xff] }
 0x707   : > { %11601 = vmatmul.msk.f32.gmra.mxu3 %vm303_vm0, %v8453_v26  ;;  %v7027_v17 = vpop.f32.mrf.mxu2 }
 0x708   : > { %v7101_v42 = vadd.f32 %v7027_v17, %v6723_v23  ;;  %v7498_v17 = vld [vmem:[%s12070_s24 + $0x39] sm:$0xff] }
 0x709   : > { %v6274_v58 = vpop.f32.mrf.mxu0 }
 0x70a   : > { %v6346_v13 = vadd.f32 %v6274_v58, %v14496_v62  ;;  %v7405_v14 = vpop.f32.mrf.mxu3  ;;  %v11702_v62 = vld [vmem:[%s16278_s1 + $0x670] sm:$0xff] }
 0x70b   : > { %v15139_v10 = vadd.f32 %v7405_v14, %v7101_v42  ;;  %v6652_v49 = vpop.f32.mrf.mxu1  ;;  %9402 = vmatpush.msra.mxu1 %v11702_v62  ;;  %v11905_v14 = vld [vmem:[%s12070_s24 + $0x78] sm:$0xff] }
 0x70c   : > { %11446 = vmatmul.msk.f32.gmra.mxu0 %vm303_vm0, %v7496_v63  ;;  %11550 = vmatmul.msk.f32.gmra.mxu2 %vm303_vm0, %v11903_v45  ;;  %v6724_v57 = vadd.f32 %v6652_v49, %v6346_v13  ;;  %v7876_v13 = vld [vmem:[%s12070_s24 + $0x75] sm:$0xff] }
 0x70d   : > { %v8456_v49 = vld [vmem:[%s12070_s24 + $0x7b] sm:$0xff] }
 0x70e   : > { %11498 = vmatmul.msk.f32.gmra.mxu1 %vm303_vm0, %v7874_v50 }
 0x70f   : > { %11602 = vmatmul.msk.f32.gmra.mxu3 %vm303_vm0, %v8454_v11  ;;  %v7030_v44 = vpop.f32.mrf.mxu2  ;;  %v7499_v11 = vld [vmem:[%s12070_s24 + $0x41] sm:$0xff] }
 0x710   : > { %v7102_v21 = vadd.f32 %v7030_v44, %v6724_v57 }
 0x711   : > { %v6277_v31 = vpop.f32.mrf.mxu0 }
 0x712   : > { %v6347_v15 = vadd.f32 %v6277_v31, %v14510_v32  ;;  %v7408_v24 = vpop.f32.mrf.mxu3  ;;  %v7877_v31 = vld [vmem:[%s12070_s24 + $0x7d] sm:$0xff] }
 0x713   : > { %v15156_v28 = vadd.f32 %v7408_v24, %v7102_v21  ;;  %v6655_v59 = vpop.f32.mrf.mxu1 }
 0x714   : > { %11447 = vmatmul.msk.f32.gmra.mxu0 %vm303_vm0, %v7497_v20  ;;  %11551 = vmatmul.msk.f32.gmra.mxu2 %vm303_vm0, %v11904_v5  ;;  %v6725_v18 = vadd.f32 %v6655_v59, %v6347_v15  ;;  %v11906_v20 = vld [vmem:[%s12070_s24 + $0x80] sm:$0xff]  ;;  %v7500_v5 = vld [vmem:[%s12070_s24 + $0x49] sm:$0xff] }
 0x715   : > { %v8457_v15 = vld [vmem:[%s12070_s24 + $0x83] sm:$0xff] }
 0x716   : > { %11499 = vmatmul.msk.f32.gmra.mxu1 %vm303_vm0, %v7875_v60 }
 0x717   : > { %11603 = vmatmul.msk.f32.gmra.mxu3 %vm303_vm0, %v8455_v52  ;;  %v7033_v32 = vpop.f32.mrf.mxu2  ;;  %v16289_v52 = vld [vmem:[#allocation2_spill] sm:$0xff] }
 0x718   : > { %v7103_v26 = vadd.f32 %v7033_v32, %v6725_v18 }
 0x719   : > { %v6280_v23 = vpop.f32.mrf.mxu0 }
 0x71a   : > { %v6348_v42 = vadd.f32 %v6280_v23, %v14524_v51  ;;  %v7411_v9 = vpop.f32.mrf.mxu3 }
 0x71b   : > { %v15167_v58 = vadd.f32 %v7411_v9, %v7103_v26  ;;  %v6658_v63 = vpop.f32.mrf.mxu1  ;;  %v8458_v9 = vld [vmem:[%s12070_s24 + $0x8b] sm:$0xff] }
 0x71c   : > { %11448 = vmatmul.msk.f32.gmra.mxu0 %vm303_vm0, %v7498_v17  ;;  %11552 = vmatmul.msk.f32.gmra.mxu2 %vm303_vm0, %v11905_v14  ;;  %v6726_v50 = vadd.f32 %v6658_v63, %v6348_v42  ;;  %v7878_v17 = vld [vmem:[%s12070_s24 + $0x85] sm:$0xff] }
 0x71d   : > { %v11907_v42 = vld [vmem:[%s12070_s24 + $0x88] sm:$0xff] }
 0x71e   : > { %11500 = vmatmul.msk.f32.gmra.mxu1 %vm303_vm0, %v7876_v13 }
 0x71f   : > { %11604 = vmatmul.msk.f32.gmra.mxu3 %vm303_vm0, %v8456_v49  ;;  %v7036_v51 = vpop.f32.mrf.mxu2 }
 0x720   : > { %v7104_v12 = vadd.f32 %v7036_v51, %v6726_v50  ;;  %v7501_v50 = vld [vmem:[%s12070_s24 + $0x51] sm:$0xff]  ;;  %v16290_v51 = vld [vmem:[#allocation3_spill] sm:$0xff] }
 0x721   : > { %v6283_v45 = vpop.f32.mrf.mxu0 }
 0x722   : > { %v6349_v62 = vadd.f32 %v6283_v45, %v14538_v3  ;;  %v7414_v57 = vpop.f32.mrf.mxu3 }
 0x723   : > { %v15178_v44 = vadd.f32 %v7414_v57, %v7104_v12  ;;  %v6661_v21 = vpop.f32.mrf.mxu1  ;;  %v7879_v57 = vld [vmem:[%s12070_s24 + $0x8d] sm:$0xff] }
 0x724   : > { %11449 = vmatmul.msk.f32.gmra.mxu0 %vm303_vm0, %v7499_v11  ;;  %11553 = vmatmul.msk.f32.gmra.mxu2 %vm303_vm0, %v11906_v20  ;;  %v6727_v24 = vadd.f32 %v6661_v21, %v6349_v62  ;;  %v11908_v21 = vld [vmem:[%s12070_s24 + $0x90] sm:$0xff]  ;;  %v11753_v20 = vld [vmem:[%s16278_s1 + $0x6a8] sm:$0xff] }
 0x725   : > { %9781 = vmatpush.msra.mxu2 %v11753_v20  ;;  %v7881_v20 = vld [vmem:[%s12070_s24 + $0x9d] sm:$0xff] }
 0x726   : > { %11501 = vmatmul.msk.f32.gmra.mxu1 %vm303_vm0, %v7877_v31  ;;  %v8459_v31 = vld [vmem:[%s12070_s24 + $0x93] sm:$0xff] }
 0x727   : > { %11605 = vmatmul.msk.f32.gmra.mxu3 %vm303_vm0, %v8457_v15  ;;  %v7039_v3 = vpop.f32.mrf.mxu2 }
 0x728   : > { %v7105_v59 = vadd.f32 %v7039_v3, %v6727_v24  ;;  %v11649_v3 = vld [vmem:[%s16278_s1 + $0x628] sm:$0xff] }
 0x729   : > { %v6286_v60 = vpop.f32.mrf.mxu0  ;;  %9025 = vmatpush.msra.mxu0 %v11649_v3 }
 0x72a   : > { %v6350_v18 = vadd.f32 %v6286_v60, %v16289_v52  ;;  %v7417_v32 = vpop.f32.mrf.mxu3  ;;  %v11701_v60 = vld [vmem:[%s16278_s1 + $0x668] sm:$0xff]  ;;  %v7502_v52 = vld [vmem:[%s12070_s24 + $0x59] sm:$0xff] }
 0x72b   : > { %v15189_v26 = vadd.f32 %v7417_v32, %v7105_v59  ;;  %v6664_v23 = vpop.f32.mrf.mxu1  ;;  %9403 = vmatpush.msra.mxu1 %v11701_v60 }
 0x72c   : > { %11450 = vmatmul.msk.f32.gmra.mxu0 %vm303_vm0, %v7500_v5  ;;  %11554 = vmatmul.msk.f32.gmra.mxu2 %vm303_vm0, %v11907_v42  ;;  %v6728_v63 = vadd.f32 %v6664_v23, %v6350_v18  ;;  %v16291_v18 = vld [vmem:[#allocation4_spill] sm:$0xff] }
 0x72e   : > { %11502 = vmatmul.msk.f32.gmra.mxu1 %vm303_vm0, %v7878_v17 }
 0x72f   : > { %11606 = vmatmul.msk.f32.gmra.mxu3 %vm303_vm0, %v8458_v9  ;;  %v7042_v13 = vpop.f32.mrf.mxu2  ;;  %v7880_v9 = vld [vmem:[%s12070_s24 + $0x95] sm:$0xff] }
 0x730   : > { %v7106_v14 = vadd.f32 %v7042_v13, %v6728_v63  ;;  %v11909_v63 = vld [vmem:[%s12070_s24 + $0x98] sm:$0xff] }
 0x731   : > { %v6289_v49 = vpop.f32.mrf.mxu0  ;;  %v8460_v13 = vld [vmem:[%s12070_s24 + $0x9b] sm:$0xff] }
 0x732   : > { %v6351_v12 = vadd.f32 %v6289_v49, %v16290_v51  ;;  %v7420_v45 = vpop.f32.mrf.mxu3 }
 0x733   : > { %v15200_v11 = vadd.f32 %v7420_v45, %v7106_v14  ;;  %v6667_v62 = vpop.f32.mrf.mxu1  ;;  %v16292_v45 = vld [vmem:[#allocation5_spill] sm:$0xff] }
 0x734   : > { %11451 = vmatmul.msk.f32.gmra.mxu0 %vm303_vm0, %v7501_v50  ;;  %11555 = vmatmul.msk.f32.gmra.mxu2 %vm303_vm0, %v11908_v21  ;;  %v6729_v15 = vadd.f32 %v6667_v62, %v6351_v12  ;;  %v7503_v12 = vld [vmem:[%s12070_s24 + $0x61] sm:$0xff] }
 0x736   : > { %11503 = vmatmul.msk.f32.gmra.mxu1 %vm303_vm0, %v7879_v57 }
 0x737   : > { %11607 = vmatmul.msk.f32.gmra.mxu3 %vm303_vm0, %v8459_v31  ;;  %v7045_v24 = vpop.f32.mrf.mxu2 }
 0x738   : > { %v7107_v59 = vadd.f32 %v7045_v24, %v6729_v15  ;;  %v11910_v15 = vld [vmem:[%s12070_s24 + $0xa0] sm:$0xff] }
 0x739   : > { %v6292_v5 = vpop.f32.mrf.mxu0  ;;  %v8461_v24 = vld [vmem:[%s12070_s24 + $0xa3] sm:$0xff] }
 0x73a   : > { %v6352_v32 = vadd.f32 %v6292_v5, %v16291_v18  ;;  %v7423_v23 = vpop.f32.mrf.mxu3  ;;  %v16293_v18 = vld [vmem:[#allocation6_spill] sm:$0xff] }
 0x73b   : > { %v15220_v17 = vadd.f32 %v7423_v23, %v7107_v59  ;;  %v6670_v42 = vpop.f32.mrf.mxu1 }
 0x73c   : > { %11452 = vmatmul.msk.f32.gmra.mxu0 %vm303_vm0, %v7502_v52  ;;  %11556 = vmatmul.msk.f32.gmra.mxu2 %vm303_vm0, %v11909_v63  ;;  %v6730_v14 = vadd.f32 %v6670_v42, %v6352_v32  ;;  %v7504_v52 = vld [vmem:[%s12070_s24 + $0x69] sm:$0xff] }
 0x73d   : > { %v7882_v63 = vld [vmem:[%s12070_s24 + $0xa5] sm:$0xff] }
 0x73e   : > { %11504 = vmatmul.msk.f32.gmra.mxu1 %vm303_vm0, %v7880_v9 }
 0x73f   : > { %11608 = vmatmul.msk.f32.gmra.mxu3 %vm303_vm0, %v8460_v13  ;;  %v7048_v49 = vpop.f32.mrf.mxu2  ;;  %v11911_v13 = vld [vmem:[%s12070_s24 + $0xa8] sm:$0xff] }
 0x740   : > { %v7108_v50 = vadd.f32 %v7048_v49, %v6730_v14  ;;  %v8462_v14 = vld [vmem:[%s12070_s24 + $0xab] sm:$0xff] }
 0x741   : > { %v6295_v51 = vpop.f32.mrf.mxu0 }
 0x742   : > { %v6353_v62 = vadd.f32 %v6295_v51, %v16292_v45  ;;  %v7426_v57 = vpop.f32.mrf.mxu3  ;;  %v7505_v45 = vld [vmem:[%s12070_s24 + $0x71] sm:$0xff] }
 0x743   : > { %v15231_v21 = vadd.f32 %v7426_v57, %v7108_v50  ;;  %v6673_v31 = vpop.f32.mrf.mxu1 }
 0x744   : > { %11453 = vmatmul.msk.f32.gmra.mxu0 %vm303_vm0, %v7503_v12  ;;  %11557 = vmatmul.msk.f32.gmra.mxu2 %vm303_vm0, %v11910_v15  ;;  %v6731_v3 = vadd.f32 %v6673_v31, %v6353_v62  ;;  %v16294_v62 = vld [vmem:[#allocation7_spill] sm:$0xff] }
 0x746   : > { %11505 = vmatmul.msk.f32.gmra.mxu1 %vm303_vm0, %v7881_v20 }
 0x747   : > { %11609 = vmatmul.msk.f32.gmra.mxu3 %vm303_vm0, %v8461_v24  ;;  %v7051_v59 = vpop.f32.mrf.mxu2  ;;  %v7883_v24 = vld [vmem:[%s12070_s24 + $0xad] sm:$0xff] }
 0x748   : > { %v7109_v60 = vadd.f32 %v7051_v59, %v6731_v3  ;;  %v11912_v3 = vld [vmem:[%s12070_s24 + $0xb0] sm:$0xff] }
 0x749   : > { %v6298_v5 = vpop.f32.mrf.mxu0  ;;  %v8463_v59 = vld [vmem:[%s12070_s24 + $0xb3] sm:$0xff] }
 0x74a   : > { %v6354_v32 = vadd.f32 %v6298_v5, %v16293_v18  ;;  %v7429_v23 = vpop.f32.mrf.mxu3 }
 0x74b   : > { %v15242_v42 = vadd.f32 %v7429_v23, %v7109_v60  ;;  %v6676_v9 = vpop.f32.mrf.mxu1  ;;  %v16295_v23 = vld [vmem:[#allocation8_spill] sm:$0xff] }
 0x74c   : > { %11454 = vmatmul.msk.f32.gmra.mxu0 %vm303_vm0, %v7504_v52  ;;  %11558 = vmatmul.msk.f32.gmra.mxu2 %vm303_vm0, %v11911_v13  ;;  %v6732_v49 = vadd.f32 %v6676_v9, %v6354_v32  ;;  %v7506_v32 = vld [vmem:[%s12070_s24 + $0x79] sm:$0xff] }
 0x74e   : > { %11506 = vmatmul.msk.f32.gmra.mxu1 %vm303_vm0, %v7882_v63 }
 0x74f   : > { %11610 = vmatmul.msk.f32.gmra.mxu3 %vm303_vm0, %v8462_v14  ;;  %v7054_v50 = vpop.f32.mrf.mxu2 }
 0x750   : > { %v7110_v51 = vadd.f32 %v7054_v50, %v6732_v49  ;;  %v7884_v49 = vld [vmem:[%s12070_s24 + $0xb5] sm:$0xff] }
 0x751   : > { %v6301_v12 = vpop.f32.mrf.mxu0  ;;  %v11913_v50 = vld [vmem:[%s12070_s24 + $0xb8] sm:$0xff] }
 0x752   : > { %v6355_v57 = vadd.f32 %v6301_v12, %v16294_v62  ;;  %v7432_v31 = vpop.f32.mrf.mxu3 }
 0x753   : > { %v15253_v20 = vadd.f32 %v7432_v31, %v7110_v51  ;;  %v6679_v15 = vpop.f32.mrf.mxu1  ;;  %v8464_v51 = vld [vmem:[%s12070_s24 + $0xbb] sm:$0xff] }
 0x754   : > { %11455 = vmatmul.msk.f32.gmra.mxu0 %vm303_vm0, %v7505_v45  ;;  %11559 = vmatmul.msk.f32.gmra.mxu2 %vm303_vm0, %v11912_v3  ;;  %v6733_v60 = vadd.f32 %v6679_v15, %v6355_v57  ;;  %v11752_v57 = vld [vmem:[%s16278_s1 + $0x6a0] sm:$0xff] }
 0x755   : > { %v7507_v15 = vld [vmem:[%s12070_s24 + $0x81] sm:$0xff]  ;;  %9782 = vmatpush.msra.mxu2 %v11752_v57 }
 0x756   : > { %11507 = vmatmul.msk.f32.gmra.mxu1 %vm303_vm0, %v7883_v24  ;;  %v7886_v57 = vld [vmem:[%s12070_s24 + $0xc5] sm:$0xff] }
 0x757   : > { %11611 = vmatmul.msk.f32.gmra.mxu3 %vm303_vm0, %v8463_v59  ;;  %v7057_v5 = vpop.f32.mrf.mxu2 }
 0x758   : > { %v7111_v52 = vadd.f32 %v7057_v5, %v6733_v60  ;;  %v7885_v5 = vld [vmem:[%s12070_s24 + $0xbd] sm:$0xff] }
 0x759   : > { %v6304_v18 = vpop.f32.mrf.mxu0 }
 0x75a   : > { %v6356_v9 = vadd.f32 %v6304_v18, %v16295_v23  ;;  %v7435_v63 = vpop.f32.mrf.mxu3  ;;  %v11914_v18 = vld [vmem:[%s12070_s24 + $0xc0] sm:$0xff]  ;;  %v10011_v23 = vld [vmem:[%s16279_s2 + $0x18] sm:$0xff] }
 0x75b   : > { %v15264_v13 = vadd.f32 %v7435_v63, %v7111_v52  ;;  %v6682_v14 = vpop.f32.mrf.mxu1  ;;  %v11648_v52 = vld [vmem:[%s16278_s1 + $0x620] sm:$0xff]  ;;  %10161 = vmatpush.msra.mxu3 %v10011_v23  ;;  %v7887_v23 = vld [vmem:[%s12070_s24 + $0xcd] sm:$0xff] }
 0x75c   : > { %11456 = vmatmul.msk.f32.gmra.mxu0 %vm303_vm0, %v7506_v32  ;;  %11560 = vmatmul.msk.f32.gmra.mxu2 %vm303_vm0, %v11913_v50  ;;  %v6734_v12 = vadd.f32 %v6682_v14, %v6356_v9  ;;  %v8465_v32 = vld [vmem:[%s12070_s24 + $0xc3] sm:$0xff] }
 0x75d   : > { %9026 = vmatpush.msra.mxu0 %v11648_v52  ;;  %v7508_v50 = vld [vmem:[%s12070_s24 + $0x89] sm:$0xff] }
 0x75e   : > { %11508 = vmatmul.msk.f32.gmra.mxu1 %vm303_vm0, %v7884_v49 }
 0x75f   : > { %11612 = vmatmul.msk.f32.gmra.mxu3 %vm303_vm0, %v8464_v51  ;;  %v7060_v45 = vpop.f32.mrf.mxu2 }
 0x760   : > { %v7112_v62 = vadd.f32 %v7060_v45, %v6734_v12 }
 0x761   : > { %v6307_v31 = vpop.f32.mrf.mxu0 }
 0x762   : > { %v6357_v24 = vadd.f32 %v6307_v31, %v14671_v30  ;;  %v7438_v3 = vpop.f32.mrf.mxu3  ;;  %v11700_v30 = vld [vmem:[%s16278_s1 + $0x660] sm:$0xff]  ;;  %v11915_v31 = vld [vmem:[%s12070_s24 + $0xc8] sm:$0xff] }
 0x763   : > { %v15278_v59 = vadd.f32 %v7438_v3, %v7112_v62  ;;  %v6685_v60 = vpop.f32.mrf.mxu1  ;;  %9404 = vmatpush.msra.mxu1 %v11700_v30 }
 0x764   : > { %11457 = vmatmul.msk.f32.gmra.mxu0 %vm303_vm0, %v7507_v15  ;;  %11561 = vmatmul.msk.f32.gmra.mxu2 %vm303_vm0, %v11914_v18  ;;  %v6735_v9 = vadd.f32 %v6685_v60, %v6357_v24  ;;  %v8466_v15 = vld [vmem:[%s12070_s24 + $0xcb] sm:$0xff] }
 0x766   : > { %11509 = vmatmul.msk.f32.gmra.mxu1 %vm303_vm0, %v7885_v5  ;;  %v7509_v5 = vld [vmem:[%s12070_s24 + $0x91] sm:$0xff] }
 0x767   : > { %11613 = vmatmul.msk.f32.gmra.mxu3 %vm303_vm0, %v8465_v32  ;;  %v7063_v63 = vpop.f32.mrf.mxu2 }
 0x768   : > { %v7113_v14 = vadd.f32 %v7063_v63, %v6735_v9  ;;  %v11916_v9 = vld [vmem:[%s12070_s24 + $0xd0] sm:$0xff] }
 0x769   : > { %v6310_v49 = vpop.f32.mrf.mxu0  ;;  %v8467_v63 = vld [vmem:[%s12070_s24 + $0xd3] sm:$0xff] }
 0x76a   : > { %v6358_v51 = vadd.f32 %v6310_v49, %v14685_v0  ;;  %v7441_v12 = vpop.f32.mrf.mxu3 }
 0x76b   : > { %v15298_v45 = vadd.f32 %v7441_v12, %v7113_v14  ;;  %v6688_v62 = vpop.f32.mrf.mxu1 }
 0x76c   : > { %11458 = vmatmul.msk.f32.gmra.mxu0 %vm303_vm0, %v7508_v50  ;;  %11562 = vmatmul.msk.f32.gmra.mxu2 %vm303_vm0, %v11915_v31  ;;  %v6736_v24 = vadd.f32 %v6688_v62, %v6358_v51  ;;  %v7510_v51 = vld [vmem:[%s12070_s24 + $0x99] sm:$0xff] }
 0x76e   : > { %11510 = vmatmul.msk.f32.gmra.mxu1 %vm303_vm0, %v7886_v57 }
 0x76f   : > { %11614 = vmatmul.msk.f32.gmra.mxu3 %vm303_vm0, %v8466_v15  ;;  %v7066_v0 = vpop.f32.mrf.mxu2  ;;  %v7888_v15 = vld [vmem:[%s12070_s24 + $0xd5] sm:$0xff] }
 0x770   : > { %v7114_v3 = vadd.f32 %v7066_v0, %v6736_v24  ;;  %v11917_v24 = vld [vmem:[%s12070_s24 + $0xd8] sm:$0xff] }
 0x771   : > { %v6313_v60 = vpop.f32.mrf.mxu0  ;;  %v8468_v0 = vld [vmem:[%s12070_s24 + $0xdb] sm:$0xff] }
 0x772   : > { %v6359_v52 = vadd.f32 %v6313_v60, %v14699_v47  ;;  %v7444_v18 = vpop.f32.mrf.mxu3 }
 0x773   : > { %v15309_v32 = vadd.f32 %v7444_v18, %v7114_v3  ;;  %v6691_v30 = vpop.f32.mrf.mxu1 }
 0x774   : > { %11459 = vmatmul.msk.f32.gmra.mxu0 %vm303_vm0, %v7509_v5  ;;  %11563 = vmatmul.msk.f32.gmra.mxu2 %vm303_vm0, %v11916_v9  ;;  %v6737_v14 = vadd.f32 %v6691_v30, %v6359_v52  ;;  %v7511_v52 = vld [vmem:[%s12070_s24 + $0xa1] sm:$0xff] }
 0x776   : > { %11511 = vmatmul.msk.f32.gmra.mxu1 %vm303_vm0, %v7887_v23 }
 0x777   : > { %11615 = vmatmul.msk.f32.gmra.mxu3 %vm303_vm0, %v8467_v63  ;;  %v7069_v47 = vpop.f32.mrf.mxu2  ;;  %v7889_v63 = vld [vmem:[%s12070_s24 + $0xdd] sm:$0xff] }
 0x778   : > { %v7115_v49 = vadd.f32 %v7069_v47, %v6737_v14  ;;  %v11918_v14 = vld [vmem:[%s12070_s24 + $0xe0] sm:$0xff] }
 0x779   : > { %v7696_v50 = vpop.f32.mrf.mxu0  ;;  %v8469_v47 = vld [vmem:[%s12070_s24 + $0xe3] sm:$0xff] }
 0x77a   : > { %v7447_v12 = vpop.f32.mrf.mxu3  ;;  %v7828_v62 = vadd.f32 %v7696_v50, %v14713_v22 }
 0x77b   : > { %v15320_v57 = vadd.f32 %v7447_v12, %v7115_v49  ;;  %v8074_v31 = vpop.f32.mrf.mxu1  ;;  %v7512_v12 = vld [vmem:[%s12070_s24 + $0xa9] sm:$0xff] }
 0x77c   : > { %11460 = vmatmul.msk.f32.gmra.mxu0 %vm303_vm0, %v7510_v51  ;;  %11564 = vmatmul.msk.f32.gmra.mxu2 %vm303_vm0, %v11917_v24  ;;  %v8206_v3 = vadd.f32 %v8074_v31, %v7828_v62 }
 0x77e   : > { %11512 = vmatmul.msk.f32.gmra.mxu1 %vm303_vm0, %v7888_v15 }
 0x77f   : > { %11616 = vmatmul.msk.f32.gmra.mxu3 %vm303_vm0, %v8468_v0  ;;  %v8276_v60 = vpop.f32.mrf.mxu2  ;;  %v7890_v0 = vld [vmem:[%s12070_s24 + $0xe5] sm:$0xff] }
 0x780   : > { %v8408_v22 = vadd.f32 %v8276_v60, %v8206_v3  ;;  %v11919_v3 = vld [vmem:[%s12070_s24 + $0xe8] sm:$0xff] }
 0x781   : > { %v7699_v5 = vpop.f32.mrf.mxu0  ;;  %v8470_v60 = vld [vmem:[%s12070_s24 + $0xeb] sm:$0xff] }
 0x782   : > { %v7829_v18 = vadd.f32 %v7699_v5, %v14727_v33  ;;  %v8654_v30 = vpop.f32.mrf.mxu3 }
 0x783   : > { %v15331_v23 = vadd.f32 %v8654_v30, %v8408_v22  ;;  %v8077_v9 = vpop.f32.mrf.mxu1  ;;  %v11751_v22 = vld [vmem:[%s16278_s1 + $0x698] sm:$0xff] }
 0x784   : > { %11461 = vmatmul.msk.f32.gmra.mxu0 %vm303_vm0, %v7511_v52  ;;  %11565 = vmatmul.msk.f32.gmra.mxu2 %vm303_vm0, %v11918_v14  ;;  %v8207_v49 = vadd.f32 %v8077_v9, %v7829_v18  ;;  %v11647_v52 = vld [vmem:[%s16278_s1 + $0x618] sm:$0xff] }
 0x785   : > { %9783 = vmatpush.msra.mxu2 %v11751_v22  ;;  %9027 = vmatpush.msra.mxu0 %v11647_v52  ;;  %v11699_v30 = vld [vmem:[%s16278_s1 + $0x658] sm:$0xff] }
 0x786   : > { %11513 = vmatmul.msk.f32.gmra.mxu1 %vm303_vm0, %v7889_v63  ;;  %v7513_v63 = vld [vmem:[%s12070_s24 + $0xb1] sm:$0xff] }
 0x787   : > { %11617 = vmatmul.msk.f32.gmra.mxu3 %vm303_vm0, %v8469_v47  ;;  %v8279_v33 = vpop.f32.mrf.mxu2  ;;  %9405 = vmatpush.msra.mxu1 %v11699_v30  ;;  %v11921_v52 = vld [vmem:[%s12070_s24 + $0xf8] sm:$0xff] }
 0x788   : > { %v8409_v50 = vadd.f32 %v8279_v33, %v8207_v49 }
 0x789   : > { %v7702_v51 = vpop.f32.mrf.mxu0 }
 0x78a   : > { %v7830_v62 = vadd.f32 %v7702_v51, %v14753_v61  ;;  %v8657_v31 = vpop.f32.mrf.mxu3  ;;  %v11920_v51 = vld [vmem:[%s12070_s24 + $0xf0] sm:$0xff] }
 0x78b   : > { %v15342_v15 = vadd.f32 %v8657_v31, %v8409_v50  ;;  %v8080_v24 = vpop.f32.mrf.mxu1  ;;  %v7891_v50 = vld [vmem:[%s12070_s24 + $0xed] sm:$0xff] }
 0x78c   : > { %11462 = vmatmul.msk.f32.gmra.mxu0 %vm303_vm0, %v7512_v12  ;;  %11566 = vmatmul.msk.f32.gmra.mxu2 %vm303_vm0, %v11919_v3  ;;  %v8208_v5 = vadd.f32 %v8080_v24, %v7830_v62  ;;  %v8471_v12 = vld [vmem:[%s12070_s24 + $0xf3] sm:$0xff] }
 0x78e   : > { %11514 = vmatmul.msk.f32.gmra.mxu1 %vm303_vm0, %v7890_v0  ;;  %v7514_v0 = vld [vmem:[%s12070_s24 + $0xb9] sm:$0xff] }
 0x78f   : > { %11618 = vmatmul.msk.f32.gmra.mxu3 %vm303_vm0, %v8470_v60  ;;  %v8282_v61 = vpop.f32.mrf.mxu2 }
 0x790   : > { %v8410_v18 = vadd.f32 %v8282_v61, %v8208_v5  ;;  %v7892_v61 = vld [vmem:[%s12070_s24 + $0xf5] sm:$0xff] }
 0x791   : > { %v7705_v9 = vpop.f32.mrf.mxu0 }
 0x792   : > { %v7831_v14 = vadd.f32 %v7705_v9, %v14767_v7  ;;  %v8660_v47 = vpop.f32.mrf.mxu3 }
 0x793   : > { %v15362_v49 = vadd.f32 %v8660_v47, %v8410_v18  ;;  %v8083_v33 = vpop.f32.mrf.mxu1  ;;  %v8472_v18 = vld [vmem:[%s12070_s24 + $0xfb] sm:$0xff] }
 0x794   : > { %11463 = vmatmul.msk.f32.gmra.mxu0 %vm303_vm0, %v7513_v63  ;;  %11567 = vmatmul.msk.f32.gmra.mxu2 %vm303_vm0, %v11920_v51  ;;  %v8209_v62 = vadd.f32 %v8083_v33, %v7831_v14  ;;  %v7515_v14 = vld [vmem:[%s12070_s24 + $0xc1] sm:$0xff] }
 0x796   : > { %11515 = vmatmul.msk.f32.gmra.mxu1 %vm303_vm0, %v7891_v50 }
 0x797   : > { %11619 = vmatmul.msk.f32.gmra.mxu3 %vm303_vm0, %v8471_v12  ;;  %v8285_v7 = vpop.f32.mrf.mxu2  ;;  %v7893_v12 = vld [vmem:[%s12070_s24 + $0xfd] sm:$0xff] }
 0x798   : > { %v8411_v31 = vadd.f32 %v8285_v7, %v8209_v62  ;;  %v11922_v62 = vld [vmem:[%s12070_s24 + $0x100] sm:$0xff] }
 0x799   : > { %v7708_v24 = vpop.f32.mrf.mxu0  ;;  %v8473_v7 = vld [vmem:[%s12070_s24 + $0x103] sm:$0xff] }
 0x79a   : > { %v7832_v3 = vadd.f32 %v7708_v24, %v14781_v29  ;;  %v8663_v60 = vpop.f32.mrf.mxu3 }
 0x79b   : > { %v15373_v22 = vadd.f32 %v8663_v60, %v8411_v31  ;;  %v8086_v5 = vpop.f32.mrf.mxu1 }
 0x79c   : > { %11464 = vmatmul.msk.f32.gmra.mxu0 %vm303_vm0, %v7514_v0  ;;  %11568 = vmatmul.msk.f32.gmra.mxu2 %vm303_vm0, %v11921_v52  ;;  %v8210_v30 = vadd.f32 %v8086_v5, %v7832_v3  ;;  %v7516_v3 = vld [vmem:[%s12070_s24 + $0xc9] sm:$0xff] }
 0x79e   : > { %11516 = vmatmul.msk.f32.gmra.mxu1 %vm303_vm0, %v7892_v61 }
 0x79f   : > { %11620 = vmatmul.msk.f32.gmra.mxu3 %vm303_vm0, %v8472_v18  ;;  %v8288_v29 = vpop.f32.mrf.mxu2  ;;  %v7894_v18 = vld [vmem:[%s12070_s24 + $0x105] sm:$0xff] }
 0x7a0   : > { %v8412_v9 = vadd.f32 %v8288_v29, %v8210_v30  ;;  %v11923_v30 = vld [vmem:[%s12070_s24 + $0x108] sm:$0xff] }
 0x7a1   : > { %v7711_v63 = vpop.f32.mrf.mxu0  ;;  %v8474_v29 = vld [vmem:[%s12070_s24 + $0x10b] sm:$0xff] }
 0x7a2   : > { %v7833_v47 = vadd.f32 %v7711_v63, %v14795_v1  ;;  %v8666_v33 = vpop.f32.mrf.mxu3 }
 0x7a3   : > { %v15384_v50 = vadd.f32 %v8666_v33, %v8412_v9  ;;  %v8089_v51 = vpop.f32.mrf.mxu1 }
 0x7a4   : > { %11465 = vmatmul.msk.f32.gmra.mxu0 %vm303_vm0, %v7515_v14  ;;  %11569 = vmatmul.msk.f32.gmra.mxu2 %vm303_vm0, %v11922_v62  ;;  %v8211_v31 = vadd.f32 %v8089_v51, %v7833_v47  ;;  %v7517_v47 = vld [vmem:[%s12070_s24 + $0xd1] sm:$0xff] }
 0x7a6   : > { %11517 = vmatmul.msk.f32.gmra.mxu1 %vm303_vm0, %v7893_v12 }
 0x7a7   : > { %11621 = vmatmul.msk.f32.gmra.mxu3 %vm303_vm0, %v8473_v7  ;;  %v8291_v1 = vpop.f32.mrf.mxu2  ;;  %v7895_v7 = vld [vmem:[%s12070_s24 + $0x10d] sm:$0xff] }
 0x7a8   : > { %v8413_v24 = vadd.f32 %v8291_v1, %v8211_v31  ;;  %v11924_v31 = vld [vmem:[%s12070_s24 + $0x110] sm:$0xff] }
 0x7a9   : > { %v7714_v0 = vpop.f32.mrf.mxu0  ;;  %v8475_v1 = vld [vmem:[%s12070_s24 + $0x113] sm:$0xff] }
 0x7aa   : > { %v7834_v60 = vadd.f32 %v7714_v0, %v14809_v8  ;;  %v8669_v5 = vpop.f32.mrf.mxu3 }
 0x7ab   : > { %v15395_v61 = vadd.f32 %v8669_v5, %v8413_v24  ;;  %v8092_v52 = vpop.f32.mrf.mxu1  ;;  %v7518_v5 = vld [vmem:[%s12070_s24 + $0xd9] sm:$0xff] }
 0x7ac   : > { %11466 = vmatmul.msk.f32.gmra.mxu0 %vm303_vm0, %v7516_v3  ;;  %11570 = vmatmul.msk.f32.gmra.mxu2 %vm303_vm0, %v11923_v30  ;;  %v8212_v9 = vadd.f32 %v8092_v52, %v7834_v60  ;;  %v11750_v3 = vld [vmem:[%s16278_s1 + $0x690] sm:$0xff] }
 0x7ad   : > { %9784 = vmatpush.msra.mxu2 %v11750_v3  ;;  %v7897_v3 = vld [vmem:[%s12070_s24 + $0x11d] sm:$0xff] }
 0x7ae   : > { %11518 = vmatmul.msk.f32.gmra.mxu1 %vm303_vm0, %v7894_v18 }
 0x7af   : > { %11622 = vmatmul.msk.f32.gmra.mxu3 %vm303_vm0, %v8474_v29  ;;  %v8294_v8 = vpop.f32.mrf.mxu2 }
 0x7b0   : > { %v8414_v63 = vadd.f32 %v8294_v8, %v8212_v9  ;;  %v7896_v9 = vld [vmem:[%s12070_s24 + $0x115] sm:$0xff] }
 0x7b1   : > { %v7717_v14 = vpop.f32.mrf.mxu0  ;;  %v11646_v8 = vld [vmem:[%s16278_s1 + $0x610] sm:$0xff] }
 0x7b2   : > { %v7835_v33 = vadd.f32 %v7717_v14, %v14826_v37  ;;  %v8672_v51 = vpop.f32.mrf.mxu3  ;;  %v8476_v14 = vld [vmem:[%s12070_s24 + $0x11b] sm:$0xff]  ;;  %9028 = vmatpush.msra.mxu0 %v11646_v8 }
 0x7b3   : > { %v15406_v12 = vadd.f32 %v8672_v51, %v8414_v63  ;;  %v8095_v62 = vpop.f32.mrf.mxu1  ;;  %v11925_v63 = vld [vmem:[%s12070_s24 + $0x118] sm:$0xff] }
 0x7b4   : > { %11467 = vmatmul.msk.f32.gmra.mxu0 %vm303_vm0, %v7517_v47  ;;  %11571 = vmatmul.msk.f32.gmra.mxu2 %vm303_vm0, %v11924_v31  ;;  %v8213_v24 = vadd.f32 %v8095_v62, %v7835_v33  ;;  %v10010_v47 = vld [vmem:[%s16279_s2 + $0x10] sm:$0xff]  ;;  %v7519_v31 = vld [vmem:[%s12070_s24 + $0xe1] sm:$0xff] }
 0x7b5   : > { %10162 = vmatpush.msra.mxu3 %v10010_v47  ;;  %v7898_v47 = vld [vmem:[%s12070_s24 + $0x125] sm:$0xff] }
 0x7b6   : > { %11519 = vmatmul.msk.f32.gmra.mxu1 %vm303_vm0, %v7895_v7 }
 0x7b7   : > { %11623 = vmatmul.msk.f32.gmra.mxu3 %vm303_vm0, %v8475_v1  ;;  %v8297_v37 = vpop.f32.mrf.mxu2 }
 0x7b8   : > { %v8415_v0 = vadd.f32 %v8297_v37, %v8213_v24 }
 0x7b9   : > { %v7720_v60 = vpop.f32.mrf.mxu0 }
 0x7ba   : > { %v7836_v52 = vadd.f32 %v7720_v60, %v14849_v36  ;;  %v8675_v18 = vpop.f32.mrf.mxu3  ;;  %v11698_v36 = vld [vmem:[%s16278_s1 + $0x650] sm:$0xff]  ;;  %v11926_v60 = vld [vmem:[%s12070_s24 + $0x120] sm:$0xff] }
 0x7bb   : > { %v15420_v30 = vadd.f32 %v8675_v18, %v8415_v0  ;;  %v8098_v29 = vpop.f32.mrf.mxu1  ;;  %9406 = vmatpush.msra.mxu1 %v11698_v36 }
 0x7bc   : > { %11468 = vmatmul.msk.f32.gmra.mxu0 %vm303_vm0, %v7518_v5  ;;  %11572 = vmatmul.msk.f32.gmra.mxu2 %vm303_vm0, %v11925_v63  ;;  %v8214_v33 = vadd.f32 %v8098_v29, %v7836_v52  ;;  %v8477_v5 = vld [vmem:[%s12070_s24 + $0x123] sm:$0xff] }
 0x7be   : > { %11520 = vmatmul.msk.f32.gmra.mxu1 %vm303_vm0, %v7896_v9  ;;  %v7520_v9 = vld [vmem:[%s12070_s24 + $0xe9] sm:$0xff] }
 0x7bf   : > { %11624 = vmatmul.msk.f32.gmra.mxu3 %vm303_vm0, %v8476_v14  ;;  %v8300_v51 = vpop.f32.mrf.mxu2 }
 0x7c0   : > { %v8416_v62 = vadd.f32 %v8300_v51, %v8214_v33  ;;  %v11927_v33 = vld [vmem:[%s12070_s24 + $0x128] sm:$0xff] }
 0x7c1   : > { %v7723_v7 = vpop.f32.mrf.mxu0  ;;  %v8478_v51 = vld [vmem:[%s12070_s24 + $0x12b] sm:$0xff] }
 0x7c2   : > { %v7837_v1 = vadd.f32 %v7723_v7, %v14863_v56  ;;  %v8678_v24 = vpop.f32.mrf.mxu3 }
 0x7c3   : > { %v15440_v37 = vadd.f32 %v8678_v24, %v8416_v62  ;;  %v8101_v0 = vpop.f32.mrf.mxu1 }
 0x7c4   : > { %11469 = vmatmul.msk.f32.gmra.mxu0 %vm303_vm0, %v7519_v31  ;;  %11573 = vmatmul.msk.f32.gmra.mxu2 %vm303_vm0, %v11926_v60  ;;  %v8215_v52 = vadd.f32 %v8101_v0, %v7837_v1  ;;  %v7521_v1 = vld [vmem:[%s12070_s24 + $0xf1] sm:$0xff] }
 0x7c6   : > { %11521 = vmatmul.msk.f32.gmra.mxu1 %vm303_vm0, %v7897_v3 }
 0x7c7   : > { %11625 = vmatmul.msk.f32.gmra.mxu3 %vm303_vm0, %v8477_v5  ;;  %v8303_v56 = vpop.f32.mrf.mxu2  ;;  %v7899_v5 = vld [vmem:[%s12070_s24 + $0x12d] sm:$0xff] }
 0x7c8   : > { %v8417_v18 = vadd.f32 %v8303_v56, %v8215_v52  ;;  %v11928_v52 = vld [vmem:[%s12070_s24 + $0x130] sm:$0xff] }
 0x7c9   : > { %v7726_v29 = vpop.f32.mrf.mxu0  ;;  %v8479_v56 = vld [vmem:[%s12070_s24 + $0x133] sm:$0xff] }
 0x7ca   : > { %v7838_v8 = vadd.f32 %v7726_v29, %v14877_v48  ;;  %v8681_v63 = vpop.f32.mrf.mxu3 }
 0x7cb   : > { %v15451_v14 = vadd.f32 %v8681_v63, %v8417_v18  ;;  %v8104_v36 = vpop.f32.mrf.mxu1 }
 0x7cc   : > { %11470 = vmatmul.msk.f32.gmra.mxu0 %vm303_vm0, %v7520_v9  ;;  %11574 = vmatmul.msk.f32.gmra.mxu2 %vm303_vm0, %v11927_v33  ;;  %v8216_v62 = vadd.f32 %v8104_v36, %v7838_v8  ;;  %v7522_v8 = vld [vmem:[%s12070_s24 + $0xf9] sm:$0xff] }
 0x7ce   : > { %11522 = vmatmul.msk.f32.gmra.mxu1 %vm303_vm0, %v7898_v47 }
 0x7cf   : > { %11626 = vmatmul.msk.f32.gmra.mxu3 %vm303_vm0, %v8478_v51  ;;  %v8306_v48 = vpop.f32.mrf.mxu2  ;;  %v7900_v51 = vld [vmem:[%s12070_s24 + $0x135] sm:$0xff] }
 0x7d0   : > { %v8418_v7 = vadd.f32 %v8306_v48, %v8216_v62  ;;  %v11929_v62 = vld [vmem:[%s12070_s24 + $0x138] sm:$0xff] }
 0x7d1   : > { %v7729_v31 = vpop.f32.mrf.mxu0  ;;  %v8480_v48 = vld [vmem:[%s12070_s24 + $0x13b] sm:$0xff] }
 0x7d2   : > { %v7839_v24 = vadd.f32 %v7729_v31, %v14891_v53  ;;  %v8684_v0 = vpop.f32.mrf.mxu3 }
 0x7d3   : > { %v15462_v3 = vadd.f32 %v8684_v0, %v8418_v7  ;;  %v8107_v60 = vpop.f32.mrf.mxu1 }
 0x7d4   : > { %11471 = vmatmul.msk.f32.gmra.mxu0 %vm303_vm0, %v7521_v1  ;;  %11575 = vmatmul.msk.f32.gmra.mxu2 %vm303_vm0, %v11928_v52  ;;  %v8217_v18 = vadd.f32 %v8107_v60, %v7839_v24  ;;  %v7523_v24 = vld [vmem:[%s12070_s24 + $0x101] sm:$0xff] }
 0x7d6   : > { %11523 = vmatmul.msk.f32.gmra.mxu1 %vm303_vm0, %v7899_v5 }
 0x7d7   : > { %11627 = vmatmul.msk.f32.gmra.mxu3 %vm303_vm0, %v8479_v56  ;;  %v8309_v53 = vpop.f32.mrf.mxu2  ;;  %v7901_v56 = vld [vmem:[%s12070_s24 + $0x13d] sm:$0xff] }
 0x7d8   : > { %v8419_v29 = vadd.f32 %v8309_v53, %v8217_v18  ;;  %v11930_v18 = vld [vmem:[%s12070_s24 + $0x140] sm:$0xff] }
 0x7d9   : > { %v7732_v9 = vpop.f32.mrf.mxu0  ;;  %v8481_v53 = vld [vmem:[%s12070_s24 + $0x143] sm:$0xff] }
 0x7da   : > { %v7840_v63 = vadd.f32 %v7732_v9, %v14905_v35  ;;  %v8687_v36 = vpop.f32.mrf.mxu3 }
 0x7db   : > { %v15473_v47 = vadd.f32 %v8687_v36, %v8419_v29  ;;  %v8110_v33 = vpop.f32.mrf.mxu1  ;;  %v11749_v29 = vld [vmem:[%s16278_s1 + $0x688] sm:$0xff] }
 0x7dc   : > { %11472 = vmatmul.msk.f32.gmra.mxu0 %vm303_vm0, %v7522_v8  ;;  %11576 = vmatmul.msk.f32.gmra.mxu2 %vm303_vm0, %v11929_v62  ;;  %v8218_v7 = vadd.f32 %v8110_v33, %v7840_v63  ;;  %v11645_v8 = vld [vmem:[%s16278_s1 + $0x608] sm:$0xff] }
 0x7dd   : > { %9785 = vmatpush.msra.mxu2 %v11749_v29  ;;  %9029 = vmatpush.msra.mxu0 %v11645_v8  ;;  %v11697_v36 = vld [vmem:[%s16278_s1 + $0x648] sm:$0xff]  ;;  %v11932_v8 = vld [vmem:[%s12070_s24 + $0x150] sm:$0xff] }
 0x7de   : > { %11524 = vmatmul.msk.f32.gmra.mxu1 %vm303_vm0, %v7900_v51  ;;  %v7524_v51 = vld [vmem:[%s12070_s24 + $0x109] sm:$0xff] }
 0x7df   : > { %11628 = vmatmul.msk.f32.gmra.mxu3 %vm303_vm0, %v8480_v48  ;;  %v8312_v35 = vpop.f32.mrf.mxu2  ;;  %9407 = vmatpush.msra.mxu1 %v11697_v36 }
 0x7e0   : > { %v8420_v31 = vadd.f32 %v8312_v35, %v8218_v7 }
 0x7e1   : > { %v7735_v1 = vpop.f32.mrf.mxu0 }
 0x7e2   : > { %v7841_v0 = vadd.f32 %v7735_v1, %v14931_v19  ;;  %v8690_v60 = vpop.f32.mrf.mxu3  ;;  %v11931_v1 = vld [vmem:[%s12070_s24 + $0x148] sm:$0xff] }
 0x7e3   : > { %v15484_v5 = vadd.f32 %v8690_v60, %v8420_v31  ;;  %v8113_v52 = vpop.f32.mrf.mxu1  ;;  %v7902_v31 = vld [vmem:[%s12070_s24 + $0x145] sm:$0xff] }
 0x7e4   : > { %11473 = vmatmul.msk.f32.gmra.mxu0 %vm303_vm0, %v7523_v24  ;;  %11577 = vmatmul.msk.f32.gmra.mxu2 %vm303_vm0, %v11930_v18  ;;  %v8219_v9 = vadd.f32 %v8113_v52, %v7841_v0  ;;  %v8482_v24 = vld [vmem:[%s12070_s24 + $0x14b] sm:$0xff] }
 0x7e6   : > { %11525 = vmatmul.msk.f32.gmra.mxu1 %vm303_vm0, %v7901_v56  ;;  %v7525_v56 = vld [vmem:[%s12070_s24 + $0x111] sm:$0xff] }
 0x7e7   : > { %11629 = vmatmul.msk.f32.gmra.mxu3 %vm303_vm0, %v8481_v53  ;;  %v8315_v19 = vpop.f32.mrf.mxu2 }
 0x7e8   : > { %v8421_v63 = vadd.f32 %v8315_v19, %v8219_v9  ;;  %v7903_v19 = vld [vmem:[%s12070_s24 + $0x14d] sm:$0xff] }
 0x7e9   : > { %v7738_v33 = vpop.f32.mrf.mxu0 }
 0x7ea   : > { %v7842_v62 = vadd.f32 %v7738_v33, %v14942_v46  ;;  %v8693_v48 = vpop.f32.mrf.mxu3 }
 0x7eb   : > { %v15504_v7 = vadd.f32 %v8693_v48, %v8421_v63  ;;  %v8116_v35 = vpop.f32.mrf.mxu1  ;;  %v8483_v63 = vld [vmem:[%s12070_s24 + $0x153] sm:$0xff] }
 0x7ec   : > { %11474 = vmatmul.msk.f32.gmra.mxu0 %vm303_vm0, %v7524_v51  ;;  %11578 = vmatmul.msk.f32.gmra.mxu2 %vm303_vm0, %v11931_v1  ;;  %v8220_v0 = vadd.f32 %v8116_v35, %v7842_v62  ;;  %v7526_v62 = vld [vmem:[%s12070_s24 + $0x119] sm:$0xff] }
 0x7ee   : > { %11526 = vmatmul.msk.f32.gmra.mxu1 %vm303_vm0, %v7902_v31 }
 0x7ef   : > { %11630 = vmatmul.msk.f32.gmra.mxu3 %vm303_vm0, %v8482_v24  ;;  %v8318_v46 = vpop.f32.mrf.mxu2  ;;  %v7904_v24 = vld [vmem:[%s12070_s24 + $0x155] sm:$0xff] }
 0x7f0   : > { %v8422_v60 = vadd.f32 %v8318_v46, %v8220_v0  ;;  %v11933_v0 = vld [vmem:[%s12070_s24 + $0x158] sm:$0xff] }
 0x7f1   : > { %v7741_v52 = vpop.f32.mrf.mxu0  ;;  %v8484_v46 = vld [vmem:[%s12070_s24 + $0x15b] sm:$0xff] }
 0x7f2   : > { %v7843_v18 = vadd.f32 %v7741_v52, %v14953_v40  ;;  %v8696_v53 = vpop.f32.mrf.mxu3 }
 0x7f3   : > { %v15515_v29 = vadd.f32 %v8696_v53, %v8422_v60  ;;  %v8119_v9 = vpop.f32.mrf.mxu1 }
 0x7f4   : > { %11475 = vmatmul.msk.f32.gmra.mxu0 %vm303_vm0, %v7525_v56  ;;  %11579 = vmatmul.msk.f32.gmra.mxu2 %vm303_vm0, %v11932_v8  ;;  %v8221_v36 = vadd.f32 %v8119_v9, %v7843_v18  ;;  %v7527_v18 = vld [vmem:[%s12070_s24 + $0x121] sm:$0xff] }
 0x7f6   : > { %11527 = vmatmul.msk.f32.gmra.mxu1 %vm303_vm0, %v7903_v19 }
 0x7f7   : > { %11631 = vmatmul.msk.f32.gmra.mxu3 %vm303_vm0, %v8483_v63  ;;  %v8321_v40 = vpop.f32.mrf.mxu2  ;;  %v7905_v63 = vld [vmem:[%s12070_s24 + $0x15d] sm:$0xff] }
 0x7f8   : > { %v8423_v33 = vadd.f32 %v8321_v40, %v8221_v36  ;;  %v11934_v36 = vld [vmem:[%s12070_s24 + $0x160] sm:$0xff] }
 0x7f9   : > { %v7744_v51 = vpop.f32.mrf.mxu0  ;;  %v8485_v40 = vld [vmem:[%s12070_s24 + $0x163] sm:$0xff] }
 0x7fa   : > { %v7844_v48 = vadd.f32 %v7744_v51, %v14964_v54  ;;  %v8699_v35 = vpop.f32.mrf.mxu3 }
 0x7fb   : > { %v15526_v31 = vadd.f32 %v8699_v35, %v8423_v33  ;;  %v8122_v1 = vpop.f32.mrf.mxu1 }
 0x7fc   : > { %11476 = vmatmul.msk.f32.gmra.mxu0 %vm303_vm0, %v7526_v62  ;;  %11580 = vmatmul.msk.f32.gmra.mxu2 %vm303_vm0, %v11933_v0  ;;  %v8222_v60 = vadd.f32 %v8122_v1, %v7844_v48  ;;  %v7528_v48 = vld [vmem:[%s12070_s24 + $0x129] sm:$0xff] }
 0x7fe   : > { %11528 = vmatmul.msk.f32.gmra.mxu1 %vm303_vm0, %v7904_v24 }
 0x7ff   : > { %11632 = vmatmul.msk.f32.gmra.mxu3 %vm303_vm0, %v8484_v46  ;;  %v8324_v54 = vpop.f32.mrf.mxu2  ;;  %v15551_v46 = vld [vmem:[%s12070_s24 + $0x165] sm:$0xff] }
 0x800   : > { %v8424_v52 = vadd.f32 %v8324_v54, %v8222_v60  ;;  %v11935_v60 = vld [vmem:[%s12070_s24 + $0x168] sm:$0xff] }
 0x801   : > { %v7747_v56 = vpop.f32.mrf.mxu0  ;;  %v8486_v54 = vld [vmem:[%s12070_s24 + $0x16b] sm:$0xff] }
 0x802   : > { %v7845_v53 = vadd.f32 %v7747_v56, %v14975_v43  ;;  %v8702_v9 = vpop.f32.mrf.mxu3 }
 0x803   : > { %v15537_v19 = vadd.f32 %v8702_v9, %v8424_v52  ;;  %v8125_v8 = vpop.f32.mrf.mxu1  ;;  %v7529_v9 = vld [vmem:[%s12070_s24 + $0x131] sm:$0xff] }
 0x804   : > { %11477 = vmatmul.msk.f32.gmra.mxu0 %vm303_vm0, %v7527_v18  ;;  %11581 = vmatmul.msk.f32.gmra.mxu2 %vm303_vm0, %v11934_v36  ;;  %v8223_v33 = vadd.f32 %v8125_v8, %v7845_v53  ;;  %v11748_v18 = vld [vmem:[%s16278_s1 + $0x680] sm:$0xff] }
 0x805   : > { %9786 = vmatpush.msra.mxu2 %v11748_v18 }
 0x806   : > { %11529 = vmatmul.msk.f32.gmra.mxu1 %vm303_vm0, %v7905_v63 }
 0x807   : > { %11633 = vmatmul.msk.f32.gmra.mxu3 %vm303_vm0, %v8485_v40  ;;  %v8327_v43 = vpop.f32.mrf.mxu2 }
 0x808   : > { %v8425_v51 = vadd.f32 %v8327_v43, %v8223_v33  ;;  %v15568_v33 = vld [vmem:[%s12070_s24 + $0x16d] sm:$0xff]  ;;  %v11644_v43 = vld [vmem:[%s16278_s1 + $0x600] sm:$0xff] }
 0x809   : > { %v7750_v62 = vpop.f32.mrf.mxu0  ;;  %9030 = vmatpush.msra.mxu0 %v11644_v43 }
 0x80a   : > { %v7846_v35 = vadd.f32 %v7750_v62, %v14989_v41  ;;  %v8705_v1 = vpop.f32.mrf.mxu3  ;;  %v8487_v62 = vld [vmem:[%s12070_s24 + $0x173] sm:$0xff] }
 0x80b   : > { %v15548_v24 = vadd.f32 %v8705_v1, %v8425_v51  ;;  %v8128_v0 = vpop.f32.mrf.mxu1  ;;  %v11936_v51 = vld [vmem:[%s12070_s24 + $0x170] sm:$0xff] }
 0x80c   : > { %11478 = vmatmul.msk.f32.gmra.mxu0 %vm303_vm0, %v7528_v48  ;;  %11582 = vmatmul.msk.f32.gmra.mxu2 %vm303_vm0, %v11935_v60  ;;  %v8224_v52 = vadd.f32 %v8128_v0, %v7846_v35  ;;  %v10009_v48 = vld [vmem:[%s16279_s2 + $0x8] sm:$0xff] }
 0x80d   : > { %10163 = vmatpush.msra.mxu3 %v10009_v48  ;;  %v15605_v48 = vld [vmem:[%s12070_s24 + $0x17d] sm:$0xff] }
 0x80e   : > { %11530 = vmatmul.msk.f32.gmra.mxu1 %vm303_vm0, %v15551_v46 }
 0x80f   : > { %11634 = vmatmul.msk.f32.gmra.mxu3 %vm303_vm0, %v8486_v54  ;;  %v8330_v41 = vpop.f32.mrf.mxu2  ;;  %v7530_v54 = vld [vmem:[%s12070_s24 + $0x139] sm:$0xff] }
 0x810   : > { %v8426_v56 = vadd.f32 %v8330_v41, %v8224_v52 }
 0x811   : > { %v7753_v53 = vpop.f32.mrf.mxu0 }
 0x812   : > { %v7847_v8 = vadd.f32 %v7753_v53, %v15009_v6  ;;  %v8708_v63 = vpop.f32.mrf.mxu3  ;;  %v11696_v6 = vld [vmem:[%s16278_s1 + $0x640] sm:$0xff]  ;;  %v15591_v53 = vld [vmem:[%s12070_s24 + $0x175] sm:$0xff] }
 0x813   : > { %v15565_v36 = vadd.f32 %v8708_v63, %v8426_v56  ;;  %v8131_v40 = vpop.f32.mrf.mxu1  ;;  %9408 = vmatpush.msra.mxu1 %v11696_v6 }
 0x814   : > { %11479 = vmatmul.msk.f32.gmra.mxu0 %vm303_vm0, %v7529_v9  ;;  %11583 = vmatmul.msk.f32.gmra.mxu2 %vm303_vm0, %v11936_v51  ;;  %v8225_v35 = vadd.f32 %v8131_v40, %v7847_v8  ;;  %v11937_v9 = vld [vmem:[%s12070_s24 + $0x178] sm:$0xff]  ;;  %v7531_v51 = vld [vmem:[%s12070_s24 + $0x141] sm:$0xff] }
 0x815   : > { %v8488_v8 = vld [vmem:[%s12070_s24 + $0x17b] sm:$0xff] }
 0x816   : > { %11531 = vmatmul.msk.f32.gmra.mxu1 %vm303_vm0, %v15568_v33 }
 0x817   : > { %11635 = vmatmul.msk.f32.gmra.mxu3 %vm303_vm0, %v8487_v62  ;;  %v8333_v1 = vpop.f32.mrf.mxu2 }
 0x818   : > { %v8427_v0 = vadd.f32 %v8333_v1, %v8225_v35  ;;  %v11938_v35 = vld [vmem:[%s12070_s24 + $0x180] sm:$0xff] }
 0x819   : > { %v7756_v60 = vpop.f32.mrf.mxu0  ;;  %v8489_v1 = vld [vmem:[%s12070_s24 + $0x183] sm:$0xff] }
 0x81a   : > { %v7848_v52 = vadd.f32 %v7756_v60, %v15020_v55  ;;  %v8711_v41 = vpop.f32.mrf.mxu3 }
 0x81b   : > { %v15588_v56 = vadd.f32 %v8711_v41, %v8427_v0  ;;  %v8134_v18 = vpop.f32.mrf.mxu1 }
 0x81c   : > { %11480 = vmatmul.msk.f32.gmra.mxu0 %vm303_vm0, %v7530_v54  ;;  %11584 = vmatmul.msk.f32.gmra.mxu2 %vm303_vm0, %v11937_v9  ;;  %v8226_v63 = vadd.f32 %v8134_v18, %v7848_v52  ;;  %v7532_v52 = vld [vmem:[%s12070_s24 + $0x149] sm:$0xff] }
 0x81d   : > { %v15619_v9 = vld [vmem:[%s12070_s24 + $0x185] sm:$0xff] }
 0x81e   : > { %11532 = vmatmul.msk.f32.gmra.mxu1 %vm303_vm0, %v15591_v53 }
 0x81f   : > { %11636 = vmatmul.msk.f32.gmra.mxu3 %vm303_vm0, %v8488_v8  ;;  %v8336_v55 = vpop.f32.mrf.mxu2  ;;  %v11939_v8 = vld [vmem:[%s12070_s24 + $0x188] sm:$0xff] }
 0x820   : > { %v15600_v40 = vadd.f32 %v8336_v55, %v8226_v63  ;;  %v8490_v63 = vld [vmem:[%s12070_s24 + $0x18b] sm:$0xff] }
 0x821   : > { %v7759_v43 = vpop.f32.mrf.mxu0 }
 0x822   : > { %v7849_v62 = vadd.f32 %v7759_v43, %v15031_v39 }
 0x823   : > { %v8137_v6 = vpop.f32.mrf.mxu1 }
 0x824   : > { %11481 = vmatmul.msk.f32.gmra.mxu0 %vm303_vm0, %v7531_v51  ;;  %11585 = vmatmul.msk.f32.gmra.mxu2 %vm303_vm0, %v11938_v35  ;;  %v8227_v0 = vadd.f32 %v8137_v6, %v7849_v62  ;;  %v7533_v62 = vld [vmem:[%s12070_s24 + $0x151] sm:$0xff] }
 0x826   : > { %11533 = vmatmul.msk.f32.gmra.mxu1 %vm303_vm0, %v15605_v48 }
 0x827   : > { %11637 = vmatmul.msk.f32.gmra.mxu3 %vm303_vm0, %v8489_v1  ;;  %v8339_v60 = vpop.f32.mrf.mxu2  ;;  %v15633_v1 = vld [vmem:[%s12070_s24 + $0x18d] sm:$0xff] }
 0x828   : > { %v15614_v39 = vadd.f32 %v8339_v60, %v8227_v0  ;;  %v11940_v0 = vld [vmem:[%s12070_s24 + $0x190] sm:$0xff] }
 0x829   : > { %v7762_v54 = vpop.f32.mrf.mxu0  ;;  %v8491_v60 = vld [vmem:[%s12070_s24 + $0x193] sm:$0xff] }
 0x82a   : > { %v7850_v41 = vadd.f32 %v7762_v54, %v15042_v25 }
 0x82b   : > { %v8140_v18 = vpop.f32.mrf.mxu1 }
 0x82c   : > { %11482 = vmatmul.msk.f32.gmra.mxu0 %vm303_vm0, %v7532_v52  ;;  %11586 = vmatmul.msk.f32.gmra.mxu2 %vm303_vm0, %v11939_v8  ;;  %v8228_v55 = vadd.f32 %v8140_v18, %v7850_v41  ;;  %v7534_v18 = vld [vmem:[%s12070_s24 + $0x159] sm:$0xff] }
 0x82e   : > { %11534 = vmatmul.msk.f32.gmra.mxu1 %vm303_vm0, %v15619_v9 }
 0x82f   : > { %11638 = vmatmul.msk.f32.gmra.mxu3 %vm303_vm0, %v8490_v63  ;;  %v8342_v43 = vpop.f32.mrf.mxu2 }
 0x830   : > { %v15628_v25 = vadd.f32 %v8342_v43, %v8228_v55  ;;  %v15647_v55 = vld [vmem:[%s12070_s24 + $0x195] sm:$0xff] }
 0x831   : > { %v7765_v51 = vpop.f32.mrf.mxu0  ;;  %v11941_v43 = vld [vmem:[%s12070_s24 + $0x198] sm:$0xff] }
 0x832   : > { %v7851_v6 = vadd.f32 %v7765_v51, %v15056_v38  ;;  %v8492_v51 = vld [vmem:[%s12070_s24 + $0x19b] sm:$0xff] }
 0x833   : > { %v8143_v35 = vpop.f32.mrf.mxu1 }
 0x834   : > { %11483 = vmatmul.msk.f32.gmra.mxu0 %vm303_vm0, %v7533_v62  ;;  %11587 = vmatmul.msk.f32.gmra.mxu2 %vm303_vm0, %v11940_v0  ;;  %v8229_v54 = vadd.f32 %v8143_v35, %v7851_v6  ;;  %v7535_v0 = vld [vmem:[%s12070_s24 + $0x161] sm:$0xff] }
 0x836   : > { %11535 = vmatmul.msk.f32.gmra.mxu1 %vm303_vm0, %v15633_v1 }
 0x837   : > { %11639 = vmatmul.msk.f32.gmra.mxu3 %vm303_vm0, %v8491_v60  ;;  %v8345_v52 = vpop.f32.mrf.mxu2 }
 0x838   : > { %v15642_v38 = vadd.f32 %v8345_v52, %v8229_v54  ;;  %v15661_v52 = vld [vmem:[%s12070_s24 + $0x19d] sm:$0xff] }
 0x839   : > { %v7768_v41 = vpop.f32.mrf.mxu0 }
 0x83a   : > { %v7852_v8 = vadd.f32 %v7768_v41, %v15082_v27  ;;  %v11942_v41 = vld [vmem:[%s12070_s24 + $0x1a0] sm:$0xff] }
 0x83b   : > { %v8146_v63 = vpop.f32.mrf.mxu1 }
 0x83c   : > { %11484 = vmatmul.msk.f32.gmra.mxu0 %vm303_vm0, %v7534_v18  ;;  %11588 = vmatmul.msk.f32.gmra.mxu2 %vm303_vm0, %v11941_v43  ;;  %v8230_v62 = vadd.f32 %v8146_v63, %v7852_v8  ;;  %v8493_v18 = vld [vmem:[%s12070_s24 + $0x1a3] sm:$0xff] }
 0x83e   : > { %11536 = vmatmul.msk.f32.gmra.mxu1 %vm303_vm0, %v15647_v55 }
 0x83f   : > { %11640 = vmatmul.msk.f32.gmra.mxu3 %vm303_vm0, %v8492_v51  ;;  %v8348_v6 = vpop.f32.mrf.mxu2  ;;  %v7536_v51 = vld [vmem:[%s12070_s24 + $0x169] sm:$0xff] }
 0x840   : > { %v15656_v27 = vadd.f32 %v8348_v6, %v8230_v62 }
 0x841   : > { %v7771_v35 = vpop.f32.mrf.mxu0 }
 0x842   : > { %v7853_v60 = vadd.f32 %v7771_v35, %v15093_v4  ;;  %v15675_v35 = vld [vmem:[%s12070_s24 + $0x1a5] sm:$0xff] }
 0x843   : > { %v8149_v54 = vpop.f32.mrf.mxu1 }
 0x844   : > { %11485 = vmatmul.msk.f32.gmra.mxu0 %vm303_vm0, %v7535_v0  ;;  %11589 = vmatmul.msk.f32.gmra.mxu2 %vm303_vm0, %v11942_v41  ;;  %v8231_v8 = vadd.f32 %v8149_v54, %v7853_v60  ;;  %v11943_v0 = vld [vmem:[%s12070_s24 + $0x1a8] sm:$0xff] }
 0x845   : > { %v8494_v60 = vld [vmem:[%s12070_s24 + $0x1ab] sm:$0xff] }
 0x846   : > { %11537 = vmatmul.msk.f32.gmra.mxu1 %vm303_vm0, %v15661_v52 }
 0x847   : > { %11641 = vmatmul.msk.f32.gmra.mxu3 %vm303_vm0, %v8493_v18  ;;  %v8351_v63 = vpop.f32.mrf.mxu2 }
 0x848   : > { %v15670_v4 = vadd.f32 %v8351_v63, %v8231_v8  ;;  %v7537_v8 = vld [vmem:[%s12070_s24 + $0x171] sm:$0xff] }
 0x849   : > { %v7774_v43 = vpop.f32.mrf.mxu0 }
 0x84a   : > { %16296 = vst [vmem:[#allocation2_spill] sm:$0xff] %v15670_v4  ;;  %v7854_v62 = vadd.f32 %v7774_v43, %v15104_v2  ;;  %v9209_v4 = vld [vmem:[%s12070_s24 + $0xa2] sm:$0xff] }
 0x84b   : > { %v8152_v6 = vpop.f32.mrf.mxu1 }
 0x84c   : > { %11486 = vmatmul.msk.f32.gmra.mxu0 %vm303_vm0, %v7536_v51  ;;  %11590 = vmatmul.msk.f32.gmra.mxu2 %vm303_vm0, %v11943_v0  ;;  %v8232_v54 = vadd.f32 %v8152_v6, %v7854_v62  ;;  %v15689_v51 = vld [vmem:[%s12070_s24 + $0x1ad] sm:$0xff] }
 0x84d   : > { %v11944_v62 = vld [vmem:[%s12070_s24 + $0x1b0] sm:$0xff] }
 0x84e   : > { %11538 = vmatmul.msk.f32.gmra.mxu1 %vm303_vm0, %v15675_v35  ;;  %v8495_v6 = vld [vmem:[%s12070_s24 + $0x1b3] sm:$0xff] }
 0x84f   : > { %11642 = vmatmul.msk.f32.gmra.mxu3 %vm303_vm0, %v8494_v60  ;;  %v8354_v41 = vpop.f32.mrf.mxu2 }
 0x850   : > { %v15684_v2 = vadd.f32 %v8354_v41, %v8232_v54  ;;  %v8830_v41 = vld [vmem:[%s12070_s24 + $0x97] sm:$0xff] }
 0x851   : > { %v7777_v18 = vpop.f32.mrf.mxu0 }
 0x852   : > { %16297 = vst [vmem:[#allocation3_spill] sm:$0xff] %v15684_v2  ;;  %v7855_v63 = vadd.f32 %v7777_v18, %v15114_v34  ;;  %v9586_v18 = vld [vmem:[%s12070_s24 + $0x9d] sm:$0xff] }
 0x853   : > { %v8155_v43 = vpop.f32.mrf.mxu1 }
 0x854   : > { %11487 = vmatmul.msk.f32.gmra.mxu0 %vm303_vm0, %v7537_v8  ;;  %11591 = vmatmul.msk.f32.gmra.mxu2 %vm303_vm0, %v11944_v62  ;;  %v8233_v0 = vadd.f32 %v8155_v43, %v7855_v63  ;;  %v9208_v62 = vld [vmem:[%s12070_s24 + $0x9a] sm:$0xff] }
 0x856   : > { %11539 = vmatmul.msk.f32.gmra.mxu1 %vm303_vm0, %v15689_v51 }
 0x857   : > { %11643 = vmatmul.msk.f32.gmra.mxu3 %vm303_vm0, %v8495_v6  ;;  %v8357_v60 = vpop.f32.mrf.mxu2 }
 0x858   : > { %v15698_v34 = vadd.f32 %v8357_v60, %v8233_v0  ;;  %v8831_v60 = vld [vmem:[%s12070_s24 + $0x9f] sm:$0xff] }
 0x859   : > { %v7780_v54 = vpop.f32.mrf.mxu0 }
 0x85a   : > { %16298 = vst [vmem:[#allocation4_spill] sm:$0xff] %v15698_v34  ;;  %v7856_v8 = vadd.f32 %v7780_v54, %v15125_v16  ;;  %v9587_v34 = vld [vmem:[%s12070_s24 + $0xa5] sm:$0xff] }
 0x85b   : > { %v8158_v2 = vpop.f32.mrf.mxu1 }
 0x85c   : > { %11652 = vmatmul.msk.f32.vlgmr.msra.gmra.mxu0 %vm303_vm0, %v8830_v41  ;;  %11756 = vmatmul.msk.f32.vlgmr.msra.gmra.mxu2 %vm303_vm0, %v9586_v18  ;;  %v8234_v63 = vadd.f32 %v8158_v2, %v7856_v8 }
 0x85e   : > { %11704 = vmatmul.msk.f32.vlgmr.msra.gmra.mxu1 %vm303_vm0, %v9208_v62  ;;  %v8832_v62 = vld [vmem:[%s12070_s24 + $0xa7] sm:$0xff] }
 0x85f   : > { %v8360_v43 = vpop.f32.mrf.mxu2 }
 0x860   : > { %v15707_v6 = vadd.f32 %v8360_v43, %v8234_v63  ;;  %v9588_v63 = vld [vmem:[%s12070_s24 + $0xad] sm:$0xff] }
 0x861   : > { %v7783_v0 = vpop.f32.mrf.mxu0 }
 0x862   : > { %v7857_v16 = vadd.f32 %v7783_v0, %v15139_v10  ;;  %v9210_v0 = vld [vmem:[%s12070_s24 + $0xaa] sm:$0xff] }
 0x863   : > { %v8161_v54 = vpop.f32.mrf.mxu1 }
 0x864   : > { %11653 = vmatmul.msk.f32.gmra.mxu0 %vm303_vm0, %v8831_v60  ;;  %11757 = vmatmul.msk.f32.gmra.mxu2 %vm303_vm0, %v9587_v34  ;;  %v8235_v2 = vadd.f32 %v8161_v54, %v7857_v16  ;;  %v8833_v54 = vld [vmem:[%s12070_s24 + $0xaf] sm:$0xff] }
 0x866   : > { %11705 = vmatmul.msk.f32.gmra.mxu1 %vm303_vm0, %v9209_v4  ;;  %v10008_v4 = vld [vmem:[%s16279_s2] sm:$0xff] }
 0x867   : > { %v8363_v41 = vpop.f32.mrf.mxu2  ;;  %10164 = vmatpush.msra.mxu3 %v10008_v4  ;;  %v8834_v4 = vld [vmem:[%s12070_s24 + $0xb7] sm:$0xff] }
 0x868   : > { %v15716_v18 = vadd.f32 %v8363_v41, %v8235_v2  ;;  %v9589_v2 = vld [vmem:[%s12070_s24 + $0xb5] sm:$0xff] }
 0x869   : > { %v7786_v8 = vpop.f32.mrf.mxu0 }
 0x86a   : > { %v7858_v43 = vadd.f32 %v7786_v8, %v15156_v28 }
 0x86b   : > { %v8164_v10 = vpop.f32.mrf.mxu1 }
 0x86c   : > { %11654 = vmatmul.msk.f32.gmra.mxu0 %vm303_vm0, %v8832_v62  ;;  %11758 = vmatmul.msk.f32.gmra.mxu2 %vm303_vm0, %v9588_v63  ;;  %v8236_v34 = vadd.f32 %v8164_v10, %v7858_v43  ;;  %v9211_v62 = vld [vmem:[%s12070_s24 + $0xb2] sm:$0xff] }
 0x86e   : > { %11706 = vmatmul.msk.f32.gmra.mxu1 %vm303_vm0, %v9210_v0 }
 0x86f   : > { %v8366_v60 = vpop.f32.mrf.mxu2 }
 0x870   : > { %v15728_v16 = vadd.f32 %v8366_v60, %v8236_v34  ;;  %v9590_v34 = vld [vmem:[%s12070_s24 + $0xbd] sm:$0xff]  ;;  %v15741_v60 = vpop.f32.mrf.mxu3 }
 0x871   : > { %v7789_v28 = vpop.f32.mrf.mxu0 }
 0x872   : > { %16299 = vst [vmem:[#allocation5_spill] sm:$0xff] %v15728_v16  ;;  %v7859_v41 = vadd.f32 %v7789_v28, %v15167_v58 }
 0x873   : > { %v8167_v8 = vpop.f32.mrf.mxu1 }
 0x874   : > { %11655 = vmatmul.msk.f32.gmra.mxu0 %vm303_vm0, %v8833_v54  ;;  %11759 = vmatmul.msk.f32.gmra.mxu2 %vm303_vm0, %v9589_v2  ;;  %v8237_v63 = vadd.f32 %v8167_v8, %v7859_v41  ;;  %v9212_v54 = vld [vmem:[%s12070_s24 + $0xba] sm:$0xff] }
 0x876   : > { %11707 = vmatmul.msk.f32.gmra.mxu1 %vm303_vm0, %v9211_v62 }
 0x877   : > { %v8369_v43 = vpop.f32.mrf.mxu2 }
 0x878   : > { %v15737_v10 = vadd.f32 %v8369_v43, %v8237_v63  ;;  %v8835_v63 = vld [vmem:[%s12070_s24 + $0xbf] sm:$0xff]  ;;  %v15754_v16 = vpop.f32.mrf.mxu3 }
 0x879   : > { %v7792_v0 = vpop.f32.mrf.mxu0  ;;  %v9591_v43 = vld [vmem:[%s12070_s24 + $0xc5] sm:$0xff] }
 0x87a   : > { %16300 = vst [vmem:[#allocation6_spill] sm:$0xff] %v15737_v10  ;;  %v7860_v58 = vadd.f32 %v7792_v0, %v15178_v44  ;;  %v9213_v10 = vld [vmem:[%s12070_s24 + $0xc2] sm:$0xff] }
 0x87b   : > { %v8170_v28 = vpop.f32.mrf.mxu1 }
 0x87c   : > { %11656 = vmatmul.msk.f32.gmra.mxu0 %vm303_vm0, %v8834_v4  ;;  %11760 = vmatmul.msk.f32.gmra.mxu2 %vm303_vm0, %v9590_v34  ;;  %v8238_v2 = vadd.f32 %v8170_v28, %v7860_v58 }
 0x87e   : > { %11708 = vmatmul.msk.f32.gmra.mxu1 %vm303_vm0, %v9212_v54  ;;  %v8836_v54 = vld [vmem:[%s12070_s24 + $0xc7] sm:$0xff] }
 0x87f   : > { %v8372_v41 = vpop.f32.mrf.mxu2 }
 0x880   : > { %v15748_v8 = vadd.f32 %v8372_v41, %v8238_v2  ;;  %v9592_v2 = vld [vmem:[%s12070_s24 + $0xcd] sm:$0xff] }
 0x881   : > { %v7795_v62 = vpop.f32.mrf.mxu0 }
 0x882   : > { %v7861_v44 = vadd.f32 %v7795_v62, %v15189_v26  ;;  %v9214_v62 = vld [vmem:[%s12070_s24 + $0xca] sm:$0xff] }
 0x883   : > { %v8173_v0 = vpop.f32.mrf.mxu1 }
 0x884   : > { %11657 = vmatmul.msk.f32.gmra.mxu0 %vm303_vm0, %v8835_v63  ;;  %11761 = vmatmul.msk.f32.gmra.mxu2 %vm303_vm0, %v9591_v43  ;;  %v8239_v4 = vadd.f32 %v8173_v0, %v7861_v44  ;;  %v15767_v63 = vpop.f32.mrf.mxu3 }
 0x886   : > { %11709 = vmatmul.msk.f32.gmra.mxu1 %vm303_vm0, %v9213_v10 }
 0x887   : > { %v8375_v34 = vpop.f32.mrf.mxu2 }
 0x888   : > { %v15759_v58 = vadd.f32 %v8375_v34, %v8239_v4  ;;  %v8837_v4 = vld [vmem:[%s12070_s24 + $0xcf] sm:$0xff] }
 0x889   : > { %v7798_v28 = vpop.f32.mrf.mxu0  ;;  %v9593_v34 = vld [vmem:[%s12070_s24 + $0xd5] sm:$0xff] }
 0x88a   : > { %16301 = vst [vmem:[#allocation7_spill] sm:$0xff] %v15759_v58  ;;  %v7862_v26 = vadd.f32 %v7798_v28, %v15200_v11 }
 0x88b   : > { %v8176_v41 = vpop.f32.mrf.mxu1 }
 0x88c   : > { %11658 = vmatmul.msk.f32.gmra.mxu0 %vm303_vm0, %v8836_v54  ;;  %11762 = vmatmul.msk.f32.gmra.mxu2 %vm303_vm0, %v9592_v2  ;;  %v8240_v10 = vadd.f32 %v8176_v41, %v7862_v26  ;;  %v9215_v54 = vld [vmem:[%s12070_s24 + $0xd2] sm:$0xff]  ;;  %v15779_v41 = vpop.f32.mrf.mxu3 }
 0x88e   : > { %11710 = vmatmul.msk.f32.gmra.mxu1 %vm303_vm0, %v9214_v62 }
 0x88f   : > { %v8378_v43 = vpop.f32.mrf.mxu2 }
 0x890   : > { %v15770_v44 = vadd.f32 %v8378_v43, %v8240_v10  ;;  %v8838_v43 = vld [vmem:[%s12070_s24 + $0xd7] sm:$0xff] }
 0x891   : > { %v7801_v0 = vpop.f32.mrf.mxu0 }
 0x892   : > { %16302 = vst [vmem:[#allocation8_spill] sm:$0xff] %v15770_v44  ;;  %v7863_v11 = vadd.f32 %v7801_v0, %v15220_v17  ;;  %v9594_v44 = vld [vmem:[%s12070_s24 + $0xdd] sm:$0xff] }
 0x893   : > { %v8179_v28 = vpop.f32.mrf.mxu1 }
 0x894   : > { %11659 = vmatmul.msk.f32.gmra.mxu0 %vm303_vm0, %v8837_v4  ;;  %11763 = vmatmul.msk.f32.gmra.mxu2 %vm303_vm0, %v9593_v34  ;;  %v8241_v2 = vadd.f32 %v8179_v28, %v7863_v11  ;;  %v9216_v4 = vld [vmem:[%s12070_s24 + $0xda] sm:$0xff] }
 0x896   : > { %11711 = vmatmul.msk.f32.gmra.mxu1 %vm303_vm0, %v9215_v54 }
 0x897   : > { %v8381_v26 = vpop.f32.mrf.mxu2 }
 0x898   : > { %v15781_v62 = vadd.f32 %v8381_v26, %v8241_v2  ;;  %v8839_v2 = vld [vmem:[%s12070_s24 + $0xdf] sm:$0xff] }
 0x899   : > { %v7804_v10 = vpop.f32.mrf.mxu0  ;;  %v9595_v26 = vld [vmem:[%s12070_s24 + $0xe5] sm:$0xff] }
 0x89a   : > { %16303 = vst [vmem:[#allocation9_spill] sm:$0xff] %v15781_v62  ;;  %v7864_v17 = vadd.f32 %v7804_v10, %v15231_v21  ;;  %v15794_v62 = vpop.f32.mrf.mxu3 }
 0x89b   : > { %v8182_v0 = vpop.f32.mrf.mxu1 }
 0x89c   : > { %11660 = vmatmul.msk.f32.gmra.mxu0 %vm303_vm0, %v8838_v43  ;;  %11764 = vmatmul.msk.f32.gmra.mxu2 %vm303_vm0, %v9594_v44  ;;  %v8242_v34 = vadd.f32 %v8182_v0, %v7864_v17  ;;  %v9217_v43 = vld [vmem:[%s12070_s24 + $0xe2] sm:$0xff] }
 0x89e   : > { %11712 = vmatmul.msk.f32.gmra.mxu1 %vm303_vm0, %v9216_v4 }
 0x89f   : > { %v8384_v11 = vpop.f32.mrf.mxu2 }
 0x8a0   : > { %v15790_v28 = vadd.f32 %v8384_v11, %v8242_v34  ;;  %v8840_v34 = vld [vmem:[%s12070_s24 + $0xe7] sm:$0xff] }
 0x8a1   : > { %v7807_v54 = vpop.f32.mrf.mxu0  ;;  %v9596_v11 = vld [vmem:[%s12070_s24 + $0xed] sm:$0xff] }
 0x8a2   : > { %16304 = vst [vmem:[#allocation10_spill] sm:$0xff] %v15790_v28  ;;  %v7865_v21 = vadd.f32 %v7807_v54, %v15242_v42  ;;  %v9218_v28 = vld [vmem:[%s12070_s24 + $0xea] sm:$0xff]  ;;  %v15807_v58 = vpop.f32.mrf.mxu3 }
 0x8a3   : > { %v8185_v10 = vpop.f32.mrf.mxu1 }
 0x8a4   : > { %11661 = vmatmul.msk.f32.gmra.mxu0 %vm303_vm0, %v8839_v2  ;;  %11765 = vmatmul.msk.f32.gmra.mxu2 %vm303_vm0, %v9595_v26  ;;  %v8243_v44 = vadd.f32 %v8185_v10, %v7865_v21 }
 0x8a6   : > { %11713 = vmatmul.msk.f32.gmra.mxu1 %vm303_vm0, %v9217_v43  ;;  %v8841_v43 = vld [vmem:[%s12070_s24 + $0xef] sm:$0xff] }
 0x8a7   : > { %v8387_v17 = vpop.f32.mrf.mxu2 }
 0x8a8   : > { %v15801_v0 = vadd.f32 %v8387_v17, %v8243_v44  ;;  %v9597_v44 = vld [vmem:[%s12070_s24 + $0xf5] sm:$0xff] }
 0x8a9   : > { %v7810_v4 = vpop.f32.mrf.mxu0 }
 0x8aa   : > { %v7866_v42 = vadd.f32 %v7810_v4, %v15253_v20  ;;  %v9219_v4 = vld [vmem:[%s12070_s24 + $0xf2] sm:$0xff] }
 0x8ab   : > { %v8188_v54 = vpop.f32.mrf.mxu1 }
 0x8ac   : > { %11662 = vmatmul.msk.f32.gmra.mxu0 %vm303_vm0, %v8840_v34  ;;  %11766 = vmatmul.msk.f32.gmra.mxu2 %vm303_vm0, %v9596_v11  ;;  %v8244_v2 = vadd.f32 %v8188_v54, %v7866_v42  ;;  %v15820_v34 = vpop.f32.mrf.mxu3 }
 0x8ae   : > { %11714 = vmatmul.msk.f32.gmra.mxu1 %vm303_vm0, %v9218_v28 }
 0x8af   : > { %v8390_v26 = vpop.f32.mrf.mxu2 }
 0x8b0   : > { %v15812_v21 = vadd.f32 %v8390_v26, %v8244_v2  ;;  %v8842_v2 = vld [vmem:[%s12070_s24 + $0xf7] sm:$0xff] }
 0x8b1   : > { %v7813_v10 = vpop.f32.mrf.mxu0  ;;  %v9598_v26 = vld [vmem:[%s12070_s24 + $0xfd] sm:$0xff] }
 0x8b2   : > { %16305 = vst [vmem:[#allocation11_spill] sm:$0xff] %v15812_v21  ;;  %v7867_v20 = vadd.f32 %v7813_v10, %v15264_v13 }
 0x8b3   : > { %v8191_v17 = vpop.f32.mrf.mxu1 }
 0x8b4   : > { %11663 = vmatmul.msk.f32.gmra.mxu0 %vm303_vm0, %v8841_v43  ;;  %11767 = vmatmul.msk.f32.gmra.mxu2 %vm303_vm0, %v9597_v44  ;;  %v8245_v28 = vadd.f32 %v8191_v17, %v7867_v20  ;;  %v9220_v43 = vld [vmem:[%s12070_s24 + $0xfa] sm:$0xff]  ;;  %v15832_v17 = vpop.f32.mrf.mxu3 }
 0x8b6   : > { %11715 = vmatmul.msk.f32.gmra.mxu1 %vm303_vm0, %v9219_v4 }
 0x8b7   : > { %v8393_v11 = vpop.f32.mrf.mxu2 }
 0x8b8   : > { %v15823_v42 = vadd.f32 %v8393_v11, %v8245_v28  ;;  %v8843_v11 = vld [vmem:[%s12070_s24 + $0xff] sm:$0xff] }
 0x8b9   : > { %v7816_v54 = vpop.f32.mrf.mxu0 }
 0x8ba   : > { %16306 = vst [vmem:[#allocation12_spill] sm:$0xff] %v15823_v42  ;;  %v7868_v13 = vadd.f32 %v7816_v54, %v15278_v59  ;;  %v9599_v42 = vld [vmem:[%s12070_s24 + $0x105] sm:$0xff] }
 0x8bb   : > { %v8194_v10 = vpop.f32.mrf.mxu1 }
 0x8bc   : > { %11664 = vmatmul.msk.f32.gmra.mxu0 %vm303_vm0, %v8842_v2  ;;  %11768 = vmatmul.msk.f32.gmra.mxu2 %vm303_vm0, %v9598_v26  ;;  %v8246_v44 = vadd.f32 %v8194_v10, %v7868_v13  ;;  %v9221_v2 = vld [vmem:[%s12070_s24 + $0x102] sm:$0xff] }
 0x8be   : > { %11716 = vmatmul.msk.f32.gmra.mxu1 %vm303_vm0, %v9220_v43 }
 0x8bf   : > { %v8396_v20 = vpop.f32.mrf.mxu2 }
 0x8c0   : > { %v15834_v4 = vadd.f32 %v8396_v20, %v8246_v44  ;;  %v8844_v44 = vld [vmem:[%s12070_s24 + $0x107] sm:$0xff] }
 0x8c1   : > { %v7819_v28 = vpop.f32.mrf.mxu0  ;;  %v9600_v20 = vld [vmem:[%s12070_s24 + $0x10d] sm:$0xff] }
 0x8c2   : > { %16307 = vst [vmem:[#allocation13_spill] sm:$0xff] %v15834_v4  ;;  %v7869_v59 = vadd.f32 %v7819_v28, %v15298_v45  ;;  %v15847_v4 = vpop.f32.mrf.mxu3 }
 0x8c3   : > { %v8197_v54 = vpop.f32.mrf.mxu1 }
 0x8c4   : > { %11665 = vmatmul.msk.f32.gmra.mxu0 %vm303_vm0, %v8843_v11  ;;  %11769 = vmatmul.msk.f32.gmra.mxu2 %vm303_vm0, %v9599_v42  ;;  %v8247_v26 = vadd.f32 %v8197_v54, %v7869_v59  ;;  %v9222_v11 = vld [vmem:[%s12070_s24 + $0x10a] sm:$0xff] }
 0x8c6   : > { %11717 = vmatmul.msk.f32.gmra.mxu1 %vm303_vm0, %v9221_v2 }
 0x8c7   : > { %v8399_v13 = vpop.f32.mrf.mxu2 }
 0x8c8   : > { %v15843_v10 = vadd.f32 %v8399_v13, %v8247_v26  ;;  %v8845_v26 = vld [vmem:[%s12070_s24 + $0x10f] sm:$0xff] }
 0x8c9   : > { %v7822_v43 = vpop.f32.mrf.mxu0  ;;  %v9601_v13 = vld [vmem:[%s12070_s24 + $0x115] sm:$0xff] }
 0x8ca   : > { %16308 = vst [vmem:[#allocation14_spill] sm:$0xff] %v15843_v10  ;;  %v7870_v45 = vadd.f32 %v7822_v43, %v15309_v32  ;;  %v9223_v10 = vld [vmem:[%s12070_s24 + $0x112] sm:$0xff]  ;;  %v15860_v21 = vpop.f32.mrf.mxu3 }
 0x8cb   : > { %v8200_v28 = vpop.f32.mrf.mxu1 }
 0x8cc   : > { %11666 = vmatmul.msk.f32.gmra.mxu0 %vm303_vm0, %v8844_v44  ;;  %11770 = vmatmul.msk.f32.gmra.mxu2 %vm303_vm0, %v9600_v20  ;;  %v8248_v42 = vadd.f32 %v8200_v28, %v7870_v45 }
 0x8ce   : > { %11718 = vmatmul.msk.f32.gmra.mxu1 %vm303_vm0, %v9222_v11  ;;  %v8846_v11 = vld [vmem:[%s12070_s24 + $0x117] sm:$0xff] }
 0x8cf   : > { %v8402_v59 = vpop.f32.mrf.mxu2 }
 0x8d0   : > { %v15854_v54 = vadd.f32 %v8402_v59, %v8248_v42  ;;  %v9602_v42 = vld [vmem:[%s12070_s24 + $0x11d] sm:$0xff] }
 0x8d1   : > { %v7825_v2 = vpop.f32.mrf.mxu0 }
 0x8d2   : > { %16309 = vst [vmem:[#allocation15_spill] sm:$0xff] %v15854_v54  ;;  %v7871_v32 = vadd.f32 %v7825_v2, %v15320_v57  ;;  %v9224_v2 = vld [vmem:[%s12070_s24 + $0x11a] sm:$0xff] }
 0x8d3   : > { %v8203_v43 = vpop.f32.mrf.mxu1 }
 0x8d4   : > { %11667 = vmatmul.msk.f32.gmra.mxu0 %vm303_vm0, %v8845_v26  ;;  %11771 = vmatmul.msk.f32.gmra.mxu2 %vm303_vm0, %v9601_v13  ;;  %v8249_v44 = vadd.f32 %v8203_v43, %v7871_v32  ;;  %v15873_v26 = vpop.f32.mrf.mxu3 }
 0x8d6   : > { %11719 = vmatmul.msk.f32.gmra.mxu1 %vm303_vm0, %v9223_v10 }
 0x8d7   : > { %v8405_v20 = vpop.f32.mrf.mxu2 }
 0x8d8   : > { %v15865_v45 = vadd.f32 %v8405_v20, %v8249_v44  ;;  %v8847_v44 = vld [vmem:[%s12070_s24 + $0x11f] sm:$0xff] }
 0x8d9   : > { %v9032_v28 = vpop.f32.mrf.mxu0  ;;  %v9603_v20 = vld [vmem:[%s12070_s24 + $0x125] sm:$0xff] }
 0x8da   : > { %16310 = vst [vmem:[#allocation16_spill] sm:$0xff] %v15865_v45  ;;  %v9164_v57 = vadd.f32 %v9032_v28, %v15331_v23 }
 0x8db   : > { %v9410_v59 = vpop.f32.mrf.mxu1 }
 0x8dc   : > { %11668 = vmatmul.msk.f32.gmra.mxu0 %vm303_vm0, %v8846_v11  ;;  %11772 = vmatmul.msk.f32.gmra.mxu2 %vm303_vm0, %v9602_v42  ;;  %v9542_v10 = vadd.f32 %v9410_v59, %v9164_v57  ;;  %v9225_v11 = vld [vmem:[%s12070_s24 + $0x122] sm:$0xff]  ;;  %v15884_v59 = vpop.f32.mrf.mxu3 }
 0x8de   : > { %11720 = vmatmul.msk.f32.gmra.mxu1 %vm303_vm0, %v9224_v2 }
 0x8df   : > { %v9788_v13 = vpop.f32.mrf.mxu2 }
 0x8e0   : > { %v9920_v32 = vadd.f32 %v9788_v13, %v9542_v10  ;;  %v9604_v13 = vld [vmem:[%s12070_s24 + $0x12d] sm:$0xff] }
 0x8e1   : > { %v9035_v43 = vpop.f32.mrf.mxu0 }
 0x8e2   : > { %v9964_v23 = vmax.f32 %v9920_v32, 0.0  ;;  %v9165_v28 = vadd.f32 %v9035_v43, %v15342_v15  ;;  %v8848_v15 = vld [vmem:[%s12070_s24 + $0x127] sm:$0xff] }
 0x8e3   : > { %v9413_v45 = vpop.f32.mrf.mxu1 }
 0x8e4   : > { %11669 = vmatmul.msk.f32.gmra.mxu0 %vm303_vm0, %v8847_v44  ;;  %11773 = vmatmul.msk.f32.gmra.mxu2 %vm303_vm0, %v9603_v20  ;;  %v9543_v42 = vadd.f32 %v9413_v45, %v9165_v28  ;;  %v9226_v20 = vld [vmem:[%s12070_s24 + $0x12a] sm:$0xff] }
 0x8e5   : > { %11800 = vmatmul.msk.f32.vlgmr.msra.gmra.mxu3 %vm10016_vm1, %v9964_v23 }
 0x8e6   : > { %11721 = vmatmul.msk.f32.gmra.mxu1 %vm303_vm0, %v9225_v11 }
 0x8e7   : > { %v9791_v57 = vpop.f32.mrf.mxu2 }
 0x8e8   : > { %v9921_v2 = vadd.f32 %v9791_v57, %v9543_v42  ;;  %v8849_v42 = vld [vmem:[%s12070_s24 + $0x12f] sm:$0xff] }
 0x8e9   : > { %v9038_v10 = vpop.f32.mrf.mxu0  ;;  %v9605_v57 = vld [vmem:[%s12070_s24 + $0x135] sm:$0xff] }
 0x8ea   : > { %v9965_v32 = vmax.f32 %v9921_v2, 0.0  ;;  %v9166_v43 = vadd.f32 %v9038_v10, %v15362_v49  ;;  %v15896_v49 = vpop.f32.mrf.mxu3 }
 0x8eb   : > { %v9416_v44 = vpop.f32.mrf.mxu1 }
 0x8ec   : > { %11670 = vmatmul.msk.f32.gmra.mxu0 %vm303_vm0, %v8848_v15  ;;  %11774 = vmatmul.msk.f32.gmra.mxu2 %vm303_vm0, %v9604_v13  ;;  %v9544_v45 = vadd.f32 %v9416_v44, %v9166_v43  ;;  %v9227_v13 = vld [vmem:[%s12070_s24 + $0x132] sm:$0xff] }
 0x8ed   : > { %11801 = vmatmul.msk.f32.gmra.mxu3 %vm10016_vm1, %v9965_v32 }
 0x8ee   : > { %11722 = vmatmul.msk.f32.gmra.mxu1 %vm303_vm0, %v9226_v20 }
 0x8ef   : > { %v9794_v23 = vpop.f32.mrf.mxu2 }
 0x8f0   : > { %v9922_v28 = vadd.f32 %v9794_v23, %v9544_v45  ;;  %v8850_v45 = vld [vmem:[%s12070_s24 + $0x137] sm:$0xff] }
 0x8f1   : > { %v9041_v11 = vpop.f32.mrf.mxu0  ;;  %v9606_v23 = vld [vmem:[%s12070_s24 + $0x13d] sm:$0xff] }
 0x8f2   : > { %v9966_v2 = vmax.f32 %v9922_v28, 0.0  ;;  %v9167_v10 = vadd.f32 %v9041_v11, %v15373_v22  ;;  %v15908_v54 = vpop.f32.mrf.mxu3 }
 0x8f3   : > { %v9419_v15 = vpop.f32.mrf.mxu1 }
 0x8f4   : > { %11671 = vmatmul.msk.f32.gmra.mxu0 %vm303_vm0, %v8849_v42  ;;  %11775 = vmatmul.msk.f32.gmra.mxu2 %vm303_vm0, %v9605_v57  ;;  %v9545_v32 = vadd.f32 %v9419_v15, %v9167_v10  ;;  %v9228_v42 = vld [vmem:[%s12070_s24 + $0x13a] sm:$0xff] }
 0x8f5   : > { %11802 = vmatmul.msk.f32.gmra.mxu3 %vm10016_vm1, %v9966_v2 }
 0x8f6   : > { %11723 = vmatmul.msk.f32.gmra.mxu1 %vm303_vm0, %v9227_v13  ;;  %v8851_v13 = vld [vmem:[%s12070_s24 + $0x13f] sm:$0xff] }
 0x8f7   : > { %v9797_v43 = vpop.f32.mrf.mxu2 }
 0x8f8   : > { %v9923_v44 = vadd.f32 %v9797_v43, %v9545_v32 }
 0x8f9   : > { %v9044_v20 = vpop.f32.mrf.mxu0 }
 0x8fa   : > { %v9967_v22 = vmax.f32 %v9923_v44, 0.0  ;;  %v9168_v28 = vadd.f32 %v9044_v20, %v15384_v50  ;;  %v9607_v50 = vld [vmem:[%s12070_s24 + $0x145] sm:$0xff] }
 0x8fb   : > { %v9422_v11 = vpop.f32.mrf.mxu1  ;;  %v9229_v20 = vld [vmem:[%s12070_s24 + $0x142] sm:$0xff] }
 0x8fc   : > { %11672 = vmatmul.msk.f32.gmra.mxu0 %vm303_vm0, %v8850_v45  ;;  %11776 = vmatmul.msk.f32.gmra.mxu2 %vm303_vm0, %v9606_v23  ;;  %v9546_v57 = vadd.f32 %v9422_v11, %v9168_v28  ;;  %v15921_v45 = vpop.f32.mrf.mxu3 }
 0x8fd   : > { %11803 = vmatmul.msk.f32.gmra.mxu3 %vm10016_vm1, %v9967_v22 }
 0x8fe   : > { %11724 = vmatmul.msk.f32.gmra.mxu1 %vm303_vm0, %v9228_v42  ;;  %v8852_v42 = vld [vmem:[%s12070_s24 + $0x147] sm:$0xff] }
 0x8ff   : > { %v9800_v2 = vpop.f32.mrf.mxu2 }
 0x900   : > { %v9924_v10 = vadd.f32 %v9800_v2, %v9546_v57 }
 0x901   : > { %v9047_v15 = vpop.f32.mrf.mxu0 }
 0x902   : > { %v9968_v32 = vmax.f32 %v9924_v10, 0.0  ;;  %v9169_v43 = vadd.f32 %v9047_v15, %v15395_v61  ;;  %v9608_v61 = vld [vmem:[%s12070_s24 + $0x14d] sm:$0xff] }
 0x903   : > { %v9425_v44 = vpop.f32.mrf.mxu1  ;;  %v9230_v15 = vld [vmem:[%s12070_s24 + $0x14a] sm:$0xff] }
 0x904   : > { %11673 = vmatmul.msk.f32.gmra.mxu0 %vm303_vm0, %v8851_v13  ;;  %11777 = vmatmul.msk.f32.gmra.mxu2 %vm303_vm0, %v9607_v50  ;;  %v9547_v23 = vadd.f32 %v9425_v44, %v9169_v43 }
 0x905   : > { %11804 = vmatmul.msk.f32.gmra.mxu3 %vm10016_vm1, %v9968_v32  ;;  %v15932_v32 = vpop.f32.mrf.mxu3 }
 0x906   : > { %11725 = vmatmul.msk.f32.gmra.mxu1 %vm303_vm0, %v9229_v20  ;;  %v9609_v20 = vld [vmem:[%s12070_s24 + $0x155] sm:$0xff] }
 0x907   : > { %v9803_v22 = vpop.f32.mrf.mxu2 }
 0x908   : > { %v9925_v28 = vadd.f32 %v9803_v22, %v9547_v23 }
 0x909   : > { %v9050_v11 = vpop.f32.mrf.mxu0 }
 0x90a   : > { %v9969_v57 = vmax.f32 %v9925_v28, 0.0  ;;  %v9170_v2 = vadd.f32 %v9050_v11, %v15406_v12  ;;  %v8853_v12 = vld [vmem:[%s12070_s24 + $0x14f] sm:$0xff] }
 0x90b   : > { %v9428_v10 = vpop.f32.mrf.mxu1  ;;  %v9231_v11 = vld [vmem:[%s12070_s24 + $0x152] sm:$0xff] }
 0x90c   : > { %11674 = vmatmul.msk.f32.gmra.mxu0 %vm303_vm0, %v8852_v42  ;;  %11778 = vmatmul.msk.f32.gmra.mxu2 %vm303_vm0, %v9608_v61  ;;  %v9548_v13 = vadd.f32 %v9428_v10, %v9170_v2  ;;  %v8854_v10 = vld [vmem:[%s12070_s24 + $0x157] sm:$0xff] }
 0x90d   : > { %11805 = vmatmul.msk.f32.gmra.mxu3 %vm10016_vm1, %v9969_v57 }
 0x90e   : > { %11726 = vmatmul.msk.f32.gmra.mxu1 %vm303_vm0, %v9230_v15  ;;  %v9610_v15 = vld [vmem:[%s12070_s24 + $0x15d] sm:$0xff] }
 0x90f   : > { %v9806_v50 = vpop.f32.mrf.mxu2 }
 0x910   : > { %v9926_v43 = vadd.f32 %v9806_v50, %v9548_v13  ;;  %v15944_v13 = vpop.f32.mrf.mxu3 }
 0x911   : > { %v9053_v44 = vpop.f32.mrf.mxu0 }
 0x912   : > { %v9970_v23 = vmax.f32 %v9926_v43, 0.0  ;;  %v9171_v22 = vadd.f32 %v9053_v44, %v15420_v30  ;;  %v9232_v44 = vld [vmem:[%s12070_s24 + $0x15a] sm:$0xff] }
 0x913   : > { %v9431_v28 = vpop.f32.mrf.mxu1 }
 0x914   : > { %11675 = vmatmul.msk.f32.gmra.mxu0 %vm303_vm0, %v8853_v12  ;;  %11779 = vmatmul.msk.f32.gmra.mxu2 %vm303_vm0, %v9609_v20  ;;  %v9549_v42 = vadd.f32 %v9431_v28, %v9171_v22  ;;  %v8855_v28 = vld [vmem:[%s12070_s24 + $0x15f] sm:$0xff] }
 0x915   : > { %11806 = vmatmul.msk.f32.gmra.mxu3 %vm10016_vm1, %v9970_v23 }
 0x916   : > { %11727 = vmatmul.msk.f32.gmra.mxu1 %vm303_vm0, %v9231_v11 }
 0x917   : > { %v9809_v61 = vpop.f32.mrf.mxu2 }
 0x918   : > { %v9927_v57 = vadd.f32 %v9809_v61, %v9549_v42  ;;  %v9233_v61 = vld [vmem:[%s12070_s24 + $0x162] sm:$0xff] }
 0x919   : > { %v9056_v2 = vpop.f32.mrf.mxu0 }
 0x91a   : > { %v9971_v30 = vmax.f32 %v9927_v57, 0.0  ;;  %v9172_v50 = vadd.f32 %v9056_v2, %v15440_v37  ;;  %v15955_v57 = vpop.f32.mrf.mxu3 }
 0x91b   : > { %v9434_v43 = vpop.f32.mrf.mxu1 }
 0x91c   : > { %11676 = vmatmul.msk.f32.gmra.mxu0 %vm303_vm0, %v8854_v10  ;;  %11780 = vmatmul.msk.f32.gmra.mxu2 %vm303_vm0, %v9610_v15  ;;  %v9550_v12 = vadd.f32 %v9434_v43, %v9172_v50 }
 0x91d   : > { %11807 = vmatmul.msk.f32.gmra.mxu3 %vm10016_vm1, %v9971_v30 }
 0x91e   : > { %11728 = vmatmul.msk.f32.gmra.mxu1 %vm303_vm0, %v9232_v44 }
 0x91f   : > { %v9812_v20 = vpop.f32.mrf.mxu2 }
 0x920   : > { %v9928_v23 = vadd.f32 %v9812_v20, %v9550_v12  ;;  %v9234_v12 = vld [vmem:[%s12070_s24 + $0x16a] sm:$0xff] }
 0x921   : > { %v9059_v22 = vpop.f32.mrf.mxu0 }
 0x922   : > { %v9972_v11 = vmax.f32 %v9928_v23, 0.0  ;;  %v9173_v42 = vadd.f32 %v9059_v22, %v15451_v14  ;;  %v8856_v14 = vld [vmem:[%s12070_s24 + $0x167] sm:$0xff] }
 0x923   : > { %v9437_v37 = vpop.f32.mrf.mxu1 }
 0x924   : > { %11677 = vmatmul.msk.f32.gmra.mxu0 %vm303_vm0, %v8855_v28  ;;  %11781 = vmatmul.msk.f32.gmra.mxu2 %vm303_vm0, %v15551_v46  ;;  %v9551_v2 = vadd.f32 %v9437_v37, %v9173_v42  ;;  %v15969_v46 = vpop.f32.mrf.mxu3 }
 0x925   : > { %11808 = vmatmul.msk.f32.gmra.mxu3 %vm10016_vm1, %v9972_v11 }
 0x926   : > { %11729 = vmatmul.msk.f32.gmra.mxu1 %vm303_vm0, %v9233_v61  ;;  %v9235_v61 = vld [vmem:[%s12070_s24 + $0x172] sm:$0xff] }
 0x927   : > { %v9815_v10 = vpop.f32.mrf.mxu2 }
 0x928   : > { %v9929_v15 = vadd.f32 %v9815_v10, %v9551_v2 }
 0x929   : > { %v9062_v30 = vpop.f32.mrf.mxu0 }
 0x92a   : > { %v9973_v50 = vmax.f32 %v9929_v15, 0.0  ;;  %v9174_v43 = vadd.f32 %v9062_v30, %v15462_v3  ;;  %v8857_v3 = vld [vmem:[%s12070_s24 + $0x16f] sm:$0xff] }
 0x92b   : > { %v9440_v44 = vpop.f32.mrf.mxu1 }
 0x92c   : > { %11678 = vmatmul.msk.f32.gmra.mxu0 %vm303_vm0, %v8856_v14  ;;  %11782 = vmatmul.msk.f32.gmra.mxu2 %vm303_vm0, %v15568_v33  ;;  %v9552_v20 = vadd.f32 %v9440_v44, %v9174_v43  ;;  %v15980_v10 = vpop.f32.mrf.mxu3  ;;  %v9236_v44 = vld [vmem:[%s12070_s24 + $0x17a] sm:$0xff] }
 0x92d   : > { %11809 = vmatmul.msk.f32.gmra.mxu3 %vm10016_vm1, %v9973_v50 }
 0x92e   : > { %11730 = vmatmul.msk.f32.gmra.mxu1 %vm303_vm0, %v9234_v12 }
 0x92f   : > { %v9818_v23 = vpop.f32.mrf.mxu2 }
 0x930   : > { %v9930_v22 = vadd.f32 %v9818_v23, %v9552_v20 }
 0x931   : > { %v9065_v28 = vpop.f32.mrf.mxu0 }
 0x932   : > { %v9974_v11 = vmax.f32 %v9930_v22, 0.0  ;;  %v9175_v42 = vadd.f32 %v9065_v28, %v15473_v47  ;;  %v8858_v47 = vld [vmem:[%s12070_s24 + $0x177] sm:$0xff]  ;;  %v8859_v22 = vld [vmem:[%s12070_s24 + $0x17f] sm:$0xff] }
 0x933   : > { %v9443_v37 = vpop.f32.mrf.mxu1 }
 0x934   : > { %11679 = vmatmul.msk.f32.gmra.mxu0 %vm303_vm0, %v8857_v3  ;;  %11783 = vmatmul.msk.f32.gmra.mxu2 %vm303_vm0, %v15591_v53  ;;  %v9553_v33 = vadd.f32 %v9443_v37, %v9175_v42  ;;  %v15991_v28 = vpop.f32.mrf.mxu3  ;;  %v9237_v42 = vld [vmem:[%s12070_s24 + $0x182] sm:$0xff] }
 0x935   : > { %11810 = vmatmul.msk.f32.gmra.mxu3 %vm10016_vm1, %v9974_v11 }
 0x936   : > { %11731 = vmatmul.msk.f32.gmra.mxu1 %vm303_vm0, %v9235_v61 }
 0x937   : > { %v9821_v2 = vpop.f32.mrf.mxu2 }
 0x938   : > { %v9931_v15 = vadd.f32 %v9821_v2, %v9553_v33  ;;  %v8860_v2 = vld [vmem:[%s12070_s24 + $0x187] sm:$0xff] }
 0x939   : > { %v9068_v30 = vpop.f32.mrf.mxu0 }
 0x93a   : > { %v9975_v14 = vmax.f32 %v9931_v15, 0.0  ;;  %v9176_v50 = vadd.f32 %v9068_v30, %v15484_v5 }
 0x93b   : > { %v9446_v43 = vpop.f32.mrf.mxu1 }
 0x93c   : > { %11680 = vmatmul.msk.f32.gmra.mxu0 %vm303_vm0, %v8858_v47  ;;  %11784 = vmatmul.msk.f32.gmra.mxu2 %vm303_vm0, %v15605_v48  ;;  %v9554_v53 = vadd.f32 %v9446_v43, %v9176_v50  ;;  %v9238_v47 = vld [vmem:[%s12070_s24 + $0x18a] sm:$0xff] }
 0x93d   : > { %11811 = vmatmul.msk.f32.gmra.mxu3 %vm10016_vm1, %v9975_v14  ;;  %v16003_v14 = vpop.f32.mrf.mxu3 }
 0x93e   : > { %11732 = vmatmul.msk.f32.gmra.mxu1 %vm303_vm0, %v9236_v44 }
 0x93f   : > { %v9824_v12 = vpop.f32.mrf.mxu2 }
 0x940   : > { %v9932_v20 = vadd.f32 %v9824_v12, %v9554_v53 }
 0x941   : > { %v9071_v23 = vpop.f32.mrf.mxu0 }
 0x942   : > { %v9976_v5 = vmax.f32 %v9932_v20, 0.0  ;;  %v9177_v3 = vadd.f32 %v9071_v23, %v15504_v7  ;;  %v9239_v23 = vld [vmem:[%s12070_s24 + $0x192] sm:$0xff] }
 0x943   : > { %v9449_v11 = vpop.f32.mrf.mxu1 }
 0x944   : > { %11681 = vmatmul.msk.f32.gmra.mxu0 %vm303_vm0, %v8859_v22  ;;  %11785 = vmatmul.msk.f32.gmra.mxu2 %vm303_vm0, %v15619_v9  ;;  %v9555_v48 = vadd.f32 %v9449_v11, %v9177_v3 }
 0x945   : > { %11812 = vmatmul.msk.f32.gmra.mxu3 %vm10016_vm1, %v9976_v5 }
 0x946   : > { %11733 = vmatmul.msk.f32.gmra.mxu1 %vm303_vm0, %v9237_v42 }
 0x947   : > { %v9827_v37 = vpop.f32.mrf.mxu2 }
 0x948   : > { %v9933_v61 = vadd.f32 %v9827_v37, %v9555_v48 }
 0x949   : > { %v9074_v33 = vpop.f32.mrf.mxu0 }
 0x94a   : > { %v9977_v15 = vmax.f32 %v9933_v61, 0.0  ;;  %v9178_v7 = vadd.f32 %v9074_v33, %v15515_v29  ;;  %v8861_v29 = vld [vmem:[%s12070_s24 + $0x18f] sm:$0xff]  ;;  %v9240_v61 = vld [vmem:[%s12070_s24 + $0x19a] sm:$0xff] }
 0x94b   : > { %v9452_v30 = vpop.f32.mrf.mxu1 }
 0x94c   : > { %11682 = vmatmul.msk.f32.gmra.mxu0 %vm303_vm0, %v8860_v2  ;;  %11786 = vmatmul.msk.f32.gmra.mxu2 %vm303_vm0, %v15633_v1  ;;  %v9556_v9 = vadd.f32 %v9452_v30, %v9178_v7  ;;  %v16017_v1 = vpop.f32.mrf.mxu3 }
 0x94d   : > { %11813 = vmatmul.msk.f32.gmra.mxu3 %vm10016_vm1, %v9977_v15 }
 0x94e   : > { %11734 = vmatmul.msk.f32.gmra.mxu1 %vm303_vm0, %v9238_v47 }
 0x94f   : > { %v9830_v50 = vpop.f32.mrf.mxu2 }
 0x950   : > { %v9934_v43 = vadd.f32 %v9830_v50, %v9556_v9  ;;  %v9241_v50 = vld [vmem:[%s12070_s24 + $0x1a2] sm:$0xff] }
 0x951   : > { %v9077_v44 = vpop.f32.mrf.mxu0 }
 0x952   : > { %v9978_v53 = vmax.f32 %v9934_v43, 0.0  ;;  %v9179_v12 = vadd.f32 %v9077_v44, %v15526_v31  ;;  %v8862_v31 = vld [vmem:[%s12070_s24 + $0x197] sm:$0xff] }
 0x953   : > { %v9455_v20 = vpop.f32.mrf.mxu1 }
 0x954   : > { %11683 = vmatmul.msk.f32.gmra.mxu0 %vm303_vm0, %v8861_v29  ;;  %11787 = vmatmul.msk.f32.gmra.mxu2 %vm303_vm0, %v15647_v55  ;;  %v9557_v22 = vadd.f32 %v9455_v20, %v9179_v12  ;;  %v16028_v2 = vpop.f32.mrf.mxu3  ;;  %v8864_v12 = vld [vmem:[%s12070_s24 + $0x1a7] sm:$0xff] }
 0x955   : > { %11814 = vmatmul.msk.f32.gmra.mxu3 %vm10016_vm1, %v9978_v53 }
 0x956   : > { %11735 = vmatmul.msk.f32.gmra.mxu1 %vm303_vm0, %v9239_v23 }
 0x957   : > { %v9833_v5 = vpop.f32.mrf.mxu2 }
 0x958   : > { %v9935_v3 = vadd.f32 %v9833_v5, %v9557_v22  ;;  %v9242_v5 = vld [vmem:[%s12070_s24 + $0x1aa] sm:$0xff] }
 0x959   : > { %v9080_v11 = vpop.f32.mrf.mxu0 }
 0x95a   : > { %v9979_v42 = vmax.f32 %v9935_v3, 0.0  ;;  %v9180_v48 = vadd.f32 %v9080_v11, %v15537_v19  ;;  %v8863_v19 = vld [vmem:[%s12070_s24 + $0x19f] sm:$0xff] }
 0x95b   : > { %v9458_v37 = vpop.f32.mrf.mxu1 }
 0x95c   : > { %11684 = vmatmul.msk.f32.gmra.mxu0 %vm303_vm0, %v8862_v31  ;;  %11788 = vmatmul.msk.f32.gmra.mxu2 %vm303_vm0, %v15661_v52  ;;  %v9558_v55 = vadd.f32 %v9458_v37, %v9180_v48  ;;  %v16041_v52 = vld [vmem:[%s16280_s3] ss:$0 sm:$0xff]  ;;  %v8865_v37 = vld [vmem:[%s12070_s24 + $0x1af] sm:$0xff] }
 0x95d   : > { %11815 = vmatmul.msk.f32.gmra.mxu3 %vm10016_vm1, %v9979_v42 }
 0x95e   : > { %11736 = vmatmul.msk.f32.gmra.mxu1 %vm303_vm0, %v9240_v61  ;;  %v9621_v61 = vld [vmem:[%s12070_s24 + $0x1b5] sm:$0xff] }
 0x95f   : > { %v9836_v33 = vpop.f32.mrf.mxu2 }
 0x960   : > { %v9936_v15 = vadd.f32 %v9836_v33, %v9558_v55 }
 0x961   : > { %v9083_v7 = vpop.f32.mrf.mxu0 }
 0x962   : > { %v9980_v30 = vmax.f32 %v9936_v15, 0.0  ;;  %v9181_v47 = vadd.f32 %v9083_v7, %v15548_v24  ;;  %v9243_v15 = vld [vmem:[%s12070_s24 + $0x1b2] sm:$0xff] }
 0x963   : > { %v9461_v9 = vpop.f32.mrf.mxu1 }
 0x964   : > { %11685 = vmatmul.msk.f32.gmra.mxu0 %vm303_vm0, %v8863_v19  ;;  %11789 = vmatmul.msk.f32.gmra.mxu2 %vm303_vm0, %v15675_v35  ;;  %v9559_v43 = vadd.f32 %v9461_v9, %v9181_v47 }
 0x965   : > { %11816 = vmatmul.msk.f32.gmra.mxu3 %vm10016_vm1, %v9980_v30  ;;  %v8806_v30 = vadd.f32 %v15741_v60, %v15600_v40 }
 0x966   : > { %11737 = vmatmul.msk.f32.gmra.mxu1 %vm303_vm0, %v9241_v50 }
 0x967   : > { %v9839_v24 = vpop.f32.mrf.mxu2 }
 0x968   : > { %v9937_v44 = vadd.f32 %v9839_v24, %v9559_v43  ;;  %v10166_v35 = vpop.f32.mrf.mxu3  ;;  %v8866_v43 = vld [vmem:[%s12070_s24 + $0x1b7] sm:$0xff] }
 0x969   : > { %v10167_v29 = vadd.f32 %v16041_v52, %v10166_v35  ;;  %v9086_v53 = vpop.f32.mrf.mxu0  ;;  %v9622_v24 = vld [vmem:[%s12070_s24 + $0x1bd] sm:$0xff] }
 0x96a   : > { %v9981_v20 = vmax.f32 %v9937_v44, 0.0  ;;  %v9182_v23 = vadd.f32 %v9086_v53, %v15565_v36  ;;  %v9244_v53 = vld [vmem:[%s12070_s24 + $0x1ba] sm:$0xff] }
 0x96b   : > { %10298 = vst [vmem:[%s16047_s27] sm:$0xff] %v10167_v29  ;;  %v9464_v22 = vpop.f32.mrf.mxu1 }
 0x96c   : > { %11686 = vmatmul.msk.f32.gmra.mxu0 %vm303_vm0, %v8864_v12  ;;  %11790 = vmatmul.msk.f32.gmra.mxu2 %vm303_vm0, %v15689_v51  ;;  %v9560_v3 = vadd.f32 %v9464_v22, %v9182_v23  ;;  %v8807_v12 = vadd.f32 %v15754_v16, %v15614_v39 }
 0x96d   : > { %11817 = vmatmul.msk.f32.gmra.mxu3 %vm10016_vm1, %v9981_v20 }
 0x96e   : > { %11738 = vmatmul.msk.f32.gmra.mxu1 %vm303_vm0, %v9242_v5 }
 0x96f   : > { %v9842_v11 = vpop.f32.mrf.mxu2 }
 0x970   : > { %v9938_v31 = vadd.f32 %v9842_v11, %v9560_v3  ;;  %v10169_v42 = vpop.f32.mrf.mxu3  ;;  %v8867_v3 = vld [vmem:[%s12070_s24 + $0x1bf] sm:$0xff] }
 0x971   : > { %v10170_v36 = vadd.f32 %v16041_v52, %v10169_v42  ;;  %v9089_v48 = vpop.f32.mrf.mxu0  ;;  %v9623_v11 = vld [vmem:[%s12070_s24 + $0x1c5] sm:$0xff] }
 0x972   : > { %v9982_v55 = vmax.f32 %v9938_v31, 0.0  ;;  %v9183_v33 = vadd.f32 %v9089_v48, %v15588_v56  ;;  %v9245_v48 = vld [vmem:[%s12070_s24 + $0x1c2] sm:$0xff] }
 0x973   : > { %10299 = vst [vmem:[%s16047_s27 + $0x8] sm:$0xff] %v10170_v36  ;;  %v9467_v51 = vpop.f32.mrf.mxu1 }
 0x974   : > { %11687 = vmatmul.msk.f32.gmra.mxu0 %vm303_vm0, %v8865_v37  ;;  %11791 = vmatmul.msk.f32.gmra.mxu2 %vm303_vm0, %v9621_v61  ;;  %v9561_v7 = vadd.f32 %v9467_v51, %v9183_v33  ;;  %v8808_v37 = vadd.f32 %v15767_v63, %v15628_v25 }
 0x975   : > { %11818 = vmatmul.msk.f32.gmra.mxu3 %vm10016_vm1, %v9982_v55 }
 0x976   : > { %11739 = vmatmul.msk.f32.gmra.mxu1 %vm303_vm0, %v9243_v15  ;;  %v8868_v15 = vld [vmem:[%s12070_s24 + $0x1c7] sm:$0xff] }
 0x977   : > { %v9845_v19 = vpop.f32.mrf.mxu2 }
 0x978   : > { %v9939_v56 = vadd.f32 %v9845_v19, %v9561_v7  ;;  %v10172_v47 = vpop.f32.mrf.mxu3  ;;  %v9624_v7 = vld [vmem:[%s12070_s24 + $0x1cd] sm:$0xff] }
 0x979   : > { %v10173_v9 = vadd.f32 %v16041_v52, %v10172_v47  ;;  %v9092_v50 = vpop.f32.mrf.mxu0  ;;  %v9246_v47 = vld [vmem:[%s12070_s24 + $0x1ca] sm:$0xff] }
 0x97a   : > { %v9983_v44 = vmax.f32 %v9939_v56, 0.0  ;;  %v9184_v35 = vadd.f32 %v9092_v50, %v8806_v30 }
 0x97b   : > { %10300 = vst [vmem:[%s16047_s27 + $0x10] sm:$0xff] %v10173_v9  ;;  %v9470_v29 = vpop.f32.mrf.mxu1  ;;  %v8809_v9 = vadd.f32 %v15779_v41, %v15642_v38 }
 0x97c   : > { %11688 = vmatmul.msk.f32.gmra.mxu0 %vm303_vm0, %v8866_v43  ;;  %11792 = vmatmul.msk.f32.gmra.mxu2 %vm303_vm0, %v9622_v24  ;;  %v9562_v40 = vadd.f32 %v9470_v29, %v9184_v35  ;;  %v8869_v35 = vld [vmem:[%s12070_s24 + $0x1cf] sm:$0xff] }
 0x97d   : > { %11819 = vmatmul.msk.f32.gmra.mxu3 %vm10016_vm1, %v9983_v44  ;;  %v9625_v29 = vld [vmem:[%s12070_s24 + $0x1d5] sm:$0xff] }
 0x97e   : > { %11740 = vmatmul.msk.f32.gmra.mxu1 %vm303_vm0, %v9244_v53 }
 0x97f   : > { %v9848_v60 = vpop.f32.mrf.mxu2 }
 0x980   : > { %v9940_v20 = vadd.f32 %v9848_v60, %v9562_v40  ;;  %v10175_v23 = vpop.f32.mrf.mxu3 }
 0x981   : > { %v10176_v22 = vadd.f32 %v16041_v52, %v10175_v23  ;;  %v9095_v5 = vpop.f32.mrf.mxu0 }
 0x982   : > { %v9984_v31 = vmax.f32 %v9940_v20, 0.0  ;;  %v9185_v42 = vadd.f32 %v9095_v5, %v8807_v12  ;;  %v9247_v12 = vld [vmem:[%s12070_s24 + $0x1d2] sm:$0xff]  ;;  %v8810_v20 = vadd.f32 %v15794_v62, %v15656_v27 }
 0x983   : > { %10301 = vst [vmem:[%s16047_s27 + $0x18] sm:$0xff] %v10176_v22  ;;  %v9473_v36 = vpop.f32.mrf.mxu1 }
 0x984   : > { %11689 = vmatmul.msk.f32.gmra.mxu0 %vm303_vm0, %v8867_v3  ;;  %11793 = vmatmul.msk.f32.gmra.mxu2 %vm303_vm0, %v9623_v11  ;;  %v9563_v39 = vadd.f32 %v9473_v36, %v9185_v42  ;;  %v8870_v11 = vld [vmem:[%s12070_s24 + $0x1d7] sm:$0xff] }
 0x985   : > { %11820 = vmatmul.msk.f32.gmra.mxu3 %vm10016_vm1, %v9984_v31  ;;  %v9626_v31 = vld [vmem:[%s12070_s24 + $0x1dd] sm:$0xff] }
 0x986   : > { %11741 = vmatmul.msk.f32.gmra.mxu1 %vm303_vm0, %v9245_v48 }
 0x987   : > { %v9851_v16 = vpop.f32.mrf.mxu2 }
 0x988   : > { %v9941_v61 = vadd.f32 %v9851_v16, %v9563_v39  ;;  %v10178_v55 = vpop.f32.mrf.mxu3  ;;  %v9248_v39 = vld [vmem:[%s12070_s24 + $0x1da] sm:$0xff] }
 0x989   : > { %v10179_v33 = vadd.f32 %v16041_v52, %v10178_v55  ;;  %v9098_v51 = vpop.f32.mrf.mxu0  ;;  %v16311_v16 = vld [vmem:[#allocation2_spill] sm:$0xff] }
 0x98a   : > { %v9985_v19 = vmax.f32 %v9941_v61, 0.0  ;;  %v9186_v30 = vadd.f32 %v9098_v51, %v8808_v37  ;;  %v8811_v37 = vadd.f32 %v15807_v58, %v16311_v16 }
 0x98b   : > { %10302 = vst [vmem:[%s16047_s27 + $0x20] sm:$0xff] %v10179_v33  ;;  %v9476_v56 = vpop.f32.mrf.mxu1 }
 0x98c   : > { %11690 = vmatmul.msk.f32.gmra.mxu0 %vm303_vm0, %v8868_v15  ;;  %11794 = vmatmul.msk.f32.gmra.mxu2 %vm303_vm0, %v9624_v7  ;;  %v9564_v25 = vadd.f32 %v9476_v56, %v9186_v30  ;;  %v8871_v15 = vld [vmem:[%s12070_s24 + $0x1df] sm:$0xff] }
 0x98d   : > { %11821 = vmatmul.msk.f32.gmra.mxu3 %vm10016_vm1, %v9985_v19  ;;  %v9627_v7 = vld [vmem:[%s12070_s24 + $0x1e5] sm:$0xff] }
 0x98e   : > { %11742 = vmatmul.msk.f32.gmra.mxu1 %vm303_vm0, %v9246_v47  ;;  %v9249_v47 = vld [vmem:[%s12070_s24 + $0x1e2] sm:$0xff] }
 0x98f   : > { %v9854_v63 = vpop.f32.mrf.mxu2 }
 0x990   : > { %v9942_v50 = vadd.f32 %v9854_v63, %v9564_v25  ;;  %v10181_v43 = vpop.f32.mrf.mxu3  ;;  %v16312_v63 = vld [vmem:[#allocation3_spill] sm:$0xff] }
 0x991   : > { %v10182_v24 = vadd.f32 %v16041_v52, %v10181_v43  ;;  %v9101_v44 = vpop.f32.mrf.mxu0 }
 0x992   : > { %v9986_v53 = vmax.f32 %v9942_v50, 0.0  ;;  %v9187_v40 = vadd.f32 %v9101_v44, %v8809_v9  ;;  %v8812_v9 = vadd.f32 %v15820_v34, %v16312_v63 }
 0x993   : > { %10303 = vst [vmem:[%s16047_s27 + $0x28] sm:$0xff] %v10182_v24  ;;  %v9479_v60 = vpop.f32.mrf.mxu1 }
 0x994   : > { %11691 = vmatmul.msk.f32.gmra.mxu0 %vm303_vm0, %v8869_v35  ;;  %11795 = vmatmul.msk.f32.gmra.mxu2 %vm303_vm0, %v9625_v29  ;;  %v9565_v38 = vadd.f32 %v9479_v60, %v9187_v40  ;;  %v8872_v35 = vld [vmem:[%s12070_s24 + $0x1e7] sm:$0xff] }
 0x995   : > { %11822 = vmatmul.msk.f32.gmra.mxu3 %vm10016_vm1, %v9986_v53  ;;  %v9628_v29 = vld [vmem:[%s12070_s24 + $0x1ed] sm:$0xff] }
 0x996   : > { %11743 = vmatmul.msk.f32.gmra.mxu1 %vm303_vm0, %v9247_v12  ;;  %v9250_v12 = vld [vmem:[%s12070_s24 + $0x1ea] sm:$0xff] }
 0x997   : > { %v9857_v41 = vpop.f32.mrf.mxu2 }
 0x998   : > { %v9943_v23 = vadd.f32 %v9857_v41, %v9565_v38  ;;  %v10184_v22 = vpop.f32.mrf.mxu3  ;;  %v16313_v41 = vld [vmem:[#allocation4_spill] sm:$0xff] }
 0x999   : > { %v10185_v5 = vadd.f32 %v16041_v52, %v10184_v22  ;;  %v9104_v3 = vpop.f32.mrf.mxu0 }
 0x99a   : > { %v9987_v42 = vmax.f32 %v9943_v23, 0.0  ;;  %v9188_v36 = vadd.f32 %v9104_v3, %v8810_v20  ;;  %v8813_v20 = vadd.f32 %v15832_v17, %v16313_v41 }
 0x99b   : > { %10304 = vst [vmem:[%s16047_s27 + $0x30] sm:$0xff] %v10185_v5  ;;  %v9482_v48 = vpop.f32.mrf.mxu1 }
 0x99c   : > { %11692 = vmatmul.msk.f32.gmra.mxu0 %vm303_vm0, %v8870_v11  ;;  %11796 = vmatmul.msk.f32.gmra.mxu2 %vm303_vm0, %v9626_v31  ;;  %v9566_v27 = vadd.f32 %v9482_v48, %v9188_v36  ;;  %v8873_v11 = vld [vmem:[%s12070_s24 + $0x1ef] sm:$0xff] }
 0x99d   : > { %11823 = vmatmul.msk.f32.gmra.mxu3 %vm10016_vm1, %v9987_v42  ;;  %v9629_v31 = vld [vmem:[%s12070_s24 + $0x1f5] sm:$0xff] }
 0x99e   : > { %11744 = vmatmul.msk.f32.gmra.mxu1 %vm303_vm0, %v9248_v39  ;;  %v9251_v39 = vld [vmem:[%s12070_s24 + $0x1f2] sm:$0xff] }
 0x99f   : > { %v9860_v62 = vpop.f32.mrf.mxu2 }
 0x9a0   : > { %v9944_v61 = vadd.f32 %v9860_v62, %v9566_v27  ;;  %v10187_v55 = vpop.f32.mrf.mxu3  ;;  %v8814_v62 = vadd.f32 %v15847_v4, %v15707_v6 }
 0x9a1   : > { %v10188_v33 = vadd.f32 %v16041_v52, %v10187_v55  ;;  %v9107_v51 = vpop.f32.mrf.mxu0 }
 0x9a2   : > { %v9988_v19 = vmax.f32 %v9944_v61, 0.0  ;;  %v9189_v30 = vadd.f32 %v9107_v51, %v8811_v37 }
 0x9a3   : > { %10305 = vst [vmem:[%s16047_s27 + $0x38] sm:$0xff] %v10188_v33  ;;  %v9485_v56 = vpop.f32.mrf.mxu1 }
 0x9a4   : > { %11693 = vmatmul.msk.f32.gmra.mxu0 %vm303_vm0, %v8871_v15  ;;  %11797 = vmatmul.msk.f32.gmra.mxu2 %vm303_vm0, %v9627_v7  ;;  %v9567_v58 = vadd.f32 %v9485_v56, %v9189_v30  ;;  %v8815_v30 = vadd.f32 %v15860_v21, %v15716_v18 }
 0x9a5   : > { %11824 = vmatmul.msk.f32.gmra.mxu3 %vm10016_vm1, %v9988_v19 }
 0x9a6   : > { %11745 = vmatmul.msk.f32.gmra.mxu1 %vm303_vm0, %v9249_v47 }
 0x9a7   : > { %v9863_v25 = vpop.f32.mrf.mxu2 }
 0x9a8   : > { %v9945_v50 = vadd.f32 %v9863_v25, %v9567_v58  ;;  %v10190_v43 = vpop.f32.mrf.mxu3 }
 0x9a9   : > { %v10191_v24 = vadd.f32 %v16041_v52, %v10190_v43  ;;  %v9110_v44 = vpop.f32.mrf.mxu0  ;;  %v16314_v43 = vld [vmem:[#allocation5_spill] sm:$0xff] }
 0x9aa   : > { %v9989_v53 = vmax.f32 %v9945_v50, 0.0  ;;  %v9190_v40 = vadd.f32 %v9110_v44, %v8812_v9 }
 0x9ab   : > { %10306 = vst [vmem:[%s16047_s27 + $0x40] sm:$0xff] %v10191_v24  ;;  %v9488_v60 = vpop.f32.mrf.mxu1  ;;  %v8816_v24 = vadd.f32 %v15873_v26, %v16314_v43 }
 0x9ac   : > { %11694 = vmatmul.msk.f32.gmra.mxu0 %vm303_vm0, %v8872_v35  ;;  %11798 = vmatmul.msk.f32.gmra.mxu2 %vm303_vm0, %v9628_v29  ;;  %v9568_v34 = vadd.f32 %v9488_v60, %v9190_v40 }
 0x9ad   : > { %11825 = vmatmul.msk.f32.gmra.mxu3 %vm10016_vm1, %v9989_v53 }
 0x9ae   : > { %11746 = vmatmul.msk.f32.gmra.mxu1 %vm303_vm0, %v9250_v12 }
 0x9af   : > { %v9866_v38 = vpop.f32.mrf.mxu2 }
 0x9b0   : > { %v9946_v23 = vadd.f32 %v9866_v38, %v9568_v34  ;;  %v10193_v22 = vpop.f32.mrf.mxu3  ;;  %v16315_v34 = vld [vmem:[#allocation6_spill] sm:$0xff] }
 0x9b1   : > { %v10194_v5 = vadd.f32 %v16041_v52, %v10193_v22  ;;  %v9113_v3 = vpop.f32.mrf.mxu0  ;;  %v8817_v38 = vadd.f32 %v15884_v59, %v16315_v34 }
 0x9b2   : > { %v9990_v42 = vmax.f32 %v9946_v23, 0.0  ;;  %v9191_v36 = vadd.f32 %v9113_v3, %v8813_v20 }
 0x9b3   : > { %10307 = vst [vmem:[%s16047_s27 + $0x48] sm:$0xff] %v10194_v5  ;;  %v9491_v48 = vpop.f32.mrf.mxu1 }
 0x9b4   : > { %11695 = vmatmul.msk.f32.gmra.mxu0 %vm303_vm0, %v8873_v11  ;;  %11799 = vmatmul.msk.f32.gmra.mxu2 %vm303_vm0, %v9629_v31  ;;  %v9569_v17 = vadd.f32 %v9491_v48, %v9191_v36 }
 0x9b5   : > { %11826 = vmatmul.msk.f32.gmra.mxu3 %vm10016_vm1, %v9990_v42  ;;  %v8818_v42 = vadd.f32 %v15896_v49, %v15748_v8 }
 0x9b6   : > { %11747 = vmatmul.msk.f32.gmra.mxu1 %vm303_vm0, %v9251_v39 }
 0x9b7   : > { %v9869_v27 = vpop.f32.mrf.mxu2 }
 0x9b8   : > { %v9947_v16 = vadd.f32 %v9869_v27, %v9569_v17  ;;  %v10196_v37 = vpop.f32.mrf.mxu3 }
 0x9b9   : > { %v10197_v61 = vadd.f32 %v16041_v52, %v10196_v37  ;;  %v9116_v55 = vpop.f32.mrf.mxu0 }
 0x9ba   : > { %v9991_v33 = vmax.f32 %v9947_v16, 0.0  ;;  %v9192_v51 = vadd.f32 %v9116_v55, %v8814_v62 }
 0x9bb   : > { %10308 = vst [vmem:[%s16047_s27 + $0x50] sm:$0xff] %v10197_v61  ;;  %v9494_v15 = vpop.f32.mrf.mxu1  ;;  %v16316_v61 = vld [vmem:[#allocation7_spill] sm:$0xff] }
 0x9bc   : > { %v9570_v7 = vadd.f32 %v9494_v15, %v9192_v51  ;;  %v8819_v55 = vadd.f32 %v15908_v54, %v16316_v61 }
 0x9bd   : > { %11827 = vmatmul.msk.f32.gmra.mxu3 %vm10016_vm1, %v9991_v33 }
 0x9bf   : > { %v9872_v19 = vpop.f32.mrf.mxu2 }
 0x9c0   : > { %v9948_v56 = vadd.f32 %v9872_v19, %v9570_v7  ;;  %v10199_v47 = vpop.f32.mrf.mxu3 }
 0x9c1   : > { %v10200_v6 = vadd.f32 %v16041_v52, %v10199_v47  ;;  %v9119_v4 = vpop.f32.mrf.mxu0  ;;  %v16317_v47 = vld [vmem:[#allocation8_spill] sm:$0xff] }
 0x9c2   : > { %v9992_v58 = vmax.f32 %v9948_v56, 0.0  ;;  %v9193_v25 = vadd.f32 %v9119_v4, %v8815_v30 }
 0x9c3   : > { %10309 = vst [vmem:[%s16047_s27 + $0x58] sm:$0xff] %v10200_v6  ;;  %v9497_v63 = vpop.f32.mrf.mxu1  ;;  %v8820_v6 = vadd.f32 %v15921_v45, %v16317_v47 }
 0x9c4   : > { %v9571_v9 = vadd.f32 %v9497_v63, %v9193_v25 }
 0x9c5   : > { %11828 = vmatmul.msk.f32.gmra.mxu3 %vm10016_vm1, %v9992_v58 }
 0x9c7   : > { %v9875_v50 = vpop.f32.mrf.mxu2 }
 0x9c8   : > { %v9949_v44 = vadd.f32 %v9875_v50, %v9571_v9  ;;  %v10202_v35 = vpop.f32.mrf.mxu3 }
 0x9c9   : > { %v10203_v18 = vadd.f32 %v16041_v52, %v10202_v35  ;;  %v9122_v21 = vpop.f32.mrf.mxu0 }
 0x9ca   : > { %v9993_v29 = vmax.f32 %v9949_v44, 0.0  ;;  %v9194_v53 = vadd.f32 %v9122_v21, %v8816_v24  ;;  %v16318_v44 = vld [vmem:[#allocation9_spill] sm:$0xff] }
 0x9cb   : > { %10310 = vst [vmem:[%s16047_s27 + $0x60] sm:$0xff] %v10203_v18  ;;  %v9500_v40 = vpop.f32.mrf.mxu1  ;;  %v8821_v35 = vadd.f32 %v15932_v32, %v16318_v44 }
 0x9cc   : > { %v9572_v60 = vadd.f32 %v9500_v40, %v9194_v53 }
 0x9cd   : > { %11829 = vmatmul.msk.f32.gmra.mxu3 %vm10016_vm1, %v9993_v29 }
 0x9cf   : > { %v9878_v12 = vpop.f32.mrf.mxu2 }
 0x9d0   : > { %v9950_v41 = vadd.f32 %v9878_v12, %v9572_v60  ;;  %v10205_v20 = vpop.f32.mrf.mxu3 }
 0x9d1   : > { %v10206_v26 = vadd.f32 %v16041_v52, %v10205_v20  ;;  %v9125_v23 = vpop.f32.mrf.mxu0 }
 0x9d2   : > { %v9994_v22 = vmax.f32 %v9950_v41, 0.0  ;;  %v9195_v5 = vadd.f32 %v9125_v23, %v8817_v38  ;;  %v16319_v38 = vld [vmem:[#allocation10_spill] sm:$0xff] }
 0x9d3   : > { %10311 = vst [vmem:[%s16047_s27 + $0x68] sm:$0xff] %v10206_v26  ;;  %v9503_v3 = vpop.f32.mrf.mxu1  ;;  %v8822_v41 = vadd.f32 %v15944_v13, %v16319_v38 }
 0x9d4   : > { %v9573_v11 = vadd.f32 %v9503_v3, %v9195_v5 }
 0x9d5   : > { %11830 = vmatmul.msk.f32.gmra.mxu3 %vm10016_vm1, %v9994_v22 }
 0x9d7   : > { %v9881_v31 = vpop.f32.mrf.mxu2 }
 0x9d8   : > { %v9951_v36 = vadd.f32 %v9881_v31, %v9573_v11  ;;  %v10208_v48 = vpop.f32.mrf.mxu3 }
 0x9d9   : > { %v10209_v59 = vadd.f32 %v16041_v52, %v10208_v48  ;;  %v9128_v39 = vpop.f32.mrf.mxu0 }
 0x9da   : > { %v9995_v17 = vmax.f32 %v9951_v36, 0.0  ;;  %v9196_v27 = vadd.f32 %v9128_v39, %v8818_v42  ;;  %v8823_v42 = vadd.f32 %v15955_v57, %v15801_v0 }
 0x9db   : > { %10312 = vst [vmem:[%s16047_s27 + $0x70] sm:$0xff] %v10209_v59  ;;  %v9506_v62 = vpop.f32.mrf.mxu1 }
 0x9dc   : > { %v9574_v16 = vadd.f32 %v9506_v62, %v9196_v27 }
 0x9dd   : > { %11831 = vmatmul.msk.f32.gmra.mxu3 %vm10016_vm1, %v9995_v17 }
 0x9df   : > { %v9884_v37 = vpop.f32.mrf.mxu2 }
 0x9e0   : > { %v9952_v33 = vadd.f32 %v9884_v37, %v9574_v16  ;;  %v10211_v51 = vpop.f32.mrf.mxu3  ;;  %v16320_v37 = vld [vmem:[#allocation11_spill] sm:$0xff] }
 0x9e1   : > { %v10212_v8 = vadd.f32 %v16041_v52, %v10211_v51  ;;  %v9131_v49 = vpop.f32.mrf.mxu0  ;;  %v8824_v61 = vadd.f32 %v15969_v46, %v16320_v37 }
 0x9e2   : > { %v9996_v15 = vmax.f32 %v9952_v33, 0.0  ;;  %v9197_v7 = vadd.f32 %v9131_v49, %v8819_v55 }
 0x9e3   : > { %10313 = vst [vmem:[%s16047_s27 + $0x78] sm:$0xff] %v10212_v8  ;;  %v9509_v19 = vpop.f32.mrf.mxu1 }
 0x9e4   : > { %v9575_v30 = vadd.f32 %v9509_v19, %v9197_v7  ;;  %v16321_v19 = vld [vmem:[#allocation12_spill] sm:$0xff] }
 0x9e5   : > { %11832 = vmatmul.msk.f32.gmra.mxu3 %vm10016_vm1, %v9996_v15 }
 0x9e7   : > { %v9887_v56 = vpop.f32.mrf.mxu2 }
 0x9e8   : > { %v9953_v4 = vadd.f32 %v9887_v56, %v9575_v30  ;;  %v10214_v58 = vpop.f32.mrf.mxu3  ;;  %v8825_v30 = vadd.f32 %v15980_v10, %v16321_v19 }
 0x9e9   : > { %v10215_v54 = vadd.f32 %v16041_v52, %v10214_v58  ;;  %v9134_v25 = vpop.f32.mrf.mxu0 }
 0x9ea   : > { %v9997_v63 = vmax.f32 %v9953_v4, 0.0  ;;  %v9198_v9 = vadd.f32 %v9134_v25, %v8820_v6 }
 0x9eb   : > { %10314 = vst [vmem:[%s16047_s27 + $0x80] sm:$0xff] %v10215_v54  ;;  %v9512_v50 = vpop.f32.mrf.mxu1 }
 0x9ec   : > { %v9576_v43 = vadd.f32 %v9512_v50, %v9198_v9  ;;  %v16322_v9 = vld [vmem:[#allocation13_spill] sm:$0xff] }
 0x9ed   : > { %11833 = vmatmul.msk.f32.gmra.mxu3 %vm10016_vm1, %v9997_v63  ;;  %v8826_v50 = vadd.f32 %v15991_v28, %v16322_v9 }
 0x9ef   : > { %v9890_v24 = vpop.f32.mrf.mxu2 }
 0x9f0   : > { %v9954_v18 = vadd.f32 %v9890_v24, %v9576_v43  ;;  %v10217_v21 = vpop.f32.mrf.mxu3 }
 0x9f1   : > { %v10218_v45 = vadd.f32 %v16041_v52, %v10217_v21  ;;  %v9137_v29 = vpop.f32.mrf.mxu0 }
 0x9f2   : > { %v9998_v53 = vmax.f32 %v9954_v18, 0.0  ;;  %v9199_v40 = vadd.f32 %v9137_v29, %v8821_v35 }
 0x9f3   : > { %10315 = vst [vmem:[%s16047_s27 + $0x88] sm:$0xff] %v10218_v45  ;;  %v9515_v60 = vpop.f32.mrf.mxu1 }
 0x9f4   : > { %v9577_v12 = vadd.f32 %v9515_v60, %v9199_v40 }
 0x9f5   : > { %11834 = vmatmul.msk.f32.gmra.mxu3 %vm10016_vm1, %v9998_v53  ;;  %v16323_v53 = vld [vmem:[#allocation14_spill] sm:$0xff] }
 0x9f6   : > { %v8827_v40 = vadd.f32 %v16003_v14, %v16323_v53 }
 0x9f7   : > { %v9893_v34 = vpop.f32.mrf.mxu2 }
 0x9f8   : > { %v9955_v20 = vadd.f32 %v9893_v34, %v9577_v12  ;;  %v10220_v26 = vpop.f32.mrf.mxu3 }
 0x9f9   : > { %v10221_v32 = vadd.f32 %v16041_v52, %v10220_v26  ;;  %v9140_v23 = vpop.f32.mrf.mxu0 }
 0x9fa   : > { %v9999_v22 = vmax.f32 %v9955_v20, 0.0  ;;  %v9200_v5 = vadd.f32 %v9140_v23, %v8822_v41  ;;  %v16324_v23 = vld [vmem:[#allocation15_spill] sm:$0xff] }
 0x9fb   : > { %10316 = vst [vmem:[%s16047_s27 + $0x90] sm:$0xff] %v10221_v32  ;;  %v9518_v3 = vpop.f32.mrf.mxu1 }
 0x9fc   : > { %v9578_v11 = vadd.f32 %v9518_v3, %v9200_v5 }
 0x9fd   : > { %11835 = vmatmul.msk.f32.gmra.mxu3 %vm10016_vm1, %v9999_v22  ;;  %v8828_v22 = vadd.f32 %v16017_v1, %v16324_v23 }
 0x9ff   : > { %v9896_v31 = vpop.f32.mrf.mxu2 }
 0xa00   : > { %v9956_v36 = vadd.f32 %v9896_v31, %v9578_v11  ;;  %v10223_v48 = vpop.f32.mrf.mxu3 }
 0xa01   : > { %v10224_v13 = vadd.f32 %v16041_v52, %v10223_v48  ;;  %v9143_v59 = vpop.f32.mrf.mxu0 }
 0xa02   : > { %v10000_v39 = vmax.f32 %v9956_v36, 0.0  ;;  %v9201_v17 = vadd.f32 %v9143_v59, %v8823_v42  ;;  %v16325_v59 = vld [vmem:[#allocation16_spill] sm:$0xff] }
 0xa03   : > { %10317 = vst [vmem:[%s16047_s27 + $0x98] sm:$0xff] %v10224_v13  ;;  %v9521_v27 = vpop.f32.mrf.mxu1 }
 0xa04   : > { %v9579_v62 = vadd.f32 %v9521_v27, %v9201_v17 }
 0xa05   : > { %11836 = vmatmul.msk.f32.gmra.mxu3 %vm10016_vm1, %v10000_v39  ;;  %v8829_v39 = vadd.f32 %v16028_v2, %v16325_v59 }
 0xa07   : > { %v9899_v16 = vpop.f32.mrf.mxu2 }
 0xa08   : > { %v9957_v55 = vadd.f32 %v9899_v16, %v9579_v62  ;;  %v10226_v33 = vpop.f32.mrf.mxu3 }
 0xa09   : > { %v10227_v0 = vadd.f32 %v16041_v52, %v10226_v33  ;;  %v9146_v57 = vpop.f32.mrf.mxu0 }
 0xa0a   : > { %v10001_v51 = vmax.f32 %v9957_v55, 0.0  ;;  %v9202_v8 = vadd.f32 %v9146_v57, %v8824_v61 }
 0xa0b   : > { %10318 = vst [vmem:[%s16047_s27 + $0xa0] sm:$0xff] %v10227_v0  ;;  %v9524_v49 = vpop.f32.mrf.mxu1 }
 0xa0c   : > { %v9580_v15 = vadd.f32 %v9524_v49, %v9202_v8 }
 0xa0d   : > { %11837 = vmatmul.msk.f32.gmra.mxu3 %vm10016_vm1, %v10001_v51 }
 0xa0f   : > { %v9902_v7 = vpop.f32.mrf.mxu2 }
 0xa10   : > { %v9958_v56 = vadd.f32 %v9902_v7, %v9580_v15  ;;  %v10229_v47 = vpop.f32.mrf.mxu3 }
 0xa11   : > { %v10230_v46 = vadd.f32 %v16041_v52, %v10229_v47  ;;  %v9149_v6 = vpop.f32.mrf.mxu0 }
 0xa12   : > { %v10002_v4 = vmax.f32 %v9958_v56, 0.0  ;;  %v9203_v58 = vadd.f32 %v9149_v6, %v8825_v30 }
 0xa13   : > { %10319 = vst [vmem:[%s16047_s27 + $0xa8] sm:$0xff] %v10230_v46  ;;  %v9527_v54 = vpop.f32.mrf.mxu1 }
 0xa14   : > { %v9581_v25 = vadd.f32 %v9527_v54, %v9203_v58 }
 0xa15   : > { %11838 = vmatmul.msk.f32.gmra.mxu3 %vm10016_vm1, %v10002_v4 }
 0xa17   : > { %v9905_v63 = vpop.f32.mrf.mxu2 }
 0xa18   : > { %v9959_v43 = vadd.f32 %v9905_v63, %v9581_v25  ;;  %v10232_v24 = vpop.f32.mrf.mxu3 }
 0xa19   : > { %v10233_v10 = vadd.f32 %v16041_v52, %v10232_v24  ;;  %v9152_v44 = vpop.f32.mrf.mxu0 }
 0xa1a   : > { %v10003_v35 = vmax.f32 %v9959_v43, 0.0  ;;  %v9204_v18 = vadd.f32 %v9152_v44, %v8826_v50 }
 0xa1b   : > { %10320 = vst [vmem:[%s16047_s27 + $0xb0] sm:$0xff] %v10233_v10  ;;  %v9530_v21 = vpop.f32.mrf.mxu1 }
 0xa1c   : > { %v9582_v45 = vadd.f32 %v9530_v21, %v9204_v18 }
 0xa1d   : > { %11839 = vmatmul.msk.f32.gmra.mxu3 %vm10016_vm1, %v10003_v35 }
 0xa1f   : > { %v9908_v29 = vpop.f32.mrf.mxu2 }
 0xa20   : > { %v9960_v60 = vadd.f32 %v9908_v29, %v9582_v45  ;;  %v10235_v12 = vpop.f32.mrf.mxu3 }
 0xa21   : > { %v10236_v28 = vadd.f32 %v16041_v52, %v10235_v12  ;;  %v9155_v34 = vpop.f32.mrf.mxu0 }
 0xa22   : > { %v10004_v38 = vmax.f32 %v9960_v60, 0.0  ;;  %v9205_v41 = vadd.f32 %v9155_v34, %v8827_v40 }
 0xa23   : > { %10321 = vst [vmem:[%s16047_s27 + $0xb8] sm:$0xff] %v10236_v28  ;;  %v9533_v20 = vpop.f32.mrf.mxu1 }
 0xa24   : > { %v9583_v26 = vadd.f32 %v9533_v20, %v9205_v41 }
 0xa25   : > { %11840 = vmatmul.msk.f32.gmra.mxu3 %vm10016_vm1, %v10004_v38 }
 0xa27   : > { %v9911_v32 = vpop.f32.mrf.mxu2 }
 0xa28   : > { %v9961_v5 = vadd.f32 %v9911_v32, %v9583_v26  ;;  %v10238_v3 = vpop.f32.mrf.mxu3 }
 0xa29   : > { %v10239_v14 = vadd.f32 %v16041_v52, %v10238_v3  ;;  %v9158_v11 = vpop.f32.mrf.mxu0 }
 0xa2a   : > { %v10005_v31 = vmax.f32 %v9961_v5, 0.0  ;;  %v9206_v42 = vadd.f32 %v9158_v11, %v8828_v22 }
 0xa2b   : > { %10322 = vst [vmem:[%s16047_s27 + $0xc0] sm:$0xff] %v10239_v14  ;;  %v9536_v36 = vpop.f32.mrf.mxu1 }
 0xa2c   : > { %v9584_v48 = vadd.f32 %v9536_v36, %v9206_v42 }
 0xa2d   : > { %11841 = vmatmul.msk.f32.gmra.mxu3 %vm10016_vm1, %v10005_v31 }
 0xa2f   : > { %v9914_v13 = vpop.f32.mrf.mxu2 }
 0xa30   : > { %v9962_v17 = vadd.f32 %v9914_v13, %v9584_v48  ;;  %v10241_v1 = vpop.f32.mrf.mxu3 }
 0xa31   : > { %v10242_v27 = vadd.f32 %v16041_v52, %v10241_v1  ;;  %v9161_v62 = vpop.f32.mrf.mxu0 }
 0xa32   : > { %v10006_v16 = vmax.f32 %v9962_v17, 0.0  ;;  %v9207_v37 = vadd.f32 %v9161_v62, %v8829_v39 }
 0xa33   : > { %10323 = vst [vmem:[%s16047_s27 + $0xc8] sm:$0xff] %v10242_v27  ;;  %v9539_v61 = vpop.f32.mrf.mxu1 }
 0xa34   : > { %v9585_v55 = vadd.f32 %v9539_v61, %v9207_v37 }
 0xa35   : > { %11842 = vmatmul.msk.f32.gmra.mxu3 %vm10016_vm1, %v10006_v16 }
 0xa37   : > { %v9917_v33 = vpop.f32.mrf.mxu2 }
 0xa38   : > { %v9963_v0 = vadd.f32 %v9917_v33, %v9585_v55  ;;  %v10244_v57 = vpop.f32.mrf.mxu3 }
 0xa39   : > { %v10245_v2 = vadd.f32 %v16041_v52, %v10244_v57 }
 0xa3a   : > { %v10007_v51 = vmax.f32 %v9963_v0, 0.0 }
 0xa3b   : > { %10324 = vst [vmem:[%s16047_s27 + $0xd0] sm:$0xff] %v10245_v2 }
 0xa3d   : > { %11843 = vmatmul.msk.f32.gmra.mxu3 %vm10016_vm1, %v10007_v51 }
 0xa40   : > { %v10247_v8 = vpop.f32.mrf.mxu3 }
 0xa41   : > { %v10248_v49 = vadd.f32 %v16041_v52, %v10247_v8 }
 0xa43   : > { %10325 = vst [vmem:[%s16047_s27 + $0xd8] sm:$0xff] %v10248_v49 }
 0xa48   : > { %v10250_v15 = vpop.f32.mrf.mxu3 }
 0xa49   : > { %v10251_v7 = vadd.f32 %v16041_v52, %v10250_v15 }
 0xa4b   : > { %10326 = vst [vmem:[%s16047_s27 + $0xe0] sm:$0xff] %v10251_v7 }
 0xa50   : > { %v10253_v19 = vpop.f32.mrf.mxu3 }
 0xa51   : > { %v10254_v30 = vadd.f32 %v16041_v52, %v10253_v19 }
 0xa53   : > { %10327 = vst [vmem:[%s16047_s27 + $0xe8] sm:$0xff] %v10254_v30 }
 0xa58   : > { %v10256_v56 = vpop.f32.mrf.mxu3 }
 0xa59   : > { %v10257_v47 = vadd.f32 %v16041_v52, %v10256_v56 }
 0xa5b   : > { %10328 = vst [vmem:[%s16047_s27 + $0xf0] sm:$0xff] %v10257_v47 }
 0xa60   : > { %v10259_v46 = vpop.f32.mrf.mxu3 }
 0xa61   : > { %v10260_v6 = vadd.f32 %v16041_v52, %v10259_v46 }
 0xa63   : > { %10329 = vst [vmem:[%s16047_s27 + $0xf8] sm:$0xff] %v10260_v6 }
 0xa68   : > { %v10262_v4 = vpop.f32.mrf.mxu3 }
 0xa69   : > { %v10263_v58 = vadd.f32 %v16041_v52, %v10262_v4 }
 0xa6b   : > { %10330 = vst [vmem:[%s16047_s27 + $0x100] sm:$0xff] %v10263_v58 }
 0xa70   : > { %v10265_v54 = vpop.f32.mrf.mxu3 }
 0xa71   : > { %v10266_v25 = vadd.f32 %v16041_v52, %v10265_v54 }
 0xa73   : > { %10331 = vst [vmem:[%s16047_s27 + $0x108] sm:$0xff] %v10266_v25 }
 0xa78   : > { %v10268_v63 = vpop.f32.mrf.mxu3 }
 0xa79   : > { %v10269_v9 = vadd.f32 %v16041_v52, %v10268_v63 }
 0xa7b   : > { %10332 = vst [vmem:[%s16047_s27 + $0x110] sm:$0xff] %v10269_v9 }
 0xa80   : > { %v10271_v50 = vpop.f32.mrf.mxu3 }
 0xa81   : > { %v10272_v43 = vadd.f32 %v16041_v52, %v10271_v50 }
 0xa83   : > { %10333 = vst [vmem:[%s16047_s27 + $0x118] sm:$0xff] %v10272_v43 }
 0xa88   : > { %v10274_v24 = vpop.f32.mrf.mxu3 }
 0xa89   : > { %v10275_v10 = vadd.f32 %v16041_v52, %v10274_v24 }
 0xa8b   : > { %10334 = vst [vmem:[%s16047_s27 + $0x120] sm:$0xff] %v10275_v10 }
 0xa90   : > { %v10277_v44 = vpop.f32.mrf.mxu3 }
 0xa91   : > { %v10278_v35 = vadd.f32 %v16041_v52, %v10277_v44 }
 0xa93   : > { %10335 = vst [vmem:[%s16047_s27 + $0x128] sm:$0xff] %v10278_v35 }
 0xa98   : > { %v10280_v18 = vpop.f32.mrf.mxu3 }
 0xa99   : > { %v10281_v21 = vadd.f32 %v16041_v52, %v10280_v18 }
 0xa9b   : > { %10336 = vst [vmem:[%s16047_s27 + $0x130] sm:$0xff] %v10281_v21 }
 0xaa0   : > { %v10283_v45 = vpop.f32.mrf.mxu3 }
 0xaa1   : > { %v10284_v29 = vadd.f32 %v16041_v52, %v10283_v45 }
 0xaa3   : > { %10337 = vst [vmem:[%s16047_s27 + $0x138] sm:$0xff] %v10284_v29 }
 0xaa8   : > { %v10286_v53 = vpop.f32.mrf.mxu3 }
 0xaa9   : > { %v10287_v40 = vadd.f32 %v16041_v52, %v10286_v53 }
 0xaab   : > { %10338 = vst [vmem:[%s16047_s27 + $0x140] sm:$0xff] %v10287_v40 }
 0xab0   : > { %v10289_v60 = vpop.f32.mrf.mxu3 }
 0xab1   : > { %v10290_v12 = vadd.f32 %v16041_v52, %v10289_v60 }
 0xab3   : > { %10339 = vst [vmem:[%s16047_s27 + $0x148] sm:$0xff] %v10290_v12 }
 0xab8   : > { %v10292_v28 = vpop.f32.mrf.mxu3 }
 0xab9   : > { %v10293_v34 = vadd.f32 %v16041_v52, %v10292_v28 }
 0xabb   : > { %10340 = vst [vmem:[%s16047_s27 + $0x150] sm:$0xff] %v10293_v34 }
 0xac0   : > { %v10295_v38 = vpop.f32.mrf.mxu3 }
 0xac1   : > { %v10296_v41 = vadd.f32 %v16041_v52, %v10295_v38 }
 0xac3   : > { %10341 = vst [vmem:[%s16047_s27 + $0x158] sm:$0xff] %v10296_v41 }
 0xac4 PF: > { %s14_s15 = sadd.s32 1, %s11951_s15  }
 0xac5   : > { %p11_p4 = scmp.ge.s32.totalorder %s14_s15, 4  }
 0xac7   :  { %13 = sbr.rel (!%p11_p4) target bundleno = 1 (0x1), region = 92 }

</bundles_post_ra>
